<compile_context>
chip_gen: v7x
topology: tpu7x:2x2x1
jax: 0.10.0
libtpu: 0.0.40
codegen_flags: <defaults>
</compile_context>

<pallas_src>
import jax
import jax.numpy as jnp
from jax.experimental import pallas as pl
from jax.experimental.pallas import tpu as pltpu


def _round_up(v, m):
    return ((v + m - 1) // m) * m


def get_padding(kernel_size, dilation=1):
    return (kernel_size * dilation - dilation) // 2


# ----------------------------------------------------------------------------
# Fused ResBlock layer kernel:
#   BatchNorm1d (train-mode stats) -> [conditional gamma/beta affine] -> ReLU
#   -> dilated Conv1d -> [+ residual] -> [* 1/num_kernels] -> [+ accumulator]
# ----------------------------------------------------------------------------

def _make_resblock_layer_kernel(*, B, C, L, K, dilation, pad, c_pad, eps,
                                use_cbn, M, Lc, Kg, pad_g, m_pad,
                                add_residual, add_accum, inv_scale):
    def kernel(*refs):
        it = iter(refs)
        x_ref = next(it)
        bn_w_ref = next(it)
        bn_b_ref = next(it)
        if use_cbn:
            c_ref = next(it)
            gbw_ref = next(it)
            gbb_ref = next(it)
        w_ref = next(it)
        b_ref = next(it)
        res_ref = next(it) if add_residual else None
        acc_ref = next(it) if add_accum else None
        o_ref = next(it)
        op_ref = next(it)
        gop_ref = next(it) if use_cbn else None

        # ---- BatchNorm1d statistics over (batch, length), biased variance ----
        xs = [x_ref[b] for b in range(B)]                       # B x (C, L)
        s1 = xs[0]
        s2 = xs[0] * xs[0]
        for b in range(1, B):
            s1 = s1 + xs[b]
            s2 = s2 + xs[b] * xs[b]
        inv_n = 1.0 / float(B * L)
        mean = jnp.sum(s1, axis=1, keepdims=True) * inv_n       # (C, 1)
        var = jnp.sum(s2, axis=1, keepdims=True) * inv_n - mean * mean
        inv_std = jax.lax.rsqrt(var + eps)
        scale = bn_w_ref[...] * inv_std                         # (C, 1)
        shift = bn_b_ref[...] - mean * scale                    # (C, 1)

        # ---- conditional gamma/beta: ONE stacked conv over the mora signal ----
        if use_cbn:
            gop_ref[...] = jnp.zeros_like(gop_ref)
            lc_eff = min(Lc, L)            # F.pad(c, (0, L - Lc)) pads or crops
            for b in range(B):
                cb = c_ref[b]                                   # (M, Lc)
                for t in range(Kg):
                    off = t - pad_g
                    lo = max(0, -off)
                    hi = min(L, lc_eff - off)
                    if hi > lo:
                        gop_ref[t * m_pad: t * m_pad + M,
                                b * L + lo: b * L + hi] = cb[:, lo + off: hi + off]
            gb = jnp.dot(gbw_ref[...], gop_ref[...],
                         preferred_element_type=jnp.float32) + gbb_ref[...]   # (2C, B*L)

        # ---- normalize + affine + ReLU; build (K*C, B*L) im2col operand -------
        op_ref[...] = jnp.zeros_like(op_ref)
        for b in range(B):
            y = xs[b] * scale + shift                           # (C, L)
            if use_cbn:
                y = gb[:C, b * L:(b + 1) * L] * y + gb[C:2 * C, b * L:(b + 1) * L]
            y = jnp.maximum(y, 0.0)
            for t in range(K):
                off = t * dilation - pad
                lo = max(0, -off)
                hi = min(L, L - off)
                if hi > lo:
                    op_ref[t * c_pad: t * c_pad + C,
                           b * L + lo: b * L + hi] = y[:, lo + off: hi + off]

        # ---- single MXU contraction over K taps for the whole batch -----------
        out = jnp.dot(w_ref[...], op_ref[...],
                      preferred_element_type=jnp.float32) + b_ref[...]        # (C, B*L)

        # ---- fused epilogue ----------------------------------------------------
        for b in range(B):
            blk = out[:, b * L:(b + 1) * L]
            if add_residual:
                blk = blk + res_ref[b]
            if inv_scale != 1.0:
                blk = blk * inv_scale
            if add_accum:
                blk = blk + acc_ref[b]
            o_ref[b] = blk

    return kernel


def resblock_layer(x, lp, *, kernel_size, dilation, pc=None,
                   residual=None, accum=None, inv_scale=1.0, eps=1e-5):
    B, C, L = x.shape
    K = kernel_size
    pad = get_padding(K, dilation)
    c_pad = _round_up(C, 8)
    use_cbn = pc is not None

    inputs = [x, lp["bn_w"], lp["bn_b"]]
    if use_cbn:
        M, Lc = pc.shape[1], pc.shape[2]
        m_pad = _round_up(M, 8)
        Kg = lp["gb_w"].shape[1] // m_pad
        pad_g = (Kg - 1) // 2
        inputs += [pc, lp["gb_w"], lp["gb_b"]]
    else:
        M = Lc = Kg = pad_g = m_pad = 0
    inputs += [lp["conv_w"], lp["conv_b"]]
    add_residual = residual is not None
    add_accum = accum is not None
    if add_residual:
        inputs.append(residual)
    if add_accum:
        inputs.append(accum)

    scratch = [pltpu.VMEM((K * c_pad, B * L), jnp.float32)]
    if use_cbn:
        scratch.append(pltpu.VMEM((Kg * m_pad, B * L), jnp.float32))

    kernel = _make_resblock_layer_kernel(
        B=B, C=C, L=L, K=K, dilation=dilation, pad=pad, c_pad=c_pad, eps=eps,
        use_cbn=use_cbn, M=M, Lc=Lc, Kg=Kg, pad_g=pad_g, m_pad=m_pad,
        add_residual=add_residual, add_accum=add_accum, inv_scale=inv_scale)

    return pl.pallas_call(
        kernel,
        out_shape=jax.ShapeDtypeStruct((B, C, L), jnp.float32),
        scratch_shapes=scratch,
    )(*inputs)


# ----------------------------------------------------------------------------
# Fused (ReLU +) ConvTranspose1d: zero-insertion + padding in VMEM scratch,
# single stacked-tap MXU matmul with batch folded into lanes.
# ----------------------------------------------------------------------------

def _make_upsample_kernel(*, B, Cin, Cout, L, K, stride, pad_conv, Lout, c_pad,
                          apply_relu):
    def kernel(x_ref, w_ref, b_ref, o_ref, zp_ref, op_ref):
        # zero-inserted, conv-padded copy of the (relu'd) input, built in VMEM
        zp_ref[...] = jnp.zeros_like(zp_ref)
        for b in range(B):
            xb = x_ref[b]                                       # (Cin, L)
            if apply_relu:
                xb = jnp.maximum(xb, 0.0)
            for i in range(L):
                q = pad_conv + stride * i
                zp_ref[b, :, q:q + 1] = xb[:, i:i + 1]
        # im2col operand (K*Cin, B*Lout)
        op_ref[...] = jnp.zeros_like(op_ref)
        for b in range(B):
            for t in range(K):
                op_ref[t * c_pad: t * c_pad + Cin,
                       b * Lout:(b + 1) * Lout] = zp_ref[b, :, t:t + Lout]
        out = jnp.dot(w_ref[...], op_ref[...],
                      preferred_element_type=jnp.float32) + b_ref[...]        # (Cout, B*Lout)
        for b in range(B):
            o_ref[b] = out[:, b * Lout:(b + 1) * Lout]

    return kernel


def conv_transpose1d(x, up, *, stride, kernel_size, padding, apply_relu):
    B, Cin, L = x.shape
    K = kernel_size
    Cout = up["b"].shape[0]
    c_pad = _round_up(Cin, 8)
    pad_conv = K - 1 - padding
    Lout = (L - 1) * stride + K - 2 * padding
    Lzp = (L - 1) * stride + 1 + 2 * pad_conv
    kernel = _make_upsample_kernel(B=B, Cin=Cin, Cout=Cout, L=L, K=K,
                                   stride=stride, pad_conv=pad_conv, Lout=Lout,
                                   c_pad=c_pad, apply_relu=apply_relu)
    return pl.pallas_call(
        kernel,
        out_shape=jax.ShapeDtypeStruct((B, Cout, Lout), jnp.float32),
        scratch_shapes=[
            pltpu.VMEM((B, Cin, Lzp), jnp.float32),
            pltpu.VMEM((K * c_pad, B * Lout), jnp.float32),
        ],
    )(x, up["w"], up["b"])


# ----------------------------------------------------------------------------
# Module forward (pallas_calls only inside the jit)
# ----------------------------------------------------------------------------

def generator_unit(x, moras, pp, h):
    num_kernels = len(h["resblock_kernel_sizes"])
    num_upsamples = len(h["upsample_rates"])
    inv_nk = 1.0 / num_kernels
    for i in range(num_upsamples):
        u = h["upsample_rates"][i]
        k = h["upsample_kernel_sizes"][i]
        # F.relu (for i>0) fused into the conv-transpose kernel
        x = conv_transpose1d(x, pp["ups"][i], stride=u, kernel_size=k,
                             padding=(k - u) // 2, apply_relu=(i > 0))
        use_cbn = h["conditional_norms"][i]
        pc = moras[i] if (use_cbn and i < len(moras)) else None
        acc = None
        for j in range(num_kernels):
            rp = pp["resblocks"][i * num_kernels + j]
            ks = h["resblock_kernel_sizes"][j]
            d = h["resblock_dilation_sizes"][j]
            # layer 1: norm + relu + conv
            xt = resblock_layer(x, rp["layers"][0], kernel_size=ks,
                                dilation=d[0], pc=pc)
            # layer 2: norm + relu + conv + residual + 1/num_kernels + accumulate
            acc = resblock_layer(xt, rp["layers"][1], kernel_size=ks,
                                 dilation=d[1], pc=pc,
                                 residual=x, accum=acc, inv_scale=inv_nk)
        x = acc
    return x


# ----------------------------------------------------------------------------
# One-time parameter layout preparation (outside the jitted forward)
# ----------------------------------------------------------------------------

def _flatten_conv_weight(w, cin_pad):
    """(Cout, Cin, K) conv weight -> (Cout, K*cin_pad) matmul weight whose column
    index is t*cin_pad + cin, matching the in-kernel im2col operand rows."""
    Cout, Cin, K = w.shape
    wt = jnp.transpose(w, (0, 2, 1))                            # (Cout, K, Cin)
    if cin_pad != Cin:
        wt = jnp.pad(wt, ((0, 0), (0, 0), (0, cin_pad - Cin)))
    return wt.reshape(Cout, K * cin_pad)


def prepare_params(params, h):
    pp = {"ups": [], "resblocks": []}
    for i in range(len(h["upsample_rates"])):
        w = params["ups"][i]["w"]                               # (Cin, Cout, K)
        b = params["ups"][i]["b"]
        Cin, Cout, K = w.shape
        # conv-transpose == conv on zero-inserted input with flipped kernel
        w_conv = jnp.flip(jnp.transpose(w, (1, 0, 2)), axis=2)  # (Cout, Cin, K)
        pp["ups"].append({"w": _flatten_conv_weight(w_conv, _round_up(Cin, 8)),
                          "b": b.reshape(Cout, 1)})
    for rb in params["resblocks"]:
        layers = []
        for li in range(2):
            cw = rb["convs"][li]["w"]                           # (C, C, Kr)
            C = cw.shape[0]
            layer = {
                "bn_w": rb["norms"][li]["bn_w"].reshape(C, 1),
                "bn_b": rb["norms"][li]["bn_b"].reshape(C, 1),
                "conv_w": _flatten_conv_weight(cw, _round_up(C, 8)),
                "conv_b": rb["convs"][li]["b"].reshape(C, 1),
            }
            if "gamma_w" in rb["norms"][li]:
                gw = rb["norms"][li]["gamma_w"]                 # (C, M, 7)
                bw = rb["norms"][li]["beta_w"]
                M = gw.shape[1]
                gbw = jnp.concatenate([gw, bw], axis=0)         # (2C, M, 7)
                layer["gb_w"] = _flatten_conv_weight(gbw, _round_up(M, 8))
                layer["gb_b"] = jnp.concatenate(
                    [rb["norms"][li]["gamma_b"],
                     rb["norms"][li]["beta_b"]]).reshape(2 * C, 1)
            layers.append(layer)
        pp["resblocks"].append({"layers": layers})
    return pp


# ----------------------------------------------------------------------------
# Deterministic synthetic parameter initialization (mirrors module shapes)
# ----------------------------------------------------------------------------

def init_params(key, h, n_moras):
    std = 0.01  # init_weights: conv weights ~ N(0, 0.01)

    def nrm(k, shape):
        return std * jax.random.normal(k, shape, jnp.float32)

    keys = iter(jax.random.split(key, 4096))
    params = {"ups": [], "resblocks": []}
    in_ch = h["in_channels"]

    for i, (u, k) in enumerate(zip(h["upsample_rates"], h["upsample_kernel_sizes"])):
        cin = in_ch // 2 ** i
        cout = in_ch // 2 ** (i + 1)
        params["ups"].append({"w": nrm(next(keys), (cin, cout, k)),   # ConvT weight (Cin,Cout,K)
                              "b": nrm(next(keys), (cout,))})

    for i in range(len(h["upsample_rates"])):
        ch = in_ch // 2 ** (i + 1)
        use_cbn = h["conditional_norms"][i]
        for rk in h["resblock_kernel_sizes"]:
            convs, norms = [], []
            for _ in range(2):
                convs.append({"w": nrm(next(keys), (ch, ch, rk)),
                              "b": nrm(next(keys), (ch,))})
                norm = {"bn_w": jnp.ones((ch,), jnp.float32),
                        "bn_b": jnp.zeros((ch,), jnp.float32)}
                if use_cbn:
                    norm.update({"gamma_w": nrm(next(keys), (ch, n_moras, 7)),
                                 "gamma_b": nrm(next(keys), (ch,)),
                                 "beta_w": nrm(next(keys), (ch, n_moras, 7)),
                                 "beta_b": nrm(next(keys), (ch,))})
                norms.append(norm)
            params["resblocks"].append({"convs": convs, "norms": norms})
    return params


# ----------------------------------------------------------------------------

if __name__ == "__main__":
    # small synthetic config (the "h" hyperparameter object of GeneratorUnit)
    h = dict(
        in_channels=32,
        upsample_rates=[2, 2],
        upsample_kernel_sizes=[4, 4],
        resblock_kernel_sizes=[3, 5],
        resblock_dilation_sizes=[[1, 3], [1, 3]],
        conditional_norms=[True, False],
    )
    n_phoneme_types = 4  # n_moras

    key = jax.random.PRNGKey(0)
    kp, kx, km = jax.random.split(key, 3)

    params = init_params(kp, h, n_phoneme_types)
    pp = prepare_params(params, h)   # one-time weight layout prep (not in hot path)

    B, L0 = 2, 8
    x = jax.random.normal(kx, (B, h["in_channels"], L0), jnp.float32)
    moras = [jax.random.normal(km, (B, n_phoneme_types, 8), jnp.float32)]

    fwd = jax.jit(lambda x, moras, pp: generator_unit(x, moras, pp, h))
    out = jax.block_until_ready(fwd(x, moras, pp))

    expected_shape = (B, h["in_channels"] // 4, L0 * 4)  # (2, 8, 32)
    assert out.shape == expected_shape, out.shape
    assert bool(jnp.isfinite(out).all())
    print("KERNEL_OK")
</pallas_src>

<mosaic_0001>
module attributes {stable_mosaic.version = 11 : i64} {
  func.func @kernel(%arg0: memref<2x32x8xf32, #tpu.memory_space<vmem>>, %arg1: memref<16x128xf32, #tpu.memory_space<vmem>>, %arg2: memref<16x1xf32, #tpu.memory_space<vmem>>, %arg3: memref<2x16x16xf32, #tpu.memory_space<vmem>>, %arg4: memref<2x32x19xf32, #tpu.memory_space<vmem>>, %arg5: memref<128x32xf32, #tpu.memory_space<vmem>>) attributes {dimension_semantics = [], scalar_prefetch = 0 : i64, scratch_operands = 2 : i64, tpu.core_type = #tpu.core_type<tc>} {
    %cst = arith.constant 0.000000e+00 : f32
    %0 = vector.broadcast %cst : f32 to vector<2x32x19xf32>
    %c0 = arith.constant 0 : index
    %c0_0 = arith.constant 0 : index
    %c0_1 = arith.constant 0 : index
    %1 = vector.load %arg4[%c0, %c0_0, %c0_1] : memref<2x32x19xf32, #tpu.memory_space<vmem>>, vector<2x32x19xf32>
    tpu.vector_store %arg4[%c0, %c0_0, %c0_1], %0 {strides = array<i32>} : memref<2x32x19xf32, #tpu.memory_space<vmem>>, vector<2x32x19xf32>,
    %c0_2 = arith.constant 0 : index
    %c0_3 = arith.constant 0 : index
    %c0_4 = arith.constant 0 : index
    %2 = vector.load %arg0[%c0_2, %c0_3, %c0_4] : memref<2x32x8xf32, #tpu.memory_space<vmem>>, vector<1x32x8xf32>
    %3 = vector.shape_cast %2 : vector<1x32x8xf32> to vector<32x8xf32>
    %4 = vector.extract_strided_slice %3 {offsets = [0, 0], sizes = [32, 1], strides = [1, 1]} : vector<32x8xf32> to vector<32x1xf32>
    %c0_5 = arith.constant 0 : index
    %c0_6 = arith.constant 0 : index
    %c2 = arith.constant 2 : index
    %5 = vector.load %arg4[%c0_5, %c0_6, %c2] : memref<2x32x19xf32, #tpu.memory_space<vmem>>, vector<1x32x1xf32>
    %6 = vector.shape_cast %5 : vector<1x32x1xf32> to vector<32x1xf32>
    %7 = vector.shape_cast %4 : vector<32x1xf32> to vector<1x32x1xf32>
    tpu.vector_store %arg4[%c0_5, %c0_6, %c2], %7 {strides = array<i32>} : memref<2x32x19xf32, #tpu.memory_space<vmem>>, vector<1x32x1xf32>,
    %8 = vector.extract_strided_slice %3 {offsets = [0, 1], sizes = [32, 1], strides = [1, 1]} : vector<32x8xf32> to vector<32x1xf32>
    %c0_7 = arith.constant 0 : index
    %c0_8 = arith.constant 0 : index
    %c4 = arith.constant 4 : index
    %9 = vector.load %arg4[%c0_7, %c0_8, %c4] : memref<2x32x19xf32, #tpu.memory_space<vmem>>, vector<1x32x1xf32>
    %10 = vector.shape_cast %9 : vector<1x32x1xf32> to vector<32x1xf32>
    %11 = vector.shape_cast %8 : vector<32x1xf32> to vector<1x32x1xf32>
    tpu.vector_store %arg4[%c0_7, %c0_8, %c4], %11 {strides = array<i32>} : memref<2x32x19xf32, #tpu.memory_space<vmem>>, vector<1x32x1xf32>,
    %12 = vector.extract_strided_slice %3 {offsets = [0, 2], sizes = [32, 1], strides = [1, 1]} : vector<32x8xf32> to vector<32x1xf32>
    %c0_9 = arith.constant 0 : index
    %c0_10 = arith.constant 0 : index
    %c6 = arith.constant 6 : index
    %13 = vector.load %arg4[%c0_9, %c0_10, %c6] : memref<2x32x19xf32, #tpu.memory_space<vmem>>, vector<1x32x1xf32>
    %14 = vector.shape_cast %13 : vector<1x32x1xf32> to vector<32x1xf32>
    %15 = vector.shape_cast %12 : vector<32x1xf32> to vector<1x32x1xf32>
    tpu.vector_store %arg4[%c0_9, %c0_10, %c6], %15 {strides = array<i32>} : memref<2x32x19xf32, #tpu.memory_space<vmem>>, vector<1x32x1xf32>,
    %16 = vector.extract_strided_slice %3 {offsets = [0, 3], sizes = [32, 1], strides = [1, 1]} : vector<32x8xf32> to vector<32x1xf32>
    %c0_11 = arith.constant 0 : index
    %c0_12 = arith.constant 0 : index
    %c8 = arith.constant 8 : index
    %17 = vector.load %arg4[%c0_11, %c0_12, %c8] : memref<2x32x19xf32, #tpu.memory_space<vmem>>, vector<1x32x1xf32>
    %18 = vector.shape_cast %17 : vector<1x32x1xf32> to vector<32x1xf32>
    %19 = vector.shape_cast %16 : vector<32x1xf32> to vector<1x32x1xf32>
    tpu.vector_store %arg4[%c0_11, %c0_12, %c8], %19 {strides = array<i32>} : memref<2x32x19xf32, #tpu.memory_space<vmem>>, vector<1x32x1xf32>,
    %20 = vector.extract_strided_slice %3 {offsets = [0, 4], sizes = [32, 1], strides = [1, 1]} : vector<32x8xf32> to vector<32x1xf32>
    %c0_13 = arith.constant 0 : index
    %c0_14 = arith.constant 0 : index
    %c10 = arith.constant 10 : index
    %21 = vector.load %arg4[%c0_13, %c0_14, %c10] : memref<2x32x19xf32, #tpu.memory_space<vmem>>, vector<1x32x1xf32>
    %22 = vector.shape_cast %21 : vector<1x32x1xf32> to vector<32x1xf32>
    %23 = vector.shape_cast %20 : vector<32x1xf32> to vector<1x32x1xf32>
    tpu.vector_store %arg4[%c0_13, %c0_14, %c10], %23 {strides = array<i32>} : memref<2x32x19xf32, #tpu.memory_space<vmem>>, vector<1x32x1xf32>,
    %24 = vector.extract_strided_slice %3 {offsets = [0, 5], sizes = [32, 1], strides = [1, 1]} : vector<32x8xf32> to vector<32x1xf32>
    %c0_15 = arith.constant 0 : index
    %c0_16 = arith.constant 0 : index
    %c12 = arith.constant 12 : index
    %25 = vector.load %arg4[%c0_15, %c0_16, %c12] : memref<2x32x19xf32, #tpu.memory_space<vmem>>, vector<1x32x1xf32>
    %26 = vector.shape_cast %25 : vector<1x32x1xf32> to vector<32x1xf32>
    %27 = vector.shape_cast %24 : vector<32x1xf32> to vector<1x32x1xf32>
    tpu.vector_store %arg4[%c0_15, %c0_16, %c12], %27 {strides = array<i32>} : memref<2x32x19xf32, #tpu.memory_space<vmem>>, vector<1x32x1xf32>,
    %28 = vector.extract_strided_slice %3 {offsets = [0, 6], sizes = [32, 1], strides = [1, 1]} : vector<32x8xf32> to vector<32x1xf32>
    %c0_17 = arith.constant 0 : index
    %c0_18 = arith.constant 0 : index
    %c14 = arith.constant 14 : index
    %29 = vector.load %arg4[%c0_17, %c0_18, %c14] : memref<2x32x19xf32, #tpu.memory_space<vmem>>, vector<1x32x1xf32>
    %30 = vector.shape_cast %29 : vector<1x32x1xf32> to vector<32x1xf32>
    %31 = vector.shape_cast %28 : vector<32x1xf32> to vector<1x32x1xf32>
    tpu.vector_store %arg4[%c0_17, %c0_18, %c14], %31 {strides = array<i32>} : memref<2x32x19xf32, #tpu.memory_space<vmem>>, vector<1x32x1xf32>,
    %32 = vector.extract_strided_slice %3 {offsets = [0, 7], sizes = [32, 1], strides = [1, 1]} : vector<32x8xf32> to vector<32x1xf32>
    %c0_19 = arith.constant 0 : index
    %c0_20 = arith.constant 0 : index
    %c16 = arith.constant 16 : index
    %33 = vector.load %arg4[%c0_19, %c0_20, %c16] : memref<2x32x19xf32, #tpu.memory_space<vmem>>, vector<1x32x1xf32>
    %34 = vector.shape_cast %33 : vector<1x32x1xf32> to vector<32x1xf32>
    %35 = vector.shape_cast %32 : vector<32x1xf32> to vector<1x32x1xf32>
    tpu.vector_store %arg4[%c0_19, %c0_20, %c16], %35 {strides = array<i32>} : memref<2x32x19xf32, #tpu.memory_space<vmem>>, vector<1x32x1xf32>,
    %c1 = arith.constant 1 : index
    %c0_21 = arith.constant 0 : index
    %c0_22 = arith.constant 0 : index
    %36 = vector.load %arg0[%c1, %c0_21, %c0_22] : memref<2x32x8xf32, #tpu.memory_space<vmem>>, vector<1x32x8xf32>
    %37 = vector.shape_cast %36 : vector<1x32x8xf32> to vector<32x8xf32>
    %38 = vector.extract_strided_slice %37 {offsets = [0, 0], sizes = [32, 1], strides = [1, 1]} : vector<32x8xf32> to vector<32x1xf32>
    %c1_23 = arith.constant 1 : index
    %c0_24 = arith.constant 0 : index
    %c2_25 = arith.constant 2 : index
    %39 = vector.load %arg4[%c1_23, %c0_24, %c2_25] : memref<2x32x19xf32, #tpu.memory_space<vmem>>, vector<1x32x1xf32>
    %40 = vector.shape_cast %39 : vector<1x32x1xf32> to vector<32x1xf32>
    %41 = vector.shape_cast %38 : vector<32x1xf32> to vector<1x32x1xf32>
    tpu.vector_store %arg4[%c1_23, %c0_24, %c2_25], %41 {strides = array<i32>} : memref<2x32x19xf32, #tpu.memory_space<vmem>>, vector<1x32x1xf32>,
    %42 = vector.extract_strided_slice %37 {offsets = [0, 1], sizes = [32, 1], strides = [1, 1]} : vector<32x8xf32> to vector<32x1xf32>
    %c1_26 = arith.constant 1 : index
    %c0_27 = arith.constant 0 : index
    %c4_28 = arith.constant 4 : index
    %43 = vector.load %arg4[%c1_26, %c0_27, %c4_28] : memref<2x32x19xf32, #tpu.memory_space<vmem>>, vector<1x32x1xf32>
    %44 = vector.shape_cast %43 : vector<1x32x1xf32> to vector<32x1xf32>
    %45 = vector.shape_cast %42 : vector<32x1xf32> to vector<1x32x1xf32>
    tpu.vector_store %arg4[%c1_26, %c0_27, %c4_28], %45 {strides = array<i32>} : memref<2x32x19xf32, #tpu.memory_space<vmem>>, vector<1x32x1xf32>,
    %46 = vector.extract_strided_slice %37 {offsets = [0, 2], sizes = [32, 1], strides = [1, 1]} : vector<32x8xf32> to vector<32x1xf32>
    %c1_29 = arith.constant 1 : index
    %c0_30 = arith.constant 0 : index
    %c6_31 = arith.constant 6 : index
    %47 = vector.load %arg4[%c1_29, %c0_30, %c6_31] : memref<2x32x19xf32, #tpu.memory_space<vmem>>, vector<1x32x1xf32>
    %48 = vector.shape_cast %47 : vector<1x32x1xf32> to vector<32x1xf32>
    %49 = vector.shape_cast %46 : vector<32x1xf32> to vector<1x32x1xf32>
    tpu.vector_store %arg4[%c1_29, %c0_30, %c6_31], %49 {strides = array<i32>} : memref<2x32x19xf32, #tpu.memory_space<vmem>>, vector<1x32x1xf32>,
    %50 = vector.extract_strided_slice %37 {offsets = [0, 3], sizes = [32, 1], strides = [1, 1]} : vector<32x8xf32> to vector<32x1xf32>
    %c1_32 = arith.constant 1 : index
    %c0_33 = arith.constant 0 : index
    %c8_34 = arith.constant 8 : index
    %51 = vector.load %arg4[%c1_32, %c0_33, %c8_34] : memref<2x32x19xf32, #tpu.memory_space<vmem>>, vector<1x32x1xf32>
    %52 = vector.shape_cast %51 : vector<1x32x1xf32> to vector<32x1xf32>
    %53 = vector.shape_cast %50 : vector<32x1xf32> to vector<1x32x1xf32>
    tpu.vector_store %arg4[%c1_32, %c0_33, %c8_34], %53 {strides = array<i32>} : memref<2x32x19xf32, #tpu.memory_space<vmem>>, vector<1x32x1xf32>,
    %54 = vector.extract_strided_slice %37 {offsets = [0, 4], sizes = [32, 1], strides = [1, 1]} : vector<32x8xf32> to vector<32x1xf32>
    %c1_35 = arith.constant 1 : index
    %c0_36 = arith.constant 0 : index
    %c10_37 = arith.constant 10 : index
    %55 = vector.load %arg4[%c1_35, %c0_36, %c10_37] : memref<2x32x19xf32, #tpu.memory_space<vmem>>, vector<1x32x1xf32>
    %56 = vector.shape_cast %55 : vector<1x32x1xf32> to vector<32x1xf32>
    %57 = vector.shape_cast %54 : vector<32x1xf32> to vector<1x32x1xf32>
    tpu.vector_store %arg4[%c1_35, %c0_36, %c10_37], %57 {strides = array<i32>} : memref<2x32x19xf32, #tpu.memory_space<vmem>>, vector<1x32x1xf32>,
    %58 = vector.extract_strided_slice %37 {offsets = [0, 5], sizes = [32, 1], strides = [1, 1]} : vector<32x8xf32> to vector<32x1xf32>
    %c1_38 = arith.constant 1 : index
    %c0_39 = arith.constant 0 : index
    %c12_40 = arith.constant 12 : index
    %59 = vector.load %arg4[%c1_38, %c0_39, %c12_40] : memref<2x32x19xf32, #tpu.memory_space<vmem>>, vector<1x32x1xf32>
    %60 = vector.shape_cast %59 : vector<1x32x1xf32> to vector<32x1xf32>
    %61 = vector.shape_cast %58 : vector<32x1xf32> to vector<1x32x1xf32>
    tpu.vector_store %arg4[%c1_38, %c0_39, %c12_40], %61 {strides = array<i32>} : memref<2x32x19xf32, #tpu.memory_space<vmem>>, vector<1x32x1xf32>,
    %62 = vector.extract_strided_slice %37 {offsets = [0, 6], sizes = [32, 1], strides = [1, 1]} : vector<32x8xf32> to vector<32x1xf32>
    %c1_41 = arith.constant 1 : index
    %c0_42 = arith.constant 0 : index
    %c14_43 = arith.constant 14 : index
    %63 = vector.load %arg4[%c1_41, %c0_42, %c14_43] : memref<2x32x19xf32, #tpu.memory_space<vmem>>, vector<1x32x1xf32>
    %64 = vector.shape_cast %63 : vector<1x32x1xf32> to vector<32x1xf32>
    %65 = vector.shape_cast %62 : vector<32x1xf32> to vector<1x32x1xf32>
    tpu.vector_store %arg4[%c1_41, %c0_42, %c14_43], %65 {strides = array<i32>} : memref<2x32x19xf32, #tpu.memory_space<vmem>>, vector<1x32x1xf32>,
    %66 = vector.extract_strided_slice %37 {offsets = [0, 7], sizes = [32, 1], strides = [1, 1]} : vector<32x8xf32> to vector<32x1xf32>
    %c1_44 = arith.constant 1 : index
    %c0_45 = arith.constant 0 : index
    %c16_46 = arith.constant 16 : index
    %67 = vector.load %arg4[%c1_44, %c0_45, %c16_46] : memref<2x32x19xf32, #tpu.memory_space<vmem>>, vector<1x32x1xf32>
    %68 = vector.shape_cast %67 : vector<1x32x1xf32> to vector<32x1xf32>
    %69 = vector.shape_cast %66 : vector<32x1xf32> to vector<1x32x1xf32>
    tpu.vector_store %arg4[%c1_44, %c0_45, %c16_46], %69 {strides = array<i32>} : memref<2x32x19xf32, #tpu.memory_space<vmem>>, vector<1x32x1xf32>,
    %cst_47 = arith.constant 0.000000e+00 : f32
    %70 = vector.broadcast %cst_47 : f32 to vector<128x32xf32>
    %c0_48 = arith.constant 0 : index
    %c0_49 = arith.constant 0 : index
    %71 = vector.load %arg5[%c0_48, %c0_49] : memref<128x32xf32, #tpu.memory_space<vmem>>, vector<128x32xf32>
    tpu.vector_store %arg5[%c0_48, %c0_49], %70 {strides = array<i32>} : memref<128x32xf32, #tpu.memory_space<vmem>>, vector<128x32xf32>,
    %c0_50 = arith.constant 0 : index
    %c0_51 = arith.constant 0 : index
    %c0_52 = arith.constant 0 : index
    %72 = vector.load %arg4[%c0_50, %c0_51, %c0_52] : memref<2x32x19xf32, #tpu.memory_space<vmem>>, vector<1x32x16xf32>
    %73 = vector.shape_cast %72 : vector<1x32x16xf32> to vector<32x16xf32>
    %c0_53 = arith.constant 0 : index
    %c0_54 = arith.constant 0 : index
    %74 = vector.load %arg5[%c0_53, %c0_54] : memref<128x32xf32, #tpu.memory_space<vmem>>, vector<32x16xf32>
    tpu.vector_store %arg5[%c0_53, %c0_54], %73 {strides = array<i32>} : memref<128x32xf32, #tpu.memory_space<vmem>>, vector<32x16xf32>,
    %c0_55 = arith.constant 0 : index
    %c0_56 = arith.constant 0 : index
    %c1_57 = arith.constant 1 : index
    %75 = vector.load %arg4[%c0_55, %c0_56, %c1_57] : memref<2x32x19xf32, #tpu.memory_space<vmem>>, vector<1x32x16xf32>
    %76 = vector.shape_cast %75 : vector<1x32x16xf32> to vector<32x16xf32>
    %c32 = arith.constant 32 : index
    %c0_58 = arith.constant 0 : index
    %77 = vector.load %arg5[%c32, %c0_58] : memref<128x32xf32, #tpu.memory_space<vmem>>, vector<32x16xf32>
    tpu.vector_store %arg5[%c32, %c0_58], %76 {strides = array<i32>} : memref<128x32xf32, #tpu.memory_space<vmem>>, vector<32x16xf32>,
    %c0_59 = arith.constant 0 : index
    %c0_60 = arith.constant 0 : index
    %c2_61 = arith.constant 2 : index
    %78 = vector.load %arg4[%c0_59, %c0_60, %c2_61] : memref<2x32x19xf32, #tpu.memory_space<vmem>>, vector<1x32x16xf32>
    %79 = vector.shape_cast %78 : vector<1x32x16xf32> to vector<32x16xf32>
    %c64 = arith.constant 64 : index
    %c0_62 = arith.constant 0 : index
    %80 = vector.load %arg5[%c64, %c0_62] : memref<128x32xf32, #tpu.memory_space<vmem>>, vector<32x16xf32>
    tpu.vector_store %arg5[%c64, %c0_62], %79 {strides = array<i32>} : memref<128x32xf32, #tpu.memory_space<vmem>>, vector<32x16xf32>,
    %c0_63 = arith.constant 0 : index
    %c0_64 = arith.constant 0 : index
    %c3 = arith.constant 3 : index
    %81 = vector.load %arg4[%c0_63, %c0_64, %c3] : memref<2x32x19xf32, #tpu.memory_space<vmem>>, vector<1x32x16xf32>
    %82 = vector.shape_cast %81 : vector<1x32x16xf32> to vector<32x16xf32>
    %c96 = arith.constant 96 : index
    %c0_65 = arith.constant 0 : index
    %83 = vector.load %arg5[%c96, %c0_65] : memref<128x32xf32, #tpu.memory_space<vmem>>, vector<32x16xf32>
    tpu.vector_store %arg5[%c96, %c0_65], %82 {strides = array<i32>} : memref<128x32xf32, #tpu.memory_space<vmem>>, vector<32x16xf32>,
    %c1_66 = arith.constant 1 : index
    %c0_67 = arith.constant 0 : index
    %c0_68 = arith.constant 0 : index
    %84 = vector.load %arg4[%c1_66, %c0_67, %c0_68] : memref<2x32x19xf32, #tpu.memory_space<vmem>>, vector<1x32x16xf32>
    %85 = vector.shape_cast %84 : vector<1x32x16xf32> to vector<32x16xf32>
    %c0_69 = arith.constant 0 : index
    %c16_70 = arith.constant 16 : index
    %86 = vector.load %arg5[%c0_69, %c16_70] : memref<128x32xf32, #tpu.memory_space<vmem>>, vector<32x16xf32>
    tpu.vector_store %arg5[%c0_69, %c16_70], %85 {strides = array<i32>} : memref<128x32xf32, #tpu.memory_space<vmem>>, vector<32x16xf32>,
    %c1_71 = arith.constant 1 : index
    %c0_72 = arith.constant 0 : index
    %c1_73 = arith.constant 1 : index
    %87 = vector.load %arg4[%c1_71, %c0_72, %c1_73] : memref<2x32x19xf32, #tpu.memory_space<vmem>>, vector<1x32x16xf32>
    %88 = vector.shape_cast %87 : vector<1x32x16xf32> to vector<32x16xf32>
    %c32_74 = arith.constant 32 : index
    %c16_75 = arith.constant 16 : index
    %89 = vector.load %arg5[%c32_74, %c16_75] : memref<128x32xf32, #tpu.memory_space<vmem>>, vector<32x16xf32>
    tpu.vector_store %arg5[%c32_74, %c16_75], %88 {strides = array<i32>} : memref<128x32xf32, #tpu.memory_space<vmem>>, vector<32x16xf32>,
    %c1_76 = arith.constant 1 : index
    %c0_77 = arith.constant 0 : index
    %c2_78 = arith.constant 2 : index
    %90 = vector.load %arg4[%c1_76, %c0_77, %c2_78] : memref<2x32x19xf32, #tpu.memory_space<vmem>>, vector<1x32x16xf32>
    %91 = vector.shape_cast %90 : vector<1x32x16xf32> to vector<32x16xf32>
    %c64_79 = arith.constant 64 : index
    %c16_80 = arith.constant 16 : index
    %92 = vector.load %arg5[%c64_79, %c16_80] : memref<128x32xf32, #tpu.memory_space<vmem>>, vector<32x16xf32>
    tpu.vector_store %arg5[%c64_79, %c16_80], %91 {strides = array<i32>} : memref<128x32xf32, #tpu.memory_space<vmem>>, vector<32x16xf32>,
    %c1_81 = arith.constant 1 : index
    %c0_82 = arith.constant 0 : index
    %c3_83 = arith.constant 3 : index
    %93 = vector.load %arg4[%c1_81, %c0_82, %c3_83] : memref<2x32x19xf32, #tpu.memory_space<vmem>>, vector<1x32x16xf32>
    %94 = vector.shape_cast %93 : vector<1x32x16xf32> to vector<32x16xf32>
    %c96_84 = arith.constant 96 : index
    %c16_85 = arith.constant 16 : index
    %95 = vector.load %arg5[%c96_84, %c16_85] : memref<128x32xf32, #tpu.memory_space<vmem>>, vector<32x16xf32>
    tpu.vector_store %arg5[%c96_84, %c16_85], %94 {strides = array<i32>} : memref<128x32xf32, #tpu.memory_space<vmem>>, vector<32x16xf32>,
    %c0_86 = arith.constant 0 : index
    %c0_87 = arith.constant 0 : index
    %96 = vector.load %arg1[%c0_86, %c0_87] : memref<16x128xf32, #tpu.memory_space<vmem>>, vector<16x128xf32>
    %c0_88 = arith.constant 0 : index
    %c0_89 = arith.constant 0 : index
    %97 = vector.load %arg5[%c0_88, %c0_89] : memref<128x32xf32, #tpu.memory_space<vmem>>, vector<128x32xf32>
    %cst_90 = arith.constant dense<0.000000e+00> : vector<16x32xf32>
    %98 = tpu.matmul %96, %97, %cst_90 {dimension_numbers = #tpu.dot_dimension_numbers<[1], [0], [0], [1], [0, 0, 1, 1], [], []>} : vector<16x128xf32>, vector<128x32xf32>, vector<16x32xf32> -> vector<16x32xf32>
    %c0_91 = arith.constant 0 : index
    %c0_92 = arith.constant 0 : index
    %99 = vector.load %arg2[%c0_91, %c0_92] : memref<16x1xf32, #tpu.memory_space<vmem>>, vector<16x1xf32>
    %100 = vector.broadcast %99 : vector<16x1xf32> to vector<16x32xf32>
    %101 = arith.addf %98, %100 : vector<16x32xf32>
    %102 = vector.extract_strided_slice %101 {offsets = [0, 0], sizes = [16, 16], strides = [1, 1]} : vector<16x32xf32> to vector<16x16xf32>
    %c0_93 = arith.constant 0 : index
    %c0_94 = arith.constant 0 : index
    %c0_95 = arith.constant 0 : index
    %103 = vector.load %arg3[%c0_93, %c0_94, %c0_95] : memref<2x16x16xf32, #tpu.memory_space<vmem>>, vector<1x16x16xf32>
    %104 = vector.shape_cast %103 : vector<1x16x16xf32> to vector<16x16xf32>
    %105 = vector.shape_cast %102 : vector<16x16xf32> to vector<1x16x16xf32>
    tpu.vector_store %arg3[%c0_93, %c0_94, %c0_95], %105 {strides = array<i32>} : memref<2x16x16xf32, #tpu.memory_space<vmem>>, vector<1x16x16xf32>,
    %106 = vector.extract_strided_slice %101 {offsets = [0, 16], sizes = [16, 16], strides = [1, 1]} : vector<16x32xf32> to vector<16x16xf32>
    %c1_96 = arith.constant 1 : index
    %c0_97 = arith.constant 0 : index
    %c0_98 = arith.constant 0 : index
    %107 = vector.load %arg3[%c1_96, %c0_97, %c0_98] : memref<2x16x16xf32, #tpu.memory_space<vmem>>, vector<1x16x16xf32>
    %108 = vector.shape_cast %107 : vector<1x16x16xf32> to vector<16x16xf32>
    %109 = vector.shape_cast %106 : vector<16x16xf32> to vector<1x16x16xf32>
    tpu.vector_store %arg3[%c1_96, %c0_97, %c0_98], %109 {strides = array<i32>} : memref<2x16x16xf32, #tpu.memory_space<vmem>>, vector<1x16x16xf32>,
    return
  }
}

module attributes {stable_mosaic.version = 11 : i64} {
  func.func @kernel(%arg0: memref<2x16x16xf32, #tpu.memory_space<vmem>>, %arg1: memref<16x1xf32, #tpu.memory_space<vmem>>, %arg2: memref<16x1xf32, #tpu.memory_space<vmem>>, %arg3: memref<2x4x8xf32, #tpu.memory_space<vmem>>, %arg4: memref<32x56xf32, #tpu.memory_space<vmem>>, %arg5: memref<32x1xf32, #tpu.memory_space<vmem>>, %arg6: memref<16x80xf32, #tpu.memory_space<vmem>>, %arg7: memref<16x1xf32, #tpu.memory_space<vmem>>, %arg8: memref<2x16x16xf32, #tpu.memory_space<vmem>>, %arg9: memref<80x32xf32, #tpu.memory_space<vmem>>, %arg10: memref<56x32xf32, #tpu.memory_space<vmem>>) attributes {dimension_semantics = [], scalar_prefetch = 0 : i64, scratch_operands = 2 : i64, tpu.core_type = #tpu.core_type<tc>} {
    %c0 = arith.constant 0 : index
    %c0_0 = arith.constant 0 : index
    %c0_1 = arith.constant 0 : index
    %0 = vector.load %arg0[%c0, %c0_0, %c0_1] : memref<2x16x16xf32, #tpu.memory_space<vmem>>, vector<1x16x16xf32>
    %1 = vector.shape_cast %0 : vector<1x16x16xf32> to vector<16x16xf32>
    %c1 = arith.constant 1 : index
    %c0_2 = arith.constant 0 : index
    %c0_3 = arith.constant 0 : index
    %2 = vector.load %arg0[%c1, %c0_2, %c0_3] : memref<2x16x16xf32, #tpu.memory_space<vmem>>, vector<1x16x16xf32>
    %3 = vector.shape_cast %2 : vector<1x16x16xf32> to vector<16x16xf32>
    %4 = arith.mulf %1, %1 : vector<16x16xf32>
    %5 = arith.addf %1, %3 : vector<16x16xf32>
    %6 = arith.mulf %3, %3 : vector<16x16xf32>
    %7 = arith.addf %4, %6 : vector<16x16xf32>
    %cst = arith.constant dense<0.000000e+00> : vector<16xf32>
    %8 = vector.multi_reduction <add>, %5, %cst [1] : vector<16x16xf32> to vector<16xf32>
    %9 = vector.shape_cast %8 : vector<16xf32> to vector<16x1xf32>
    %cst_4 = arith.constant 3.125000e-02 : f32
    %10 = vector.broadcast %cst_4 : f32 to vector<16x1xf32>
    %11 = arith.mulf %9, %10 : vector<16x1xf32>
    %cst_5 = arith.constant dense<0.000000e+00> : vector<16xf32>
    %12 = vector.multi_reduction <add>, %7, %cst_5 [1] : vector<16x16xf32> to vector<16xf32>
    %13 = vector.shape_cast %12 : vector<16xf32> to vector<16x1xf32>
    %cst_6 = arith.constant 3.125000e-02 : f32
    %14 = vector.broadcast %cst_6 : f32 to vector<16x1xf32>
    %15 = arith.mulf %13, %14 : vector<16x1xf32>
    %16 = arith.mulf %11, %11 : vector<16x1xf32>
    %17 = arith.subf %15, %16 : vector<16x1xf32>
    %cst_7 = arith.constant 9.99999974E-6 : f32
    %18 = vector.broadcast %cst_7 : f32 to vector<16x1xf32>
    %19 = arith.addf %17, %18 : vector<16x1xf32>
    %20 = math.rsqrt %19 : vector<16x1xf32>
    %c0_8 = arith.constant 0 : index
    %c0_9 = arith.constant 0 : index
    %21 = vector.load %arg1[%c0_8, %c0_9] : memref<16x1xf32, #tpu.memory_space<vmem>>, vector<16x1xf32>
    %22 = arith.mulf %21, %20 : vector<16x1xf32>
    %c0_10 = arith.constant 0 : index
    %c0_11 = arith.constant 0 : index
    %23 = vector.load %arg2[%c0_10, %c0_11] : memref<16x1xf32, #tpu.memory_space<vmem>>, vector<16x1xf32>
    %24 = arith.mulf %11, %22 : vector<16x1xf32>
    %25 = arith.subf %23, %24 : vector<16x1xf32>
    %cst_12 = arith.constant 0.000000e+00 : f32
    %26 = vector.broadcast %cst_12 : f32 to vector<56x32xf32>
    %c0_13 = arith.constant 0 : index
    %c0_14 = arith.constant 0 : index
    %27 = vector.load %arg10[%c0_13, %c0_14] : memref<56x32xf32, #tpu.memory_space<vmem>>, vector<56x32xf32>
    tpu.vector_store %arg10[%c0_13, %c0_14], %26 {strides = array<i32>} : memref<56x32xf32, #tpu.memory_space<vmem>>, vector<56x32xf32>,
    %c0_15 = arith.constant 0 : index
    %c0_16 = arith.constant 0 : index
    %c0_17 = arith.constant 0 : index
    %28 = vector.load %arg3[%c0_15, %c0_16, %c0_17] : memref<2x4x8xf32, #tpu.memory_space<vmem>>, vector<1x4x8xf32>
    %29 = vector.shape_cast %28 : vector<1x4x8xf32> to vector<4x8xf32>
    %c0_18 = arith.constant 0 : index
    %c3 = arith.constant 3 : index
    %30 = vector.load %arg10[%c0_18, %c3] : memref<56x32xf32, #tpu.memory_space<vmem>>, vector<4x8xf32>
    tpu.vector_store %arg10[%c0_18, %c3], %29 {strides = array<i32>} : memref<56x32xf32, #tpu.memory_space<vmem>>, vector<4x8xf32>,
    %c8 = arith.constant 8 : index
    %c2 = arith.constant 2 : index
    %31 = vector.load %arg10[%c8, %c2] : memref<56x32xf32, #tpu.memory_space<vmem>>, vector<4x8xf32>
    tpu.vector_store %arg10[%c8, %c2], %29 {strides = array<i32>} : memref<56x32xf32, #tpu.memory_space<vmem>>, vector<4x8xf32>,
    %c16 = arith.constant 16 : index
    %c1_19 = arith.constant 1 : index
    %32 = vector.load %arg10[%c16, %c1_19] : memref<56x32xf32, #tpu.memory_space<vmem>>, vector<4x8xf32>
    tpu.vector_store %arg10[%c16, %c1_19], %29 {strides = array<i32>} : memref<56x32xf32, #tpu.memory_space<vmem>>, vector<4x8xf32>,
    %c24 = arith.constant 24 : index
    %c0_20 = arith.constant 0 : index
    %33 = vector.load %arg10[%c24, %c0_20] : memref<56x32xf32, #tpu.memory_space<vmem>>, vector<4x8xf32>
    tpu.vector_store %arg10[%c24, %c0_20], %29 {strides = array<i32>} : memref<56x32xf32, #tpu.memory_space<vmem>>, vector<4x8xf32>,
    %34 = vector.extract_strided_slice %29 {offsets = [0, 1], sizes = [4, 7], strides = [1, 1]} : vector<4x8xf32> to vector<4x7xf32>
    %c32 = arith.constant 32 : index
    %c0_21 = arith.constant 0 : index
    %35 = vector.load %arg10[%c32, %c0_21] : memref<56x32xf32, #tpu.memory_space<vmem>>, vector<4x7xf32>
    tpu.vector_store %arg10[%c32, %c0_21], %34 {strides = array<i32>} : memref<56x32xf32, #tpu.memory_space<vmem>>, vector<4x7xf32>,
    %36 = vector.extract_strided_slice %29 {offsets = [0, 2], sizes = [4, 6], strides = [1, 1]} : vector<4x8xf32> to vector<4x6xf32>
    %c40 = arith.constant 40 : index
    %c0_22 = arith.constant 0 : index
    %37 = vector.load %arg10[%c40, %c0_22] : memref<56x32xf32, #tpu.memory_space<vmem>>, vector<4x6xf32>
    tpu.vector_store %arg10[%c40, %c0_22], %36 {strides = array<i32>} : memref<56x32xf32, #tpu.memory_space<vmem>>, vector<4x6xf32>,
    %38 = vector.extract_strided_slice %29 {offsets = [0, 3], sizes = [4, 5], strides = [1, 1]} : vector<4x8xf32> to vector<4x5xf32>
    %c48 = arith.constant 48 : index
    %c0_23 = arith.constant 0 : index
    %39 = vector.load %arg10[%c48, %c0_23] : memref<56x32xf32, #tpu.memory_space<vmem>>, vector<4x5xf32>
    tpu.vector_store %arg10[%c48, %c0_23], %38 {strides = array<i32>} : memref<56x32xf32, #tpu.memory_space<vmem>>, vector<4x5xf32>,
    %c1_24 = arith.constant 1 : index
    %c0_25 = arith.constant 0 : index
    %c0_26 = arith.constant 0 : index
    %40 = vector.load %arg3[%c1_24, %c0_25, %c0_26] : memref<2x4x8xf32, #tpu.memory_space<vmem>>, vector<1x4x8xf32>
    %41 = vector.shape_cast %40 : vector<1x4x8xf32> to vector<4x8xf32>
    %c0_27 = arith.constant 0 : index
    %c19 = arith.constant 19 : index
    %42 = vector.load %arg10[%c0_27, %c19] : memref<56x32xf32, #tpu.memory_space<vmem>>, vector<4x8xf32>
    tpu.vector_store %arg10[%c0_27, %c19], %41 {strides = array<i32>} : memref<56x32xf32, #tpu.memory_space<vmem>>, vector<4x8xf32>,
    %c8_28 = arith.constant 8 : index
    %c18 = arith.constant 18 : index
    %43 = vector.load %arg10[%c8_28, %c18] : memref<56x32xf32, #tpu.memory_space<vmem>>, vector<4x8xf32>
    tpu.vector_store %arg10[%c8_28, %c18], %41 {strides = array<i32>} : memref<56x32xf32, #tpu.memory_space<vmem>>, vector<4x8xf32>,
    %c16_29 = arith.constant 16 : index
    %c17 = arith.constant 17 : index
    %44 = vector.load %arg10[%c16_29, %c17] : memref<56x32xf32, #tpu.memory_space<vmem>>, vector<4x8xf32>
    tpu.vector_store %arg10[%c16_29, %c17], %41 {strides = array<i32>} : memref<56x32xf32, #tpu.memory_space<vmem>>, vector<4x8xf32>,
    %c24_30 = arith.constant 24 : index
    %c16_31 = arith.constant 16 : index
    %45 = vector.load %arg10[%c24_30, %c16_31] : memref<56x32xf32, #tpu.memory_space<vmem>>, vector<4x8xf32>
    tpu.vector_store %arg10[%c24_30, %c16_31], %41 {strides = array<i32>} : memref<56x32xf32, #tpu.memory_space<vmem>>, vector<4x8xf32>,
    %46 = vector.extract_strided_slice %41 {offsets = [0, 1], sizes = [4, 7], strides = [1, 1]} : vector<4x8xf32> to vector<4x7xf32>
    %c32_32 = arith.constant 32 : index
    %c16_33 = arith.constant 16 : index
    %47 = vector.load %arg10[%c32_32, %c16_33] : memref<56x32xf32, #tpu.memory_space<vmem>>, vector<4x7xf32>
    tpu.vector_store %arg10[%c32_32, %c16_33], %46 {strides = array<i32>} : memref<56x32xf32, #tpu.memory_space<vmem>>, vector<4x7xf32>,
    %48 = vector.extract_strided_slice %41 {offsets = [0, 2], sizes = [4, 6], strides = [1, 1]} : vector<4x8xf32> to vector<4x6xf32>
    %c40_34 = arith.constant 40 : index
    %c16_35 = arith.constant 16 : index
    %49 = vector.load %arg10[%c40_34, %c16_35] : memref<56x32xf32, #tpu.memory_space<vmem>>, vector<4x6xf32>
    tpu.vector_store %arg10[%c40_34, %c16_35], %48 {strides = array<i32>} : memref<56x32xf32, #tpu.memory_space<vmem>>, vector<4x6xf32>,
    %50 = vector.extract_strided_slice %41 {offsets = [0, 3], sizes = [4, 5], strides = [1, 1]} : vector<4x8xf32> to vector<4x5xf32>
    %c48_36 = arith.constant 48 : index
    %c16_37 = arith.constant 16 : index
    %51 = vector.load %arg10[%c48_36, %c16_37] : memref<56x32xf32, #tpu.memory_space<vmem>>, vector<4x5xf32>
    tpu.vector_store %arg10[%c48_36, %c16_37], %50 {strides = array<i32>} : memref<56x32xf32, #tpu.memory_space<vmem>>, vector<4x5xf32>,
    %c0_38 = arith.constant 0 : index
    %c0_39 = arith.constant 0 : index
    %52 = vector.load %arg4[%c0_38, %c0_39] : memref<32x56xf32, #tpu.memory_space<vmem>>, vector<32x56xf32>
    %c0_40 = arith.constant 0 : index
    %c0_41 = arith.constant 0 : index
    %53 = vector.load %arg10[%c0_40, %c0_41] : memref<56x32xf32, #tpu.memory_space<vmem>>, vector<56x32xf32>
    %cst_42 = arith.constant dense<0.000000e+00> : vector<32x32xf32>
    %54 = tpu.matmul %52, %53, %cst_42 {dimension_numbers = #tpu.dot_dimension_numbers<[1], [0], [0], [1], [0, 0, 1, 1], [], []>} : vector<32x56xf32>, vector<56x32xf32>, vector<32x32xf32> -> vector<32x32xf32>
    %c0_43 = arith.constant 0 : index
    %c0_44 = arith.constant 0 : index
    %55 = vector.load %arg5[%c0_43, %c0_44] : memref<32x1xf32, #tpu.memory_space<vmem>>, vector<32x1xf32>
    %56 = vector.broadcast %55 : vector<32x1xf32> to vector<32x32xf32>
    %57 = arith.addf %54, %56 : vector<32x32xf32>
    %cst_45 = arith.constant 0.000000e+00 : f32
    %58 = vector.broadcast %cst_45 : f32 to vector<80x32xf32>
    %c0_46 = arith.constant 0 : index
    %c0_47 = arith.constant 0 : index
    %59 = vector.load %arg9[%c0_46, %c0_47] : memref<80x32xf32, #tpu.memory_space<vmem>>, vector<80x32xf32>
    tpu.vector_store %arg9[%c0_46, %c0_47], %58 {strides = array<i32>} : memref<80x32xf32, #tpu.memory_space<vmem>>, vector<80x32xf32>,
    %60 = vector.broadcast %22 : vector<16x1xf32> to vector<16x16xf32>
    %61 = arith.mulf %1, %60 : vector<16x16xf32>
    %62 = vector.broadcast %25 : vector<16x1xf32> to vector<16x16xf32>
    %63 = arith.addf %61, %62 : vector<16x16xf32>
    %64 = vector.extract_strided_slice %57 {offsets = [0, 0], sizes = [16, 16], strides = [1, 1]} : vector<32x32xf32> to vector<16x16xf32>
    %65 = arith.mulf %64, %63 : vector<16x16xf32>
    %66 = vector.extract_strided_slice %57 {offsets = [16, 0], sizes = [16, 16], strides = [1, 1]} : vector<32x32xf32> to vector<16x16xf32>
    %67 = arith.addf %65, %66 : vector<16x16xf32>
    %cst_48 = arith.constant 0.000000e+00 : f32
    %68 = vector.broadcast %cst_48 : f32 to vector<16x16xf32>
    %69 = arith.maximumf %67, %68 : vector<16x16xf32>
    %70 = vector.extract_strided_slice %69 {offsets = [0, 0], sizes = [16, 14], strides = [1, 1]} : vector<16x16xf32> to vector<16x14xf32>
    %c0_49 = arith.constant 0 : index
    %c2_50 = arith.constant 2 : index
    %71 = vector.load %arg9[%c0_49, %c2_50] : memref<80x32xf32, #tpu.memory_space<vmem>>, vector<16x14xf32>
    tpu.vector_store %arg9[%c0_49, %c2_50], %70 {strides = array<i32>} : memref<80x32xf32, #tpu.memory_space<vmem>>, vector<16x14xf32>,
    %72 = vector.extract_strided_slice %69 {offsets = [0, 0], sizes = [16, 15], strides = [1, 1]} : vector<16x16xf32> to vector<16x15xf32>
    %c16_51 = arith.constant 16 : index
    %c1_52 = arith.constant 1 : index
    %73 = vector.load %arg9[%c16_51, %c1_52] : memref<80x32xf32, #tpu.memory_space<vmem>>, vector<16x15xf32>
    tpu.vector_store %arg9[%c16_51, %c1_52], %72 {strides = array<i32>} : memref<80x32xf32, #tpu.memory_space<vmem>>, vector<16x15xf32>,
    %c32_53 = arith.constant 32 : index
    %c0_54 = arith.constant 0 : index
    %74 = vector.load %arg9[%c32_53, %c0_54] : memref<80x32xf32, #tpu.memory_space<vmem>>, vector<16x16xf32>
    tpu.vector_store %arg9[%c32_53, %c0_54], %69 {strides = array<i32>} : memref<80x32xf32, #tpu.memory_space<vmem>>, vector<16x16xf32>,
    %75 = vector.extract_strided_slice %69 {offsets = [0, 1], sizes = [16, 15], strides = [1, 1]} : vector<16x16xf32> to vector<16x15xf32>
    %c48_55 = arith.constant 48 : index
    %c0_56 = arith.constant 0 : index
    %76 = vector.load %arg9[%c48_55, %c0_56] : memref<80x32xf32, #tpu.memory_space<vmem>>, vector<16x15xf32>
    tpu.vector_store %arg9[%c48_55, %c0_56], %75 {strides = array<i32>} : memref<80x32xf32, #tpu.memory_space<vmem>>, vector<16x15xf32>,
    %77 = vector.extract_strided_slice %69 {offsets = [0, 2], sizes = [16, 14], strides = [1, 1]} : vector<16x16xf32> to vector<16x14xf32>
    %c64 = arith.constant 64 : index
    %c0_57 = arith.constant 0 : index
    %78 = vector.load %arg9[%c64, %c0_57] : memref<80x32xf32, #tpu.memory_space<vmem>>, vector<16x14xf32>
    tpu.vector_store %arg9[%c64, %c0_57], %77 {strides = array<i32>} : memref<80x32xf32, #tpu.memory_space<vmem>>, vector<16x14xf32>,
    %79 = vector.broadcast %22 : vector<16x1xf32> to vector<16x16xf32>
    %80 = arith.mulf %3, %79 : vector<16x16xf32>
    %81 = vector.broadcast %25 : vector<16x1xf32> to vector<16x16xf32>
    %82 = arith.addf %80, %81 : vector<16x16xf32>
    %83 = vector.extract_strided_slice %57 {offsets = [0, 16], sizes = [16, 16], strides = [1, 1]} : vector<32x32xf32> to vector<16x16xf32>
    %84 = arith.mulf %83, %82 : vector<16x16xf32>
    %85 = vector.extract_strided_slice %57 {offsets = [16, 16], sizes = [16, 16], strides = [1, 1]} : vector<32x32xf32> to vector<16x16xf32>
    %86 = arith.addf %84, %85 : vector<16x16xf32>
    %cst_58 = arith.constant 0.000000e+00 : f32
    %87 = vector.broadcast %cst_58 : f32 to vector<16x16xf32>
    %88 = arith.maximumf %86, %87 : vector<16x16xf32>
    %89 = vector.extract_strided_slice %88 {offsets = [0, 0], sizes = [16, 14], strides = [1, 1]} : vector<16x16xf32> to vector<16x14xf32>
    %c0_59 = arith.constant 0 : index
    %c18_60 = arith.constant 18 : index
    %90 = vector.load %arg9[%c0_59, %c18_60] : memref<80x32xf32, #tpu.memory_space<vmem>>, vector<16x14xf32>
    tpu.vector_store %arg9[%c0_59, %c18_60], %89 {strides = array<i32>} : memref<80x32xf32, #tpu.memory_space<vmem>>, vector<16x14xf32>,
    %91 = vector.extract_strided_slice %88 {offsets = [0, 0], sizes = [16, 15], strides = [1, 1]} : vector<16x16xf32> to vector<16x15xf32>
    %c16_61 = arith.constant 16 : index
    %c17_62 = arith.constant 17 : index
    %92 = vector.load %arg9[%c16_61, %c17_62] : memref<80x32xf32, #tpu.memory_space<vmem>>, vector<16x15xf32>
    tpu.vector_store %arg9[%c16_61, %c17_62], %91 {strides = array<i32>} : memref<80x32xf32, #tpu.memory_space<vmem>>, vector<16x15xf32>,
    %c32_63 = arith.constant 32 : index
    %c16_64 = arith.constant 16 : index
    %93 = vector.load %arg9[%c32_63, %c16_64] : memref<80x32xf32, #tpu.memory_space<vmem>>, vector<16x16xf32>
    tpu.vector_store %arg9[%c32_63, %c16_64], %88 {strides = array<i32>} : memref<80x32xf32, #tpu.memory_space<vmem>>, vector<16x16xf32>,
    %94 = vector.extract_strided_slice %88 {offsets = [0, 1], sizes = [16, 15], strides = [1, 1]} : vector<16x16xf32> to vector<16x15xf32>
    %c48_65 = arith.constant 48 : index
    %c16_66 = arith.constant 16 : index
    %95 = vector.load %arg9[%c48_65, %c16_66] : memref<80x32xf32, #tpu.memory_space<vmem>>, vector<16x15xf32>
    tpu.vector_store %arg9[%c48_65, %c16_66], %94 {strides = array<i32>} : memref<80x32xf32, #tpu.memory_space<vmem>>, vector<16x15xf32>,
    %96 = vector.extract_strided_slice %88 {offsets = [0, 2], sizes = [16, 14], strides = [1, 1]} : vector<16x16xf32> to vector<16x14xf32>
    %c64_67 = arith.constant 64 : index
    %c16_68 = arith.constant 16 : index
    %97 = vector.load %arg9[%c64_67, %c16_68] : memref<80x32xf32, #tpu.memory_space<vmem>>, vector<16x14xf32>
    tpu.vector_store %arg9[%c64_67, %c16_68], %96 {strides = array<i32>} : memref<80x32xf32, #tpu.memory_space<vmem>>, vector<16x14xf32>,
    %c0_69 = arith.constant 0 : index
    %c0_70 = arith.constant 0 : index
    %98 = vector.load %arg6[%c0_69, %c0_70] : memref<16x80xf32, #tpu.memory_space<vmem>>, vector<16x80xf32>
    %c0_71 = arith.constant 0 : index
    %c0_72 = arith.constant 0 : index
    %99 = vector.load %arg9[%c0_71, %c0_72] : memref<80x32xf32, #tpu.memory_space<vmem>>, vector<80x32xf32>
    %cst_73 = arith.constant dense<0.000000e+00> : vector<16x32xf32>
    %100 = tpu.matmul %98, %99, %cst_73 {dimension_numbers = #tpu.dot_dimension_numbers<[1], [0], [0], [1], [0, 0, 1, 1], [], []>} : vector<16x80xf32>, vector<80x32xf32>, vector<16x32xf32> -> vector<16x32xf32>
    %c0_74 = arith.constant 0 : index
    %c0_75 = arith.constant 0 : index
    %101 = vector.load %arg7[%c0_74, %c0_75] : memref<16x1xf32, #tpu.memory_space<vmem>>, vector<16x1xf32>
    %102 = vector.broadcast %101 : vector<16x1xf32> to vector<16x32xf32>
    %103 = arith.addf %100, %102 : vector<16x32xf32>
    %104 = vector.extract_strided_slice %103 {offsets = [0, 0], sizes = [16, 16], strides = [1, 1]} : vector<16x32xf32> to vector<16x16xf32>
    %c0_76 = arith.constant 0 : index
    %c0_77 = arith.constant 0 : index
    %c0_78 = arith.constant 0 : index
    %105 = vector.load %arg8[%c0_76, %c0_77, %c0_78] : memref<2x16x16xf32, #tpu.memory_space<vmem>>, vector<1x16x16xf32>
    %106 = vector.shape_cast %105 : vector<1x16x16xf32> to vector<16x16xf32>
    %107 = vector.shape_cast %104 : vector<16x16xf32> to vector<1x16x16xf32>
    tpu.vector_store %arg8[%c0_76, %c0_77, %c0_78], %107 {strides = array<i32>} : memref<2x16x16xf32, #tpu.memory_space<vmem>>, vector<1x16x16xf32>,
    %108 = vector.extract_strided_slice %103 {offsets = [0, 16], sizes = [16, 16], strides = [1, 1]} : vector<16x32xf32> to vector<16x16xf32>
    %c1_79 = arith.constant 1 : index
    %c0_80 = arith.constant 0 : index
    %c0_81 = arith.constant 0 : index
    %109 = vector.load %arg8[%c1_79, %c0_80, %c0_81] : memref<2x16x16xf32, #tpu.memory_space<vmem>>, vector<1x16x16xf32>
    %110 = vector.shape_cast %109 : vector<1x16x16xf32> to vector<16x16xf32>
    %111 = vector.shape_cast %108 : vector<16x16xf32> to vector<1x16x16xf32>
    tpu.vector_store %arg8[%c1_79, %c0_80, %c0_81], %111 {strides = array<i32>} : memref<2x16x16xf32, #tpu.memory_space<vmem>>, vector<1x16x16xf32>,
    return
  }
}

module attributes {stable_mosaic.version = 11 : i64} {
  func.func @kernel(%arg0: memref<2x16x16xf32, #tpu.memory_space<vmem>>, %arg1: memref<16x1xf32, #tpu.memory_space<vmem>>, %arg2: memref<16x1xf32, #tpu.memory_space<vmem>>, %arg3: memref<2x4x8xf32, #tpu.memory_space<vmem>>, %arg4: memref<32x56xf32, #tpu.memory_space<vmem>>, %arg5: memref<32x1xf32, #tpu.memory_space<vmem>>, %arg6: memref<16x48xf32, #tpu.memory_space<vmem>>, %arg7: memref<16x1xf32, #tpu.memory_space<vmem>>, %arg8: memref<2x16x16xf32, #tpu.memory_space<vmem>>, %arg9: memref<48x32xf32, #tpu.memory_space<vmem>>, %arg10: memref<56x32xf32, #tpu.memory_space<vmem>>) attributes {dimension_semantics = [], scalar_prefetch = 0 : i64, scratch_operands = 2 : i64, tpu.core_type = #tpu.core_type<tc>} {
    %c0 = arith.constant 0 : index
    %c0_0 = arith.constant 0 : index
    %c0_1 = arith.constant 0 : index
    %0 = vector.load %arg0[%c0, %c0_0, %c0_1] : memref<2x16x16xf32, #tpu.memory_space<vmem>>, vector<1x16x16xf32>
    %1 = vector.shape_cast %0 : vector<1x16x16xf32> to vector<16x16xf32>
    %c1 = arith.constant 1 : index
    %c0_2 = arith.constant 0 : index
    %c0_3 = arith.constant 0 : index
    %2 = vector.load %arg0[%c1, %c0_2, %c0_3] : memref<2x16x16xf32, #tpu.memory_space<vmem>>, vector<1x16x16xf32>
    %3 = vector.shape_cast %2 : vector<1x16x16xf32> to vector<16x16xf32>
    %4 = arith.mulf %1, %1 : vector<16x16xf32>
    %5 = arith.addf %1, %3 : vector<16x16xf32>
    %6 = arith.mulf %3, %3 : vector<16x16xf32>
    %7 = arith.addf %4, %6 : vector<16x16xf32>
    %cst = arith.constant dense<0.000000e+00> : vector<16xf32>
    %8 = vector.multi_reduction <add>, %5, %cst [1] : vector<16x16xf32> to vector<16xf32>
    %9 = vector.shape_cast %8 : vector<16xf32> to vector<16x1xf32>
    %cst_4 = arith.constant 3.125000e-02 : f32
    %10 = vector.broadcast %cst_4 : f32 to vector<16x1xf32>
    %11 = arith.mulf %9, %10 : vector<16x1xf32>
    %cst_5 = arith.constant dense<0.000000e+00> : vector<16xf32>
    %12 = vector.multi_reduction <add>, %7, %cst_5 [1] : vector<16x16xf32> to vector<16xf32>
    %13 = vector.shape_cast %12 : vector<16xf32> to vector<16x1xf32>
    %cst_6 = arith.constant 3.125000e-02 : f32
    %14 = vector.broadcast %cst_6 : f32 to vector<16x1xf32>
    %15 = arith.mulf %13, %14 : vector<16x1xf32>
    %16 = arith.mulf %11, %11 : vector<16x1xf32>
    %17 = arith.subf %15, %16 : vector<16x1xf32>
    %cst_7 = arith.constant 9.99999974E-6 : f32
    %18 = vector.broadcast %cst_7 : f32 to vector<16x1xf32>
    %19 = arith.addf %17, %18 : vector<16x1xf32>
    %20 = math.rsqrt %19 : vector<16x1xf32>
    %c0_8 = arith.constant 0 : index
    %c0_9 = arith.constant 0 : index
    %21 = vector.load %arg1[%c0_8, %c0_9] : memref<16x1xf32, #tpu.memory_space<vmem>>, vector<16x1xf32>
    %22 = arith.mulf %21, %20 : vector<16x1xf32>
    %c0_10 = arith.constant 0 : index
    %c0_11 = arith.constant 0 : index
    %23 = vector.load %arg2[%c0_10, %c0_11] : memref<16x1xf32, #tpu.memory_space<vmem>>, vector<16x1xf32>
    %24 = arith.mulf %11, %22 : vector<16x1xf32>
    %25 = arith.subf %23, %24 : vector<16x1xf32>
    %cst_12 = arith.constant 0.000000e+00 : f32
    %26 = vector.broadcast %cst_12 : f32 to vector<56x32xf32>
    %c0_13 = arith.constant 0 : index
    %c0_14 = arith.constant 0 : index
    %27 = vector.load %arg10[%c0_13, %c0_14] : memref<56x32xf32, #tpu.memory_space<vmem>>, vector<56x32xf32>
    tpu.vector_store %arg10[%c0_13, %c0_14], %26 {strides = array<i32>} : memref<56x32xf32, #tpu.memory_space<vmem>>, vector<56x32xf32>,
    %c0_15 = arith.constant 0 : index
    %c0_16 = arith.constant 0 : index
    %c0_17 = arith.constant 0 : index
    %28 = vector.load %arg3[%c0_15, %c0_16, %c0_17] : memref<2x4x8xf32, #tpu.memory_space<vmem>>, vector<1x4x8xf32>
    %29 = vector.shape_cast %28 : vector<1x4x8xf32> to vector<4x8xf32>
    %c0_18 = arith.constant 0 : index
    %c3 = arith.constant 3 : index
    %30 = vector.load %arg10[%c0_18, %c3] : memref<56x32xf32, #tpu.memory_space<vmem>>, vector<4x8xf32>
    tpu.vector_store %arg10[%c0_18, %c3], %29 {strides = array<i32>} : memref<56x32xf32, #tpu.memory_space<vmem>>, vector<4x8xf32>,
    %c8 = arith.constant 8 : index
    %c2 = arith.constant 2 : index
    %31 = vector.load %arg10[%c8, %c2] : memref<56x32xf32, #tpu.memory_space<vmem>>, vector<4x8xf32>
    tpu.vector_store %arg10[%c8, %c2], %29 {strides = array<i32>} : memref<56x32xf32, #tpu.memory_space<vmem>>, vector<4x8xf32>,
    %c16 = arith.constant 16 : index
    %c1_19 = arith.constant 1 : index
    %32 = vector.load %arg10[%c16, %c1_19] : memref<56x32xf32, #tpu.memory_space<vmem>>, vector<4x8xf32>
    tpu.vector_store %arg10[%c16, %c1_19], %29 {strides = array<i32>} : memref<56x32xf32, #tpu.memory_space<vmem>>, vector<4x8xf32>,
    %c24 = arith.constant 24 : index
    %c0_20 = arith.constant 0 : index
    %33 = vector.load %arg10[%c24, %c0_20] : memref<56x32xf32, #tpu.memory_space<vmem>>, vector<4x8xf32>
    tpu.vector_store %arg10[%c24, %c0_20], %29 {strides = array<i32>} : memref<56x32xf32, #tpu.memory_space<vmem>>, vector<4x8xf32>,
    %34 = vector.extract_strided_slice %29 {offsets = [0, 1], sizes = [4, 7], strides = [1, 1]} : vector<4x8xf32> to vector<4x7xf32>
    %c32 = arith.constant 32 : index
    %c0_21 = arith.constant 0 : index
    %35 = vector.load %arg10[%c32, %c0_21] : memref<56x32xf32, #tpu.memory_space<vmem>>, vector<4x7xf32>
    tpu.vector_store %arg10[%c32, %c0_21], %34 {strides = array<i32>} : memref<56x32xf32, #tpu.memory_space<vmem>>, vector<4x7xf32>,
    %36 = vector.extract_strided_slice %29 {offsets = [0, 2], sizes = [4, 6], strides = [1, 1]} : vector<4x8xf32> to vector<4x6xf32>
    %c40 = arith.constant 40 : index
    %c0_22 = arith.constant 0 : index
    %37 = vector.load %arg10[%c40, %c0_22] : memref<56x32xf32, #tpu.memory_space<vmem>>, vector<4x6xf32>
    tpu.vector_store %arg10[%c40, %c0_22], %36 {strides = array<i32>} : memref<56x32xf32, #tpu.memory_space<vmem>>, vector<4x6xf32>,
    %38 = vector.extract_strided_slice %29 {offsets = [0, 3], sizes = [4, 5], strides = [1, 1]} : vector<4x8xf32> to vector<4x5xf32>
    %c48 = arith.constant 48 : index
    %c0_23 = arith.constant 0 : index
    %39 = vector.load %arg10[%c48, %c0_23] : memref<56x32xf32, #tpu.memory_space<vmem>>, vector<4x5xf32>
    tpu.vector_store %arg10[%c48, %c0_23], %38 {strides = array<i32>} : memref<56x32xf32, #tpu.memory_space<vmem>>, vector<4x5xf32>,
    %c1_24 = arith.constant 1 : index
    %c0_25 = arith.constant 0 : index
    %c0_26 = arith.constant 0 : index
    %40 = vector.load %arg3[%c1_24, %c0_25, %c0_26] : memref<2x4x8xf32, #tpu.memory_space<vmem>>, vector<1x4x8xf32>
    %41 = vector.shape_cast %40 : vector<1x4x8xf32> to vector<4x8xf32>
    %c0_27 = arith.constant 0 : index
    %c19 = arith.constant 19 : index
    %42 = vector.load %arg10[%c0_27, %c19] : memref<56x32xf32, #tpu.memory_space<vmem>>, vector<4x8xf32>
    tpu.vector_store %arg10[%c0_27, %c19], %41 {strides = array<i32>} : memref<56x32xf32, #tpu.memory_space<vmem>>, vector<4x8xf32>,
    %c8_28 = arith.constant 8 : index
    %c18 = arith.constant 18 : index
    %43 = vector.load %arg10[%c8_28, %c18] : memref<56x32xf32, #tpu.memory_space<vmem>>, vector<4x8xf32>
    tpu.vector_store %arg10[%c8_28, %c18], %41 {strides = array<i32>} : memref<56x32xf32, #tpu.memory_space<vmem>>, vector<4x8xf32>,
    %c16_29 = arith.constant 16 : index
    %c17 = arith.constant 17 : index
    %44 = vector.load %arg10[%c16_29, %c17] : memref<56x32xf32, #tpu.memory_space<vmem>>, vector<4x8xf32>
    tpu.vector_store %arg10[%c16_29, %c17], %41 {strides = array<i32>} : memref<56x32xf32, #tpu.memory_space<vmem>>, vector<4x8xf32>,
    %c24_30 = arith.constant 24 : index
    %c16_31 = arith.constant 16 : index
    %45 = vector.load %arg10[%c24_30, %c16_31] : memref<56x32xf32, #tpu.memory_space<vmem>>, vector<4x8xf32>
    tpu.vector_store %arg10[%c24_30, %c16_31], %41 {strides = array<i32>} : memref<56x32xf32, #tpu.memory_space<vmem>>, vector<4x8xf32>,
    %46 = vector.extract_strided_slice %41 {offsets = [0, 1], sizes = [4, 7], strides = [1, 1]} : vector<4x8xf32> to vector<4x7xf32>
    %c32_32 = arith.constant 32 : index
    %c16_33 = arith.constant 16 : index
    %47 = vector.load %arg10[%c32_32, %c16_33] : memref<56x32xf32, #tpu.memory_space<vmem>>, vector<4x7xf32>
    tpu.vector_store %arg10[%c32_32, %c16_33], %46 {strides = array<i32>} : memref<56x32xf32, #tpu.memory_space<vmem>>, vector<4x7xf32>,
    %48 = vector.extract_strided_slice %41 {offsets = [0, 2], sizes = [4, 6], strides = [1, 1]} : vector<4x8xf32> to vector<4x6xf32>
    %c40_34 = arith.constant 40 : index
    %c16_35 = arith.constant 16 : index
    %49 = vector.load %arg10[%c40_34, %c16_35] : memref<56x32xf32, #tpu.memory_space<vmem>>, vector<4x6xf32>
    tpu.vector_store %arg10[%c40_34, %c16_35], %48 {strides = array<i32>} : memref<56x32xf32, #tpu.memory_space<vmem>>, vector<4x6xf32>,
    %50 = vector.extract_strided_slice %41 {offsets = [0, 3], sizes = [4, 5], strides = [1, 1]} : vector<4x8xf32> to vector<4x5xf32>
    %c48_36 = arith.constant 48 : index
    %c16_37 = arith.constant 16 : index
    %51 = vector.load %arg10[%c48_36, %c16_37] : memref<56x32xf32, #tpu.memory_space<vmem>>, vector<4x5xf32>
    tpu.vector_store %arg10[%c48_36, %c16_37], %50 {strides = array<i32>} : memref<56x32xf32, #tpu.memory_space<vmem>>, vector<4x5xf32>,
    %c0_38 = arith.constant 0 : index
    %c0_39 = arith.constant 0 : index
    %52 = vector.load %arg4[%c0_38, %c0_39] : memref<32x56xf32, #tpu.memory_space<vmem>>, vector<32x56xf32>
    %c0_40 = arith.constant 0 : index
    %c0_41 = arith.constant 0 : index
    %53 = vector.load %arg10[%c0_40, %c0_41] : memref<56x32xf32, #tpu.memory_space<vmem>>, vector<56x32xf32>
    %cst_42 = arith.constant dense<0.000000e+00> : vector<32x32xf32>
    %54 = tpu.matmul %52, %53, %cst_42 {dimension_numbers = #tpu.dot_dimension_numbers<[1], [0], [0], [1], [0, 0, 1, 1], [], []>} : vector<32x56xf32>, vector<56x32xf32>, vector<32x32xf32> -> vector<32x32xf32>
    %c0_43 = arith.constant 0 : index
    %c0_44 = arith.constant 0 : index
    %55 = vector.load %arg5[%c0_43, %c0_44] : memref<32x1xf32, #tpu.memory_space<vmem>>, vector<32x1xf32>
    %56 = vector.broadcast %55 : vector<32x1xf32> to vector<32x32xf32>
    %57 = arith.addf %54, %56 : vector<32x32xf32>
    %cst_45 = arith.constant 0.000000e+00 : f32
    %58 = vector.broadcast %cst_45 : f32 to vector<48x32xf32>
    %c0_46 = arith.constant 0 : index
    %c0_47 = arith.constant 0 : index
    %59 = vector.load %arg9[%c0_46, %c0_47] : memref<48x32xf32, #tpu.memory_space<vmem>>, vector<48x32xf32>
    tpu.vector_store %arg9[%c0_46, %c0_47], %58 {strides = array<i32>} : memref<48x32xf32, #tpu.memory_space<vmem>>, vector<48x32xf32>,
    %60 = vector.broadcast %22 : vector<16x1xf32> to vector<16x16xf32>
    %61 = arith.mulf %1, %60 : vector<16x16xf32>
    %62 = vector.broadcast %25 : vector<16x1xf32> to vector<16x16xf32>
    %63 = arith.addf %61, %62 : vector<16x16xf32>
    %64 = vector.extract_strided_slice %57 {offsets = [0, 0], sizes = [16, 16], strides = [1, 1]} : vector<32x32xf32> to vector<16x16xf32>
    %65 = arith.mulf %64, %63 : vector<16x16xf32>
    %66 = vector.extract_strided_slice %57 {offsets = [16, 0], sizes = [16, 16], strides = [1, 1]} : vector<32x32xf32> to vector<16x16xf32>
    %67 = arith.addf %65, %66 : vector<16x16xf32>
    %cst_48 = arith.constant 0.000000e+00 : f32
    %68 = vector.broadcast %cst_48 : f32 to vector<16x16xf32>
    %69 = arith.maximumf %67, %68 : vector<16x16xf32>
    %70 = vector.extract_strided_slice %69 {offsets = [0, 0], sizes = [16, 15], strides = [1, 1]} : vector<16x16xf32> to vector<16x15xf32>
    %c0_49 = arith.constant 0 : index
    %c1_50 = arith.constant 1 : index
    %71 = vector.load %arg9[%c0_49, %c1_50] : memref<48x32xf32, #tpu.memory_space<vmem>>, vector<16x15xf32>
    tpu.vector_store %arg9[%c0_49, %c1_50], %70 {strides = array<i32>} : memref<48x32xf32, #tpu.memory_space<vmem>>, vector<16x15xf32>,
    %c16_51 = arith.constant 16 : index
    %c0_52 = arith.constant 0 : index
    %72 = vector.load %arg9[%c16_51, %c0_52] : memref<48x32xf32, #tpu.memory_space<vmem>>, vector<16x16xf32>
    tpu.vector_store %arg9[%c16_51, %c0_52], %69 {strides = array<i32>} : memref<48x32xf32, #tpu.memory_space<vmem>>, vector<16x16xf32>,
    %73 = vector.extract_strided_slice %69 {offsets = [0, 1], sizes = [16, 15], strides = [1, 1]} : vector<16x16xf32> to vector<16x15xf32>
    %c32_53 = arith.constant 32 : index
    %c0_54 = arith.constant 0 : index
    %74 = vector.load %arg9[%c32_53, %c0_54] : memref<48x32xf32, #tpu.memory_space<vmem>>, vector<16x15xf32>
    tpu.vector_store %arg9[%c32_53, %c0_54], %73 {strides = array<i32>} : memref<48x32xf32, #tpu.memory_space<vmem>>, vector<16x15xf32>,
    %75 = vector.broadcast %22 : vector<16x1xf32> to vector<16x16xf32>
    %76 = arith.mulf %3, %75 : vector<16x16xf32>
    %77 = vector.broadcast %25 : vector<16x1xf32> to vector<16x16xf32>
    %78 = arith.addf %76, %77 : vector<16x16xf32>
    %79 = vector.extract_strided_slice %57 {offsets = [0, 16], sizes = [16, 16], strides = [1, 1]} : vector<32x32xf32> to vector<16x16xf32>
    %80 = arith.mulf %79, %78 : vector<16x16xf32>
    %81 = vector.extract_strided_slice %57 {offsets = [16, 16], sizes = [16, 16], strides = [1, 1]} : vector<32x32xf32> to vector<16x16xf32>
    %82 = arith.addf %80, %81 : vector<16x16xf32>
    %cst_55 = arith.constant 0.000000e+00 : f32
    %83 = vector.broadcast %cst_55 : f32 to vector<16x16xf32>
    %84 = arith.maximumf %82, %83 : vector<16x16xf32>
    %85 = vector.extract_strided_slice %84 {offsets = [0, 0], sizes = [16, 15], strides = [1, 1]} : vector<16x16xf32> to vector<16x15xf32>
    %c0_56 = arith.constant 0 : index
    %c17_57 = arith.constant 17 : index
    %86 = vector.load %arg9[%c0_56, %c17_57] : memref<48x32xf32, #tpu.memory_space<vmem>>, vector<16x15xf32>
    tpu.vector_store %arg9[%c0_56, %c17_57], %85 {strides = array<i32>} : memref<48x32xf32, #tpu.memory_space<vmem>>, vector<16x15xf32>,
    %c16_58 = arith.constant 16 : index
    %c16_59 = arith.constant 16 : index
    %87 = vector.load %arg9[%c16_58, %c16_59] : memref<48x32xf32, #tpu.memory_space<vmem>>, vector<16x16xf32>
    tpu.vector_store %arg9[%c16_58, %c16_59], %84 {strides = array<i32>} : memref<48x32xf32, #tpu.memory_space<vmem>>, vector<16x16xf32>,
    %88 = vector.extract_strided_slice %84 {offsets = [0, 1], sizes = [16, 15], strides = [1, 1]} : vector<16x16xf32> to vector<16x15xf32>
    %c32_60 = arith.constant 32 : index
    %c16_61 = arith.constant 16 : index
    %89 = vector.load %arg9[%c32_60, %c16_61] : memref<48x32xf32, #tpu.memory_space<vmem>>, vector<16x15xf32>
    tpu.vector_store %arg9[%c32_60, %c16_61], %88 {strides = array<i32>} : memref<48x32xf32, #tpu.memory_space<vmem>>, vector<16x15xf32>,
    %c0_62 = arith.constant 0 : index
    %c0_63 = arith.constant 0 : index
    %90 = vector.load %arg6[%c0_62, %c0_63] : memref<16x48xf32, #tpu.memory_space<vmem>>, vector<16x48xf32>
    %c0_64 = arith.constant 0 : index
    %c0_65 = arith.constant 0 : index
    %91 = vector.load %arg9[%c0_64, %c0_65] : memref<48x32xf32, #tpu.memory_space<vmem>>, vector<48x32xf32>
    %cst_66 = arith.constant dense<0.000000e+00> : vector<16x32xf32>
    %92 = tpu.matmul %90, %91, %cst_66 {dimension_numbers = #tpu.dot_dimension_numbers<[1], [0], [0], [1], [0, 0, 1, 1], [], []>} : vector<16x48xf32>, vector<48x32xf32>, vector<16x32xf32> -> vector<16x32xf32>
    %c0_67 = arith.constant 0 : index
    %c0_68 = arith.constant 0 : index
    %93 = vector.load %arg7[%c0_67, %c0_68] : memref<16x1xf32, #tpu.memory_space<vmem>>, vector<16x1xf32>
    %94 = vector.broadcast %93 : vector<16x1xf32> to vector<16x32xf32>
    %95 = arith.addf %92, %94 : vector<16x32xf32>
    %96 = vector.extract_strided_slice %95 {offsets = [0, 0], sizes = [16, 16], strides = [1, 1]} : vector<16x32xf32> to vector<16x16xf32>
    %c0_69 = arith.constant 0 : index
    %c0_70 = arith.constant 0 : index
    %c0_71 = arith.constant 0 : index
    %97 = vector.load %arg8[%c0_69, %c0_70, %c0_71] : memref<2x16x16xf32, #tpu.memory_space<vmem>>, vector<1x16x16xf32>
    %98 = vector.shape_cast %97 : vector<1x16x16xf32> to vector<16x16xf32>
    %99 = vector.shape_cast %96 : vector<16x16xf32> to vector<1x16x16xf32>
    tpu.vector_store %arg8[%c0_69, %c0_70, %c0_71], %99 {strides = array<i32>} : memref<2x16x16xf32, #tpu.memory_space<vmem>>, vector<1x16x16xf32>,
    %100 = vector.extract_strided_slice %95 {offsets = [0, 16], sizes = [16, 16], strides = [1, 1]} : vector<16x32xf32> to vector<16x16xf32>
    %c1_72 = arith.constant 1 : index
    %c0_73 = arith.constant 0 : index
    %c0_74 = arith.constant 0 : index
    %101 = vector.load %arg8[%c1_72, %c0_73, %c0_74] : memref<2x16x16xf32, #tpu.memory_space<vmem>>, vector<1x16x16xf32>
    %102 = vector.shape_cast %101 : vector<1x16x16xf32> to vector<16x16xf32>
    %103 = vector.shape_cast %100 : vector<16x16xf32> to vector<1x16x16xf32>
    tpu.vector_store %arg8[%c1_72, %c0_73, %c0_74], %103 {strides = array<i32>} : memref<2x16x16xf32, #tpu.memory_space<vmem>>, vector<1x16x16xf32>,
    return
  }
}

module attributes {stable_mosaic.version = 11 : i64} {
  func.func @kernel(%arg0: memref<2x16x16xf32, #tpu.memory_space<vmem>>, %arg1: memref<16x1xf32, #tpu.memory_space<vmem>>, %arg2: memref<16x1xf32, #tpu.memory_space<vmem>>, %arg3: memref<2x4x8xf32, #tpu.memory_space<vmem>>, %arg4: memref<32x56xf32, #tpu.memory_space<vmem>>, %arg5: memref<32x1xf32, #tpu.memory_space<vmem>>, %arg6: memref<16x48xf32, #tpu.memory_space<vmem>>, %arg7: memref<16x1xf32, #tpu.memory_space<vmem>>, %arg8: memref<2x16x16xf32, #tpu.memory_space<vmem>>, %arg9: memref<2x16x16xf32, #tpu.memory_space<vmem>>, %arg10: memref<48x32xf32, #tpu.memory_space<vmem>>, %arg11: memref<56x32xf32, #tpu.memory_space<vmem>>) attributes {dimension_semantics = [], scalar_prefetch = 0 : i64, scratch_operands = 2 : i64, tpu.core_type = #tpu.core_type<tc>} {
    %c0 = arith.constant 0 : index
    %c0_0 = arith.constant 0 : index
    %c0_1 = arith.constant 0 : index
    %0 = vector.load %arg0[%c0, %c0_0, %c0_1] : memref<2x16x16xf32, #tpu.memory_space<vmem>>, vector<1x16x16xf32>
    %1 = vector.shape_cast %0 : vector<1x16x16xf32> to vector<16x16xf32>
    %c1 = arith.constant 1 : index
    %c0_2 = arith.constant 0 : index
    %c0_3 = arith.constant 0 : index
    %2 = vector.load %arg0[%c1, %c0_2, %c0_3] : memref<2x16x16xf32, #tpu.memory_space<vmem>>, vector<1x16x16xf32>
    %3 = vector.shape_cast %2 : vector<1x16x16xf32> to vector<16x16xf32>
    %4 = arith.mulf %1, %1 : vector<16x16xf32>
    %5 = arith.addf %1, %3 : vector<16x16xf32>
    %6 = arith.mulf %3, %3 : vector<16x16xf32>
    %7 = arith.addf %4, %6 : vector<16x16xf32>
    %cst = arith.constant dense<0.000000e+00> : vector<16xf32>
    %8 = vector.multi_reduction <add>, %5, %cst [1] : vector<16x16xf32> to vector<16xf32>
    %9 = vector.shape_cast %8 : vector<16xf32> to vector<16x1xf32>
    %cst_4 = arith.constant 3.125000e-02 : f32
    %10 = vector.broadcast %cst_4 : f32 to vector<16x1xf32>
    %11 = arith.mulf %9, %10 : vector<16x1xf32>
    %cst_5 = arith.constant dense<0.000000e+00> : vector<16xf32>
    %12 = vector.multi_reduction <add>, %7, %cst_5 [1] : vector<16x16xf32> to vector<16xf32>
    %13 = vector.shape_cast %12 : vector<16xf32> to vector<16x1xf32>
    %cst_6 = arith.constant 3.125000e-02 : f32
    %14 = vector.broadcast %cst_6 : f32 to vector<16x1xf32>
    %15 = arith.mulf %13, %14 : vector<16x1xf32>
    %16 = arith.mulf %11, %11 : vector<16x1xf32>
    %17 = arith.subf %15, %16 : vector<16x1xf32>
    %cst_7 = arith.constant 9.99999974E-6 : f32
    %18 = vector.broadcast %cst_7 : f32 to vector<16x1xf32>
    %19 = arith.addf %17, %18 : vector<16x1xf32>
    %20 = math.rsqrt %19 : vector<16x1xf32>
    %c0_8 = arith.constant 0 : index
    %c0_9 = arith.constant 0 : index
    %21 = vector.load %arg1[%c0_8, %c0_9] : memref<16x1xf32, #tpu.memory_space<vmem>>, vector<16x1xf32>
    %22 = arith.mulf %21, %20 : vector<16x1xf32>
    %c0_10 = arith.constant 0 : index
    %c0_11 = arith.constant 0 : index
    %23 = vector.load %arg2[%c0_10, %c0_11] : memref<16x1xf32, #tpu.memory_space<vmem>>, vector<16x1xf32>
    %24 = arith.mulf %11, %22 : vector<16x1xf32>
    %25 = arith.subf %23, %24 : vector<16x1xf32>
    %cst_12 = arith.constant 0.000000e+00 : f32
    %26 = vector.broadcast %cst_12 : f32 to vector<56x32xf32>
    %c0_13 = arith.constant 0 : index
    %c0_14 = arith.constant 0 : index
    %27 = vector.load %arg11[%c0_13, %c0_14] : memref<56x32xf32, #tpu.memory_space<vmem>>, vector<56x32xf32>
    tpu.vector_store %arg11[%c0_13, %c0_14], %26 {strides = array<i32>} : memref<56x32xf32, #tpu.memory_space<vmem>>, vector<56x32xf32>,
    %c0_15 = arith.constant 0 : index
    %c0_16 = arith.constant 0 : index
    %c0_17 = arith.constant 0 : index
    %28 = vector.load %arg3[%c0_15, %c0_16, %c0_17] : memref<2x4x8xf32, #tpu.memory_space<vmem>>, vector<1x4x8xf32>
    %29 = vector.shape_cast %28 : vector<1x4x8xf32> to vector<4x8xf32>
    %c0_18 = arith.constant 0 : index
    %c3 = arith.constant 3 : index
    %30 = vector.load %arg11[%c0_18, %c3] : memref<56x32xf32, #tpu.memory_space<vmem>>, vector<4x8xf32>
    tpu.vector_store %arg11[%c0_18, %c3], %29 {strides = array<i32>} : memref<56x32xf32, #tpu.memory_space<vmem>>, vector<4x8xf32>,
    %c8 = arith.constant 8 : index
    %c2 = arith.constant 2 : index
    %31 = vector.load %arg11[%c8, %c2] : memref<56x32xf32, #tpu.memory_space<vmem>>, vector<4x8xf32>
    tpu.vector_store %arg11[%c8, %c2], %29 {strides = array<i32>} : memref<56x32xf32, #tpu.memory_space<vmem>>, vector<4x8xf32>,
    %c16 = arith.constant 16 : index
    %c1_19 = arith.constant 1 : index
    %32 = vector.load %arg11[%c16, %c1_19] : memref<56x32xf32, #tpu.memory_space<vmem>>, vector<4x8xf32>
    tpu.vector_store %arg11[%c16, %c1_19], %29 {strides = array<i32>} : memref<56x32xf32, #tpu.memory_space<vmem>>, vector<4x8xf32>,
    %c24 = arith.constant 24 : index
    %c0_20 = arith.constant 0 : index
    %33 = vector.load %arg11[%c24, %c0_20] : memref<56x32xf32, #tpu.memory_space<vmem>>, vector<4x8xf32>
    tpu.vector_store %arg11[%c24, %c0_20], %29 {strides = array<i32>} : memref<56x32xf32, #tpu.memory_space<vmem>>, vector<4x8xf32>,
    %34 = vector.extract_strided_slice %29 {offsets = [0, 1], sizes = [4, 7], strides = [1, 1]} : vector<4x8xf32> to vector<4x7xf32>
    %c32 = arith.constant 32 : index
    %c0_21 = arith.constant 0 : index
    %35 = vector.load %arg11[%c32, %c0_21] : memref<56x32xf32, #tpu.memory_space<vmem>>, vector<4x7xf32>
    tpu.vector_store %arg11[%c32, %c0_21], %34 {strides = array<i32>} : memref<56x32xf32, #tpu.memory_space<vmem>>, vector<4x7xf32>,
    %36 = vector.extract_strided_slice %29 {offsets = [0, 2], sizes = [4, 6], strides = [1, 1]} : vector<4x8xf32> to vector<4x6xf32>
    %c40 = arith.constant 40 : index
    %c0_22 = arith.constant 0 : index
    %37 = vector.load %arg11[%c40, %c0_22] : memref<56x32xf32, #tpu.memory_space<vmem>>, vector<4x6xf32>
    tpu.vector_store %arg11[%c40, %c0_22], %36 {strides = array<i32>} : memref<56x32xf32, #tpu.memory_space<vmem>>, vector<4x6xf32>,
    %38 = vector.extract_strided_slice %29 {offsets = [0, 3], sizes = [4, 5], strides = [1, 1]} : vector<4x8xf32> to vector<4x5xf32>
    %c48 = arith.constant 48 : index
    %c0_23 = arith.constant 0 : index
    %39 = vector.load %arg11[%c48, %c0_23] : memref<56x32xf32, #tpu.memory_space<vmem>>, vector<4x5xf32>
    tpu.vector_store %arg11[%c48, %c0_23], %38 {strides = array<i32>} : memref<56x32xf32, #tpu.memory_space<vmem>>, vector<4x5xf32>,
    %c1_24 = arith.constant 1 : index
    %c0_25 = arith.constant 0 : index
    %c0_26 = arith.constant 0 : index
    %40 = vector.load %arg3[%c1_24, %c0_25, %c0_26] : memref<2x4x8xf32, #tpu.memory_space<vmem>>, vector<1x4x8xf32>
    %41 = vector.shape_cast %40 : vector<1x4x8xf32> to vector<4x8xf32>
    %c0_27 = arith.constant 0 : index
    %c19 = arith.constant 19 : index
    %42 = vector.load %arg11[%c0_27, %c19] : memref<56x32xf32, #tpu.memory_space<vmem>>, vector<4x8xf32>
    tpu.vector_store %arg11[%c0_27, %c19], %41 {strides = array<i32>} : memref<56x32xf32, #tpu.memory_space<vmem>>, vector<4x8xf32>,
    %c8_28 = arith.constant 8 : index
    %c18 = arith.constant 18 : index
    %43 = vector.load %arg11[%c8_28, %c18] : memref<56x32xf32, #tpu.memory_space<vmem>>, vector<4x8xf32>
    tpu.vector_store %arg11[%c8_28, %c18], %41 {strides = array<i32>} : memref<56x32xf32, #tpu.memory_space<vmem>>, vector<4x8xf32>,
    %c16_29 = arith.constant 16 : index
    %c17 = arith.constant 17 : index
    %44 = vector.load %arg11[%c16_29, %c17] : memref<56x32xf32, #tpu.memory_space<vmem>>, vector<4x8xf32>
    tpu.vector_store %arg11[%c16_29, %c17], %41 {strides = array<i32>} : memref<56x32xf32, #tpu.memory_space<vmem>>, vector<4x8xf32>,
    %c24_30 = arith.constant 24 : index
    %c16_31 = arith.constant 16 : index
    %45 = vector.load %arg11[%c24_30, %c16_31] : memref<56x32xf32, #tpu.memory_space<vmem>>, vector<4x8xf32>
    tpu.vector_store %arg11[%c24_30, %c16_31], %41 {strides = array<i32>} : memref<56x32xf32, #tpu.memory_space<vmem>>, vector<4x8xf32>,
    %46 = vector.extract_strided_slice %41 {offsets = [0, 1], sizes = [4, 7], strides = [1, 1]} : vector<4x8xf32> to vector<4x7xf32>
    %c32_32 = arith.constant 32 : index
    %c16_33 = arith.constant 16 : index
    %47 = vector.load %arg11[%c32_32, %c16_33] : memref<56x32xf32, #tpu.memory_space<vmem>>, vector<4x7xf32>
    tpu.vector_store %arg11[%c32_32, %c16_33], %46 {strides = array<i32>} : memref<56x32xf32, #tpu.memory_space<vmem>>, vector<4x7xf32>,
    %48 = vector.extract_strided_slice %41 {offsets = [0, 2], sizes = [4, 6], strides = [1, 1]} : vector<4x8xf32> to vector<4x6xf32>
    %c40_34 = arith.constant 40 : index
    %c16_35 = arith.constant 16 : index
    %49 = vector.load %arg11[%c40_34, %c16_35] : memref<56x32xf32, #tpu.memory_space<vmem>>, vector<4x6xf32>
    tpu.vector_store %arg11[%c40_34, %c16_35], %48 {strides = array<i32>} : memref<56x32xf32, #tpu.memory_space<vmem>>, vector<4x6xf32>,
    %50 = vector.extract_strided_slice %41 {offsets = [0, 3], sizes = [4, 5], strides = [1, 1]} : vector<4x8xf32> to vector<4x5xf32>
    %c48_36 = arith.constant 48 : index
    %c16_37 = arith.constant 16 : index
    %51 = vector.load %arg11[%c48_36, %c16_37] : memref<56x32xf32, #tpu.memory_space<vmem>>, vector<4x5xf32>
    tpu.vector_store %arg11[%c48_36, %c16_37], %50 {strides = array<i32>} : memref<56x32xf32, #tpu.memory_space<vmem>>, vector<4x5xf32>,
    %c0_38 = arith.constant 0 : index
    %c0_39 = arith.constant 0 : index
    %52 = vector.load %arg4[%c0_38, %c0_39] : memref<32x56xf32, #tpu.memory_space<vmem>>, vector<32x56xf32>
    %c0_40 = arith.constant 0 : index
    %c0_41 = arith.constant 0 : index
    %53 = vector.load %arg11[%c0_40, %c0_41] : memref<56x32xf32, #tpu.memory_space<vmem>>, vector<56x32xf32>
    %cst_42 = arith.constant dense<0.000000e+00> : vector<32x32xf32>
    %54 = tpu.matmul %52, %53, %cst_42 {dimension_numbers = #tpu.dot_dimension_numbers<[1], [0], [0], [1], [0, 0, 1, 1], [], []>} : vector<32x56xf32>, vector<56x32xf32>, vector<32x32xf32> -> vector<32x32xf32>
    %c0_43 = arith.constant 0 : index
    %c0_44 = arith.constant 0 : index
    %55 = vector.load %arg5[%c0_43, %c0_44] : memref<32x1xf32, #tpu.memory_space<vmem>>, vector<32x1xf32>
    %56 = vector.broadcast %55 : vector<32x1xf32> to vector<32x32xf32>
    %57 = arith.addf %54, %56 : vector<32x32xf32>
    %cst_45 = arith.constant 0.000000e+00 : f32
    %58 = vector.broadcast %cst_45 : f32 to vector<48x32xf32>
    %c0_46 = arith.constant 0 : index
    %c0_47 = arith.constant 0 : index
    %59 = vector.load %arg10[%c0_46, %c0_47] : memref<48x32xf32, #tpu.memory_space<vmem>>, vector<48x32xf32>
    tpu.vector_store %arg10[%c0_46, %c0_47], %58 {strides = array<i32>} : memref<48x32xf32, #tpu.memory_space<vmem>>, vector<48x32xf32>,
    %60 = vector.broadcast %22 : vector<16x1xf32> to vector<16x16xf32>
    %61 = arith.mulf %1, %60 : vector<16x16xf32>
    %62 = vector.broadcast %25 : vector<16x1xf32> to vector<16x16xf32>
    %63 = arith.addf %61, %62 : vector<16x16xf32>
    %64 = vector.extract_strided_slice %57 {offsets = [0, 0], sizes = [16, 16], strides = [1, 1]} : vector<32x32xf32> to vector<16x16xf32>
    %65 = arith.mulf %64, %63 : vector<16x16xf32>
    %66 = vector.extract_strided_slice %57 {offsets = [16, 0], sizes = [16, 16], strides = [1, 1]} : vector<32x32xf32> to vector<16x16xf32>
    %67 = arith.addf %65, %66 : vector<16x16xf32>
    %cst_48 = arith.constant 0.000000e+00 : f32
    %68 = vector.broadcast %cst_48 : f32 to vector<16x16xf32>
    %69 = arith.maximumf %67, %68 : vector<16x16xf32>
    %70 = vector.extract_strided_slice %69 {offsets = [0, 0], sizes = [16, 13], strides = [1, 1]} : vector<16x16xf32> to vector<16x13xf32>
    %c0_49 = arith.constant 0 : index
    %c3_50 = arith.constant 3 : index
    %71 = vector.load %arg10[%c0_49, %c3_50] : memref<48x32xf32, #tpu.memory_space<vmem>>, vector<16x13xf32>
    tpu.vector_store %arg10[%c0_49, %c3_50], %70 {strides = array<i32>} : memref<48x32xf32, #tpu.memory_space<vmem>>, vector<16x13xf32>,
    %c16_51 = arith.constant 16 : index
    %c0_52 = arith.constant 0 : index
    %72 = vector.load %arg10[%c16_51, %c0_52] : memref<48x32xf32, #tpu.memory_space<vmem>>, vector<16x16xf32>
    tpu.vector_store %arg10[%c16_51, %c0_52], %69 {strides = array<i32>} : memref<48x32xf32, #tpu.memory_space<vmem>>, vector<16x16xf32>,
    %73 = vector.extract_strided_slice %69 {offsets = [0, 3], sizes = [16, 13], strides = [1, 1]} : vector<16x16xf32> to vector<16x13xf32>
    %c32_53 = arith.constant 32 : index
    %c0_54 = arith.constant 0 : index
    %74 = vector.load %arg10[%c32_53, %c0_54] : memref<48x32xf32, #tpu.memory_space<vmem>>, vector<16x13xf32>
    tpu.vector_store %arg10[%c32_53, %c0_54], %73 {strides = array<i32>} : memref<48x32xf32, #tpu.memory_space<vmem>>, vector<16x13xf32>,
    %75 = vector.broadcast %22 : vector<16x1xf32> to vector<16x16xf32>
    %76 = arith.mulf %3, %75 : vector<16x16xf32>
    %77 = vector.broadcast %25 : vector<16x1xf32> to vector<16x16xf32>
    %78 = arith.addf %76, %77 : vector<16x16xf32>
    %79 = vector.extract_strided_slice %57 {offsets = [0, 16], sizes = [16, 16], strides = [1, 1]} : vector<32x32xf32> to vector<16x16xf32>
    %80 = arith.mulf %79, %78 : vector<16x16xf32>
    %81 = vector.extract_strided_slice %57 {offsets = [16, 16], sizes = [16, 16], strides = [1, 1]} : vector<32x32xf32> to vector<16x16xf32>
    %82 = arith.addf %80, %81 : vector<16x16xf32>
    %cst_55 = arith.constant 0.000000e+00 : f32
    %83 = vector.broadcast %cst_55 : f32 to vector<16x16xf32>
    %84 = arith.maximumf %82, %83 : vector<16x16xf32>
    %85 = vector.extract_strided_slice %84 {offsets = [0, 0], sizes = [16, 13], strides = [1, 1]} : vector<16x16xf32> to vector<16x13xf32>
    %c0_56 = arith.constant 0 : index
    %c19_57 = arith.constant 19 : index
    %86 = vector.load %arg10[%c0_56, %c19_57] : memref<48x32xf32, #tpu.memory_space<vmem>>, vector<16x13xf32>
    tpu.vector_store %arg10[%c0_56, %c19_57], %85 {strides = array<i32>} : memref<48x32xf32, #tpu.memory_space<vmem>>, vector<16x13xf32>,
    %c16_58 = arith.constant 16 : index
    %c16_59 = arith.constant 16 : index
    %87 = vector.load %arg10[%c16_58, %c16_59] : memref<48x32xf32, #tpu.memory_space<vmem>>, vector<16x16xf32>
    tpu.vector_store %arg10[%c16_58, %c16_59], %84 {strides = array<i32>} : memref<48x32xf32, #tpu.memory_space<vmem>>, vector<16x16xf32>,
    %88 = vector.extract_strided_slice %84 {offsets = [0, 3], sizes = [16, 13], strides = [1, 1]} : vector<16x16xf32> to vector<16x13xf32>
    %c32_60 = arith.constant 32 : index
    %c16_61 = arith.constant 16 : index
    %89 = vector.load %arg10[%c32_60, %c16_61] : memref<48x32xf32, #tpu.memory_space<vmem>>, vector<16x13xf32>
    tpu.vector_store %arg10[%c32_60, %c16_61], %88 {strides = array<i32>} : memref<48x32xf32, #tpu.memory_space<vmem>>, vector<16x13xf32>,
    %c0_62 = arith.constant 0 : index
    %c0_63 = arith.constant 0 : index
    %90 = vector.load %arg6[%c0_62, %c0_63] : memref<16x48xf32, #tpu.memory_space<vmem>>, vector<16x48xf32>
    %c0_64 = arith.constant 0 : index
    %c0_65 = arith.constant 0 : index
    %91 = vector.load %arg10[%c0_64, %c0_65] : memref<48x32xf32, #tpu.memory_space<vmem>>, vector<48x32xf32>
    %cst_66 = arith.constant dense<0.000000e+00> : vector<16x32xf32>
    %92 = tpu.matmul %90, %91, %cst_66 {dimension_numbers = #tpu.dot_dimension_numbers<[1], [0], [0], [1], [0, 0, 1, 1], [], []>} : vector<16x48xf32>, vector<48x32xf32>, vector<16x32xf32> -> vector<16x32xf32>
    %c0_67 = arith.constant 0 : index
    %c0_68 = arith.constant 0 : index
    %93 = vector.load %arg7[%c0_67, %c0_68] : memref<16x1xf32, #tpu.memory_space<vmem>>, vector<16x1xf32>
    %94 = vector.broadcast %93 : vector<16x1xf32> to vector<16x32xf32>
    %95 = arith.addf %92, %94 : vector<16x32xf32>
    %96 = vector.extract_strided_slice %95 {offsets = [0, 0], sizes = [16, 16], strides = [1, 1]} : vector<16x32xf32> to vector<16x16xf32>
    %c0_69 = arith.constant 0 : index
    %c0_70 = arith.constant 0 : index
    %c0_71 = arith.constant 0 : index
    %97 = vector.load %arg8[%c0_69, %c0_70, %c0_71] : memref<2x16x16xf32, #tpu.memory_space<vmem>>, vector<1x16x16xf32>
    %98 = vector.shape_cast %97 : vector<1x16x16xf32> to vector<16x16xf32>
    %99 = arith.addf %96, %98 : vector<16x16xf32>
    %cst_72 = arith.constant 5.000000e-01 : f32
    %100 = vector.broadcast %cst_72 : f32 to vector<16x16xf32>
    %101 = arith.mulf %99, %100 : vector<16x16xf32>
    %c0_73 = arith.constant 0 : index
    %c0_74 = arith.constant 0 : index
    %c0_75 = arith.constant 0 : index
    %102 = vector.load %arg9[%c0_73, %c0_74, %c0_75] : memref<2x16x16xf32, #tpu.memory_space<vmem>>, vector<1x16x16xf32>
    %103 = vector.shape_cast %102 : vector<1x16x16xf32> to vector<16x16xf32>
    %104 = vector.shape_cast %101 : vector<16x16xf32> to vector<1x16x16xf32>
    tpu.vector_store %arg9[%c0_73, %c0_74, %c0_75], %104 {strides = array<i32>} : memref<2x16x16xf32, #tpu.memory_space<vmem>>, vector<1x16x16xf32>,
    %105 = vector.extract_strided_slice %95 {offsets = [0, 16], sizes = [16, 16], strides = [1, 1]} : vector<16x32xf32> to vector<16x16xf32>
    %c1_76 = arith.constant 1 : index
    %c0_77 = arith.constant 0 : index
    %c0_78 = arith.constant 0 : index
    %106 = vector.load %arg8[%c1_76, %c0_77, %c0_78] : memref<2x16x16xf32, #tpu.memory_space<vmem>>, vector<1x16x16xf32>
    %107 = vector.shape_cast %106 : vector<1x16x16xf32> to vector<16x16xf32>
    %108 = arith.addf %105, %107 : vector<16x16xf32>
    %cst_79 = arith.constant 5.000000e-01 : f32
    %109 = vector.broadcast %cst_79 : f32 to vector<16x16xf32>
    %110 = arith.mulf %108, %109 : vector<16x16xf32>
    %c1_80 = arith.constant 1 : index
    %c0_81 = arith.constant 0 : index
    %c0_82 = arith.constant 0 : index
    %111 = vector.load %arg9[%c1_80, %c0_81, %c0_82] : memref<2x16x16xf32, #tpu.memory_space<vmem>>, vector<1x16x16xf32>
    %112 = vector.shape_cast %111 : vector<1x16x16xf32> to vector<16x16xf32>
    %113 = vector.shape_cast %110 : vector<16x16xf32> to vector<1x16x16xf32>
    tpu.vector_store %arg9[%c1_80, %c0_81, %c0_82], %113 {strides = array<i32>} : memref<2x16x16xf32, #tpu.memory_space<vmem>>, vector<1x16x16xf32>,
    return
  }
}

module attributes {stable_mosaic.version = 11 : i64} {
  func.func @kernel(%arg0: memref<2x16x16xf32, #tpu.memory_space<vmem>>, %arg1: memref<16x1xf32, #tpu.memory_space<vmem>>, %arg2: memref<16x1xf32, #tpu.memory_space<vmem>>, %arg3: memref<2x4x8xf32, #tpu.memory_space<vmem>>, %arg4: memref<32x56xf32, #tpu.memory_space<vmem>>, %arg5: memref<32x1xf32, #tpu.memory_space<vmem>>, %arg6: memref<16x80xf32, #tpu.memory_space<vmem>>, %arg7: memref<16x1xf32, #tpu.memory_space<vmem>>, %arg8: memref<2x16x16xf32, #tpu.memory_space<vmem>>, %arg9: memref<2x16x16xf32, #tpu.memory_space<vmem>>, %arg10: memref<2x16x16xf32, #tpu.memory_space<vmem>>, %arg11: memref<80x32xf32, #tpu.memory_space<vmem>>, %arg12: memref<56x32xf32, #tpu.memory_space<vmem>>) attributes {dimension_semantics = [], scalar_prefetch = 0 : i64, scratch_operands = 2 : i64, tpu.core_type = #tpu.core_type<tc>} {
    %c0 = arith.constant 0 : index
    %c0_0 = arith.constant 0 : index
    %c0_1 = arith.constant 0 : index
    %0 = vector.load %arg0[%c0, %c0_0, %c0_1] : memref<2x16x16xf32, #tpu.memory_space<vmem>>, vector<1x16x16xf32>
    %1 = vector.shape_cast %0 : vector<1x16x16xf32> to vector<16x16xf32>
    %c1 = arith.constant 1 : index
    %c0_2 = arith.constant 0 : index
    %c0_3 = arith.constant 0 : index
    %2 = vector.load %arg0[%c1, %c0_2, %c0_3] : memref<2x16x16xf32, #tpu.memory_space<vmem>>, vector<1x16x16xf32>
    %3 = vector.shape_cast %2 : vector<1x16x16xf32> to vector<16x16xf32>
    %4 = arith.mulf %1, %1 : vector<16x16xf32>
    %5 = arith.addf %1, %3 : vector<16x16xf32>
    %6 = arith.mulf %3, %3 : vector<16x16xf32>
    %7 = arith.addf %4, %6 : vector<16x16xf32>
    %cst = arith.constant dense<0.000000e+00> : vector<16xf32>
    %8 = vector.multi_reduction <add>, %5, %cst [1] : vector<16x16xf32> to vector<16xf32>
    %9 = vector.shape_cast %8 : vector<16xf32> to vector<16x1xf32>
    %cst_4 = arith.constant 3.125000e-02 : f32
    %10 = vector.broadcast %cst_4 : f32 to vector<16x1xf32>
    %11 = arith.mulf %9, %10 : vector<16x1xf32>
    %cst_5 = arith.constant dense<0.000000e+00> : vector<16xf32>
    %12 = vector.multi_reduction <add>, %7, %cst_5 [1] : vector<16x16xf32> to vector<16xf32>
    %13 = vector.shape_cast %12 : vector<16xf32> to vector<16x1xf32>
    %cst_6 = arith.constant 3.125000e-02 : f32
    %14 = vector.broadcast %cst_6 : f32 to vector<16x1xf32>
    %15 = arith.mulf %13, %14 : vector<16x1xf32>
    %16 = arith.mulf %11, %11 : vector<16x1xf32>
    %17 = arith.subf %15, %16 : vector<16x1xf32>
    %cst_7 = arith.constant 9.99999974E-6 : f32
    %18 = vector.broadcast %cst_7 : f32 to vector<16x1xf32>
    %19 = arith.addf %17, %18 : vector<16x1xf32>
    %20 = math.rsqrt %19 : vector<16x1xf32>
    %c0_8 = arith.constant 0 : index
    %c0_9 = arith.constant 0 : index
    %21 = vector.load %arg1[%c0_8, %c0_9] : memref<16x1xf32, #tpu.memory_space<vmem>>, vector<16x1xf32>
    %22 = arith.mulf %21, %20 : vector<16x1xf32>
    %c0_10 = arith.constant 0 : index
    %c0_11 = arith.constant 0 : index
    %23 = vector.load %arg2[%c0_10, %c0_11] : memref<16x1xf32, #tpu.memory_space<vmem>>, vector<16x1xf32>
    %24 = arith.mulf %11, %22 : vector<16x1xf32>
    %25 = arith.subf %23, %24 : vector<16x1xf32>
    %cst_12 = arith.constant 0.000000e+00 : f32
    %26 = vector.broadcast %cst_12 : f32 to vector<56x32xf32>
    %c0_13 = arith.constant 0 : index
    %c0_14 = arith.constant 0 : index
    %27 = vector.load %arg12[%c0_13, %c0_14] : memref<56x32xf32, #tpu.memory_space<vmem>>, vector<56x32xf32>
    tpu.vector_store %arg12[%c0_13, %c0_14], %26 {strides = array<i32>} : memref<56x32xf32, #tpu.memory_space<vmem>>, vector<56x32xf32>,
    %c0_15 = arith.constant 0 : index
    %c0_16 = arith.constant 0 : index
    %c0_17 = arith.constant 0 : index
    %28 = vector.load %arg3[%c0_15, %c0_16, %c0_17] : memref<2x4x8xf32, #tpu.memory_space<vmem>>, vector<1x4x8xf32>
    %29 = vector.shape_cast %28 : vector<1x4x8xf32> to vector<4x8xf32>
    %c0_18 = arith.constant 0 : index
    %c3 = arith.constant 3 : index
    %30 = vector.load %arg12[%c0_18, %c3] : memref<56x32xf32, #tpu.memory_space<vmem>>, vector<4x8xf32>
    tpu.vector_store %arg12[%c0_18, %c3], %29 {strides = array<i32>} : memref<56x32xf32, #tpu.memory_space<vmem>>, vector<4x8xf32>,
    %c8 = arith.constant 8 : index
    %c2 = arith.constant 2 : index
    %31 = vector.load %arg12[%c8, %c2] : memref<56x32xf32, #tpu.memory_space<vmem>>, vector<4x8xf32>
    tpu.vector_store %arg12[%c8, %c2], %29 {strides = array<i32>} : memref<56x32xf32, #tpu.memory_space<vmem>>, vector<4x8xf32>,
    %c16 = arith.constant 16 : index
    %c1_19 = arith.constant 1 : index
    %32 = vector.load %arg12[%c16, %c1_19] : memref<56x32xf32, #tpu.memory_space<vmem>>, vector<4x8xf32>
    tpu.vector_store %arg12[%c16, %c1_19], %29 {strides = array<i32>} : memref<56x32xf32, #tpu.memory_space<vmem>>, vector<4x8xf32>,
    %c24 = arith.constant 24 : index
    %c0_20 = arith.constant 0 : index
    %33 = vector.load %arg12[%c24, %c0_20] : memref<56x32xf32, #tpu.memory_space<vmem>>, vector<4x8xf32>
    tpu.vector_store %arg12[%c24, %c0_20], %29 {strides = array<i32>} : memref<56x32xf32, #tpu.memory_space<vmem>>, vector<4x8xf32>,
    %34 = vector.extract_strided_slice %29 {offsets = [0, 1], sizes = [4, 7], strides = [1, 1]} : vector<4x8xf32> to vector<4x7xf32>
    %c32 = arith.constant 32 : index
    %c0_21 = arith.constant 0 : index
    %35 = vector.load %arg12[%c32, %c0_21] : memref<56x32xf32, #tpu.memory_space<vmem>>, vector<4x7xf32>
    tpu.vector_store %arg12[%c32, %c0_21], %34 {strides = array<i32>} : memref<56x32xf32, #tpu.memory_space<vmem>>, vector<4x7xf32>,
    %36 = vector.extract_strided_slice %29 {offsets = [0, 2], sizes = [4, 6], strides = [1, 1]} : vector<4x8xf32> to vector<4x6xf32>
    %c40 = arith.constant 40 : index
    %c0_22 = arith.constant 0 : index
    %37 = vector.load %arg12[%c40, %c0_22] : memref<56x32xf32, #tpu.memory_space<vmem>>, vector<4x6xf32>
    tpu.vector_store %arg12[%c40, %c0_22], %36 {strides = array<i32>} : memref<56x32xf32, #tpu.memory_space<vmem>>, vector<4x6xf32>,
    %38 = vector.extract_strided_slice %29 {offsets = [0, 3], sizes = [4, 5], strides = [1, 1]} : vector<4x8xf32> to vector<4x5xf32>
    %c48 = arith.constant 48 : index
    %c0_23 = arith.constant 0 : index
    %39 = vector.load %arg12[%c48, %c0_23] : memref<56x32xf32, #tpu.memory_space<vmem>>, vector<4x5xf32>
    tpu.vector_store %arg12[%c48, %c0_23], %38 {strides = array<i32>} : memref<56x32xf32, #tpu.memory_space<vmem>>, vector<4x5xf32>,
    %c1_24 = arith.constant 1 : index
    %c0_25 = arith.constant 0 : index
    %c0_26 = arith.constant 0 : index
    %40 = vector.load %arg3[%c1_24, %c0_25, %c0_26] : memref<2x4x8xf32, #tpu.memory_space<vmem>>, vector<1x4x8xf32>
    %41 = vector.shape_cast %40 : vector<1x4x8xf32> to vector<4x8xf32>
    %c0_27 = arith.constant 0 : index
    %c19 = arith.constant 19 : index
    %42 = vector.load %arg12[%c0_27, %c19] : memref<56x32xf32, #tpu.memory_space<vmem>>, vector<4x8xf32>
    tpu.vector_store %arg12[%c0_27, %c19], %41 {strides = array<i32>} : memref<56x32xf32, #tpu.memory_space<vmem>>, vector<4x8xf32>,
    %c8_28 = arith.constant 8 : index
    %c18 = arith.constant 18 : index
    %43 = vector.load %arg12[%c8_28, %c18] : memref<56x32xf32, #tpu.memory_space<vmem>>, vector<4x8xf32>
    tpu.vector_store %arg12[%c8_28, %c18], %41 {strides = array<i32>} : memref<56x32xf32, #tpu.memory_space<vmem>>, vector<4x8xf32>,
    %c16_29 = arith.constant 16 : index
    %c17 = arith.constant 17 : index
    %44 = vector.load %arg12[%c16_29, %c17] : memref<56x32xf32, #tpu.memory_space<vmem>>, vector<4x8xf32>
    tpu.vector_store %arg12[%c16_29, %c17], %41 {strides = array<i32>} : memref<56x32xf32, #tpu.memory_space<vmem>>, vector<4x8xf32>,
    %c24_30 = arith.constant 24 : index
    %c16_31 = arith.constant 16 : index
    %45 = vector.load %arg12[%c24_30, %c16_31] : memref<56x32xf32, #tpu.memory_space<vmem>>, vector<4x8xf32>
    tpu.vector_store %arg12[%c24_30, %c16_31], %41 {strides = array<i32>} : memref<56x32xf32, #tpu.memory_space<vmem>>, vector<4x8xf32>,
    %46 = vector.extract_strided_slice %41 {offsets = [0, 1], sizes = [4, 7], strides = [1, 1]} : vector<4x8xf32> to vector<4x7xf32>
    %c32_32 = arith.constant 32 : index
    %c16_33 = arith.constant 16 : index
    %47 = vector.load %arg12[%c32_32, %c16_33] : memref<56x32xf32, #tpu.memory_space<vmem>>, vector<4x7xf32>
    tpu.vector_store %arg12[%c32_32, %c16_33], %46 {strides = array<i32>} : memref<56x32xf32, #tpu.memory_space<vmem>>, vector<4x7xf32>,
    %48 = vector.extract_strided_slice %41 {offsets = [0, 2], sizes = [4, 6], strides = [1, 1]} : vector<4x8xf32> to vector<4x6xf32>
    %c40_34 = arith.constant 40 : index
    %c16_35 = arith.constant 16 : index
    %49 = vector.load %arg12[%c40_34, %c16_35] : memref<56x32xf32, #tpu.memory_space<vmem>>, vector<4x6xf32>
    tpu.vector_store %arg12[%c40_34, %c16_35], %48 {strides = array<i32>} : memref<56x32xf32, #tpu.memory_space<vmem>>, vector<4x6xf32>,
    %50 = vector.extract_strided_slice %41 {offsets = [0, 3], sizes = [4, 5], strides = [1, 1]} : vector<4x8xf32> to vector<4x5xf32>
    %c48_36 = arith.constant 48 : index
    %c16_37 = arith.constant 16 : index
    %51 = vector.load %arg12[%c48_36, %c16_37] : memref<56x32xf32, #tpu.memory_space<vmem>>, vector<4x5xf32>
    tpu.vector_store %arg12[%c48_36, %c16_37], %50 {strides = array<i32>} : memref<56x32xf32, #tpu.memory_space<vmem>>, vector<4x5xf32>,
    %c0_38 = arith.constant 0 : index
    %c0_39 = arith.constant 0 : index
    %52 = vector.load %arg4[%c0_38, %c0_39] : memref<32x56xf32, #tpu.memory_space<vmem>>, vector<32x56xf32>
    %c0_40 = arith.constant 0 : index
    %c0_41 = arith.constant 0 : index
    %53 = vector.load %arg12[%c0_40, %c0_41] : memref<56x32xf32, #tpu.memory_space<vmem>>, vector<56x32xf32>
    %cst_42 = arith.constant dense<0.000000e+00> : vector<32x32xf32>
    %54 = tpu.matmul %52, %53, %cst_42 {dimension_numbers = #tpu.dot_dimension_numbers<[1], [0], [0], [1], [0, 0, 1, 1], [], []>} : vector<32x56xf32>, vector<56x32xf32>, vector<32x32xf32> -> vector<32x32xf32>
    %c0_43 = arith.constant 0 : index
    %c0_44 = arith.constant 0 : index
    %55 = vector.load %arg5[%c0_43, %c0_44] : memref<32x1xf32, #tpu.memory_space<vmem>>, vector<32x1xf32>
    %56 = vector.broadcast %55 : vector<32x1xf32> to vector<32x32xf32>
    %57 = arith.addf %54, %56 : vector<32x32xf32>
    %cst_45 = arith.constant 0.000000e+00 : f32
    %58 = vector.broadcast %cst_45 : f32 to vector<80x32xf32>
    %c0_46 = arith.constant 0 : index
    %c0_47 = arith.constant 0 : index
    %59 = vector.load %arg11[%c0_46, %c0_47] : memref<80x32xf32, #tpu.memory_space<vmem>>, vector<80x32xf32>
    tpu.vector_store %arg11[%c0_46, %c0_47], %58 {strides = array<i32>} : memref<80x32xf32, #tpu.memory_space<vmem>>, vector<80x32xf32>,
    %60 = vector.broadcast %22 : vector<16x1xf32> to vector<16x16xf32>
    %61 = arith.mulf %1, %60 : vector<16x16xf32>
    %62 = vector.broadcast %25 : vector<16x1xf32> to vector<16x16xf32>
    %63 = arith.addf %61, %62 : vector<16x16xf32>
    %64 = vector.extract_strided_slice %57 {offsets = [0, 0], sizes = [16, 16], strides = [1, 1]} : vector<32x32xf32> to vector<16x16xf32>
    %65 = arith.mulf %64, %63 : vector<16x16xf32>
    %66 = vector.extract_strided_slice %57 {offsets = [16, 0], sizes = [16, 16], strides = [1, 1]} : vector<32x32xf32> to vector<16x16xf32>
    %67 = arith.addf %65, %66 : vector<16x16xf32>
    %cst_48 = arith.constant 0.000000e+00 : f32
    %68 = vector.broadcast %cst_48 : f32 to vector<16x16xf32>
    %69 = arith.maximumf %67, %68 : vector<16x16xf32>
    %70 = vector.extract_strided_slice %69 {offsets = [0, 0], sizes = [16, 10], strides = [1, 1]} : vector<16x16xf32> to vector<16x10xf32>
    %c0_49 = arith.constant 0 : index
    %c6 = arith.constant 6 : index
    %71 = vector.load %arg11[%c0_49, %c6] : memref<80x32xf32, #tpu.memory_space<vmem>>, vector<16x10xf32>
    tpu.vector_store %arg11[%c0_49, %c6], %70 {strides = array<i32>} : memref<80x32xf32, #tpu.memory_space<vmem>>, vector<16x10xf32>,
    %72 = vector.extract_strided_slice %69 {offsets = [0, 0], sizes = [16, 13], strides = [1, 1]} : vector<16x16xf32> to vector<16x13xf32>
    %c16_50 = arith.constant 16 : index
    %c3_51 = arith.constant 3 : index
    %73 = vector.load %arg11[%c16_50, %c3_51] : memref<80x32xf32, #tpu.memory_space<vmem>>, vector<16x13xf32>
    tpu.vector_store %arg11[%c16_50, %c3_51], %72 {strides = array<i32>} : memref<80x32xf32, #tpu.memory_space<vmem>>, vector<16x13xf32>,
    %c32_52 = arith.constant 32 : index
    %c0_53 = arith.constant 0 : index
    %74 = vector.load %arg11[%c32_52, %c0_53] : memref<80x32xf32, #tpu.memory_space<vmem>>, vector<16x16xf32>
    tpu.vector_store %arg11[%c32_52, %c0_53], %69 {strides = array<i32>} : memref<80x32xf32, #tpu.memory_space<vmem>>, vector<16x16xf32>,
    %75 = vector.extract_strided_slice %69 {offsets = [0, 3], sizes = [16, 13], strides = [1, 1]} : vector<16x16xf32> to vector<16x13xf32>
    %c48_54 = arith.constant 48 : index
    %c0_55 = arith.constant 0 : index
    %76 = vector.load %arg11[%c48_54, %c0_55] : memref<80x32xf32, #tpu.memory_space<vmem>>, vector<16x13xf32>
    tpu.vector_store %arg11[%c48_54, %c0_55], %75 {strides = array<i32>} : memref<80x32xf32, #tpu.memory_space<vmem>>, vector<16x13xf32>,
    %77 = vector.extract_strided_slice %69 {offsets = [0, 6], sizes = [16, 10], strides = [1, 1]} : vector<16x16xf32> to vector<16x10xf32>
    %c64 = arith.constant 64 : index
    %c0_56 = arith.constant 0 : index
    %78 = vector.load %arg11[%c64, %c0_56] : memref<80x32xf32, #tpu.memory_space<vmem>>, vector<16x10xf32>
    tpu.vector_store %arg11[%c64, %c0_56], %77 {strides = array<i32>} : memref<80x32xf32, #tpu.memory_space<vmem>>, vector<16x10xf32>,
    %79 = vector.broadcast %22 : vector<16x1xf32> to vector<16x16xf32>
    %80 = arith.mulf %3, %79 : vector<16x16xf32>
    %81 = vector.broadcast %25 : vector<16x1xf32> to vector<16x16xf32>
    %82 = arith.addf %80, %81 : vector<16x16xf32>
    %83 = vector.extract_strided_slice %57 {offsets = [0, 16], sizes = [16, 16], strides = [1, 1]} : vector<32x32xf32> to vector<16x16xf32>
    %84 = arith.mulf %83, %82 : vector<16x16xf32>
    %85 = vector.extract_strided_slice %57 {offsets = [16, 16], sizes = [16, 16], strides = [1, 1]} : vector<32x32xf32> to vector<16x16xf32>
    %86 = arith.addf %84, %85 : vector<16x16xf32>
    %cst_57 = arith.constant 0.000000e+00 : f32
    %87 = vector.broadcast %cst_57 : f32 to vector<16x16xf32>
    %88 = arith.maximumf %86, %87 : vector<16x16xf32>
    %89 = vector.extract_strided_slice %88 {offsets = [0, 0], sizes = [16, 10], strides = [1, 1]} : vector<16x16xf32> to vector<16x10xf32>
    %c0_58 = arith.constant 0 : index
    %c22 = arith.constant 22 : index
    %90 = vector.load %arg11[%c0_58, %c22] : memref<80x32xf32, #tpu.memory_space<vmem>>, vector<16x10xf32>
    tpu.vector_store %arg11[%c0_58, %c22], %89 {strides = array<i32>} : memref<80x32xf32, #tpu.memory_space<vmem>>, vector<16x10xf32>,
    %91 = vector.extract_strided_slice %88 {offsets = [0, 0], sizes = [16, 13], strides = [1, 1]} : vector<16x16xf32> to vector<16x13xf32>
    %c16_59 = arith.constant 16 : index
    %c19_60 = arith.constant 19 : index
    %92 = vector.load %arg11[%c16_59, %c19_60] : memref<80x32xf32, #tpu.memory_space<vmem>>, vector<16x13xf32>
    tpu.vector_store %arg11[%c16_59, %c19_60], %91 {strides = array<i32>} : memref<80x32xf32, #tpu.memory_space<vmem>>, vector<16x13xf32>,
    %c32_61 = arith.constant 32 : index
    %c16_62 = arith.constant 16 : index
    %93 = vector.load %arg11[%c32_61, %c16_62] : memref<80x32xf32, #tpu.memory_space<vmem>>, vector<16x16xf32>
    tpu.vector_store %arg11[%c32_61, %c16_62], %88 {strides = array<i32>} : memref<80x32xf32, #tpu.memory_space<vmem>>, vector<16x16xf32>,
    %94 = vector.extract_strided_slice %88 {offsets = [0, 3], sizes = [16, 13], strides = [1, 1]} : vector<16x16xf32> to vector<16x13xf32>
    %c48_63 = arith.constant 48 : index
    %c16_64 = arith.constant 16 : index
    %95 = vector.load %arg11[%c48_63, %c16_64] : memref<80x32xf32, #tpu.memory_space<vmem>>, vector<16x13xf32>
    tpu.vector_store %arg11[%c48_63, %c16_64], %94 {strides = array<i32>} : memref<80x32xf32, #tpu.memory_space<vmem>>, vector<16x13xf32>,
    %96 = vector.extract_strided_slice %88 {offsets = [0, 6], sizes = [16, 10], strides = [1, 1]} : vector<16x16xf32> to vector<16x10xf32>
    %c64_65 = arith.constant 64 : index
    %c16_66 = arith.constant 16 : index
    %97 = vector.load %arg11[%c64_65, %c16_66] : memref<80x32xf32, #tpu.memory_space<vmem>>, vector<16x10xf32>
    tpu.vector_store %arg11[%c64_65, %c16_66], %96 {strides = array<i32>} : memref<80x32xf32, #tpu.memory_space<vmem>>, vector<16x10xf32>,
    %c0_67 = arith.constant 0 : index
    %c0_68 = arith.constant 0 : index
    %98 = vector.load %arg6[%c0_67, %c0_68] : memref<16x80xf32, #tpu.memory_space<vmem>>, vector<16x80xf32>
    %c0_69 = arith.constant 0 : index
    %c0_70 = arith.constant 0 : index
    %99 = vector.load %arg11[%c0_69, %c0_70] : memref<80x32xf32, #tpu.memory_space<vmem>>, vector<80x32xf32>
    %cst_71 = arith.constant dense<0.000000e+00> : vector<16x32xf32>
    %100 = tpu.matmul %98, %99, %cst_71 {dimension_numbers = #tpu.dot_dimension_numbers<[1], [0], [0], [1], [0, 0, 1, 1], [], []>} : vector<16x80xf32>, vector<80x32xf32>, vector<16x32xf32> -> vector<16x32xf32>
    %c0_72 = arith.constant 0 : index
    %c0_73 = arith.constant 0 : index
    %101 = vector.load %arg7[%c0_72, %c0_73] : memref<16x1xf32, #tpu.memory_space<vmem>>, vector<16x1xf32>
    %102 = vector.broadcast %101 : vector<16x1xf32> to vector<16x32xf32>
    %103 = arith.addf %100, %102 : vector<16x32xf32>
    %104 = vector.extract_strided_slice %103 {offsets = [0, 0], sizes = [16, 16], strides = [1, 1]} : vector<16x32xf32> to vector<16x16xf32>
    %c0_74 = arith.constant 0 : index
    %c0_75 = arith.constant 0 : index
    %c0_76 = arith.constant 0 : index
    %105 = vector.load %arg8[%c0_74, %c0_75, %c0_76] : memref<2x16x16xf32, #tpu.memory_space<vmem>>, vector<1x16x16xf32>
    %106 = vector.shape_cast %105 : vector<1x16x16xf32> to vector<16x16xf32>
    %107 = arith.addf %104, %106 : vector<16x16xf32>
    %cst_77 = arith.constant 5.000000e-01 : f32
    %108 = vector.broadcast %cst_77 : f32 to vector<16x16xf32>
    %109 = arith.mulf %107, %108 : vector<16x16xf32>
    %c0_78 = arith.constant 0 : index
    %c0_79 = arith.constant 0 : index
    %c0_80 = arith.constant 0 : index
    %110 = vector.load %arg9[%c0_78, %c0_79, %c0_80] : memref<2x16x16xf32, #tpu.memory_space<vmem>>, vector<1x16x16xf32>
    %111 = vector.shape_cast %110 : vector<1x16x16xf32> to vector<16x16xf32>
    %112 = arith.addf %109, %111 : vector<16x16xf32>
    %c0_81 = arith.constant 0 : index
    %c0_82 = arith.constant 0 : index
    %c0_83 = arith.constant 0 : index
    %113 = vector.load %arg10[%c0_81, %c0_82, %c0_83] : memref<2x16x16xf32, #tpu.memory_space<vmem>>, vector<1x16x16xf32>
    %114 = vector.shape_cast %113 : vector<1x16x16xf32> to vector<16x16xf32>
    %115 = vector.shape_cast %112 : vector<16x16xf32> to vector<1x16x16xf32>
    tpu.vector_store %arg10[%c0_81, %c0_82, %c0_83], %115 {strides = array<i32>} : memref<2x16x16xf32, #tpu.memory_space<vmem>>, vector<1x16x16xf32>,
    %116 = vector.extract_strided_slice %103 {offsets = [0, 16], sizes = [16, 16], strides = [1, 1]} : vector<16x32xf32> to vector<16x16xf32>
    %c1_84 = arith.constant 1 : index
    %c0_85 = arith.constant 0 : index
    %c0_86 = arith.constant 0 : index
    %117 = vector.load %arg8[%c1_84, %c0_85, %c0_86] : memref<2x16x16xf32, #tpu.memory_space<vmem>>, vector<1x16x16xf32>
    %118 = vector.shape_cast %117 : vector<1x16x16xf32> to vector<16x16xf32>
    %119 = arith.addf %116, %118 : vector<16x16xf32>
    %cst_87 = arith.constant 5.000000e-01 : f32
    %120 = vector.broadcast %cst_87 : f32 to vector<16x16xf32>
    %121 = arith.mulf %119, %120 : vector<16x16xf32>
    %c1_88 = arith.constant 1 : index
    %c0_89 = arith.constant 0 : index
    %c0_90 = arith.constant 0 : index
    %122 = vector.load %arg9[%c1_88, %c0_89, %c0_90] : memref<2x16x16xf32, #tpu.memory_space<vmem>>, vector<1x16x16xf32>
    %123 = vector.shape_cast %122 : vector<1x16x16xf32> to vector<16x16xf32>
    %124 = arith.addf %121, %123 : vector<16x16xf32>
    %c1_91 = arith.constant 1 : index
    %c0_92 = arith.constant 0 : index
    %c0_93 = arith.constant 0 : index
    %125 = vector.load %arg10[%c1_91, %c0_92, %c0_93] : memref<2x16x16xf32, #tpu.memory_space<vmem>>, vector<1x16x16xf32>
    %126 = vector.shape_cast %125 : vector<1x16x16xf32> to vector<16x16xf32>
    %127 = vector.shape_cast %124 : vector<16x16xf32> to vector<1x16x16xf32>
    tpu.vector_store %arg10[%c1_91, %c0_92, %c0_93], %127 {strides = array<i32>} : memref<2x16x16xf32, #tpu.memory_space<vmem>>, vector<1x16x16xf32>,
    return
  }
}

module attributes {stable_mosaic.version = 11 : i64} {
  func.func @kernel(%arg0: memref<2x16x16xf32, #tpu.memory_space<vmem>>, %arg1: memref<8x64xf32, #tpu.memory_space<vmem>>, %arg2: memref<8x1xf32, #tpu.memory_space<vmem>>, %arg3: memref<2x8x32xf32, #tpu.memory_space<vmem>>, %arg4: memref<2x16x35xf32, #tpu.memory_space<vmem>>, %arg5: memref<64x64xf32, #tpu.memory_space<vmem>>) attributes {dimension_semantics = [], scalar_prefetch = 0 : i64, scratch_operands = 2 : i64, tpu.core_type = #tpu.core_type<tc>} {
    %cst = arith.constant 0.000000e+00 : f32
    %0 = vector.broadcast %cst : f32 to vector<2x16x35xf32>
    %c0 = arith.constant 0 : index
    %c0_0 = arith.constant 0 : index
    %c0_1 = arith.constant 0 : index
    %1 = vector.load %arg4[%c0, %c0_0, %c0_1] : memref<2x16x35xf32, #tpu.memory_space<vmem>>, vector<2x16x35xf32>
    tpu.vector_store %arg4[%c0, %c0_0, %c0_1], %0 {strides = array<i32>} : memref<2x16x35xf32, #tpu.memory_space<vmem>>, vector<2x16x35xf32>,
    %c0_2 = arith.constant 0 : index
    %c0_3 = arith.constant 0 : index
    %c0_4 = arith.constant 0 : index
    %2 = vector.load %arg0[%c0_2, %c0_3, %c0_4] : memref<2x16x16xf32, #tpu.memory_space<vmem>>, vector<1x16x16xf32>
    %3 = vector.shape_cast %2 : vector<1x16x16xf32> to vector<16x16xf32>
    %cst_5 = arith.constant 0.000000e+00 : f32
    %4 = vector.broadcast %cst_5 : f32 to vector<16x16xf32>
    %5 = arith.maximumf %3, %4 : vector<16x16xf32>
    %6 = vector.extract_strided_slice %5 {offsets = [0, 0], sizes = [16, 1], strides = [1, 1]} : vector<16x16xf32> to vector<16x1xf32>
    %c0_6 = arith.constant 0 : index
    %c0_7 = arith.constant 0 : index
    %c2 = arith.constant 2 : index
    %7 = vector.load %arg4[%c0_6, %c0_7, %c2] : memref<2x16x35xf32, #tpu.memory_space<vmem>>, vector<1x16x1xf32>
    %8 = vector.shape_cast %7 : vector<1x16x1xf32> to vector<16x1xf32>
    %9 = vector.shape_cast %6 : vector<16x1xf32> to vector<1x16x1xf32>
    tpu.vector_store %arg4[%c0_6, %c0_7, %c2], %9 {strides = array<i32>} : memref<2x16x35xf32, #tpu.memory_space<vmem>>, vector<1x16x1xf32>,
    %10 = vector.extract_strided_slice %5 {offsets = [0, 1], sizes = [16, 1], strides = [1, 1]} : vector<16x16xf32> to vector<16x1xf32>
    %c0_8 = arith.constant 0 : index
    %c0_9 = arith.constant 0 : index
    %c4 = arith.constant 4 : index
    %11 = vector.load %arg4[%c0_8, %c0_9, %c4] : memref<2x16x35xf32, #tpu.memory_space<vmem>>, vector<1x16x1xf32>
    %12 = vector.shape_cast %11 : vector<1x16x1xf32> to vector<16x1xf32>
    %13 = vector.shape_cast %10 : vector<16x1xf32> to vector<1x16x1xf32>
    tpu.vector_store %arg4[%c0_8, %c0_9, %c4], %13 {strides = array<i32>} : memref<2x16x35xf32, #tpu.memory_space<vmem>>, vector<1x16x1xf32>,
    %14 = vector.extract_strided_slice %5 {offsets = [0, 2], sizes = [16, 1], strides = [1, 1]} : vector<16x16xf32> to vector<16x1xf32>
    %c0_10 = arith.constant 0 : index
    %c0_11 = arith.constant 0 : index
    %c6 = arith.constant 6 : index
    %15 = vector.load %arg4[%c0_10, %c0_11, %c6] : memref<2x16x35xf32, #tpu.memory_space<vmem>>, vector<1x16x1xf32>
    %16 = vector.shape_cast %15 : vector<1x16x1xf32> to vector<16x1xf32>
    %17 = vector.shape_cast %14 : vector<16x1xf32> to vector<1x16x1xf32>
    tpu.vector_store %arg4[%c0_10, %c0_11, %c6], %17 {strides = array<i32>} : memref<2x16x35xf32, #tpu.memory_space<vmem>>, vector<1x16x1xf32>,
    %18 = vector.extract_strided_slice %5 {offsets = [0, 3], sizes = [16, 1], strides = [1, 1]} : vector<16x16xf32> to vector<16x1xf32>
    %c0_12 = arith.constant 0 : index
    %c0_13 = arith.constant 0 : index
    %c8 = arith.constant 8 : index
    %19 = vector.load %arg4[%c0_12, %c0_13, %c8] : memref<2x16x35xf32, #tpu.memory_space<vmem>>, vector<1x16x1xf32>
    %20 = vector.shape_cast %19 : vector<1x16x1xf32> to vector<16x1xf32>
    %21 = vector.shape_cast %18 : vector<16x1xf32> to vector<1x16x1xf32>
    tpu.vector_store %arg4[%c0_12, %c0_13, %c8], %21 {strides = array<i32>} : memref<2x16x35xf32, #tpu.memory_space<vmem>>, vector<1x16x1xf32>,
    %22 = vector.extract_strided_slice %5 {offsets = [0, 4], sizes = [16, 1], strides = [1, 1]} : vector<16x16xf32> to vector<16x1xf32>
    %c0_14 = arith.constant 0 : index
    %c0_15 = arith.constant 0 : index
    %c10 = arith.constant 10 : index
    %23 = vector.load %arg4[%c0_14, %c0_15, %c10] : memref<2x16x35xf32, #tpu.memory_space<vmem>>, vector<1x16x1xf32>
    %24 = vector.shape_cast %23 : vector<1x16x1xf32> to vector<16x1xf32>
    %25 = vector.shape_cast %22 : vector<16x1xf32> to vector<1x16x1xf32>
    tpu.vector_store %arg4[%c0_14, %c0_15, %c10], %25 {strides = array<i32>} : memref<2x16x35xf32, #tpu.memory_space<vmem>>, vector<1x16x1xf32>,
    %26 = vector.extract_strided_slice %5 {offsets = [0, 5], sizes = [16, 1], strides = [1, 1]} : vector<16x16xf32> to vector<16x1xf32>
    %c0_16 = arith.constant 0 : index
    %c0_17 = arith.constant 0 : index
    %c12 = arith.constant 12 : index
    %27 = vector.load %arg4[%c0_16, %c0_17, %c12] : memref<2x16x35xf32, #tpu.memory_space<vmem>>, vector<1x16x1xf32>
    %28 = vector.shape_cast %27 : vector<1x16x1xf32> to vector<16x1xf32>
    %29 = vector.shape_cast %26 : vector<16x1xf32> to vector<1x16x1xf32>
    tpu.vector_store %arg4[%c0_16, %c0_17, %c12], %29 {strides = array<i32>} : memref<2x16x35xf32, #tpu.memory_space<vmem>>, vector<1x16x1xf32>,
    %30 = vector.extract_strided_slice %5 {offsets = [0, 6], sizes = [16, 1], strides = [1, 1]} : vector<16x16xf32> to vector<16x1xf32>
    %c0_18 = arith.constant 0 : index
    %c0_19 = arith.constant 0 : index
    %c14 = arith.constant 14 : index
    %31 = vector.load %arg4[%c0_18, %c0_19, %c14] : memref<2x16x35xf32, #tpu.memory_space<vmem>>, vector<1x16x1xf32>
    %32 = vector.shape_cast %31 : vector<1x16x1xf32> to vector<16x1xf32>
    %33 = vector.shape_cast %30 : vector<16x1xf32> to vector<1x16x1xf32>
    tpu.vector_store %arg4[%c0_18, %c0_19, %c14], %33 {strides = array<i32>} : memref<2x16x35xf32, #tpu.memory_space<vmem>>, vector<1x16x1xf32>,
    %34 = vector.extract_strided_slice %5 {offsets = [0, 7], sizes = [16, 1], strides = [1, 1]} : vector<16x16xf32> to vector<16x1xf32>
    %c0_20 = arith.constant 0 : index
    %c0_21 = arith.constant 0 : index
    %c16 = arith.constant 16 : index
    %35 = vector.load %arg4[%c0_20, %c0_21, %c16] : memref<2x16x35xf32, #tpu.memory_space<vmem>>, vector<1x16x1xf32>
    %36 = vector.shape_cast %35 : vector<1x16x1xf32> to vector<16x1xf32>
    %37 = vector.shape_cast %34 : vector<16x1xf32> to vector<1x16x1xf32>
    tpu.vector_store %arg4[%c0_20, %c0_21, %c16], %37 {strides = array<i32>} : memref<2x16x35xf32, #tpu.memory_space<vmem>>, vector<1x16x1xf32>,
    %38 = vector.extract_strided_slice %5 {offsets = [0, 8], sizes = [16, 1], strides = [1, 1]} : vector<16x16xf32> to vector<16x1xf32>
    %c0_22 = arith.constant 0 : index
    %c0_23 = arith.constant 0 : index
    %c18 = arith.constant 18 : index
    %39 = vector.load %arg4[%c0_22, %c0_23, %c18] : memref<2x16x35xf32, #tpu.memory_space<vmem>>, vector<1x16x1xf32>
    %40 = vector.shape_cast %39 : vector<1x16x1xf32> to vector<16x1xf32>
    %41 = vector.shape_cast %38 : vector<16x1xf32> to vector<1x16x1xf32>
    tpu.vector_store %arg4[%c0_22, %c0_23, %c18], %41 {strides = array<i32>} : memref<2x16x35xf32, #tpu.memory_space<vmem>>, vector<1x16x1xf32>,
    %42 = vector.extract_strided_slice %5 {offsets = [0, 9], sizes = [16, 1], strides = [1, 1]} : vector<16x16xf32> to vector<16x1xf32>
    %c0_24 = arith.constant 0 : index
    %c0_25 = arith.constant 0 : index
    %c20 = arith.constant 20 : index
    %43 = vector.load %arg4[%c0_24, %c0_25, %c20] : memref<2x16x35xf32, #tpu.memory_space<vmem>>, vector<1x16x1xf32>
    %44 = vector.shape_cast %43 : vector<1x16x1xf32> to vector<16x1xf32>
    %45 = vector.shape_cast %42 : vector<16x1xf32> to vector<1x16x1xf32>
    tpu.vector_store %arg4[%c0_24, %c0_25, %c20], %45 {strides = array<i32>} : memref<2x16x35xf32, #tpu.memory_space<vmem>>, vector<1x16x1xf32>,
    %46 = vector.extract_strided_slice %5 {offsets = [0, 10], sizes = [16, 1], strides = [1, 1]} : vector<16x16xf32> to vector<16x1xf32>
    %c0_26 = arith.constant 0 : index
    %c0_27 = arith.constant 0 : index
    %c22 = arith.constant 22 : index
    %47 = vector.load %arg4[%c0_26, %c0_27, %c22] : memref<2x16x35xf32, #tpu.memory_space<vmem>>, vector<1x16x1xf32>
    %48 = vector.shape_cast %47 : vector<1x16x1xf32> to vector<16x1xf32>
    %49 = vector.shape_cast %46 : vector<16x1xf32> to vector<1x16x1xf32>
    tpu.vector_store %arg4[%c0_26, %c0_27, %c22], %49 {strides = array<i32>} : memref<2x16x35xf32, #tpu.memory_space<vmem>>, vector<1x16x1xf32>,
    %50 = vector.extract_strided_slice %5 {offsets = [0, 11], sizes = [16, 1], strides = [1, 1]} : vector<16x16xf32> to vector<16x1xf32>
    %c0_28 = arith.constant 0 : index
    %c0_29 = arith.constant 0 : index
    %c24 = arith.constant 24 : index
    %51 = vector.load %arg4[%c0_28, %c0_29, %c24] : memref<2x16x35xf32, #tpu.memory_space<vmem>>, vector<1x16x1xf32>
    %52 = vector.shape_cast %51 : vector<1x16x1xf32> to vector<16x1xf32>
    %53 = vector.shape_cast %50 : vector<16x1xf32> to vector<1x16x1xf32>
    tpu.vector_store %arg4[%c0_28, %c0_29, %c24], %53 {strides = array<i32>} : memref<2x16x35xf32, #tpu.memory_space<vmem>>, vector<1x16x1xf32>,
    %54 = vector.extract_strided_slice %5 {offsets = [0, 12], sizes = [16, 1], strides = [1, 1]} : vector<16x16xf32> to vector<16x1xf32>
    %c0_30 = arith.constant 0 : index
    %c0_31 = arith.constant 0 : index
    %c26 = arith.constant 26 : index
    %55 = vector.load %arg4[%c0_30, %c0_31, %c26] : memref<2x16x35xf32, #tpu.memory_space<vmem>>, vector<1x16x1xf32>
    %56 = vector.shape_cast %55 : vector<1x16x1xf32> to vector<16x1xf32>
    %57 = vector.shape_cast %54 : vector<16x1xf32> to vector<1x16x1xf32>
    tpu.vector_store %arg4[%c0_30, %c0_31, %c26], %57 {strides = array<i32>} : memref<2x16x35xf32, #tpu.memory_space<vmem>>, vector<1x16x1xf32>,
    %58 = vector.extract_strided_slice %5 {offsets = [0, 13], sizes = [16, 1], strides = [1, 1]} : vector<16x16xf32> to vector<16x1xf32>
    %c0_32 = arith.constant 0 : index
    %c0_33 = arith.constant 0 : index
    %c28 = arith.constant 28 : index
    %59 = vector.load %arg4[%c0_32, %c0_33, %c28] : memref<2x16x35xf32, #tpu.memory_space<vmem>>, vector<1x16x1xf32>
    %60 = vector.shape_cast %59 : vector<1x16x1xf32> to vector<16x1xf32>
    %61 = vector.shape_cast %58 : vector<16x1xf32> to vector<1x16x1xf32>
    tpu.vector_store %arg4[%c0_32, %c0_33, %c28], %61 {strides = array<i32>} : memref<2x16x35xf32, #tpu.memory_space<vmem>>, vector<1x16x1xf32>,
    %62 = vector.extract_strided_slice %5 {offsets = [0, 14], sizes = [16, 1], strides = [1, 1]} : vector<16x16xf32> to vector<16x1xf32>
    %c0_34 = arith.constant 0 : index
    %c0_35 = arith.constant 0 : index
    %c30 = arith.constant 30 : index
    %63 = vector.load %arg4[%c0_34, %c0_35, %c30] : memref<2x16x35xf32, #tpu.memory_space<vmem>>, vector<1x16x1xf32>
    %64 = vector.shape_cast %63 : vector<1x16x1xf32> to vector<16x1xf32>
    %65 = vector.shape_cast %62 : vector<16x1xf32> to vector<1x16x1xf32>
    tpu.vector_store %arg4[%c0_34, %c0_35, %c30], %65 {strides = array<i32>} : memref<2x16x35xf32, #tpu.memory_space<vmem>>, vector<1x16x1xf32>,
    %66 = vector.extract_strided_slice %5 {offsets = [0, 15], sizes = [16, 1], strides = [1, 1]} : vector<16x16xf32> to vector<16x1xf32>
    %c0_36 = arith.constant 0 : index
    %c0_37 = arith.constant 0 : index
    %c32 = arith.constant 32 : index
    %67 = vector.load %arg4[%c0_36, %c0_37, %c32] : memref<2x16x35xf32, #tpu.memory_space<vmem>>, vector<1x16x1xf32>
    %68 = vector.shape_cast %67 : vector<1x16x1xf32> to vector<16x1xf32>
    %69 = vector.shape_cast %66 : vector<16x1xf32> to vector<1x16x1xf32>
    tpu.vector_store %arg4[%c0_36, %c0_37, %c32], %69 {strides = array<i32>} : memref<2x16x35xf32, #tpu.memory_space<vmem>>, vector<1x16x1xf32>,
    %c1 = arith.constant 1 : index
    %c0_38 = arith.constant 0 : index
    %c0_39 = arith.constant 0 : index
    %70 = vector.load %arg0[%c1, %c0_38, %c0_39] : memref<2x16x16xf32, #tpu.memory_space<vmem>>, vector<1x16x16xf32>
    %71 = vector.shape_cast %70 : vector<1x16x16xf32> to vector<16x16xf32>
    %cst_40 = arith.constant 0.000000e+00 : f32
    %72 = vector.broadcast %cst_40 : f32 to vector<16x16xf32>
    %73 = arith.maximumf %71, %72 : vector<16x16xf32>
    %74 = vector.extract_strided_slice %73 {offsets = [0, 0], sizes = [16, 1], strides = [1, 1]} : vector<16x16xf32> to vector<16x1xf32>
    %c1_41 = arith.constant 1 : index
    %c0_42 = arith.constant 0 : index
    %c2_43 = arith.constant 2 : index
    %75 = vector.load %arg4[%c1_41, %c0_42, %c2_43] : memref<2x16x35xf32, #tpu.memory_space<vmem>>, vector<1x16x1xf32>
    %76 = vector.shape_cast %75 : vector<1x16x1xf32> to vector<16x1xf32>
    %77 = vector.shape_cast %74 : vector<16x1xf32> to vector<1x16x1xf32>
    tpu.vector_store %arg4[%c1_41, %c0_42, %c2_43], %77 {strides = array<i32>} : memref<2x16x35xf32, #tpu.memory_space<vmem>>, vector<1x16x1xf32>,
    %78 = vector.extract_strided_slice %73 {offsets = [0, 1], sizes = [16, 1], strides = [1, 1]} : vector<16x16xf32> to vector<16x1xf32>
    %c1_44 = arith.constant 1 : index
    %c0_45 = arith.constant 0 : index
    %c4_46 = arith.constant 4 : index
    %79 = vector.load %arg4[%c1_44, %c0_45, %c4_46] : memref<2x16x35xf32, #tpu.memory_space<vmem>>, vector<1x16x1xf32>
    %80 = vector.shape_cast %79 : vector<1x16x1xf32> to vector<16x1xf32>
    %81 = vector.shape_cast %78 : vector<16x1xf32> to vector<1x16x1xf32>
    tpu.vector_store %arg4[%c1_44, %c0_45, %c4_46], %81 {strides = array<i32>} : memref<2x16x35xf32, #tpu.memory_space<vmem>>, vector<1x16x1xf32>,
    %82 = vector.extract_strided_slice %73 {offsets = [0, 2], sizes = [16, 1], strides = [1, 1]} : vector<16x16xf32> to vector<16x1xf32>
    %c1_47 = arith.constant 1 : index
    %c0_48 = arith.constant 0 : index
    %c6_49 = arith.constant 6 : index
    %83 = vector.load %arg4[%c1_47, %c0_48, %c6_49] : memref<2x16x35xf32, #tpu.memory_space<vmem>>, vector<1x16x1xf32>
    %84 = vector.shape_cast %83 : vector<1x16x1xf32> to vector<16x1xf32>
    %85 = vector.shape_cast %82 : vector<16x1xf32> to vector<1x16x1xf32>
    tpu.vector_store %arg4[%c1_47, %c0_48, %c6_49], %85 {strides = array<i32>} : memref<2x16x35xf32, #tpu.memory_space<vmem>>, vector<1x16x1xf32>,
    %86 = vector.extract_strided_slice %73 {offsets = [0, 3], sizes = [16, 1], strides = [1, 1]} : vector<16x16xf32> to vector<16x1xf32>
    %c1_50 = arith.constant 1 : index
    %c0_51 = arith.constant 0 : index
    %c8_52 = arith.constant 8 : index
    %87 = vector.load %arg4[%c1_50, %c0_51, %c8_52] : memref<2x16x35xf32, #tpu.memory_space<vmem>>, vector<1x16x1xf32>
    %88 = vector.shape_cast %87 : vector<1x16x1xf32> to vector<16x1xf32>
    %89 = vector.shape_cast %86 : vector<16x1xf32> to vector<1x16x1xf32>
    tpu.vector_store %arg4[%c1_50, %c0_51, %c8_52], %89 {strides = array<i32>} : memref<2x16x35xf32, #tpu.memory_space<vmem>>, vector<1x16x1xf32>,
    %90 = vector.extract_strided_slice %73 {offsets = [0, 4], sizes = [16, 1], strides = [1, 1]} : vector<16x16xf32> to vector<16x1xf32>
    %c1_53 = arith.constant 1 : index
    %c0_54 = arith.constant 0 : index
    %c10_55 = arith.constant 10 : index
    %91 = vector.load %arg4[%c1_53, %c0_54, %c10_55] : memref<2x16x35xf32, #tpu.memory_space<vmem>>, vector<1x16x1xf32>
    %92 = vector.shape_cast %91 : vector<1x16x1xf32> to vector<16x1xf32>
    %93 = vector.shape_cast %90 : vector<16x1xf32> to vector<1x16x1xf32>
    tpu.vector_store %arg4[%c1_53, %c0_54, %c10_55], %93 {strides = array<i32>} : memref<2x16x35xf32, #tpu.memory_space<vmem>>, vector<1x16x1xf32>,
    %94 = vector.extract_strided_slice %73 {offsets = [0, 5], sizes = [16, 1], strides = [1, 1]} : vector<16x16xf32> to vector<16x1xf32>
    %c1_56 = arith.constant 1 : index
    %c0_57 = arith.constant 0 : index
    %c12_58 = arith.constant 12 : index
    %95 = vector.load %arg4[%c1_56, %c0_57, %c12_58] : memref<2x16x35xf32, #tpu.memory_space<vmem>>, vector<1x16x1xf32>
    %96 = vector.shape_cast %95 : vector<1x16x1xf32> to vector<16x1xf32>
    %97 = vector.shape_cast %94 : vector<16x1xf32> to vector<1x16x1xf32>
    tpu.vector_store %arg4[%c1_56, %c0_57, %c12_58], %97 {strides = array<i32>} : memref<2x16x35xf32, #tpu.memory_space<vmem>>, vector<1x16x1xf32>,
    %98 = vector.extract_strided_slice %73 {offsets = [0, 6], sizes = [16, 1], strides = [1, 1]} : vector<16x16xf32> to vector<16x1xf32>
    %c1_59 = arith.constant 1 : index
    %c0_60 = arith.constant 0 : index
    %c14_61 = arith.constant 14 : index
    %99 = vector.load %arg4[%c1_59, %c0_60, %c14_61] : memref<2x16x35xf32, #tpu.memory_space<vmem>>, vector<1x16x1xf32>
    %100 = vector.shape_cast %99 : vector<1x16x1xf32> to vector<16x1xf32>
    %101 = vector.shape_cast %98 : vector<16x1xf32> to vector<1x16x1xf32>
    tpu.vector_store %arg4[%c1_59, %c0_60, %c14_61], %101 {strides = array<i32>} : memref<2x16x35xf32, #tpu.memory_space<vmem>>, vector<1x16x1xf32>,
    %102 = vector.extract_strided_slice %73 {offsets = [0, 7], sizes = [16, 1], strides = [1, 1]} : vector<16x16xf32> to vector<16x1xf32>
    %c1_62 = arith.constant 1 : index
    %c0_63 = arith.constant 0 : index
    %c16_64 = arith.constant 16 : index
    %103 = vector.load %arg4[%c1_62, %c0_63, %c16_64] : memref<2x16x35xf32, #tpu.memory_space<vmem>>, vector<1x16x1xf32>
    %104 = vector.shape_cast %103 : vector<1x16x1xf32> to vector<16x1xf32>
    %105 = vector.shape_cast %102 : vector<16x1xf32> to vector<1x16x1xf32>
    tpu.vector_store %arg4[%c1_62, %c0_63, %c16_64], %105 {strides = array<i32>} : memref<2x16x35xf32, #tpu.memory_space<vmem>>, vector<1x16x1xf32>,
    %106 = vector.extract_strided_slice %73 {offsets = [0, 8], sizes = [16, 1], strides = [1, 1]} : vector<16x16xf32> to vector<16x1xf32>
    %c1_65 = arith.constant 1 : index
    %c0_66 = arith.constant 0 : index
    %c18_67 = arith.constant 18 : index
    %107 = vector.load %arg4[%c1_65, %c0_66, %c18_67] : memref<2x16x35xf32, #tpu.memory_space<vmem>>, vector<1x16x1xf32>
    %108 = vector.shape_cast %107 : vector<1x16x1xf32> to vector<16x1xf32>
    %109 = vector.shape_cast %106 : vector<16x1xf32> to vector<1x16x1xf32>
    tpu.vector_store %arg4[%c1_65, %c0_66, %c18_67], %109 {strides = array<i32>} : memref<2x16x35xf32, #tpu.memory_space<vmem>>, vector<1x16x1xf32>,
    %110 = vector.extract_strided_slice %73 {offsets = [0, 9], sizes = [16, 1], strides = [1, 1]} : vector<16x16xf32> to vector<16x1xf32>
    %c1_68 = arith.constant 1 : index
    %c0_69 = arith.constant 0 : index
    %c20_70 = arith.constant 20 : index
    %111 = vector.load %arg4[%c1_68, %c0_69, %c20_70] : memref<2x16x35xf32, #tpu.memory_space<vmem>>, vector<1x16x1xf32>
    %112 = vector.shape_cast %111 : vector<1x16x1xf32> to vector<16x1xf32>
    %113 = vector.shape_cast %110 : vector<16x1xf32> to vector<1x16x1xf32>
    tpu.vector_store %arg4[%c1_68, %c0_69, %c20_70], %113 {strides = array<i32>} : memref<2x16x35xf32, #tpu.memory_space<vmem>>, vector<1x16x1xf32>,
    %114 = vector.extract_strided_slice %73 {offsets = [0, 10], sizes = [16, 1], strides = [1, 1]} : vector<16x16xf32> to vector<16x1xf32>
    %c1_71 = arith.constant 1 : index
    %c0_72 = arith.constant 0 : index
    %c22_73 = arith.constant 22 : index
    %115 = vector.load %arg4[%c1_71, %c0_72, %c22_73] : memref<2x16x35xf32, #tpu.memory_space<vmem>>, vector<1x16x1xf32>
    %116 = vector.shape_cast %115 : vector<1x16x1xf32> to vector<16x1xf32>
    %117 = vector.shape_cast %114 : vector<16x1xf32> to vector<1x16x1xf32>
    tpu.vector_store %arg4[%c1_71, %c0_72, %c22_73], %117 {strides = array<i32>} : memref<2x16x35xf32, #tpu.memory_space<vmem>>, vector<1x16x1xf32>,
    %118 = vector.extract_strided_slice %73 {offsets = [0, 11], sizes = [16, 1], strides = [1, 1]} : vector<16x16xf32> to vector<16x1xf32>
    %c1_74 = arith.constant 1 : index
    %c0_75 = arith.constant 0 : index
    %c24_76 = arith.constant 24 : index
    %119 = vector.load %arg4[%c1_74, %c0_75, %c24_76] : memref<2x16x35xf32, #tpu.memory_space<vmem>>, vector<1x16x1xf32>
    %120 = vector.shape_cast %119 : vector<1x16x1xf32> to vector<16x1xf32>
    %121 = vector.shape_cast %118 : vector<16x1xf32> to vector<1x16x1xf32>
    tpu.vector_store %arg4[%c1_74, %c0_75, %c24_76], %121 {strides = array<i32>} : memref<2x16x35xf32, #tpu.memory_space<vmem>>, vector<1x16x1xf32>,
    %122 = vector.extract_strided_slice %73 {offsets = [0, 12], sizes = [16, 1], strides = [1, 1]} : vector<16x16xf32> to vector<16x1xf32>
    %c1_77 = arith.constant 1 : index
    %c0_78 = arith.constant 0 : index
    %c26_79 = arith.constant 26 : index
    %123 = vector.load %arg4[%c1_77, %c0_78, %c26_79] : memref<2x16x35xf32, #tpu.memory_space<vmem>>, vector<1x16x1xf32>
    %124 = vector.shape_cast %123 : vector<1x16x1xf32> to vector<16x1xf32>
    %125 = vector.shape_cast %122 : vector<16x1xf32> to vector<1x16x1xf32>
    tpu.vector_store %arg4[%c1_77, %c0_78, %c26_79], %125 {strides = array<i32>} : memref<2x16x35xf32, #tpu.memory_space<vmem>>, vector<1x16x1xf32>,
    %126 = vector.extract_strided_slice %73 {offsets = [0, 13], sizes = [16, 1], strides = [1, 1]} : vector<16x16xf32> to vector<16x1xf32>
    %c1_80 = arith.constant 1 : index
    %c0_81 = arith.constant 0 : index
    %c28_82 = arith.constant 28 : index
    %127 = vector.load %arg4[%c1_80, %c0_81, %c28_82] : memref<2x16x35xf32, #tpu.memory_space<vmem>>, vector<1x16x1xf32>
    %128 = vector.shape_cast %127 : vector<1x16x1xf32> to vector<16x1xf32>
    %129 = vector.shape_cast %126 : vector<16x1xf32> to vector<1x16x1xf32>
    tpu.vector_store %arg4[%c1_80, %c0_81, %c28_82], %129 {strides = array<i32>} : memref<2x16x35xf32, #tpu.memory_space<vmem>>, vector<1x16x1xf32>,
    %130 = vector.extract_strided_slice %73 {offsets = [0, 14], sizes = [16, 1], strides = [1, 1]} : vector<16x16xf32> to vector<16x1xf32>
    %c1_83 = arith.constant 1 : index
    %c0_84 = arith.constant 0 : index
    %c30_85 = arith.constant 30 : index
    %131 = vector.load %arg4[%c1_83, %c0_84, %c30_85] : memref<2x16x35xf32, #tpu.memory_space<vmem>>, vector<1x16x1xf32>
    %132 = vector.shape_cast %131 : vector<1x16x1xf32> to vector<16x1xf32>
    %133 = vector.shape_cast %130 : vector<16x1xf32> to vector<1x16x1xf32>
    tpu.vector_store %arg4[%c1_83, %c0_84, %c30_85], %133 {strides = array<i32>} : memref<2x16x35xf32, #tpu.memory_space<vmem>>, vector<1x16x1xf32>,
    %134 = vector.extract_strided_slice %73 {offsets = [0, 15], sizes = [16, 1], strides = [1, 1]} : vector<16x16xf32> to vector<16x1xf32>
    %c1_86 = arith.constant 1 : index
    %c0_87 = arith.constant 0 : index
    %c32_88 = arith.constant 32 : index
    %135 = vector.load %arg4[%c1_86, %c0_87, %c32_88] : memref<2x16x35xf32, #tpu.memory_space<vmem>>, vector<1x16x1xf32>
    %136 = vector.shape_cast %135 : vector<1x16x1xf32> to vector<16x1xf32>
    %137 = vector.shape_cast %134 : vector<16x1xf32> to vector<1x16x1xf32>
    tpu.vector_store %arg4[%c1_86, %c0_87, %c32_88], %137 {strides = array<i32>} : memref<2x16x35xf32, #tpu.memory_space<vmem>>, vector<1x16x1xf32>,
    %cst_89 = arith.constant 0.000000e+00 : f32
    %138 = vector.broadcast %cst_89 : f32 to vector<64x64xf32>
    %c0_90 = arith.constant 0 : index
    %c0_91 = arith.constant 0 : index
    %139 = vector.load %arg5[%c0_90, %c0_91] : memref<64x64xf32, #tpu.memory_space<vmem>>, vector<64x64xf32>
    tpu.vector_store %arg5[%c0_90, %c0_91], %138 {strides = array<i32>} : memref<64x64xf32, #tpu.memory_space<vmem>>, vector<64x64xf32>,
    %c0_92 = arith.constant 0 : index
    %c0_93 = arith.constant 0 : index
    %c0_94 = arith.constant 0 : index
    %140 = vector.load %arg4[%c0_92, %c0_93, %c0_94] : memref<2x16x35xf32, #tpu.memory_space<vmem>>, vector<1x16x32xf32>
    %141 = vector.shape_cast %140 : vector<1x16x32xf32> to vector<16x32xf32>
    %c0_95 = arith.constant 0 : index
    %c0_96 = arith.constant 0 : index
    %142 = vector.load %arg5[%c0_95, %c0_96] : memref<64x64xf32, #tpu.memory_space<vmem>>, vector<16x32xf32>
    tpu.vector_store %arg5[%c0_95, %c0_96], %141 {strides = array<i32>} : memref<64x64xf32, #tpu.memory_space<vmem>>, vector<16x32xf32>,
    %c0_97 = arith.constant 0 : index
    %c0_98 = arith.constant 0 : index
    %c1_99 = arith.constant 1 : index
    %143 = vector.load %arg4[%c0_97, %c0_98, %c1_99] : memref<2x16x35xf32, #tpu.memory_space<vmem>>, vector<1x16x32xf32>
    %144 = vector.shape_cast %143 : vector<1x16x32xf32> to vector<16x32xf32>
    %c16_100 = arith.constant 16 : index
    %c0_101 = arith.constant 0 : index
    %145 = vector.load %arg5[%c16_100, %c0_101] : memref<64x64xf32, #tpu.memory_space<vmem>>, vector<16x32xf32>
    tpu.vector_store %arg5[%c16_100, %c0_101], %144 {strides = array<i32>} : memref<64x64xf32, #tpu.memory_space<vmem>>, vector<16x32xf32>,
    %c0_102 = arith.constant 0 : index
    %c0_103 = arith.constant 0 : index
    %c2_104 = arith.constant 2 : index
    %146 = vector.load %arg4[%c0_102, %c0_103, %c2_104] : memref<2x16x35xf32, #tpu.memory_space<vmem>>, vector<1x16x32xf32>
    %147 = vector.shape_cast %146 : vector<1x16x32xf32> to vector<16x32xf32>
    %c32_105 = arith.constant 32 : index
    %c0_106 = arith.constant 0 : index
    %148 = vector.load %arg5[%c32_105, %c0_106] : memref<64x64xf32, #tpu.memory_space<vmem>>, vector<16x32xf32>
    tpu.vector_store %arg5[%c32_105, %c0_106], %147 {strides = array<i32>} : memref<64x64xf32, #tpu.memory_space<vmem>>, vector<16x32xf32>,
    %c0_107 = arith.constant 0 : index
    %c0_108 = arith.constant 0 : index
    %c3 = arith.constant 3 : index
    %149 = vector.load %arg4[%c0_107, %c0_108, %c3] : memref<2x16x35xf32, #tpu.memory_space<vmem>>, vector<1x16x32xf32>
    %150 = vector.shape_cast %149 : vector<1x16x32xf32> to vector<16x32xf32>
    %c48 = arith.constant 48 : index
    %c0_109 = arith.constant 0 : index
    %151 = vector.load %arg5[%c48, %c0_109] : memref<64x64xf32, #tpu.memory_space<vmem>>, vector<16x32xf32>
    tpu.vector_store %arg5[%c48, %c0_109], %150 {strides = array<i32>} : memref<64x64xf32, #tpu.memory_space<vmem>>, vector<16x32xf32>,
    %c1_110 = arith.constant 1 : index
    %c0_111 = arith.constant 0 : index
    %c0_112 = arith.constant 0 : index
    %152 = vector.load %arg4[%c1_110, %c0_111, %c0_112] : memref<2x16x35xf32, #tpu.memory_space<vmem>>, vector<1x16x32xf32>
    %153 = vector.shape_cast %152 : vector<1x16x32xf32> to vector<16x32xf32>
    %c0_113 = arith.constant 0 : index
    %c32_114 = arith.constant 32 : index
    %154 = vector.load %arg5[%c0_113, %c32_114] : memref<64x64xf32, #tpu.memory_space<vmem>>, vector<16x32xf32>
    tpu.vector_store %arg5[%c0_113, %c32_114], %153 {strides = array<i32>} : memref<64x64xf32, #tpu.memory_space<vmem>>, vector<16x32xf32>,
    %c1_115 = arith.constant 1 : index
    %c0_116 = arith.constant 0 : index
    %c1_117 = arith.constant 1 : index
    %155 = vector.load %arg4[%c1_115, %c0_116, %c1_117] : memref<2x16x35xf32, #tpu.memory_space<vmem>>, vector<1x16x32xf32>
    %156 = vector.shape_cast %155 : vector<1x16x32xf32> to vector<16x32xf32>
    %c16_118 = arith.constant 16 : index
    %c32_119 = arith.constant 32 : index
    %157 = vector.load %arg5[%c16_118, %c32_119] : memref<64x64xf32, #tpu.memory_space<vmem>>, vector<16x32xf32>
    tpu.vector_store %arg5[%c16_118, %c32_119], %156 {strides = array<i32>} : memref<64x64xf32, #tpu.memory_space<vmem>>, vector<16x32xf32>,
    %c1_120 = arith.constant 1 : index
    %c0_121 = arith.constant 0 : index
    %c2_122 = arith.constant 2 : index
    %158 = vector.load %arg4[%c1_120, %c0_121, %c2_122] : memref<2x16x35xf32, #tpu.memory_space<vmem>>, vector<1x16x32xf32>
    %159 = vector.shape_cast %158 : vector<1x16x32xf32> to vector<16x32xf32>
    %c32_123 = arith.constant 32 : index
    %c32_124 = arith.constant 32 : index
    %160 = vector.load %arg5[%c32_123, %c32_124] : memref<64x64xf32, #tpu.memory_space<vmem>>, vector<16x32xf32>
    tpu.vector_store %arg5[%c32_123, %c32_124], %159 {strides = array<i32>} : memref<64x64xf32, #tpu.memory_space<vmem>>, vector<16x32xf32>,
    %c1_125 = arith.constant 1 : index
    %c0_126 = arith.constant 0 : index
    %c3_127 = arith.constant 3 : index
    %161 = vector.load %arg4[%c1_125, %c0_126, %c3_127] : memref<2x16x35xf32, #tpu.memory_space<vmem>>, vector<1x16x32xf32>
    %162 = vector.shape_cast %161 : vector<1x16x32xf32> to vector<16x32xf32>
    %c48_128 = arith.constant 48 : index
    %c32_129 = arith.constant 32 : index
    %163 = vector.load %arg5[%c48_128, %c32_129] : memref<64x64xf32, #tpu.memory_space<vmem>>, vector<16x32xf32>
    tpu.vector_store %arg5[%c48_128, %c32_129], %162 {strides = array<i32>} : memref<64x64xf32, #tpu.memory_space<vmem>>, vector<16x32xf32>,
    %c0_130 = arith.constant 0 : index
    %c0_131 = arith.constant 0 : index
    %164 = vector.load %arg1[%c0_130, %c0_131] : memref<8x64xf32, #tpu.memory_space<vmem>>, vector<8x64xf32>
    %c0_132 = arith.constant 0 : index
    %c0_133 = arith.constant 0 : index
    %165 = vector.load %arg5[%c0_132, %c0_133] : memref<64x64xf32, #tpu.memory_space<vmem>>, vector<64x64xf32>
    %cst_134 = arith.constant dense<0.000000e+00> : vector<8x64xf32>
    %166 = tpu.matmul %164, %165, %cst_134 {dimension_numbers = #tpu.dot_dimension_numbers<[1], [0], [0], [1], [0, 0, 1, 1], [], []>} : vector<8x64xf32>, vector<64x64xf32>, vector<8x64xf32> -> vector<8x64xf32>
    %c0_135 = arith.constant 0 : index
    %c0_136 = arith.constant 0 : index
    %167 = vector.load %arg2[%c0_135, %c0_136] : memref<8x1xf32, #tpu.memory_space<vmem>>, vector<8x1xf32>
    %168 = vector.broadcast %167 : vector<8x1xf32> to vector<8x64xf32>
    %169 = arith.addf %166, %168 : vector<8x64xf32>
    %170 = vector.extract_strided_slice %169 {offsets = [0, 0], sizes = [8, 32], strides = [1, 1]} : vector<8x64xf32> to vector<8x32xf32>
    %c0_137 = arith.constant 0 : index
    %c0_138 = arith.constant 0 : index
    %c0_139 = arith.constant 0 : index
    %171 = vector.load %arg3[%c0_137, %c0_138, %c0_139] : memref<2x8x32xf32, #tpu.memory_space<vmem>>, vector<1x8x32xf32>
    %172 = vector.shape_cast %171 : vector<1x8x32xf32> to vector<8x32xf32>
    %173 = vector.shape_cast %170 : vector<8x32xf32> to vector<1x8x32xf32>
    tpu.vector_store %arg3[%c0_137, %c0_138, %c0_139], %173 {strides = array<i32>} : memref<2x8x32xf32, #tpu.memory_space<vmem>>, vector<1x8x32xf32>,
    %174 = vector.extract_strided_slice %169 {offsets = [0, 32], sizes = [8, 32], strides = [1, 1]} : vector<8x64xf32> to vector<8x32xf32>
    %c1_140 = arith.constant 1 : index
    %c0_141 = arith.constant 0 : index
    %c0_142 = arith.constant 0 : index
    %175 = vector.load %arg3[%c1_140, %c0_141, %c0_142] : memref<2x8x32xf32, #tpu.memory_space<vmem>>, vector<1x8x32xf32>
    %176 = vector.shape_cast %175 : vector<1x8x32xf32> to vector<8x32xf32>
    %177 = vector.shape_cast %174 : vector<8x32xf32> to vector<1x8x32xf32>
    tpu.vector_store %arg3[%c1_140, %c0_141, %c0_142], %177 {strides = array<i32>} : memref<2x8x32xf32, #tpu.memory_space<vmem>>, vector<1x8x32xf32>,
    return
  }
}

module attributes {stable_mosaic.version = 11 : i64} {
  func.func @kernel(%arg0: memref<2x8x32xf32, #tpu.memory_space<vmem>>, %arg1: memref<8x1xf32, #tpu.memory_space<vmem>>, %arg2: memref<8x1xf32, #tpu.memory_space<vmem>>, %arg3: memref<8x24xf32, #tpu.memory_space<vmem>>, %arg4: memref<8x1xf32, #tpu.memory_space<vmem>>, %arg5: memref<2x8x32xf32, #tpu.memory_space<vmem>>, %arg6: memref<24x64xf32, #tpu.memory_space<vmem>>) attributes {dimension_semantics = [], scalar_prefetch = 0 : i64, scratch_operands = 1 : i64, tpu.core_type = #tpu.core_type<tc>} {
    %c0 = arith.constant 0 : index
    %c0_0 = arith.constant 0 : index
    %c0_1 = arith.constant 0 : index
    %0 = vector.load %arg0[%c0, %c0_0, %c0_1] : memref<2x8x32xf32, #tpu.memory_space<vmem>>, vector<1x8x32xf32>
    %1 = vector.shape_cast %0 : vector<1x8x32xf32> to vector<8x32xf32>
    %c1 = arith.constant 1 : index
    %c0_2 = arith.constant 0 : index
    %c0_3 = arith.constant 0 : index
    %2 = vector.load %arg0[%c1, %c0_2, %c0_3] : memref<2x8x32xf32, #tpu.memory_space<vmem>>, vector<1x8x32xf32>
    %3 = vector.shape_cast %2 : vector<1x8x32xf32> to vector<8x32xf32>
    %4 = arith.mulf %1, %1 : vector<8x32xf32>
    %5 = arith.addf %1, %3 : vector<8x32xf32>
    %6 = arith.mulf %3, %3 : vector<8x32xf32>
    %7 = arith.addf %4, %6 : vector<8x32xf32>
    %cst = arith.constant dense<0.000000e+00> : vector<8xf32>
    %8 = vector.multi_reduction <add>, %5, %cst [1] : vector<8x32xf32> to vector<8xf32>
    %9 = vector.shape_cast %8 : vector<8xf32> to vector<8x1xf32>
    %cst_4 = arith.constant 1.562500e-02 : f32
    %10 = vector.broadcast %cst_4 : f32 to vector<8x1xf32>
    %11 = arith.mulf %9, %10 : vector<8x1xf32>
    %cst_5 = arith.constant dense<0.000000e+00> : vector<8xf32>
    %12 = vector.multi_reduction <add>, %7, %cst_5 [1] : vector<8x32xf32> to vector<8xf32>
    %13 = vector.shape_cast %12 : vector<8xf32> to vector<8x1xf32>
    %cst_6 = arith.constant 1.562500e-02 : f32
    %14 = vector.broadcast %cst_6 : f32 to vector<8x1xf32>
    %15 = arith.mulf %13, %14 : vector<8x1xf32>
    %16 = arith.mulf %11, %11 : vector<8x1xf32>
    %17 = arith.subf %15, %16 : vector<8x1xf32>
    %cst_7 = arith.constant 9.99999974E-6 : f32
    %18 = vector.broadcast %cst_7 : f32 to vector<8x1xf32>
    %19 = arith.addf %17, %18 : vector<8x1xf32>
    %20 = math.rsqrt %19 : vector<8x1xf32>
    %c0_8 = arith.constant 0 : index
    %c0_9 = arith.constant 0 : index
    %21 = vector.load %arg1[%c0_8, %c0_9] : memref<8x1xf32, #tpu.memory_space<vmem>>, vector<8x1xf32>
    %22 = arith.mulf %21, %20 : vector<8x1xf32>
    %c0_10 = arith.constant 0 : index
    %c0_11 = arith.constant 0 : index
    %23 = vector.load %arg2[%c0_10, %c0_11] : memref<8x1xf32, #tpu.memory_space<vmem>>, vector<8x1xf32>
    %24 = arith.mulf %11, %22 : vector<8x1xf32>
    %25 = arith.subf %23, %24 : vector<8x1xf32>
    %cst_12 = arith.constant 0.000000e+00 : f32
    %26 = vector.broadcast %cst_12 : f32 to vector<24x64xf32>
    %c0_13 = arith.constant 0 : index
    %c0_14 = arith.constant 0 : index
    %27 = vector.load %arg6[%c0_13, %c0_14] : memref<24x64xf32, #tpu.memory_space<vmem>>, vector<24x64xf32>
    tpu.vector_store %arg6[%c0_13, %c0_14], %26 {strides = array<i32>} : memref<24x64xf32, #tpu.memory_space<vmem>>, vector<24x64xf32>,
    %28 = vector.broadcast %22 : vector<8x1xf32> to vector<8x32xf32>
    %29 = arith.mulf %1, %28 : vector<8x32xf32>
    %30 = vector.broadcast %25 : vector<8x1xf32> to vector<8x32xf32>
    %31 = arith.addf %29, %30 : vector<8x32xf32>
    %cst_15 = arith.constant 0.000000e+00 : f32
    %32 = vector.broadcast %cst_15 : f32 to vector<8x32xf32>
    %33 = arith.maximumf %31, %32 : vector<8x32xf32>
    %34 = vector.extract_strided_slice %33 {offsets = [0, 0], sizes = [8, 31], strides = [1, 1]} : vector<8x32xf32> to vector<8x31xf32>
    %c0_16 = arith.constant 0 : index
    %c1_17 = arith.constant 1 : index
    %35 = vector.load %arg6[%c0_16, %c1_17] : memref<24x64xf32, #tpu.memory_space<vmem>>, vector<8x31xf32>
    tpu.vector_store %arg6[%c0_16, %c1_17], %34 {strides = array<i32>} : memref<24x64xf32, #tpu.memory_space<vmem>>, vector<8x31xf32>,
    %c8 = arith.constant 8 : index
    %c0_18 = arith.constant 0 : index
    %36 = vector.load %arg6[%c8, %c0_18] : memref<24x64xf32, #tpu.memory_space<vmem>>, vector<8x32xf32>
    tpu.vector_store %arg6[%c8, %c0_18], %33 {strides = array<i32>} : memref<24x64xf32, #tpu.memory_space<vmem>>, vector<8x32xf32>,
    %37 = vector.extract_strided_slice %33 {offsets = [0, 1], sizes = [8, 31], strides = [1, 1]} : vector<8x32xf32> to vector<8x31xf32>
    %c16 = arith.constant 16 : index
    %c0_19 = arith.constant 0 : index
    %38 = vector.load %arg6[%c16, %c0_19] : memref<24x64xf32, #tpu.memory_space<vmem>>, vector<8x31xf32>
    tpu.vector_store %arg6[%c16, %c0_19], %37 {strides = array<i32>} : memref<24x64xf32, #tpu.memory_space<vmem>>, vector<8x31xf32>,
    %39 = vector.broadcast %22 : vector<8x1xf32> to vector<8x32xf32>
    %40 = arith.mulf %3, %39 : vector<8x32xf32>
    %41 = vector.broadcast %25 : vector<8x1xf32> to vector<8x32xf32>
    %42 = arith.addf %40, %41 : vector<8x32xf32>
    %cst_20 = arith.constant 0.000000e+00 : f32
    %43 = vector.broadcast %cst_20 : f32 to vector<8x32xf32>
    %44 = arith.maximumf %42, %43 : vector<8x32xf32>
    %45 = vector.extract_strided_slice %44 {offsets = [0, 0], sizes = [8, 31], strides = [1, 1]} : vector<8x32xf32> to vector<8x31xf32>
    %c0_21 = arith.constant 0 : index
    %c33 = arith.constant 33 : index
    %46 = vector.load %arg6[%c0_21, %c33] : memref<24x64xf32, #tpu.memory_space<vmem>>, vector<8x31xf32>
    tpu.vector_store %arg6[%c0_21, %c33], %45 {strides = array<i32>} : memref<24x64xf32, #tpu.memory_space<vmem>>, vector<8x31xf32>,
    %c8_22 = arith.constant 8 : index
    %c32 = arith.constant 32 : index
    %47 = vector.load %arg6[%c8_22, %c32] : memref<24x64xf32, #tpu.memory_space<vmem>>, vector<8x32xf32>
    tpu.vector_store %arg6[%c8_22, %c32], %44 {strides = array<i32>} : memref<24x64xf32, #tpu.memory_space<vmem>>, vector<8x32xf32>,
    %48 = vector.extract_strided_slice %44 {offsets = [0, 1], sizes = [8, 31], strides = [1, 1]} : vector<8x32xf32> to vector<8x31xf32>
    %c16_23 = arith.constant 16 : index
    %c32_24 = arith.constant 32 : index
    %49 = vector.load %arg6[%c16_23, %c32_24] : memref<24x64xf32, #tpu.memory_space<vmem>>, vector<8x31xf32>
    tpu.vector_store %arg6[%c16_23, %c32_24], %48 {strides = array<i32>} : memref<24x64xf32, #tpu.memory_space<vmem>>, vector<8x31xf32>,
    %c0_25 = arith.constant 0 : index
    %c0_26 = arith.constant 0 : index
    %50 = vector.load %arg3[%c0_25, %c0_26] : memref<8x24xf32, #tpu.memory_space<vmem>>, vector<8x24xf32>
    %c0_27 = arith.constant 0 : index
    %c0_28 = arith.constant 0 : index
    %51 = vector.load %arg6[%c0_27, %c0_28] : memref<24x64xf32, #tpu.memory_space<vmem>>, vector<24x64xf32>
    %cst_29 = arith.constant dense<0.000000e+00> : vector<8x64xf32>
    %52 = tpu.matmul %50, %51, %cst_29 {dimension_numbers = #tpu.dot_dimension_numbers<[1], [0], [0], [1], [0, 0, 1, 1], [], []>} : vector<8x24xf32>, vector<24x64xf32>, vector<8x64xf32> -> vector<8x64xf32>
    %c0_30 = arith.constant 0 : index
    %c0_31 = arith.constant 0 : index
    %53 = vector.load %arg4[%c0_30, %c0_31] : memref<8x1xf32, #tpu.memory_space<vmem>>, vector<8x1xf32>
    %54 = vector.broadcast %53 : vector<8x1xf32> to vector<8x64xf32>
    %55 = arith.addf %52, %54 : vector<8x64xf32>
    %56 = vector.extract_strided_slice %55 {offsets = [0, 0], sizes = [8, 32], strides = [1, 1]} : vector<8x64xf32> to vector<8x32xf32>
    %c0_32 = arith.constant 0 : index
    %c0_33 = arith.constant 0 : index
    %c0_34 = arith.constant 0 : index
    %57 = vector.load %arg5[%c0_32, %c0_33, %c0_34] : memref<2x8x32xf32, #tpu.memory_space<vmem>>, vector<1x8x32xf32>
    %58 = vector.shape_cast %57 : vector<1x8x32xf32> to vector<8x32xf32>
    %59 = vector.shape_cast %56 : vector<8x32xf32> to vector<1x8x32xf32>
    tpu.vector_store %arg5[%c0_32, %c0_33, %c0_34], %59 {strides = array<i32>} : memref<2x8x32xf32, #tpu.memory_space<vmem>>, vector<1x8x32xf32>,
    %60 = vector.extract_strided_slice %55 {offsets = [0, 32], sizes = [8, 32], strides = [1, 1]} : vector<8x64xf32> to vector<8x32xf32>
    %c1_35 = arith.constant 1 : index
    %c0_36 = arith.constant 0 : index
    %c0_37 = arith.constant 0 : index
    %61 = vector.load %arg5[%c1_35, %c0_36, %c0_37] : memref<2x8x32xf32, #tpu.memory_space<vmem>>, vector<1x8x32xf32>
    %62 = vector.shape_cast %61 : vector<1x8x32xf32> to vector<8x32xf32>
    %63 = vector.shape_cast %60 : vector<8x32xf32> to vector<1x8x32xf32>
    tpu.vector_store %arg5[%c1_35, %c0_36, %c0_37], %63 {strides = array<i32>} : memref<2x8x32xf32, #tpu.memory_space<vmem>>, vector<1x8x32xf32>,
    return
  }
}

module attributes {stable_mosaic.version = 11 : i64} {
  func.func @kernel(%arg0: memref<2x8x32xf32, #tpu.memory_space<vmem>>, %arg1: memref<8x1xf32, #tpu.memory_space<vmem>>, %arg2: memref<8x1xf32, #tpu.memory_space<vmem>>, %arg3: memref<8x24xf32, #tpu.memory_space<vmem>>, %arg4: memref<8x1xf32, #tpu.memory_space<vmem>>, %arg5: memref<2x8x32xf32, #tpu.memory_space<vmem>>, %arg6: memref<2x8x32xf32, #tpu.memory_space<vmem>>, %arg7: memref<24x64xf32, #tpu.memory_space<vmem>>) attributes {dimension_semantics = [], scalar_prefetch = 0 : i64, scratch_operands = 1 : i64, tpu.core_type = #tpu.core_type<tc>} {
    %c0 = arith.constant 0 : index
    %c0_0 = arith.constant 0 : index
    %c0_1 = arith.constant 0 : index
    %0 = vector.load %arg0[%c0, %c0_0, %c0_1] : memref<2x8x32xf32, #tpu.memory_space<vmem>>, vector<1x8x32xf32>
    %1 = vector.shape_cast %0 : vector<1x8x32xf32> to vector<8x32xf32>
    %c1 = arith.constant 1 : index
    %c0_2 = arith.constant 0 : index
    %c0_3 = arith.constant 0 : index
    %2 = vector.load %arg0[%c1, %c0_2, %c0_3] : memref<2x8x32xf32, #tpu.memory_space<vmem>>, vector<1x8x32xf32>
    %3 = vector.shape_cast %2 : vector<1x8x32xf32> to vector<8x32xf32>
    %4 = arith.mulf %1, %1 : vector<8x32xf32>
    %5 = arith.addf %1, %3 : vector<8x32xf32>
    %6 = arith.mulf %3, %3 : vector<8x32xf32>
    %7 = arith.addf %4, %6 : vector<8x32xf32>
    %cst = arith.constant dense<0.000000e+00> : vector<8xf32>
    %8 = vector.multi_reduction <add>, %5, %cst [1] : vector<8x32xf32> to vector<8xf32>
    %9 = vector.shape_cast %8 : vector<8xf32> to vector<8x1xf32>
    %cst_4 = arith.constant 1.562500e-02 : f32
    %10 = vector.broadcast %cst_4 : f32 to vector<8x1xf32>
    %11 = arith.mulf %9, %10 : vector<8x1xf32>
    %cst_5 = arith.constant dense<0.000000e+00> : vector<8xf32>
    %12 = vector.multi_reduction <add>, %7, %cst_5 [1] : vector<8x32xf32> to vector<8xf32>
    %13 = vector.shape_cast %12 : vector<8xf32> to vector<8x1xf32>
    %cst_6 = arith.constant 1.562500e-02 : f32
    %14 = vector.broadcast %cst_6 : f32 to vector<8x1xf32>
    %15 = arith.mulf %13, %14 : vector<8x1xf32>
    %16 = arith.mulf %11, %11 : vector<8x1xf32>
    %17 = arith.subf %15, %16 : vector<8x1xf32>
    %cst_7 = arith.constant 9.99999974E-6 : f32
    %18 = vector.broadcast %cst_7 : f32 to vector<8x1xf32>
    %19 = arith.addf %17, %18 : vector<8x1xf32>
    %20 = math.rsqrt %19 : vector<8x1xf32>
    %c0_8 = arith.constant 0 : index
    %c0_9 = arith.constant 0 : index
    %21 = vector.load %arg1[%c0_8, %c0_9] : memref<8x1xf32, #tpu.memory_space<vmem>>, vector<8x1xf32>
    %22 = arith.mulf %21, %20 : vector<8x1xf32>
    %c0_10 = arith.constant 0 : index
    %c0_11 = arith.constant 0 : index
    %23 = vector.load %arg2[%c0_10, %c0_11] : memref<8x1xf32, #tpu.memory_space<vmem>>, vector<8x1xf32>
    %24 = arith.mulf %11, %22 : vector<8x1xf32>
    %25 = arith.subf %23, %24 : vector<8x1xf32>
    %cst_12 = arith.constant 0.000000e+00 : f32
    %26 = vector.broadcast %cst_12 : f32 to vector<24x64xf32>
    %c0_13 = arith.constant 0 : index
    %c0_14 = arith.constant 0 : index
    %27 = vector.load %arg7[%c0_13, %c0_14] : memref<24x64xf32, #tpu.memory_space<vmem>>, vector<24x64xf32>
    tpu.vector_store %arg7[%c0_13, %c0_14], %26 {strides = array<i32>} : memref<24x64xf32, #tpu.memory_space<vmem>>, vector<24x64xf32>,
    %28 = vector.broadcast %22 : vector<8x1xf32> to vector<8x32xf32>
    %29 = arith.mulf %1, %28 : vector<8x32xf32>
    %30 = vector.broadcast %25 : vector<8x1xf32> to vector<8x32xf32>
    %31 = arith.addf %29, %30 : vector<8x32xf32>
    %cst_15 = arith.constant 0.000000e+00 : f32
    %32 = vector.broadcast %cst_15 : f32 to vector<8x32xf32>
    %33 = arith.maximumf %31, %32 : vector<8x32xf32>
    %34 = vector.extract_strided_slice %33 {offsets = [0, 0], sizes = [8, 29], strides = [1, 1]} : vector<8x32xf32> to vector<8x29xf32>
    %c0_16 = arith.constant 0 : index
    %c3 = arith.constant 3 : index
    %35 = vector.load %arg7[%c0_16, %c3] : memref<24x64xf32, #tpu.memory_space<vmem>>, vector<8x29xf32>
    tpu.vector_store %arg7[%c0_16, %c3], %34 {strides = array<i32>} : memref<24x64xf32, #tpu.memory_space<vmem>>, vector<8x29xf32>,
    %c8 = arith.constant 8 : index
    %c0_17 = arith.constant 0 : index
    %36 = vector.load %arg7[%c8, %c0_17] : memref<24x64xf32, #tpu.memory_space<vmem>>, vector<8x32xf32>
    tpu.vector_store %arg7[%c8, %c0_17], %33 {strides = array<i32>} : memref<24x64xf32, #tpu.memory_space<vmem>>, vector<8x32xf32>,
    %37 = vector.extract_strided_slice %33 {offsets = [0, 3], sizes = [8, 29], strides = [1, 1]} : vector<8x32xf32> to vector<8x29xf32>
    %c16 = arith.constant 16 : index
    %c0_18 = arith.constant 0 : index
    %38 = vector.load %arg7[%c16, %c0_18] : memref<24x64xf32, #tpu.memory_space<vmem>>, vector<8x29xf32>
    tpu.vector_store %arg7[%c16, %c0_18], %37 {strides = array<i32>} : memref<24x64xf32, #tpu.memory_space<vmem>>, vector<8x29xf32>,
    %39 = vector.broadcast %22 : vector<8x1xf32> to vector<8x32xf32>
    %40 = arith.mulf %3, %39 : vector<8x32xf32>
    %41 = vector.broadcast %25 : vector<8x1xf32> to vector<8x32xf32>
    %42 = arith.addf %40, %41 : vector<8x32xf32>
    %cst_19 = arith.constant 0.000000e+00 : f32
    %43 = vector.broadcast %cst_19 : f32 to vector<8x32xf32>
    %44 = arith.maximumf %42, %43 : vector<8x32xf32>
    %45 = vector.extract_strided_slice %44 {offsets = [0, 0], sizes = [8, 29], strides = [1, 1]} : vector<8x32xf32> to vector<8x29xf32>
    %c0_20 = arith.constant 0 : index
    %c35 = arith.constant 35 : index
    %46 = vector.load %arg7[%c0_20, %c35] : memref<24x64xf32, #tpu.memory_space<vmem>>, vector<8x29xf32>
    tpu.vector_store %arg7[%c0_20, %c35], %45 {strides = array<i32>} : memref<24x64xf32, #tpu.memory_space<vmem>>, vector<8x29xf32>,
    %c8_21 = arith.constant 8 : index
    %c32 = arith.constant 32 : index
    %47 = vector.load %arg7[%c8_21, %c32] : memref<24x64xf32, #tpu.memory_space<vmem>>, vector<8x32xf32>
    tpu.vector_store %arg7[%c8_21, %c32], %44 {strides = array<i32>} : memref<24x64xf32, #tpu.memory_space<vmem>>, vector<8x32xf32>,
    %48 = vector.extract_strided_slice %44 {offsets = [0, 3], sizes = [8, 29], strides = [1, 1]} : vector<8x32xf32> to vector<8x29xf32>
    %c16_22 = arith.constant 16 : index
    %c32_23 = arith.constant 32 : index
    %49 = vector.load %arg7[%c16_22, %c32_23] : memref<24x64xf32, #tpu.memory_space<vmem>>, vector<8x29xf32>
    tpu.vector_store %arg7[%c16_22, %c32_23], %48 {strides = array<i32>} : memref<24x64xf32, #tpu.memory_space<vmem>>, vector<8x29xf32>,
    %c0_24 = arith.constant 0 : index
    %c0_25 = arith.constant 0 : index
    %50 = vector.load %arg3[%c0_24, %c0_25] : memref<8x24xf32, #tpu.memory_space<vmem>>, vector<8x24xf32>
    %c0_26 = arith.constant 0 : index
    %c0_27 = arith.constant 0 : index
    %51 = vector.load %arg7[%c0_26, %c0_27] : memref<24x64xf32, #tpu.memory_space<vmem>>, vector<24x64xf32>
    %cst_28 = arith.constant dense<0.000000e+00> : vector<8x64xf32>
    %52 = tpu.matmul %50, %51, %cst_28 {dimension_numbers = #tpu.dot_dimension_numbers<[1], [0], [0], [1], [0, 0, 1, 1], [], []>} : vector<8x24xf32>, vector<24x64xf32>, vector<8x64xf32> -> vector<8x64xf32>
    %c0_29 = arith.constant 0 : index
    %c0_30 = arith.constant 0 : index
    %53 = vector.load %arg4[%c0_29, %c0_30] : memref<8x1xf32, #tpu.memory_space<vmem>>, vector<8x1xf32>
    %54 = vector.broadcast %53 : vector<8x1xf32> to vector<8x64xf32>
    %55 = arith.addf %52, %54 : vector<8x64xf32>
    %56 = vector.extract_strided_slice %55 {offsets = [0, 0], sizes = [8, 32], strides = [1, 1]} : vector<8x64xf32> to vector<8x32xf32>
    %c0_31 = arith.constant 0 : index
    %c0_32 = arith.constant 0 : index
    %c0_33 = arith.constant 0 : index
    %57 = vector.load %arg5[%c0_31, %c0_32, %c0_33] : memref<2x8x32xf32, #tpu.memory_space<vmem>>, vector<1x8x32xf32>
    %58 = vector.shape_cast %57 : vector<1x8x32xf32> to vector<8x32xf32>
    %59 = arith.addf %56, %58 : vector<8x32xf32>
    %cst_34 = arith.constant 5.000000e-01 : f32
    %60 = vector.broadcast %cst_34 : f32 to vector<8x32xf32>
    %61 = arith.mulf %59, %60 : vector<8x32xf32>
    %c0_35 = arith.constant 0 : index
    %c0_36 = arith.constant 0 : index
    %c0_37 = arith.constant 0 : index
    %62 = vector.load %arg6[%c0_35, %c0_36, %c0_37] : memref<2x8x32xf32, #tpu.memory_space<vmem>>, vector<1x8x32xf32>
    %63 = vector.shape_cast %62 : vector<1x8x32xf32> to vector<8x32xf32>
    %64 = vector.shape_cast %61 : vector<8x32xf32> to vector<1x8x32xf32>
    tpu.vector_store %arg6[%c0_35, %c0_36, %c0_37], %64 {strides = array<i32>} : memref<2x8x32xf32, #tpu.memory_space<vmem>>, vector<1x8x32xf32>,
    %65 = vector.extract_strided_slice %55 {offsets = [0, 32], sizes = [8, 32], strides = [1, 1]} : vector<8x64xf32> to vector<8x32xf32>
    %c1_38 = arith.constant 1 : index
    %c0_39 = arith.constant 0 : index
    %c0_40 = arith.constant 0 : index
    %66 = vector.load %arg5[%c1_38, %c0_39, %c0_40] : memref<2x8x32xf32, #tpu.memory_space<vmem>>, vector<1x8x32xf32>
    %67 = vector.shape_cast %66 : vector<1x8x32xf32> to vector<8x32xf32>
    %68 = arith.addf %65, %67 : vector<8x32xf32>
    %cst_41 = arith.constant 5.000000e-01 : f32
    %69 = vector.broadcast %cst_41 : f32 to vector<8x32xf32>
    %70 = arith.mulf %68, %69 : vector<8x32xf32>
    %c1_42 = arith.constant 1 : index
    %c0_43 = arith.constant 0 : index
    %c0_44 = arith.constant 0 : index
    %71 = vector.load %arg6[%c1_42, %c0_43, %c0_44] : memref<2x8x32xf32, #tpu.memory_space<vmem>>, vector<1x8x32xf32>
    %72 = vector.shape_cast %71 : vector<1x8x32xf32> to vector<8x32xf32>
    %73 = vector.shape_cast %70 : vector<8x32xf32> to vector<1x8x32xf32>
    tpu.vector_store %arg6[%c1_42, %c0_43, %c0_44], %73 {strides = array<i32>} : memref<2x8x32xf32, #tpu.memory_space<vmem>>, vector<1x8x32xf32>,
    return
  }
}

module attributes {stable_mosaic.version = 11 : i64} {
  func.func @kernel(%arg0: memref<2x8x32xf32, #tpu.memory_space<vmem>>, %arg1: memref<8x1xf32, #tpu.memory_space<vmem>>, %arg2: memref<8x1xf32, #tpu.memory_space<vmem>>, %arg3: memref<8x40xf32, #tpu.memory_space<vmem>>, %arg4: memref<8x1xf32, #tpu.memory_space<vmem>>, %arg5: memref<2x8x32xf32, #tpu.memory_space<vmem>>, %arg6: memref<2x8x32xf32, #tpu.memory_space<vmem>>, %arg7: memref<2x8x32xf32, #tpu.memory_space<vmem>>, %arg8: memref<40x64xf32, #tpu.memory_space<vmem>>) attributes {dimension_semantics = [], scalar_prefetch = 0 : i64, scratch_operands = 1 : i64, tpu.core_type = #tpu.core_type<tc>} {
    %c0 = arith.constant 0 : index
    %c0_0 = arith.constant 0 : index
    %c0_1 = arith.constant 0 : index
    %0 = vector.load %arg0[%c0, %c0_0, %c0_1] : memref<2x8x32xf32, #tpu.memory_space<vmem>>, vector<1x8x32xf32>
    %1 = vector.shape_cast %0 : vector<1x8x32xf32> to vector<8x32xf32>
    %c1 = arith.constant 1 : index
    %c0_2 = arith.constant 0 : index
    %c0_3 = arith.constant 0 : index
    %2 = vector.load %arg0[%c1, %c0_2, %c0_3] : memref<2x8x32xf32, #tpu.memory_space<vmem>>, vector<1x8x32xf32>
    %3 = vector.shape_cast %2 : vector<1x8x32xf32> to vector<8x32xf32>
    %4 = arith.mulf %1, %1 : vector<8x32xf32>
    %5 = arith.addf %1, %3 : vector<8x32xf32>
    %6 = arith.mulf %3, %3 : vector<8x32xf32>
    %7 = arith.addf %4, %6 : vector<8x32xf32>
    %cst = arith.constant dense<0.000000e+00> : vector<8xf32>
    %8 = vector.multi_reduction <add>, %5, %cst [1] : vector<8x32xf32> to vector<8xf32>
    %9 = vector.shape_cast %8 : vector<8xf32> to vector<8x1xf32>
    %cst_4 = arith.constant 1.562500e-02 : f32
    %10 = vector.broadcast %cst_4 : f32 to vector<8x1xf32>
    %11 = arith.mulf %9, %10 : vector<8x1xf32>
    %cst_5 = arith.constant dense<0.000000e+00> : vector<8xf32>
    %12 = vector.multi_reduction <add>, %7, %cst_5 [1] : vector<8x32xf32> to vector<8xf32>
    %13 = vector.shape_cast %12 : vector<8xf32> to vector<8x1xf32>
    %cst_6 = arith.constant 1.562500e-02 : f32
    %14 = vector.broadcast %cst_6 : f32 to vector<8x1xf32>
    %15 = arith.mulf %13, %14 : vector<8x1xf32>
    %16 = arith.mulf %11, %11 : vector<8x1xf32>
    %17 = arith.subf %15, %16 : vector<8x1xf32>
    %cst_7 = arith.constant 9.99999974E-6 : f32
    %18 = vector.broadcast %cst_7 : f32 to vector<8x1xf32>
    %19 = arith.addf %17, %18 : vector<8x1xf32>
    %20 = math.rsqrt %19 : vector<8x1xf32>
    %c0_8 = arith.constant 0 : index
    %c0_9 = arith.constant 0 : index
    %21 = vector.load %arg1[%c0_8, %c0_9] : memref<8x1xf32, #tpu.memory_space<vmem>>, vector<8x1xf32>
    %22 = arith.mulf %21, %20 : vector<8x1xf32>
    %c0_10 = arith.constant 0 : index
    %c0_11 = arith.constant 0 : index
    %23 = vector.load %arg2[%c0_10, %c0_11] : memref<8x1xf32, #tpu.memory_space<vmem>>, vector<8x1xf32>
    %24 = arith.mulf %11, %22 : vector<8x1xf32>
    %25 = arith.subf %23, %24 : vector<8x1xf32>
    %cst_12 = arith.constant 0.000000e+00 : f32
    %26 = vector.broadcast %cst_12 : f32 to vector<40x64xf32>
    %c0_13 = arith.constant 0 : index
    %c0_14 = arith.constant 0 : index
    %27 = vector.load %arg8[%c0_13, %c0_14] : memref<40x64xf32, #tpu.memory_space<vmem>>, vector<40x64xf32>
    tpu.vector_store %arg8[%c0_13, %c0_14], %26 {strides = array<i32>} : memref<40x64xf32, #tpu.memory_space<vmem>>, vector<40x64xf32>,
    %28 = vector.broadcast %22 : vector<8x1xf32> to vector<8x32xf32>
    %29 = arith.mulf %1, %28 : vector<8x32xf32>
    %30 = vector.broadcast %25 : vector<8x1xf32> to vector<8x32xf32>
    %31 = arith.addf %29, %30 : vector<8x32xf32>
    %cst_15 = arith.constant 0.000000e+00 : f32
    %32 = vector.broadcast %cst_15 : f32 to vector<8x32xf32>
    %33 = arith.maximumf %31, %32 : vector<8x32xf32>
    %34 = vector.extract_strided_slice %33 {offsets = [0, 0], sizes = [8, 26], strides = [1, 1]} : vector<8x32xf32> to vector<8x26xf32>
    %c0_16 = arith.constant 0 : index
    %c6 = arith.constant 6 : index
    %35 = vector.load %arg8[%c0_16, %c6] : memref<40x64xf32, #tpu.memory_space<vmem>>, vector<8x26xf32>
    tpu.vector_store %arg8[%c0_16, %c6], %34 {strides = array<i32>} : memref<40x64xf32, #tpu.memory_space<vmem>>, vector<8x26xf32>,
    %36 = vector.extract_strided_slice %33 {offsets = [0, 0], sizes = [8, 29], strides = [1, 1]} : vector<8x32xf32> to vector<8x29xf32>
    %c8 = arith.constant 8 : index
    %c3 = arith.constant 3 : index
    %37 = vector.load %arg8[%c8, %c3] : memref<40x64xf32, #tpu.memory_space<vmem>>, vector<8x29xf32>
    tpu.vector_store %arg8[%c8, %c3], %36 {strides = array<i32>} : memref<40x64xf32, #tpu.memory_space<vmem>>, vector<8x29xf32>,
    %c16 = arith.constant 16 : index
    %c0_17 = arith.constant 0 : index
    %38 = vector.load %arg8[%c16, %c0_17] : memref<40x64xf32, #tpu.memory_space<vmem>>, vector<8x32xf32>
    tpu.vector_store %arg8[%c16, %c0_17], %33 {strides = array<i32>} : memref<40x64xf32, #tpu.memory_space<vmem>>, vector<8x32xf32>,
    %39 = vector.extract_strided_slice %33 {offsets = [0, 3], sizes = [8, 29], strides = [1, 1]} : vector<8x32xf32> to vector<8x29xf32>
    %c24 = arith.constant 24 : index
    %c0_18 = arith.constant 0 : index
    %40 = vector.load %arg8[%c24, %c0_18] : memref<40x64xf32, #tpu.memory_space<vmem>>, vector<8x29xf32>
    tpu.vector_store %arg8[%c24, %c0_18], %39 {strides = array<i32>} : memref<40x64xf32, #tpu.memory_space<vmem>>, vector<8x29xf32>,
    %41 = vector.extract_strided_slice %33 {offsets = [0, 6], sizes = [8, 26], strides = [1, 1]} : vector<8x32xf32> to vector<8x26xf32>
    %c32 = arith.constant 32 : index
    %c0_19 = arith.constant 0 : index
    %42 = vector.load %arg8[%c32, %c0_19] : memref<40x64xf32, #tpu.memory_space<vmem>>, vector<8x26xf32>
    tpu.vector_store %arg8[%c32, %c0_19], %41 {strides = array<i32>} : memref<40x64xf32, #tpu.memory_space<vmem>>, vector<8x26xf32>,
    %43 = vector.broadcast %22 : vector<8x1xf32> to vector<8x32xf32>
    %44 = arith.mulf %3, %43 : vector<8x32xf32>
    %45 = vector.broadcast %25 : vector<8x1xf32> to vector<8x32xf32>
    %46 = arith.addf %44, %45 : vector<8x32xf32>
    %cst_20 = arith.constant 0.000000e+00 : f32
    %47 = vector.broadcast %cst_20 : f32 to vector<8x32xf32>
    %48 = arith.maximumf %46, %47 : vector<8x32xf32>
    %49 = vector.extract_strided_slice %48 {offsets = [0, 0], sizes = [8, 26], strides = [1, 1]} : vector<8x32xf32> to vector<8x26xf32>
    %c0_21 = arith.constant 0 : index
    %c38 = arith.constant 38 : index
    %50 = vector.load %arg8[%c0_21, %c38] : memref<40x64xf32, #tpu.memory_space<vmem>>, vector<8x26xf32>
    tpu.vector_store %arg8[%c0_21, %c38], %49 {strides = array<i32>} : memref<40x64xf32, #tpu.memory_space<vmem>>, vector<8x26xf32>,
    %51 = vector.extract_strided_slice %48 {offsets = [0, 0], sizes = [8, 29], strides = [1, 1]} : vector<8x32xf32> to vector<8x29xf32>
    %c8_22 = arith.constant 8 : index
    %c35 = arith.constant 35 : index
    %52 = vector.load %arg8[%c8_22, %c35] : memref<40x64xf32, #tpu.memory_space<vmem>>, vector<8x29xf32>
    tpu.vector_store %arg8[%c8_22, %c35], %51 {strides = array<i32>} : memref<40x64xf32, #tpu.memory_space<vmem>>, vector<8x29xf32>,
    %c16_23 = arith.constant 16 : index
    %c32_24 = arith.constant 32 : index
    %53 = vector.load %arg8[%c16_23, %c32_24] : memref<40x64xf32, #tpu.memory_space<vmem>>, vector<8x32xf32>
    tpu.vector_store %arg8[%c16_23, %c32_24], %48 {strides = array<i32>} : memref<40x64xf32, #tpu.memory_space<vmem>>, vector<8x32xf32>,
    %54 = vector.extract_strided_slice %48 {offsets = [0, 3], sizes = [8, 29], strides = [1, 1]} : vector<8x32xf32> to vector<8x29xf32>
    %c24_25 = arith.constant 24 : index
    %c32_26 = arith.constant 32 : index
    %55 = vector.load %arg8[%c24_25, %c32_26] : memref<40x64xf32, #tpu.memory_space<vmem>>, vector<8x29xf32>
    tpu.vector_store %arg8[%c24_25, %c32_26], %54 {strides = array<i32>} : memref<40x64xf32, #tpu.memory_space<vmem>>, vector<8x29xf32>,
    %56 = vector.extract_strided_slice %48 {offsets = [0, 6], sizes = [8, 26], strides = [1, 1]} : vector<8x32xf32> to vector<8x26xf32>
    %c32_27 = arith.constant 32 : index
    %c32_28 = arith.constant 32 : index
    %57 = vector.load %arg8[%c32_27, %c32_28] : memref<40x64xf32, #tpu.memory_space<vmem>>, vector<8x26xf32>
    tpu.vector_store %arg8[%c32_27, %c32_28], %56 {strides = array<i32>} : memref<40x64xf32, #tpu.memory_space<vmem>>, vector<8x26xf32>,
    %c0_29 = arith.constant 0 : index
    %c0_30 = arith.constant 0 : index
    %58 = vector.load %arg3[%c0_29, %c0_30] : memref<8x40xf32, #tpu.memory_space<vmem>>, vector<8x40xf32>
    %c0_31 = arith.constant 0 : index
    %c0_32 = arith.constant 0 : index
    %59 = vector.load %arg8[%c0_31, %c0_32] : memref<40x64xf32, #tpu.memory_space<vmem>>, vector<40x64xf32>
    %cst_33 = arith.constant dense<0.000000e+00> : vector<8x64xf32>
    %60 = tpu.matmul %58, %59, %cst_33 {dimension_numbers = #tpu.dot_dimension_numbers<[1], [0], [0], [1], [0, 0, 1, 1], [], []>} : vector<8x40xf32>, vector<40x64xf32>, vector<8x64xf32> -> vector<8x64xf32>
    %c0_34 = arith.constant 0 : index
    %c0_35 = arith.constant 0 : index
    %61 = vector.load %arg4[%c0_34, %c0_35] : memref<8x1xf32, #tpu.memory_space<vmem>>, vector<8x1xf32>
    %62 = vector.broadcast %61 : vector<8x1xf32> to vector<8x64xf32>
    %63 = arith.addf %60, %62 : vector<8x64xf32>
    %64 = vector.extract_strided_slice %63 {offsets = [0, 0], sizes = [8, 32], strides = [1, 1]} : vector<8x64xf32> to vector<8x32xf32>
    %c0_36 = arith.constant 0 : index
    %c0_37 = arith.constant 0 : index
    %c0_38 = arith.constant 0 : index
    %65 = vector.load %arg5[%c0_36, %c0_37, %c0_38] : memref<2x8x32xf32, #tpu.memory_space<vmem>>, vector<1x8x32xf32>
    %66 = vector.shape_cast %65 : vector<1x8x32xf32> to vector<8x32xf32>
    %67 = arith.addf %64, %66 : vector<8x32xf32>
    %cst_39 = arith.constant 5.000000e-01 : f32
    %68 = vector.broadcast %cst_39 : f32 to vector<8x32xf32>
    %69 = arith.mulf %67, %68 : vector<8x32xf32>
    %c0_40 = arith.constant 0 : index
    %c0_41 = arith.constant 0 : index
    %c0_42 = arith.constant 0 : index
    %70 = vector.load %arg6[%c0_40, %c0_41, %c0_42] : memref<2x8x32xf32, #tpu.memory_space<vmem>>, vector<1x8x32xf32>
    %71 = vector.shape_cast %70 : vector<1x8x32xf32> to vector<8x32xf32>
    %72 = arith.addf %69, %71 : vector<8x32xf32>
    %c0_43 = arith.constant 0 : index
    %c0_44 = arith.constant 0 : index
    %c0_45 = arith.constant 0 : index
    %73 = vector.load %arg7[%c0_43, %c0_44, %c0_45] : memref<2x8x32xf32, #tpu.memory_space<vmem>>, vector<1x8x32xf32>
    %74 = vector.shape_cast %73 : vector<1x8x32xf32> to vector<8x32xf32>
    %75 = vector.shape_cast %72 : vector<8x32xf32> to vector<1x8x32xf32>
    tpu.vector_store %arg7[%c0_43, %c0_44, %c0_45], %75 {strides = array<i32>} : memref<2x8x32xf32, #tpu.memory_space<vmem>>, vector<1x8x32xf32>,
    %76 = vector.extract_strided_slice %63 {offsets = [0, 32], sizes = [8, 32], strides = [1, 1]} : vector<8x64xf32> to vector<8x32xf32>
    %c1_46 = arith.constant 1 : index
    %c0_47 = arith.constant 0 : index
    %c0_48 = arith.constant 0 : index
    %77 = vector.load %arg5[%c1_46, %c0_47, %c0_48] : memref<2x8x32xf32, #tpu.memory_space<vmem>>, vector<1x8x32xf32>
    %78 = vector.shape_cast %77 : vector<1x8x32xf32> to vector<8x32xf32>
    %79 = arith.addf %76, %78 : vector<8x32xf32>
    %cst_49 = arith.constant 5.000000e-01 : f32
    %80 = vector.broadcast %cst_49 : f32 to vector<8x32xf32>
    %81 = arith.mulf %79, %80 : vector<8x32xf32>
    %c1_50 = arith.constant 1 : index
    %c0_51 = arith.constant 0 : index
    %c0_52 = arith.constant 0 : index
    %82 = vector.load %arg6[%c1_50, %c0_51, %c0_52] : memref<2x8x32xf32, #tpu.memory_space<vmem>>, vector<1x8x32xf32>
    %83 = vector.shape_cast %82 : vector<1x8x32xf32> to vector<8x32xf32>
    %84 = arith.addf %81, %83 : vector<8x32xf32>
    %c1_53 = arith.constant 1 : index
    %c0_54 = arith.constant 0 : index
    %c0_55 = arith.constant 0 : index
    %85 = vector.load %arg7[%c1_53, %c0_54, %c0_55] : memref<2x8x32xf32, #tpu.memory_space<vmem>>, vector<1x8x32xf32>
    %86 = vector.shape_cast %85 : vector<1x8x32xf32> to vector<8x32xf32>
    %87 = vector.shape_cast %84 : vector<8x32xf32> to vector<1x8x32xf32>
    tpu.vector_store %arg7[%c1_53, %c0_54, %c0_55], %87 {strides = array<i32>} : memref<2x8x32xf32, #tpu.memory_space<vmem>>, vector<1x8x32xf32>,
    return
  }
}

module attributes {stable_mosaic.version = 11 : i64} {
  func.func @kernel(%arg0: memref<2x8x32xf32, #tpu.memory_space<vmem>>, %arg1: memref<8x1xf32, #tpu.memory_space<vmem>>, %arg2: memref<8x1xf32, #tpu.memory_space<vmem>>, %arg3: memref<8x40xf32, #tpu.memory_space<vmem>>, %arg4: memref<8x1xf32, #tpu.memory_space<vmem>>, %arg5: memref<2x8x32xf32, #tpu.memory_space<vmem>>, %arg6: memref<40x64xf32, #tpu.memory_space<vmem>>) attributes {dimension_semantics = [], scalar_prefetch = 0 : i64, scratch_operands = 1 : i64, tpu.core_type = #tpu.core_type<tc>} {
    %c0 = arith.constant 0 : index
    %c0_0 = arith.constant 0 : index
    %c0_1 = arith.constant 0 : index
    %0 = vector.load %arg0[%c0, %c0_0, %c0_1] : memref<2x8x32xf32, #tpu.memory_space<vmem>>, vector<1x8x32xf32>
    %1 = vector.shape_cast %0 : vector<1x8x32xf32> to vector<8x32xf32>
    %c1 = arith.constant 1 : index
    %c0_2 = arith.constant 0 : index
    %c0_3 = arith.constant 0 : index
    %2 = vector.load %arg0[%c1, %c0_2, %c0_3] : memref<2x8x32xf32, #tpu.memory_space<vmem>>, vector<1x8x32xf32>
    %3 = vector.shape_cast %2 : vector<1x8x32xf32> to vector<8x32xf32>
    %4 = arith.mulf %1, %1 : vector<8x32xf32>
    %5 = arith.addf %1, %3 : vector<8x32xf32>
    %6 = arith.mulf %3, %3 : vector<8x32xf32>
    %7 = arith.addf %4, %6 : vector<8x32xf32>
    %cst = arith.constant dense<0.000000e+00> : vector<8xf32>
    %8 = vector.multi_reduction <add>, %5, %cst [1] : vector<8x32xf32> to vector<8xf32>
    %9 = vector.shape_cast %8 : vector<8xf32> to vector<8x1xf32>
    %cst_4 = arith.constant 1.562500e-02 : f32
    %10 = vector.broadcast %cst_4 : f32 to vector<8x1xf32>
    %11 = arith.mulf %9, %10 : vector<8x1xf32>
    %cst_5 = arith.constant dense<0.000000e+00> : vector<8xf32>
    %12 = vector.multi_reduction <add>, %7, %cst_5 [1] : vector<8x32xf32> to vector<8xf32>
    %13 = vector.shape_cast %12 : vector<8xf32> to vector<8x1xf32>
    %cst_6 = arith.constant 1.562500e-02 : f32
    %14 = vector.broadcast %cst_6 : f32 to vector<8x1xf32>
    %15 = arith.mulf %13, %14 : vector<8x1xf32>
    %16 = arith.mulf %11, %11 : vector<8x1xf32>
    %17 = arith.subf %15, %16 : vector<8x1xf32>
    %cst_7 = arith.constant 9.99999974E-6 : f32
    %18 = vector.broadcast %cst_7 : f32 to vector<8x1xf32>
    %19 = arith.addf %17, %18 : vector<8x1xf32>
    %20 = math.rsqrt %19 : vector<8x1xf32>
    %c0_8 = arith.constant 0 : index
    %c0_9 = arith.constant 0 : index
    %21 = vector.load %arg1[%c0_8, %c0_9] : memref<8x1xf32, #tpu.memory_space<vmem>>, vector<8x1xf32>
    %22 = arith.mulf %21, %20 : vector<8x1xf32>
    %c0_10 = arith.constant 0 : index
    %c0_11 = arith.constant 0 : index
    %23 = vector.load %arg2[%c0_10, %c0_11] : memref<8x1xf32, #tpu.memory_space<vmem>>, vector<8x1xf32>
    %24 = arith.mulf %11, %22 : vector<8x1xf32>
    %25 = arith.subf %23, %24 : vector<8x1xf32>
    %cst_12 = arith.constant 0.000000e+00 : f32
    %26 = vector.broadcast %cst_12 : f32 to vector<40x64xf32>
    %c0_13 = arith.constant 0 : index
    %c0_14 = arith.constant 0 : index
    %27 = vector.load %arg6[%c0_13, %c0_14] : memref<40x64xf32, #tpu.memory_space<vmem>>, vector<40x64xf32>
    tpu.vector_store %arg6[%c0_13, %c0_14], %26 {strides = array<i32>} : memref<40x64xf32, #tpu.memory_space<vmem>>, vector<40x64xf32>,
    %28 = vector.broadcast %22 : vector<8x1xf32> to vector<8x32xf32>
    %29 = arith.mulf %1, %28 : vector<8x32xf32>
    %30 = vector.broadcast %25 : vector<8x1xf32> to vector<8x32xf32>
    %31 = arith.addf %29, %30 : vector<8x32xf32>
    %cst_15 = arith.constant 0.000000e+00 : f32
    %32 = vector.broadcast %cst_15 : f32 to vector<8x32xf32>
    %33 = arith.maximumf %31, %32 : vector<8x32xf32>
    %34 = vector.extract_strided_slice %33 {offsets = [0, 0], sizes = [8, 30], strides = [1, 1]} : vector<8x32xf32> to vector<8x30xf32>
    %c0_16 = arith.constant 0 : index
    %c2 = arith.constant 2 : index
    %35 = vector.load %arg6[%c0_16, %c2] : memref<40x64xf32, #tpu.memory_space<vmem>>, vector<8x30xf32>
    tpu.vector_store %arg6[%c0_16, %c2], %34 {strides = array<i32>} : memref<40x64xf32, #tpu.memory_space<vmem>>, vector<8x30xf32>,
    %36 = vector.extract_strided_slice %33 {offsets = [0, 0], sizes = [8, 31], strides = [1, 1]} : vector<8x32xf32> to vector<8x31xf32>
    %c8 = arith.constant 8 : index
    %c1_17 = arith.constant 1 : index
    %37 = vector.load %arg6[%c8, %c1_17] : memref<40x64xf32, #tpu.memory_space<vmem>>, vector<8x31xf32>
    tpu.vector_store %arg6[%c8, %c1_17], %36 {strides = array<i32>} : memref<40x64xf32, #tpu.memory_space<vmem>>, vector<8x31xf32>,
    %c16 = arith.constant 16 : index
    %c0_18 = arith.constant 0 : index
    %38 = vector.load %arg6[%c16, %c0_18] : memref<40x64xf32, #tpu.memory_space<vmem>>, vector<8x32xf32>
    tpu.vector_store %arg6[%c16, %c0_18], %33 {strides = array<i32>} : memref<40x64xf32, #tpu.memory_space<vmem>>, vector<8x32xf32>,
    %39 = vector.extract_strided_slice %33 {offsets = [0, 1], sizes = [8, 31], strides = [1, 1]} : vector<8x32xf32> to vector<8x31xf32>
    %c24 = arith.constant 24 : index
    %c0_19 = arith.constant 0 : index
    %40 = vector.load %arg6[%c24, %c0_19] : memref<40x64xf32, #tpu.memory_space<vmem>>, vector<8x31xf32>
    tpu.vector_store %arg6[%c24, %c0_19], %39 {strides = array<i32>} : memref<40x64xf32, #tpu.memory_space<vmem>>, vector<8x31xf32>,
    %41 = vector.extract_strided_slice %33 {offsets = [0, 2], sizes = [8, 30], strides = [1, 1]} : vector<8x32xf32> to vector<8x30xf32>
    %c32 = arith.constant 32 : index
    %c0_20 = arith.constant 0 : index
    %42 = vector.load %arg6[%c32, %c0_20] : memref<40x64xf32, #tpu.memory_space<vmem>>, vector<8x30xf32>
    tpu.vector_store %arg6[%c32, %c0_20], %41 {strides = array<i32>} : memref<40x64xf32, #tpu.memory_space<vmem>>, vector<8x30xf32>,
    %43 = vector.broadcast %22 : vector<8x1xf32> to vector<8x32xf32>
    %44 = arith.mulf %3, %43 : vector<8x32xf32>
    %45 = vector.broadcast %25 : vector<8x1xf32> to vector<8x32xf32>
    %46 = arith.addf %44, %45 : vector<8x32xf32>
    %cst_21 = arith.constant 0.000000e+00 : f32
    %47 = vector.broadcast %cst_21 : f32 to vector<8x32xf32>
    %48 = arith.maximumf %46, %47 : vector<8x32xf32>
    %49 = vector.extract_strided_slice %48 {offsets = [0, 0], sizes = [8, 30], strides = [1, 1]} : vector<8x32xf32> to vector<8x30xf32>
    %c0_22 = arith.constant 0 : index
    %c34 = arith.constant 34 : index
    %50 = vector.load %arg6[%c0_22, %c34] : memref<40x64xf32, #tpu.memory_space<vmem>>, vector<8x30xf32>
    tpu.vector_store %arg6[%c0_22, %c34], %49 {strides = array<i32>} : memref<40x64xf32, #tpu.memory_space<vmem>>, vector<8x30xf32>,
    %51 = vector.extract_strided_slice %48 {offsets = [0, 0], sizes = [8, 31], strides = [1, 1]} : vector<8x32xf32> to vector<8x31xf32>
    %c8_23 = arith.constant 8 : index
    %c33 = arith.constant 33 : index
    %52 = vector.load %arg6[%c8_23, %c33] : memref<40x64xf32, #tpu.memory_space<vmem>>, vector<8x31xf32>
    tpu.vector_store %arg6[%c8_23, %c33], %51 {strides = array<i32>} : memref<40x64xf32, #tpu.memory_space<vmem>>, vector<8x31xf32>,
    %c16_24 = arith.constant 16 : index
    %c32_25 = arith.constant 32 : index
    %53 = vector.load %arg6[%c16_24, %c32_25] : memref<40x64xf32, #tpu.memory_space<vmem>>, vector<8x32xf32>
    tpu.vector_store %arg6[%c16_24, %c32_25], %48 {strides = array<i32>} : memref<40x64xf32, #tpu.memory_space<vmem>>, vector<8x32xf32>,
    %54 = vector.extract_strided_slice %48 {offsets = [0, 1], sizes = [8, 31], strides = [1, 1]} : vector<8x32xf32> to vector<8x31xf32>
    %c24_26 = arith.constant 24 : index
    %c32_27 = arith.constant 32 : index
    %55 = vector.load %arg6[%c24_26, %c32_27] : memref<40x64xf32, #tpu.memory_space<vmem>>, vector<8x31xf32>
    tpu.vector_store %arg6[%c24_26, %c32_27], %54 {strides = array<i32>} : memref<40x64xf32, #tpu.memory_space<vmem>>, vector<8x31xf32>,
    %56 = vector.extract_strided_slice %48 {offsets = [0, 2], sizes = [8, 30], strides = [1, 1]} : vector<8x32xf32> to vector<8x30xf32>
    %c32_28 = arith.constant 32 : index
    %c32_29 = arith.constant 32 : index
    %57 = vector.load %arg6[%c32_28, %c32_29] : memref<40x64xf32, #tpu.memory_space<vmem>>, vector<8x30xf32>
    tpu.vector_store %arg6[%c32_28, %c32_29], %56 {strides = array<i32>} : memref<40x64xf32, #tpu.memory_space<vmem>>, vector<8x30xf32>,
    %c0_30 = arith.constant 0 : index
    %c0_31 = arith.constant 0 : index
    %58 = vector.load %arg3[%c0_30, %c0_31] : memref<8x40xf32, #tpu.memory_space<vmem>>, vector<8x40xf32>
    %c0_32 = arith.constant 0 : index
    %c0_33 = arith.constant 0 : index
    %59 = vector.load %arg6[%c0_32, %c0_33] : memref<40x64xf32, #tpu.memory_space<vmem>>, vector<40x64xf32>
    %cst_34 = arith.constant dense<0.000000e+00> : vector<8x64xf32>
    %60 = tpu.matmul %58, %59, %cst_34 {dimension_numbers = #tpu.dot_dimension_numbers<[1], [0], [0], [1], [0, 0, 1, 1], [], []>} : vector<8x40xf32>, vector<40x64xf32>, vector<8x64xf32> -> vector<8x64xf32>
    %c0_35 = arith.constant 0 : index
    %c0_36 = arith.constant 0 : index
    %61 = vector.load %arg4[%c0_35, %c0_36] : memref<8x1xf32, #tpu.memory_space<vmem>>, vector<8x1xf32>
    %62 = vector.broadcast %61 : vector<8x1xf32> to vector<8x64xf32>
    %63 = arith.addf %60, %62 : vector<8x64xf32>
    %64 = vector.extract_strided_slice %63 {offsets = [0, 0], sizes = [8, 32], strides = [1, 1]} : vector<8x64xf32> to vector<8x32xf32>
    %c0_37 = arith.constant 0 : index
    %c0_38 = arith.constant 0 : index
    %c0_39 = arith.constant 0 : index
    %65 = vector.load %arg5[%c0_37, %c0_38, %c0_39] : memref<2x8x32xf32, #tpu.memory_space<vmem>>, vector<1x8x32xf32>
    %66 = vector.shape_cast %65 : vector<1x8x32xf32> to vector<8x32xf32>
    %67 = vector.shape_cast %64 : vector<8x32xf32> to vector<1x8x32xf32>
    tpu.vector_store %arg5[%c0_37, %c0_38, %c0_39], %67 {strides = array<i32>} : memref<2x8x32xf32, #tpu.memory_space<vmem>>, vector<1x8x32xf32>,
    %68 = vector.extract_strided_slice %63 {offsets = [0, 32], sizes = [8, 32], strides = [1, 1]} : vector<8x64xf32> to vector<8x32xf32>
    %c1_40 = arith.constant 1 : index
    %c0_41 = arith.constant 0 : index
    %c0_42 = arith.constant 0 : index
    %69 = vector.load %arg5[%c1_40, %c0_41, %c0_42] : memref<2x8x32xf32, #tpu.memory_space<vmem>>, vector<1x8x32xf32>
    %70 = vector.shape_cast %69 : vector<1x8x32xf32> to vector<8x32xf32>
    %71 = vector.shape_cast %68 : vector<8x32xf32> to vector<1x8x32xf32>
    tpu.vector_store %arg5[%c1_40, %c0_41, %c0_42], %71 {strides = array<i32>} : memref<2x8x32xf32, #tpu.memory_space<vmem>>, vector<1x8x32xf32>,
    return
  }
}

</mosaic_0001>

<bundles_post_ra>
// kernel: _lambda_.10
= control target key start
LH: loop header
LB: loop body
LE: loop exit
PB: predicated region body
PF: predicated region fallthrough
CT: control target
= control target key end

     0   :  { %vm14_vm0 = vcmask 154624   ;;  %v733_v1 = vmov 0.0   ;;  %s734_s14 = smov 3   ;;  %s735_s15 = smov 2   ;;  %vm305_vm1 = vcmask 261120   ;;  %vm43_vm2 = vcmask 23568   ;;  %s1051_s0 = inlined_call_operand.vmem [shape: f32[2,32,8], index: 0, kind: input, shape index: {}]   ;;  %s1052_s1 = inlined_call_operand.vmem [shape: f32[16,128], index: 1, kind: input, shape index: {}]   ;;  %s1053_s2 = inlined_call_operand.vmem [shape: f32[16,1], index: 2, kind: input, shape index: {}]   ;;  %s1054_s3 = inlined_call_operand.vmem [shape: f32[2,16,16], index: 3, kind: output, shape index: {}]  }
   0x1   :  { %v622_v0 = vld [vmem:[%s1051_s0 + $0x20] sm:$0xff]  ;;  %19 = vst.msk [vmem:[#allocation2 + $0x20] sm:$0xff] %vm14_vm0, %v733_v1  ;;  %15 = vst.msk [vmem:[#allocation2] sm:$0xff] %vm14_vm0, %v733_v1  ;;  %v623_v2 = vld [vmem:[%s1051_s0 + $0x28] sm:$0xff]  ;;  %s736_s18 = smov 4   ;;  %s737_s19 = smov 5  }
   0x2   :  { %16 = vst.msk [vmem:[#allocation2 + $0x8] sm:$0xff] %vm14_vm0, %v733_v1  ;;  %17 = vst.msk [vmem:[#allocation2 + $0x10] sm:$0xff] %vm14_vm0, %v733_v1  ;;  %193 = vrot.lane.b32.xlu1 %v622_v0, %s734_s14  ;;  %176 = vrot.lane.b32.xlu0 %v622_v0, %s735_s15  ;;  %v625_v3 = vld [vmem:[%s1051_s0 + $0x38] sm:$0xff]  ;;  %v624_v4 = vld [vmem:[%s1051_s0 + $0x30] sm:$0xff]  ;;  %s738_s24 = smov 6   ;;  %s739_s25 = smov 7  }
   0x3   :  { %18 = vst.msk [vmem:[#allocation2 + $0x18] sm:$0xff] %vm14_vm0, %v733_v1  ;;  %20 = vst.msk [vmem:[#allocation2 + $0x28] sm:$0xff] %vm14_vm0, %v733_v1  ;;  %s740_s26 = smov 8   ;;  %v24_v5 = vld [vmem:[%s1051_s0 + $0x8] sm:$0xff]  ;;  %v23_v6 = vld [vmem:[%s1051_s0] sm:$0xff]  ;;  %s741_s4 = smov 9  }
   0x4   :  { %21 = vst.msk [vmem:[#allocation2 + $0x30] sm:$0xff] %vm14_vm0, %v733_v1  ;;  %22 = vst.msk [vmem:[#allocation2 + $0x38] sm:$0xff] %vm14_vm0, %v733_v1  ;;  %v26_v7 = vld [vmem:[%s1051_s0 + $0x18] sm:$0xff]  ;;  %v25_v8 = vld [vmem:[%s1051_s0 + $0x10] sm:$0xff]  ;;  %vm60_vm3 = vcmask 39968   ;;  %vm77_vm4 = vcmask 56368  }
   0x5   :  { %307 = vst.msk [vmem:[#allocation3 + $0x8] sm:$0xff] %vm305_vm1, %v733_v1  ;;  %306 = vst.msk [vmem:[#allocation3] sm:$0xff] %vm305_vm1, %v733_v1  ;;  %vm94_vm5 = vcmask 72768   ;;  %vm111_vm6 = vcmask 89168   ;;  %vm128_vm7 = vcmask 105568   ;;  %vm145_vm8 = vcmask 121968  }
   0x6   :  { %195 = vrot.lane.b32.xlu1 %v623_v2, %s734_s14  ;;  %178 = vrot.lane.b32.xlu0 %v623_v2, %s735_s15  ;;  %308 = vst.msk [vmem:[#allocation3 + $0x10] sm:$0xff] %vm305_vm1, %v733_v1  ;;  %309 = vst.msk [vmem:[#allocation3 + $0x18] sm:$0xff] %vm305_vm1, %v733_v1  ;;  %vm162_vm9 = vcmask 138368   ;;  %s742_s0 = smov 16   ;;  %vm326_vm10 = vcmask 130048   ;;  %s743_s9 = smov 127  }
   0x7   :  { %310 = vst.msk [vmem:[#allocation3 + $0x20] sm:$0xff] %vm305_vm1, %v733_v1  ;;  %311 = vst.msk [vmem:[#allocation3 + $0x28] sm:$0xff] %vm305_vm1, %v733_v1  ;;  %s744_s10 = smov 15   ;;  %s745_s11 = smov 126   ;;  %vm423_vm11 = vcmask 261248  }
   0x8   :  { %312 = vst.msk [vmem:[#allocation3 + $0x30] sm:$0xff] %vm305_vm1, %v733_v1  ;;  %313 = vst.msk [vmem:[#allocation3 + $0x38] sm:$0xff] %vm305_vm1, %v733_v1  ;;  %s746_s12 = smov 14   ;;  %s747_s13 = smov 125  }
   0x9   :  { %314 = vst.msk [vmem:[#allocation3 + $0x40] sm:$0xff] %vm305_vm1, %v733_v1  ;;  %315 = vst.msk [vmem:[#allocation3 + $0x48] sm:$0xff] %vm305_vm1, %v733_v1 }
   0xa   :  { %211 = vrot.lane.b32.xlu1 %v623_v2, %s736_s18  ;;  %209 = vrot.lane.b32.xlu0 %v622_v0, %s736_s18  ;;  %316 = vst.msk [vmem:[#allocation3 + $0x50] sm:$0xff] %vm305_vm1, %v733_v1  ;;  %317 = vst.msk [vmem:[#allocation3 + $0x58] sm:$0xff] %vm305_vm1, %v733_v1 }
   0xb   :  { %318 = vst.msk [vmem:[#allocation3 + $0x60] sm:$0xff] %vm305_vm1, %v733_v1  ;;  %319 = vst.msk [vmem:[#allocation3 + $0x68] sm:$0xff] %vm305_vm1, %v733_v1 }
   0xc   :  { %320 = vst.msk [vmem:[#allocation3 + $0x70] sm:$0xff] %vm305_vm1, %v733_v1  ;;  %321 = vst.msk [vmem:[#allocation3 + $0x78] sm:$0xff] %vm305_vm1, %v733_v1 }
   0xe   :  { %227 = vrot.lane.b32.xlu1 %v623_v2, %s737_s19  ;;  %225 = vrot.lane.b32.xlu0 %v622_v0, %s737_s19 }
  0x12   :  { %182 = vrot.lane.b32.xlu1 %v625_v3, %s735_s15  ;;  %180 = vrot.lane.b32.xlu0 %v624_v4, %s735_s15 }
  0x16   :  { %243 = vrot.lane.b32.xlu1 %v623_v2, %s738_s24  ;;  %241 = vrot.lane.b32.xlu0 %v622_v0, %s738_s24 }
  0x1a   :  { %199 = vrot.lane.b32.xlu1 %v625_v3, %s734_s14  ;;  %197 = vrot.lane.b32.xlu0 %v624_v4, %s734_s14 }
  0x1e   :  { %259 = vrot.lane.b32.xlu1 %v623_v2, %s739_s25  ;;  %257 = vrot.lane.b32.xlu0 %v622_v0, %s739_s25 }
  0x22   :  { %215 = vrot.lane.b32.xlu1 %v625_v3, %s736_s18  ;;  %213 = vrot.lane.b32.xlu0 %v624_v4, %s736_s18 }
  0x26   :  { %275 = vrot.lane.b32.xlu1 %v623_v2, %s740_s26  ;;  %273 = vrot.lane.b32.xlu0 %v622_v0, %s740_s26 }
  0x2a   :  { %33 = vrot.lane.b32.xlu1 %v24_v5, %s735_s15  ;;  %31 = vrot.lane.b32.xlu0 %v23_v6, %s735_s15 }
  0x2e   :  { %231 = vrot.lane.b32.xlu1 %v625_v3, %s737_s19  ;;  %229 = vrot.lane.b32.xlu0 %v624_v4, %s737_s19 }
  0x32   :  { %291 = vrot.lane.b32.xlu1 %v623_v2, %s741_s4  ;;  %289 = vrot.lane.b32.xlu0 %v622_v0, %s741_s4 }
  0x36   :  { %50 = vrot.lane.b32.xlu1 %v24_v5, %s734_s14  ;;  %48 = vrot.lane.b32.xlu0 %v23_v6, %s734_s14 }
  0x3a   :  { %247 = vrot.lane.b32.xlu1 %v625_v3, %s738_s24  ;;  %245 = vrot.lane.b32.xlu0 %v624_v4, %s738_s24 }
  0x3e   :  { %67 = vrot.lane.b32.xlu1 %v24_v5, %s736_s18  ;;  %65 = vrot.lane.b32.xlu0 %v23_v6, %s736_s18 }
  0x42   :  { %263 = vrot.lane.b32.xlu1 %v625_v3, %s739_s25  ;;  %261 = vrot.lane.b32.xlu0 %v624_v4, %s739_s25 }
  0x46   :  { %84 = vrot.lane.b32.xlu1 %v24_v5, %s737_s19  ;;  %82 = vrot.lane.b32.xlu0 %v23_v6, %s737_s19 }
  0x4a   :  { %279 = vrot.lane.b32.xlu1 %v625_v3, %s740_s26  ;;  %277 = vrot.lane.b32.xlu0 %v624_v4, %s740_s26 }
  0x4e   :  { %37 = vrot.lane.b32.xlu1 %v26_v7, %s735_s15  ;;  %35 = vrot.lane.b32.xlu0 %v25_v8, %s735_s15 }
  0x52   :  { %101 = vrot.lane.b32.xlu1 %v24_v5, %s738_s24  ;;  %99 = vrot.lane.b32.xlu0 %v23_v6, %s738_s24 }
  0x56   :  { %295 = vrot.lane.b32.xlu1 %v625_v3, %s741_s4  ;;  %293 = vrot.lane.b32.xlu0 %v624_v4, %s741_s4 }
  0x5a   :  { %54 = vrot.lane.b32.xlu1 %v26_v7, %s734_s14  ;;  %52 = vrot.lane.b32.xlu0 %v25_v8, %s734_s14  ;;  %s748_s14 = smov 13  }
  0x5e   :  { %118 = vrot.lane.b32.xlu1 %v24_v5, %s739_s25  ;;  %116 = vrot.lane.b32.xlu0 %v23_v6, %s739_s25 }
  0x62   :  { %71 = vrot.lane.b32.xlu1 %v26_v7, %s736_s18  ;;  %69 = vrot.lane.b32.xlu0 %v25_v8, %s736_s18 }
  0x66   :  { %135 = vrot.lane.b32.xlu1 %v24_v5, %s740_s26  ;;  %133 = vrot.lane.b32.xlu0 %v23_v6, %s740_s26 }
  0x6a   :  { %88 = vrot.lane.b32.xlu1 %v26_v7, %s737_s19  ;;  %86 = vrot.lane.b32.xlu0 %v25_v8, %s737_s19 }
  0x6e   :  { %152 = vrot.lane.b32.xlu1 %v24_v5, %s741_s4  ;;  %150 = vrot.lane.b32.xlu0 %v23_v6, %s741_s4 }
  0x72   :  { %105 = vrot.lane.b32.xlu1 %v26_v7, %s738_s24  ;;  %103 = vrot.lane.b32.xlu0 %v25_v8, %s738_s24  ;;  %s750_s24 = smov 112  }
  0x74   :  { %v194_v9 = vpop.permute.xlu1 %193  ;;  %v177_v10 = vpop.permute.xlu0 %176 }
  0x75   :  { %189 = vst.msk [vmem:[#allocation2 + $0x20] sm:$0xff] %vm43_vm2, %v177_v10 }
  0x76   :  { %122 = vrot.lane.b32.xlu1 %v26_v7, %s739_s25  ;;  %120 = vrot.lane.b32.xlu0 %v25_v8, %s739_s25  ;;  %205 = vst.msk [vmem:[#allocation2 + $0x20] sm:$0xff] %vm60_vm3, %v194_v9 }
  0x78   :  { %v196_v11 = vpop.permute.xlu1 %195  ;;  %v179_v12 = vpop.permute.xlu0 %178 }
  0x79   :  { %190 = vst.msk [vmem:[#allocation2 + $0x28] sm:$0xff] %vm43_vm2, %v179_v12 }
  0x7a   :  { %139 = vrot.lane.b32.xlu1 %v26_v7, %s740_s26  ;;  %137 = vrot.lane.b32.xlu0 %v25_v8, %s740_s26  ;;  %206 = vst.msk [vmem:[#allocation2 + $0x28] sm:$0xff] %vm60_vm3, %v196_v11 }
  0x7c   :  { %v212_v13 = vpop.permute.xlu1 %211  ;;  %v210_v14 = vpop.permute.xlu0 %209 }
  0x7d   :  { %222 = vst.msk [vmem:[#allocation2 + $0x28] sm:$0xff] %vm77_vm4, %v212_v13  ;;  %221 = vst.msk [vmem:[#allocation2 + $0x20] sm:$0xff] %vm77_vm4, %v210_v14 }
  0x7e   :  { %156 = vrot.lane.b32.xlu1 %v26_v7, %s741_s4  ;;  %154 = vrot.lane.b32.xlu0 %v25_v8, %s741_s4 }
  0x80   :  { %v228_v15 = vpop.permute.xlu1 %227  ;;  %v226_v16 = vpop.permute.xlu0 %225 }
  0x81   :  { %238 = vst.msk [vmem:[#allocation2 + $0x28] sm:$0xff] %vm94_vm5, %v228_v15  ;;  %237 = vst.msk [vmem:[#allocation2 + $0x20] sm:$0xff] %vm94_vm5, %v226_v16 }
  0x84   :  { %v183_v17 = vpop.permute.xlu1 %182  ;;  %v181_v18 = vpop.permute.xlu0 %180 }
  0x85   :  { %192 = vst.msk [vmem:[#allocation2 + $0x38] sm:$0xff] %vm43_vm2, %v183_v17  ;;  %191 = vst.msk [vmem:[#allocation2 + $0x30] sm:$0xff] %vm43_vm2, %v181_v18  ;;  %v500_v17 = vld [vmem:[%s1052_s1] sm:$0xff] }
  0x86   :  { %678 = vmatprep.mubr.f32.mxu0 %v500_v17 }
  0x88   :  { %v244_v19 = vpop.permute.xlu1 %243  ;;  %v242_v20 = vpop.permute.xlu0 %241 }
  0x89   :  { %254 = vst.msk [vmem:[#allocation2 + $0x28] sm:$0xff] %vm111_vm6, %v244_v19  ;;  %253 = vst.msk [vmem:[#allocation2 + $0x20] sm:$0xff] %vm111_vm6, %v242_v20  ;;  %v749_v20 = vmov 0  }
  0x8a   :  { %732 = vset.pattern.permute.xlu1 %v749_v20  ;;  %731 = vset.pattern.permute.xlu0 %v749_v20 }
  0x8c   :  { %v200_v21 = vpop.permute.xlu1 %199  ;;  %v198_v22 = vpop.permute.xlu0 %197 }
  0x8d   :  { %208 = vst.msk [vmem:[#allocation2 + $0x38] sm:$0xff] %vm60_vm3, %v200_v21  ;;  %207 = vst.msk [vmem:[#allocation2 + $0x30] sm:$0xff] %vm60_vm3, %v198_v22  ;;  %v519_v21 = vld [vmem:[%s1053_s2 + $0x8] sm:$0xff]  ;;  %v518_v22 = vld [vmem:[%s1053_s2] sm:$0xff] }
  0x90   :  { %v260_v23 = vpop.permute.xlu1 %259  ;;  %v258_v24 = vpop.permute.xlu0 %257 }
  0x91   :  { %270 = vst.msk [vmem:[#allocation2 + $0x28] sm:$0xff] %vm128_vm7, %v260_v23  ;;  %269 = vst.msk [vmem:[#allocation2 + $0x20] sm:$0xff] %vm128_vm7, %v258_v24 }
  0x94   :  { %v216_v25 = vpop.permute.xlu1 %215  ;;  %v214_v26 = vpop.permute.xlu0 %213 }
  0x95   :  { %224 = vst.msk [vmem:[#allocation2 + $0x38] sm:$0xff] %vm77_vm4, %v216_v25  ;;  %223 = vst.msk [vmem:[#allocation2 + $0x30] sm:$0xff] %vm77_vm4, %v214_v26 }
  0x98   :  { %v276_v27 = vpop.permute.xlu1 %275  ;;  %v274_v28 = vpop.permute.xlu0 %273 }
  0x99   :  { %286 = vst.msk [vmem:[#allocation2 + $0x28] sm:$0xff] %vm145_vm8, %v276_v27  ;;  %285 = vst.msk [vmem:[#allocation2 + $0x20] sm:$0xff] %vm145_vm8, %v274_v28 }
  0x9c   :  { %v34_v29 = vpop.permute.xlu1 %33  ;;  %v32_v30 = vpop.permute.xlu0 %31 }
  0x9d   :  { %45 = vst.msk [vmem:[#allocation2 + $0x8] sm:$0xff] %vm43_vm2, %v34_v29  ;;  %44 = vst.msk [vmem:[#allocation2] sm:$0xff] %vm43_vm2, %v32_v30 }
  0xa0   :  { %v232_v31 = vpop.permute.xlu1 %231  ;;  %v230_v32 = vpop.permute.xlu0 %229 }
  0xa1   :  { %240 = vst.msk [vmem:[#allocation2 + $0x38] sm:$0xff] %vm94_vm5, %v232_v31  ;;  %239 = vst.msk [vmem:[#allocation2 + $0x30] sm:$0xff] %vm94_vm5, %v230_v32 }
  0xa4   :  { %v292_v33 = vpop.permute.xlu1 %291  ;;  %v290_v34 = vpop.permute.xlu0 %289 }
  0xa5   :  { %302 = vst.msk [vmem:[#allocation2 + $0x28] sm:$0xff] %vm162_vm9, %v292_v33  ;;  %301 = vst.msk [vmem:[#allocation2 + $0x20] sm:$0xff] %vm162_vm9, %v290_v34 }
  0xa8   :  { %v51_v35 = vpop.permute.xlu1 %50  ;;  %v49_v36 = vpop.permute.xlu0 %48 }
  0xa9   :  { %62 = vst.msk [vmem:[#allocation2 + $0x8] sm:$0xff] %vm60_vm3, %v51_v35  ;;  %61 = vst.msk [vmem:[#allocation2] sm:$0xff] %vm60_vm3, %v49_v36 }
  0xac   :  { %v248_v37 = vpop.permute.xlu1 %247  ;;  %v246_v38 = vpop.permute.xlu0 %245  ;;  %v927_v39 = vld [vmem:[#allocation2 + $0x28] sm:$0xff]  ;;  %v929_v40 = vld [vmem:[#allocation2 + $0x20] sm:$0xff] }
  0xad   :  { %256 = vst.msk [vmem:[#allocation2 + $0x38] sm:$0xff] %vm111_vm6, %v248_v37  ;;  %255 = vst.msk [vmem:[#allocation2 + $0x30] sm:$0xff] %vm111_vm6, %v246_v38  ;;  %413 = vrot.lane.b32.xlu1 %v927_v39, %s742_s0  ;;  %411 = vrot.lane.b32.xlu0 %v929_v40, %s742_s0 }
  0xb0   :  { %v68_v41 = vpop.permute.xlu1 %67  ;;  %v66_v42 = vpop.permute.xlu0 %65 }
  0xb1   :  { %79 = vst.msk [vmem:[#allocation2 + $0x8] sm:$0xff] %vm77_vm4, %v68_v41  ;;  %78 = vst.msk [vmem:[#allocation2] sm:$0xff] %vm77_vm4, %v66_v42 }
  0xb4   :  { %v264_v43 = vpop.permute.xlu1 %263  ;;  %v262_v44 = vpop.permute.xlu0 %261 }
  0xb5   :  { %272 = vst.msk [vmem:[#allocation2 + $0x38] sm:$0xff] %vm128_vm7, %v264_v43  ;;  %271 = vst.msk [vmem:[#allocation2 + $0x30] sm:$0xff] %vm128_vm7, %v262_v44 }
  0xb8   :  { %v85_v45 = vpop.permute.xlu1 %84  ;;  %v83_v46 = vpop.permute.xlu0 %82 }
  0xb9   :  { %96 = vst.msk [vmem:[#allocation2 + $0x8] sm:$0xff] %vm94_vm5, %v85_v45  ;;  %95 = vst.msk [vmem:[#allocation2] sm:$0xff] %vm94_vm5, %v83_v46 }
  0xbc   :  { %v280_v47 = vpop.permute.xlu1 %279  ;;  %v278_v48 = vpop.permute.xlu0 %277 }
  0xbd   :  { %288 = vst.msk [vmem:[#allocation2 + $0x38] sm:$0xff] %vm145_vm8, %v280_v47  ;;  %287 = vst.msk [vmem:[#allocation2 + $0x30] sm:$0xff] %vm145_vm8, %v278_v48 }
  0xc0   :  { %v38_v49 = vpop.permute.xlu1 %37  ;;  %v36_v50 = vpop.permute.xlu0 %35 }
  0xc1   :  { %47 = vst.msk [vmem:[#allocation2 + $0x18] sm:$0xff] %vm43_vm2, %v38_v49  ;;  %46 = vst.msk [vmem:[#allocation2 + $0x10] sm:$0xff] %vm43_vm2, %v36_v50 }
  0xc4   :  { %v102_v51 = vpop.permute.xlu1 %101  ;;  %v100_v52 = vpop.permute.xlu0 %99 }
  0xc5   :  { %113 = vst.msk [vmem:[#allocation2 + $0x8] sm:$0xff] %vm111_vm6, %v102_v51  ;;  %112 = vst.msk [vmem:[#allocation2] sm:$0xff] %vm111_vm6, %v100_v52 }
  0xc8   :  { %v296_v53 = vpop.permute.xlu1 %295  ;;  %v294_v54 = vpop.permute.xlu0 %293 }
  0xc9   :  { %304 = vst.msk [vmem:[#allocation2 + $0x38] sm:$0xff] %vm162_vm9, %v296_v53  ;;  %303 = vst.msk [vmem:[#allocation2 + $0x30] sm:$0xff] %vm162_vm9, %v294_v54 }
  0xcc   :  { %v55_v55 = vpop.permute.xlu1 %54  ;;  %v53_v56 = vpop.permute.xlu0 %52 }
  0xcd   :  { %64 = vst.msk [vmem:[#allocation2 + $0x18] sm:$0xff] %vm60_vm3, %v55_v55  ;;  %63 = vst.msk [vmem:[#allocation2 + $0x10] sm:$0xff] %vm60_vm3, %v53_v56 }
  0xd0   :  { %v119_v57 = vpop.permute.xlu1 %118  ;;  %v117_v58 = vpop.permute.xlu0 %116  ;;  %v953_v59 = vld [vmem:[#allocation2 + $0x38] sm:$0xff]  ;;  %v955_v60 = vld [vmem:[#allocation2 + $0x30] sm:$0xff] }
  0xd1   :  { %130 = vst.msk [vmem:[#allocation2 + $0x8] sm:$0xff] %vm128_vm7, %v119_v57  ;;  %129 = vst.msk [vmem:[#allocation2] sm:$0xff] %vm128_vm7, %v117_v58  ;;  %417 = vrot.lane.b32.xlu1 %v953_v59, %s742_s0  ;;  %415 = vrot.lane.b32.xlu0 %v955_v60, %s742_s0 }
  0xd4   :  { %v72_v61 = vpop.permute.xlu1 %71  ;;  %v70_v62 = vpop.permute.xlu0 %69 }
  0xd5   :  { %81 = vst.msk [vmem:[#allocation2 + $0x18] sm:$0xff] %vm77_vm4, %v72_v61  ;;  %80 = vst.msk [vmem:[#allocation2 + $0x10] sm:$0xff] %vm77_vm4, %v70_v62 }
  0xd8   :  { %v136_v63 = vpop.permute.xlu1 %135  ;;  %v134_v0 = vpop.permute.xlu0 %133 }
  0xd9   :  { %147 = vst.msk [vmem:[#allocation2 + $0x8] sm:$0xff] %vm145_vm8, %v136_v63  ;;  %146 = vst.msk [vmem:[#allocation2] sm:$0xff] %vm145_vm8, %v134_v0 }
  0xdc   :  { %v89_v1 = vpop.permute.xlu1 %88  ;;  %v87_v2 = vpop.permute.xlu0 %86 }
  0xdd   :  { %98 = vst.msk [vmem:[#allocation2 + $0x18] sm:$0xff] %vm94_vm5, %v89_v1  ;;  %97 = vst.msk [vmem:[#allocation2 + $0x10] sm:$0xff] %vm94_vm5, %v87_v2 }
  0xe0   :  { %v153_v3 = vpop.permute.xlu1 %152  ;;  %v151_v4 = vpop.permute.xlu0 %150 }
  0xe1   :  { %164 = vst.msk [vmem:[#allocation2 + $0x8] sm:$0xff] %vm162_vm9, %v153_v3  ;;  %163 = vst.msk [vmem:[#allocation2] sm:$0xff] %vm162_vm9, %v151_v4 }
  0xe4   :  { %v106_v5 = vpop.permute.xlu1 %105  ;;  %v104_v6 = vpop.permute.xlu0 %103 }
  0xe5   :  { %115 = vst.msk [vmem:[#allocation2 + $0x18] sm:$0xff] %vm111_vm6, %v106_v5  ;;  %114 = vst.msk [vmem:[#allocation2 + $0x10] sm:$0xff] %vm111_vm6, %v104_v6 }
  0xe8   :  { %v123_v7 = vpop.permute.xlu1 %122  ;;  %v121_v8 = vpop.permute.xlu0 %120  ;;  %v332_v9 = vld [vmem:[#allocation2 + $0x8] sm:$0xff]  ;;  %v331_v10 = vld [vmem:[#allocation2] sm:$0xff] }
  0xe9   :  { %132 = vst.msk [vmem:[#allocation2 + $0x18] sm:$0xff] %vm128_vm7, %v123_v7  ;;  %131 = vst.msk [vmem:[#allocation2 + $0x10] sm:$0xff] %vm128_vm7, %v121_v8  ;;  %341 = vrot.lane.b32.xlu1 %v332_v9, %s743_s9  ;;  %339 = vrot.lane.b32.xlu0 %v331_v10, %s743_s9 }
  0xea   :  { %328 = vst.msk [vmem:[#allocation3 + $0x8] sm:$0xff] %vm326_vm10, %v332_v9  ;;  %327 = vst.msk [vmem:[#allocation3] sm:$0xff] %vm326_vm10, %v331_v10 }
  0xec   :  { %v140_v11 = vpop.permute.xlu1 %139  ;;  %v138_v12 = vpop.permute.xlu0 %137 }
  0xed   :  { %149 = vst.msk [vmem:[#allocation2 + $0x18] sm:$0xff] %vm145_vm8, %v140_v11  ;;  %148 = vst.msk [vmem:[#allocation2 + $0x10] sm:$0xff] %vm145_vm8, %v138_v12  ;;  %438 = vrot.lane.b32.xlu1 %v927_v39, %s744_s10  ;;  %436 = vrot.lane.b32.xlu0 %v929_v40, %s744_s10 }
  0xf0   :  { %v157_v13 = vpop.permute.xlu1 %156  ;;  %v155_v14 = vpop.permute.xlu0 %154 }
  0xf1   :  { %166 = vst.msk [vmem:[#allocation2 + $0x18] sm:$0xff] %vm162_vm9, %v157_v13  ;;  %165 = vst.msk [vmem:[#allocation2 + $0x10] sm:$0xff] %vm162_vm9, %v155_v14 }
  0xf8   :  { %v334_v15 = vld [vmem:[#allocation2 + $0x18] sm:$0xff]  ;;  %v333_v16 = vld [vmem:[#allocation2 + $0x10] sm:$0xff] }
  0xf9   :  { %345 = vrot.lane.b32.xlu1 %v334_v15, %s743_s9  ;;  %343 = vrot.lane.b32.xlu0 %v333_v16, %s743_s9  ;;  %330 = vst.msk [vmem:[#allocation3 + $0x18] sm:$0xff] %vm326_vm10, %v334_v15  ;;  %329 = vst.msk [vmem:[#allocation3 + $0x10] sm:$0xff] %vm326_vm10, %v333_v16 }
  0xfd   :  { %442 = vrot.lane.b32.xlu1 %v953_v59, %s744_s10  ;;  %440 = vrot.lane.b32.xlu0 %v955_v60, %s744_s10 }
 0x101   :  { %365 = vrot.lane.b32.xlu1 %v332_v9, %s745_s11  ;;  %363 = vrot.lane.b32.xlu0 %v331_v10, %s745_s11 }
 0x105   :  { %462 = vrot.lane.b32.xlu1 %v927_v39, %s746_s12  ;;  %460 = vrot.lane.b32.xlu0 %v929_v40, %s746_s12 }
 0x109   :  { %369 = vrot.lane.b32.xlu1 %v334_v15, %s745_s11  ;;  %367 = vrot.lane.b32.xlu0 %v333_v16, %s745_s11 }
 0x10d   :  { %466 = vrot.lane.b32.xlu1 %v953_v59, %s746_s12  ;;  %464 = vrot.lane.b32.xlu0 %v955_v60, %s746_s12 }
 0x111   :  { %389 = vrot.lane.b32.xlu1 %v332_v9, %s747_s13  ;;  %387 = vrot.lane.b32.xlu0 %v331_v10, %s747_s13  ;;  %v501_v9 = vld [vmem:[%s1052_s1 + $0x8] sm:$0xff] }
 0x115   :  { %486 = vrot.lane.b32.xlu1 %v927_v39, %s748_s14  ;;  %484 = vrot.lane.b32.xlu0 %v929_v40, %s748_s14 }
 0x119   :  { %393 = vrot.lane.b32.xlu1 %v334_v15, %s747_s13  ;;  %391 = vrot.lane.b32.xlu0 %v333_v16, %s747_s13 }
 0x11d   :  { %490 = vrot.lane.b32.xlu1 %v953_v59, %s748_s14  ;;  %488 = vrot.lane.b32.xlu0 %v955_v60, %s748_s14 }
 0x11f   :  { %v414_v18 = vpop.permute.xlu1 %413  ;;  %v412_v19 = vpop.permute.xlu0 %411 }
 0x120   :  { %425 = vst.msk [vmem:[#allocation3 + $0x8] sm:$0xff] %vm423_vm11, %v414_v18  ;;  %424 = vst.msk [vmem:[#allocation3] sm:$0xff] %vm423_vm11, %v412_v19 }
 0x121   :  { %527 = vperm.xlu1 %732, %v519_v21   ;;  %522 = vperm.xlu0 %731, %v518_v22  }
 0x127   :  { %v502_v23 = vld [vmem:[#allocation3] sm:$0xff]  ;;  %v503_v24 = vld [vmem:[#allocation3 + $0x8] sm:$0xff] }
 0x128   :  { %v681_v25 = vpack.c.bf16 %v503_v24, %v502_v23 }
 0x12a   :  { %682 = vmatprep.subr.bf16.mxu0 %v681_v25 }
 0x12b   :  { %684 = vmatpush3.bf16.msra.mxu0 %v681_v25 }
 0x143   :  { %v418_v26 = vpop.permute.xlu1 %417  ;;  %v416_v27 = vpop.permute.xlu0 %415 }
 0x144   :  { %427 = vst.msk [vmem:[#allocation3 + $0x18] sm:$0xff] %vm423_vm11, %v418_v26  ;;  %426 = vst.msk [vmem:[#allocation3 + $0x10] sm:$0xff] %vm423_vm11, %v416_v27 }
 0x14b   :  { %v504_v28 = vld [vmem:[#allocation3 + $0x10] sm:$0xff]  ;;  %v505_v29 = vld [vmem:[#allocation3 + $0x18] sm:$0xff] }
 0x14c   :  { %v685_v30 = vpack.c.bf16 %v505_v29, %v504_v28 }
 0x14e   :  { %686 = vmatprep.subr.bf16.mxu0 %v685_v30 }
 0x14f   :  { %688 = vmatpush3.bf16.msra.mxu0 %v685_v30 }
 0x15b   :  { %v342_v31 = vpop.permute.xlu1 %341  ;;  %v340_v32 = vpop.permute.xlu0 %339 }
 0x15c   :  { %352 = vst.msk [vmem:[#allocation3 + $0x28] sm:$0xff] %vm326_vm10, %v342_v31  ;;  %351 = vst.msk [vmem:[#allocation3 + $0x20] sm:$0xff] %vm326_vm10, %v340_v32 }
 0x15f   :  { %v439_v33 = vpop.permute.xlu1 %438  ;;  %v437_v34 = vpop.permute.xlu0 %436 }
 0x160   :  { %449 = vst.msk [vmem:[#allocation3 + $0x28] sm:$0xff] %vm423_vm11, %v439_v33  ;;  %448 = vst.msk [vmem:[#allocation3 + $0x20] sm:$0xff] %vm423_vm11, %v437_v34 }
 0x167   :  { %v506_v35 = vld [vmem:[#allocation3 + $0x20] sm:$0xff]  ;;  %v507_v36 = vld [vmem:[#allocation3 + $0x28] sm:$0xff] }
 0x168   :  { %v689_v37 = vpack.c.bf16 %v507_v36, %v506_v35 }
 0x16a   :  { %690 = vmatprep.subr.bf16.mxu0 %v689_v37 }
 0x16b   :  { %v346_v38 = vpop.permute.xlu1 %345  ;;  %692 = vmatpush3.bf16.msra.mxu0 %v689_v37  ;;  %v344_v39 = vpop.permute.xlu0 %343 }
 0x16c   :  { %354 = vst.msk [vmem:[#allocation3 + $0x38] sm:$0xff] %vm326_vm10, %v346_v38  ;;  %353 = vst.msk [vmem:[#allocation3 + $0x30] sm:$0xff] %vm326_vm10, %v344_v39 }
 0x16f   :  { %v443_v40 = vpop.permute.xlu1 %442  ;;  %v441_v41 = vpop.permute.xlu0 %440 }
 0x170   :  { %451 = vst.msk [vmem:[#allocation3 + $0x38] sm:$0xff] %vm423_vm11, %v443_v40  ;;  %450 = vst.msk [vmem:[#allocation3 + $0x30] sm:$0xff] %vm423_vm11, %v441_v41 }
 0x173   :  { %v366_v42 = vpop.permute.xlu1 %365  ;;  %v364_v43 = vpop.permute.xlu0 %363 }
 0x174   :  { %376 = vst.msk [vmem:[#allocation3 + $0x48] sm:$0xff] %vm326_vm10, %v366_v42  ;;  %375 = vst.msk [vmem:[#allocation3 + $0x40] sm:$0xff] %vm326_vm10, %v364_v43 }
 0x177   :  { %v463_v44 = vpop.permute.xlu1 %462  ;;  %v461_v45 = vpop.permute.xlu0 %460  ;;  %v508_v46 = vld [vmem:[#allocation3 + $0x30] sm:$0xff]  ;;  %v509_v47 = vld [vmem:[#allocation3 + $0x38] sm:$0xff] }
 0x178   :  { %473 = vst.msk [vmem:[#allocation3 + $0x48] sm:$0xff] %vm423_vm11, %v463_v44  ;;  %472 = vst.msk [vmem:[#allocation3 + $0x40] sm:$0xff] %vm423_vm11, %v461_v45  ;;  %v693_v48 = vpack.c.bf16 %v509_v47, %v508_v46 }
 0x17a   :  { %694 = vmatprep.subr.bf16.mxu0 %v693_v48 }
 0x17b   :  { %v370_v49 = vpop.permute.xlu1 %369  ;;  %696 = vmatpush3.bf16.msra.mxu0 %v693_v48  ;;  %v368_v50 = vpop.permute.xlu0 %367 }
 0x17c   :  { %378 = vst.msk [vmem:[#allocation3 + $0x58] sm:$0xff] %vm326_vm10, %v370_v49  ;;  %377 = vst.msk [vmem:[#allocation3 + $0x50] sm:$0xff] %vm326_vm10, %v368_v50 }
 0x17f   :  { %v467_v51 = vpop.permute.xlu1 %466  ;;  %v465_v52 = vpop.permute.xlu0 %464  ;;  %v510_v53 = vld [vmem:[#allocation3 + $0x40] sm:$0xff]  ;;  %v511_v54 = vld [vmem:[#allocation3 + $0x48] sm:$0xff] }
 0x180   :  { %475 = vst.msk [vmem:[#allocation3 + $0x58] sm:$0xff] %vm423_vm11, %v467_v51  ;;  %474 = vst.msk [vmem:[#allocation3 + $0x50] sm:$0xff] %vm423_vm11, %v465_v52  ;;  %v697_v55 = vpack.c.bf16 %v511_v54, %v510_v53 }
 0x182   :  { %698 = vmatprep.subr.bf16.mxu0 %v697_v55 }
 0x183   :  { %v390_v56 = vpop.permute.xlu1 %389  ;;  %700 = vmatpush3.bf16.msra.mxu0 %v697_v55  ;;  %v388_v57 = vpop.permute.xlu0 %387 }
 0x184   :  { %400 = vst.msk [vmem:[#allocation3 + $0x68] sm:$0xff] %vm326_vm10, %v390_v56  ;;  %399 = vst.msk [vmem:[#allocation3 + $0x60] sm:$0xff] %vm326_vm10, %v388_v57 }
 0x187   :  { %v487_v58 = vpop.permute.xlu1 %486  ;;  %v485_v59 = vpop.permute.xlu0 %484  ;;  %v512_v60 = vld [vmem:[#allocation3 + $0x50] sm:$0xff]  ;;  %v513_v61 = vld [vmem:[#allocation3 + $0x58] sm:$0xff] }
 0x188   :  { %497 = vst.msk [vmem:[#allocation3 + $0x68] sm:$0xff] %vm423_vm11, %v487_v58  ;;  %496 = vst.msk [vmem:[#allocation3 + $0x60] sm:$0xff] %vm423_vm11, %v485_v59  ;;  %v701_v62 = vpack.c.bf16 %v513_v61, %v512_v60 }
 0x18a   :  { %702 = vmatprep.subr.bf16.mxu0 %v701_v62 }
 0x18b   :  { %v394_v63 = vpop.permute.xlu1 %393  ;;  %704 = vmatpush3.bf16.msra.mxu0 %v701_v62  ;;  %v392_v0 = vpop.permute.xlu0 %391 }
 0x18c   :  { %402 = vst.msk [vmem:[#allocation3 + $0x78] sm:$0xff] %vm326_vm10, %v394_v63  ;;  %401 = vst.msk [vmem:[#allocation3 + $0x70] sm:$0xff] %vm326_vm10, %v392_v0 }
 0x18f   :  { %v491_v1 = vpop.permute.xlu1 %490  ;;  %v489_v2 = vpop.permute.xlu0 %488  ;;  %v514_v3 = vld [vmem:[#allocation3 + $0x60] sm:$0xff]  ;;  %v515_v4 = vld [vmem:[#allocation3 + $0x68] sm:$0xff] }
 0x190   :  { %499 = vst.msk [vmem:[#allocation3 + $0x78] sm:$0xff] %vm423_vm11, %v491_v1  ;;  %498 = vst.msk [vmem:[#allocation3 + $0x70] sm:$0xff] %vm423_vm11, %v489_v2  ;;  %v705_v5 = vpack.c.bf16 %v515_v4, %v514_v3 }
 0x192   :  { %706 = vmatprep.subr.bf16.mxu0 %v705_v5 }
 0x193   :  { %708 = vmatpush3.bf16.msra.mxu0 %v705_v5 }
 0x197   :  { %v516_v6 = vld [vmem:[#allocation3 + $0x70] sm:$0xff]  ;;  %v517_v7 = vld [vmem:[#allocation3 + $0x78] sm:$0xff] }
 0x198   :  { %v709_v8 = vpack.c.bf16 %v517_v7, %v516_v6 }
 0x19a   :  { %710 = vmatprep.subr.bf16.mxu0 %v709_v8 }
 0x19b   :  { %712 = vmatpush3.bf16.msra.mxu0 %v709_v8 }
 0x19e   :  { %679 = vmatmul.mubr.f32.vlgmr.msra.gmra.mrb[0].mxu0 %v501_v9 }
 0x1a0   :  { %v528_v10 = vpop.permute.xlu1 %527  ;;  %v523_v11 = vpop.permute.xlu0 %522 }
 0x271   :  { %v680_v12 = vpop.f32.mrb[0].mxu0 }
 0x272   :  { %v602_v13 = vadd.f32 %v680_v12, %v528_v10  ;;  %v596_v14 = vpop.f32.mrb[1].mxu0 }
 0x273   :  { %v597_v15 = vadd.f32 %v596_v14, %v523_v11 }
 0x274   :  { %606 = vst.msk [vmem:[%s1054_s3 + $0x8] sm:$0xff] %vm326_vm10, %v602_v13  ;;  %611 = vrot.lane.b32.xlu0 %v602_v13, %s750_s24 }
 0x275   :  { %605 = vst.msk [vmem:[%s1054_s3] sm:$0xff] %vm326_vm10, %v597_v15  ;;  %609 = vrot.lane.b32.xlu1 %v597_v15, %s750_s24 }
 0x2e6   :  { %v612_v16 = vpop.permute.xlu0 %611 }
 0x2e7   :  { %627 = vst.msk [vmem:[%s1054_s3 + $0x18] sm:$0xff] %vm326_vm10, %v612_v16  ;;  %v610_v17 = vpop.permute.xlu1 %609 }
 0x2e8   :  { %626 = vst.msk [vmem:[%s1054_s3 + $0x10] sm:$0xff] %vm326_vm10, %v610_v17 }

// kernel: _lambda_.13
= control target key start
LH: loop header
LB: loop body
LE: loop exit
PB: predicated region body
PF: predicated region fallthrough
CT: control target
= control target key end

     0   :  { %vm77_vm0 = vcmask 261120   ;;  %v683_v2 = vmov 0.0   ;;  %s685_s9 = smov 3   ;;  %s686_s10 = smov 18   ;;  %vm102_vm1 = vcmask 60416   ;;  %vm192_vm2 = vcmask 457728   ;;  %s908_s3 = inlined_call_operand.vmem [shape: f32[2,4,8], index: 3, kind: input, shape index: {}]   ;;  %s909_s4 = inlined_call_operand.vmem [shape: f32[32,56], index: 4, kind: input, shape index: {}]   ;;  %s910_s0 = inlined_call_operand.vmem [shape: f32[2,16,16], index: 0, kind: input, shape index: {}]   ;;  %s911_s1 = inlined_call_operand.vmem [shape: f32[16,1], index: 1, kind: input, shape index: {}]   ;;  %s912_s2 = inlined_call_operand.vmem [shape: f32[16,1], index: 2, kind: input, shape index: {}]   ;;  %s913_s5 = inlined_call_operand.vmem [shape: f32[32,1], index: 5, kind: input, shape index: {}]   ;;  %s914_s7 = inlined_call_operand.vmem [shape: f32[16,1], index: 7, kind: input, shape index: {}]   ;;  %s915_s6 = inlined_call_operand.vmem [shape: f32[16,80], index: 6, kind: input, shape index: {}]   ;;  %s916_s8 = inlined_call_operand.vmem [shape: f32[2,16,16], index: 8, kind: output, shape index: {}]  }
   0x1   :  { %v554_v0 = vld [vmem:[%s908_s3 + $0x4] sm:$0xf]  ;;  %v85_v1 = vld [vmem:[%s908_s3] sm:$0xf]  ;;  %78 = vst.msk [vmem:[#allocation3] sm:$0xff] %vm77_vm0, %v683_v2  ;;  %79 = vst.msk [vmem:[#allocation3 + $0x8] sm:$0xff] %vm77_vm0, %v683_v2 }
   0x2   :  { %80 = vst.msk [vmem:[#allocation3 + $0x10] sm:$0xff] %vm77_vm0, %v683_v2  ;;  %81 = vst.msk [vmem:[#allocation3 + $0x18] sm:$0xff] %vm77_vm0, %v683_v2  ;;  %s684_s3 = smov 19   ;;  %87 = vrot.lane.b32.xlu0 %v85_v1, %s685_s9  ;;  %s687_s11 = smov 2   ;;  %v157_v3 = vld [vmem:[%s909_s4] sm:$0xff]  ;;  %v779_v4 = vld [vmem:[%s910_s0 + $0x8] sm:$0xff] }
   0x3   :  { %82 = vst.msk [vmem:[#allocation3 + $0x20] sm:$0xff] %vm77_vm0, %v683_v2  ;;  %83 = vst.msk [vmem:[#allocation3 + $0x28] sm:$0xff] %vm77_vm0, %v683_v2  ;;  %122 = vrot.lane.b32.xlu1 %v554_v0, %s684_s3  ;;  %s688_s12 = smov 17   ;;  %s689_s13 = smov 1   ;;  %600 = vmatprep.mubr.msk.f32.mxu0 %vm192_vm2, %v157_v3  ;;  %v784_v5 = vld [vmem:[%s910_s0 + $0x18] sm:$0xff]  ;;  %v789_v6 = vld [vmem:[%s910_s0] sm:$0xff]  ;;  %v35_v12 = vmul.f32 %v779_v4, %v779_v4 }
   0x4   :  { %84 = vst.msk [vmem:[#allocation3 + $0x30] sm:$0xff] %vm77_vm0, %v683_v2  ;;  %290 = vst.msk [vmem:[#allocation2] sm:$0xff] %vm77_vm0, %v683_v2  ;;  %s690_s14 = smov 127   ;;  %s691_s15 = smov 16   ;;  %v794_v7 = vld [vmem:[%s910_s0 + $0x10] sm:$0xff]  ;;  %v37_v8 = vadd.f32 %v784_v5, %v779_v4  ;;  %v34_v9 = vmul.f32 %v789_v6, %v789_v6  ;;  %vm42_vm3 = vcmask 130048   ;;  %v39_v13 = vmul.f32 %v784_v5, %v784_v5 }
   0x5   :  { %291 = vst.msk [vmem:[#allocation2 + $0x8] sm:$0xff] %vm77_vm0, %v683_v2  ;;  %292 = vst.msk [vmem:[#allocation2 + $0x10] sm:$0xff] %vm77_vm0, %v683_v2  ;;  %s692_s16 = smov 15   ;;  %s693_s17 = smov 126   ;;  %v38_v10 = vmul.f32 %v794_v7, %v794_v7  ;;  %v36_v11 = vadd.f32 %v794_v7, %v789_v6  ;;  %v697_v20 = vmov 0   ;;  %vm90_vm4 = vcmask 85016  }
   0x6   :  { %293 = vst.msk [vmem:[#allocation2 + $0x18] sm:$0xff] %vm77_vm0, %v683_v2  ;;  %294 = vst.msk [vmem:[#allocation2 + $0x20] sm:$0xff] %vm77_vm0, %v683_v2  ;;  %92 = vrot.lane.b32.xlu0 %v85_v1, %s687_s11  ;;  %s694_s18 = smov 125   ;;  %s695_s19 = smov 14   ;;  %v46_v14 = vsel %vm42_vm3, %v37_v8, 0.0  ;;  %v41_v17 = vadd.f32 %v39_v13, %v35_v12  ;;  %678 = vset.pattern.permute.xlu1 %v697_v20  ;;  %vm125_vm5 = vcmask 216216  }
   0x7   :  { %295 = vst.msk [vmem:[#allocation2 + $0x28] sm:$0xff] %vm77_vm0, %v683_v2  ;;  %296 = vst.msk [vmem:[#allocation2 + $0x30] sm:$0xff] %vm77_vm0, %v683_v2  ;;  %127 = vrot.lane.b32.xlu1 %v554_v0, %s686_s10  ;;  %s696_s22 = smov 13   ;;  %v40_v15 = vadd.f32 %v38_v10, %v34_v9  ;;  %v43_v16 = vsel %vm42_vm3, %v36_v11, 0.0  ;;  %677 = vset.pattern.permute.xlu0 %v697_v20  ;;  %vm95_vm6 = vcmask 76816   ;;  %vm130_vm7 = vcmask 208016  }
   0x8   :  { %297 = vst.msk [vmem:[#allocation2 + $0x38] sm:$0xff] %vm77_vm0, %v683_v2  ;;  %298 = vst.msk [vmem:[#allocation2 + $0x40] sm:$0xff] %vm77_vm0, %v683_v2  ;;  %v54_v19 = vsel %vm42_vm3, %v41_v17, 0.0  ;;  %vm100_vm8 = vcmask 68616   ;;  %vm135_vm9 = vcmask 199816   ;;  %vm107_vm10 = vcmask 52224  }
   0x9   :  { %299 = vst.msk [vmem:[#allocation2 + $0x48] sm:$0xff] %vm77_vm0, %v683_v2  ;;  %v51_v18 = vsel %vm42_vm3, %v40_v15, 0.0  ;;  %vm140_vm11 = vcmask 191616   ;;  %vm145_vm12 = vcmask 183424   ;;  %vm112_vm13 = vcmask 44032   ;;  %v158_v44 = vld [vmem:[%s909_s4 + $0x8] sm:$0xff] }
   0xa   :  { %103 = vst.msk [vmem:[#allocation3 + $0x18] sm:$0xf] %vm102_vm1, %v85_v1  ;;  %97 = vrot.lane.b32.xlu0 %v85_v1, %s689_s13  ;;  %vm117_vm14 = vcmask 35840   ;;  %vm150_vm15 = vcmask 175232   ;;  %vm155_vm0 = vcmask 167040   ;;  %v159_v45 = vld [vmem:[%s909_s4 + $0x10] sm:$0xff] }
   0xb   :  { %132 = vrot.lane.b32.xlu1 %v554_v0, %s688_s12  ;;  %v160_v46 = vld [vmem:[%s909_s4 + $0x18] sm:$0xff]  ;;  %v67_v61 = vld [vmem:[%s911_s1] sm:$0xff]  ;;  %v68_v62 = vld [vmem:[%s911_s1 + $0x8] sm:$0xff]  ;;  %vm408_vm1 = vcmask 261248   ;;  %s698_s10 = smov 112  }
   0xc   :  { %v71_v3 = vld [vmem:[%s912_s2] sm:$0xff]  ;;  %v72_v11 = vld [vmem:[%s912_s2 + $0x8] sm:$0xff]  ;;  %v170_v15 = vld [vmem:[%s913_s5 + $0x10] sm:$0xff] }
   0xd   :  { %v168_v13 = vld [vmem:[%s913_s5] sm:$0xff] }
   0xe   :  { %137 = vrot.lane.b32.xlu0 %v554_v0, %s691_s15 }
   0xf   :  { %104 = vrot.lane.b32.xlu1 %v85_v1, %s690_s14 }
  0x12   :  { %109 = vrot.lane.b32.xlu0 %v85_v1, %s693_s17 }
  0x13   :  { %142 = vrot.lane.b32.xlu1 %v554_v0, %s692_s16 }
  0x16   :  { %147 = vrot.lane.b32.xlu0 %v554_v0, %s695_s19 }
  0x17   :  { %114 = vrot.lane.b32.xlu1 %v85_v1, %s694_s18 }
  0x1a   :  { %152 = vrot.lane.b32.xlu0 %v554_v0, %s696_s22 }
  0x39   :  { %47 = vadd.xlane.f32.xlu0 %v46_v14  ;;  %v169_v14 = vld [vmem:[%s913_s5 + $0x8] sm:$0xff] }
  0x3b   :  { %44 = vadd.xlane.f32.xlu1 %v43_v16  ;;  %v171_v16 = vld [vmem:[%s913_s5 + $0x18] sm:$0xff] }
  0x3d   :  { %52 = vadd.xlane.f32.xlu0 %v51_v18 }
  0x3f   :  { %55 = vadd.xlane.f32.xlu1 %v54_v19 }
  0x74   :  { %v88_v22 = vpop.permute.xlu0 %87 }
  0x75   :  { %v123_v21 = vpop.permute.xlu1 %122  ;;  %91 = vst.msk [vmem:[#allocation3] sm:$0xf] %vm90_vm4, %v88_v22  ;;  %vm347_vm4 = vcmask 130056  }
  0x76   :  { %126 = vst.msk [vmem:[#allocation3] sm:$0xf] %vm125_vm5, %v123_v21  ;;  %vm358_vm5 = vcmask 121856  }
  0x78   :  { %v93_v24 = vpop.permute.xlu0 %92 }
  0x79   :  { %v128_v23 = vpop.permute.xlu1 %127  ;;  %96 = vst.msk [vmem:[#allocation3 + $0x8] sm:$0xf] %vm95_vm6, %v93_v24  ;;  %vm453_vm6 = vcmask 654336  }
  0x7a   :  { %131 = vst.msk [vmem:[#allocation3 + $0x8] sm:$0xf] %vm130_vm7, %v128_v23  ;;  %vm396_vm7 = vcmask 261264  }
  0x7c   :  { %v98_v26 = vpop.permute.xlu0 %97 }
  0x7d   :  { %v133_v25 = vpop.permute.xlu1 %132  ;;  %101 = vst.msk [vmem:[#allocation3 + $0x10] sm:$0xf] %vm100_vm8, %v98_v26  ;;  %v161_v29 = vld [vmem:[#allocation3] sm:$0xff]  ;;  %vm405_vm8 = vcmask 261256  }
  0x7e   :  { %136 = vst.msk [vmem:[#allocation3 + $0x10] sm:$0xf] %vm135_vm9, %v133_v25  ;;  %vm367_vm9 = vcmask 113664  }
  0x80   :  { %v138_v28 = vpop.permute.xlu0 %137 }
  0x81   :  { %v105_v27 = vpop.permute.xlu1 %104  ;;  %141 = vst.msk [vmem:[#allocation3 + $0x18] sm:$0xf] %vm140_vm11, %v138_v28  ;;  %v162_v30 = vld [vmem:[#allocation3 + $0x8] sm:$0xff]  ;;  %vm426_vm11 = vcmask 244864  }
  0x82   :  { %108 = vst.msk [vmem:[#allocation3 + $0x20] sm:$0xf] %vm107_vm10, %v105_v27  ;;  %v629_v31 = vpack.c.bf16 %v162_v30, %v161_v29  ;;  %vm417_vm10 = vcmask 253056  }
  0x84   :  { %630 = vmatprep.subr.bf16.mxu0 %v629_v31  ;;  %v110_v33 = vpop.permute.xlu0 %109 }
  0x85   :  { %v143_v32 = vpop.permute.xlu1 %142  ;;  %113 = vst.msk [vmem:[#allocation3 + $0x28] sm:$0xf] %vm112_vm13, %v110_v33  ;;  %632 = vmatpush3.bf16.msra.mxu0 %v629_v31  ;;  %v163_v36 = vld [vmem:[#allocation3 + $0x10] sm:$0xff] }
  0x86   :  { %146 = vst.msk [vmem:[#allocation3 + $0x20] sm:$0xf] %vm145_vm12, %v143_v32 }
  0x88   :  { %v148_v35 = vpop.permute.xlu0 %147  ;;  %v164_v37 = vld [vmem:[#allocation3 + $0x18] sm:$0xff] }
  0x89   :  { %v115_v34 = vpop.permute.xlu1 %114  ;;  %151 = vst.msk [vmem:[#allocation3 + $0x28] sm:$0xf] %vm150_vm15, %v148_v35  ;;  %v633_v38 = vpack.c.bf16 %v164_v37, %v163_v36 }
  0x8a   :  { %118 = vst.msk [vmem:[#allocation3 + $0x30] sm:$0xf] %vm117_vm14, %v115_v34 }
  0x8b   :  { %634 = vmatprep.subr.bf16.mxu0 %v633_v38 }
  0x8c   :  { %636 = vmatpush3.bf16.msra.mxu0 %v633_v38  ;;  %v153_v39 = vpop.permute.xlu0 %152 }
  0x8d   :  { %156 = vst.msk [vmem:[#allocation3 + $0x30] sm:$0xf] %vm155_vm0, %v153_v39  ;;  %v165_v40 = vld [vmem:[#allocation3 + $0x20] sm:$0xff] }
  0x90   :  { %v166_v41 = vld [vmem:[#allocation3 + $0x28] sm:$0xff] }
  0x91   :  { %v637_v42 = vpack.c.bf16 %v166_v41, %v165_v40 }
  0x93   :  { %638 = vmatprep.subr.bf16.mxu0 %v637_v42 }
  0x94   :  { %640 = vmatpush3.bf16.msra.mxu0 %v637_v42  ;;  %v167_v43 = vld [vmem:[#allocation3 + $0x30] sm:$0xff] }
  0x95   :  { %598 = vmatprep.subr.mxu0 %v167_v43 }
  0x98   :  { %599 = vmatpush3.msra.mxu0 %v167_v43 }
  0x99   :  { %601 = vmatmul.mubr.msk.f32.vlgmr.msra.gmra.mrb[0].mxu0 %vm192_vm2, %v158_v44 }
  0x9a   :  { %603 = vmatprep.mubr.msk.f32.mxu0 %vm192_vm2, %v159_v45 }
  0x9d   :  { %604 = vmatmul.mubr.msk.f32.gmra.mrb[2].mxu0 %vm192_vm2, %v160_v46  ;;  %vm338_vm2 = vcmask 130064  }
  0xc6   :  { %v48_v47 = vpop.xlane.xlu0 %47 }
  0xc7   :  { %v50_v49 = vmul.f32 0.03125, %v48_v47 }
  0xc8   :  { %v45_v48 = vpop.xlane.xlu1 %44 }
  0xc9   :  { %v49_v50 = vmul.f32 0.03125, %v45_v48  ;;  %v60_v55 = vmul.f32 %v50_v49, %v50_v49 }
  0xca   :  { %v53_v52 = vpop.xlane.xlu0 %52 }
  0xcb   :  { %v59_v51 = vmul.f32 %v49_v50, %v49_v50  ;;  %v57_v53 = vmul.f32 0.03125, %v53_v52 }
  0xcc   :  { %v56_v54 = vpop.xlane.xlu1 %55 }
  0xcd   :  { %v58_v56 = vmul.f32 0.03125, %v56_v54  ;;  %v61_v57 = vsub.f32 %v57_v53, %v59_v51  ;;  %v441_v54 = vld [vmem:[%s914_s7] sm:$0xff] }
  0xcf   :  { %v62_v58 = vsub.f32 %v58_v56, %v60_v55  ;;  %v63_v59 = vadd.f32 1e-05, %v61_v57  ;;  %v429_v55 = vld [vmem:[%s915_s6] sm:$0xff] }
  0xd0   :  { %626 = vmatprep.mubr.msk.f32.mxu1 %vm453_vm6, %v429_v55 }
  0xd1   :  { %v64_v60 = vadd.f32 1e-05, %v62_v58  ;;  %679 = vrsqrt.f32 %v63_v59  ;;  %v442_v58 = vld [vmem:[%s914_s7 + $0x8] sm:$0xff] }
  0xd3   :  { %681 = vrsqrt.f32 %v64_v60 }
  0xdb   :  { %v680_v63 = vpop.eup %679 }
  0xdc   :  { %v69_v1 = vmul.f32 %v680_v63, %v67_v61 }
  0xdd   :  { %v682_v0 = vpop.eup %681 }
  0xde   :  { %v70_v2 = vmul.f32 %v682_v0, %v68_v62  ;;  %302 = vperm.xlu0 %677, %v69_v1   ;;  %v73_v8 = vmul.f32 %v69_v1, %v49_v50 }
  0xe0   :  { %307 = vperm.xlu1 %678, %v70_v2   ;;  %v75_v9 = vsub.f32 %v71_v3, %v73_v8  ;;  %v74_v10 = vmul.f32 %v70_v2, %v50_v49 }
  0xe2   :  { %v76_v12 = vsub.f32 %v72_v11, %v74_v10 }
  0xe4   :  { %314 = vperm.xlu1 %678, %v75_v9  }
  0xe8   :  { %319 = vperm.xlu1 %678, %v76_v12  }
  0xec   :  { %174 = vperm.xlu1 %678, %v168_v13  }
  0xf0   :  { %179 = vperm.xlu1 %678, %v169_v14  }
  0xf4   :  { %184 = vperm.xlu1 %678, %v170_v15  }
  0xf8   :  { %189 = vperm.xlu1 %678, %v171_v16  }
 0x15d   :  { %v303_v17 = vpop.permute.xlu0 %302 }
 0x15e   :  { %v370_v19 = vmul.f32 %v794_v7, %v303_v17  ;;  %v310_v29 = vmul.f32 %v303_v17, %v789_v6 }
 0x15f   :  { %v308_v18 = vpop.permute.xlu1 %307 }
 0x160   :  { %v371_v22 = vmul.f32 %v784_v5, %v308_v18  ;;  %v311_v34 = vmul.f32 %v308_v18, %v779_v4 }
 0x163   :  { %v315_v20 = vpop.permute.xlu1 %314 }
 0x164   :  { %v372_v21 = vadd.f32 %v370_v19, %v315_v20  ;;  %v322_v32 = vadd.f32 %v315_v20, %v310_v29 }
 0x166   :  { %376 = vrot.lane.b32.xlu1 %v372_v21, %s691_s15 }
 0x167   :  { %v320_v23 = vpop.permute.xlu1 %319 }
 0x168   :  { %v373_v24 = vadd.f32 %v371_v22, %v320_v23  ;;  %v323_v37 = vadd.f32 %v320_v23, %v311_v34 }
 0x16a   :  { %378 = vrot.lane.b32.xlu0 %v373_v24, %s691_s15 }
 0x16b   :  { %v175_v25 = vpop.permute.xlu1 %174 }
 0x16c   :  { %v602_v26 = vpop.f32.mrb[0].mxu0 }
 0x16d   :  { %v271_v27 = vpop.f32.mrb[1].mxu0 }
 0x16e   :  { %v272_v30 = vadd.f32 %v271_v27, %v175_v25  ;;  %v430_v25 = vld [vmem:[%s915_s6 + $0x8] sm:$0xff] }
 0x16f   :  { %v180_v28 = vpop.permute.xlu1 %179 }
 0x170   :  { %v605_v31 = vpop.f32.mrb[2].mxu0  ;;  %v324_v5 = vmul.f32 %v322_v32, %v272_v30  ;;  %v277_v35 = vadd.f32 %v602_v26, %v180_v28 }
 0x171   :  { %v281_v7 = vpop.f32.mrb[3].mxu0 }
 0x172   :  { %v325_v40 = vmul.f32 %v323_v37, %v277_v35 }
 0x173   :  { %v185_v33 = vpop.permute.xlu1 %184 }
 0x174   :  { %v282_v36 = vadd.f32 %v281_v7, %v185_v33 }
 0x176   :  { %v326_v38 = vadd.f32 %v324_v5, %v282_v36 }
 0x177   :  { %v190_v39 = vpop.permute.xlu1 %189 }
 0x178   :  { %v328_v41 = vmax.f32 %v326_v38, 0.0  ;;  %v287_v42 = vadd.f32 %v605_v31, %v190_v39 }
 0x17a   :  { %350 = vst.msk [vmem:[#allocation2 + $0x20] sm:$0xff] %vm42_vm3, %v328_v41  ;;  %v327_v43 = vadd.f32 %v325_v40, %v287_v42  ;;  %332 = vrot.lane.b32.xlu1 %v328_v41, %s687_s11 }
 0x17c   :  { %v329_v6 = vmax.f32 %v327_v43, 0.0 }
 0x17e   :  { %351 = vst.msk [vmem:[#allocation2 + $0x28] sm:$0xff] %vm42_vm3, %v329_v6  ;;  %341 = vrot.lane.b32.xlu1 %v328_v41, %s689_s13  ;;  %334 = vrot.lane.b32.xlu0 %v329_v6, %s687_s11 }
 0x182   :  { %352 = vrot.lane.b32.xlu1 %v328_v41, %s690_s14  ;;  %343 = vrot.lane.b32.xlu0 %v329_v6, %s689_s13 }
 0x186   :  { %354 = vrot.lane.b32.xlu0 %v329_v6, %s690_s14 }
 0x1d8   :  { %v377_v4 = vpop.permute.xlu1 %376 }
 0x1d9   :  { %v382_v44 = vmul.f32 %v377_v4, %v272_v30 }
 0x1db   :  { %v384_v45 = vadd.f32 %v382_v44, %v282_v36 }
 0x1dc   :  { %v379_v46 = vpop.permute.xlu0 %378 }
 0x1dd   :  { %v386_v47 = vmax.f32 %v384_v45, 0.0  ;;  %v383_v48 = vmul.f32 %v379_v46, %v277_v35 }
 0x1df   :  { %409 = vst.msk [vmem:[#allocation2 + $0x20] sm:$0xff] %vm408_vm1, %v386_v47  ;;  %v385_v49 = vadd.f32 %v383_v48, %v287_v42  ;;  %390 = vrot.lane.b32.xlu1 %v386_v47, %s687_s11 }
 0x1e1   :  { %v387_v50 = vmax.f32 %v385_v49, 0.0 }
 0x1e3   :  { %410 = vst.msk [vmem:[#allocation2 + $0x28] sm:$0xff] %vm408_vm1, %v387_v50  ;;  %392 = vrot.lane.b32.xlu0 %v387_v50, %s687_s11  ;;  %399 = vrot.lane.b32.xlu1 %v386_v47, %s689_s13 }
 0x1e6   :  { %v435_v16 = vld [vmem:[#allocation2 + $0x20] sm:$0xff] }
 0x1e7   :  { %401 = vrot.lane.b32.xlu0 %v387_v50, %s689_s13  ;;  %361 = vrot.lane.b32.xlu1 %v328_v41, %s693_s17 }
 0x1ea   :  { %v436_v14 = vld [vmem:[#allocation2 + $0x28] sm:$0xff] }
 0x1eb   :  { %363 = vrot.lane.b32.xlu0 %v329_v6, %s693_s17  ;;  %411 = vrot.lane.b32.xlu1 %v386_v47, %s690_s14  ;;  %v649_v17 = vpack.c.bf16 %v436_v14, %v435_v16 }
 0x1ec   :  { %v333_v51 = vpop.permute.xlu1 %332 }
 0x1ed   :  { %339 = vst.msk [vmem:[#allocation2] sm:$0xff] %vm338_vm2, %v333_v51 }
 0x1ef   :  { %413 = vrot.lane.b32.xlu0 %v387_v50, %s690_s14  ;;  %420 = vrot.lane.b32.xlu1 %v386_v47, %s693_s17 }
 0x1f0   :  { %v335_v52 = vpop.permute.xlu0 %334  ;;  %v342_v53 = vpop.permute.xlu1 %341 }
 0x1f1   :  { %340 = vst.msk [vmem:[#allocation2 + $0x8] sm:$0xff] %vm338_vm2, %v335_v52 }
 0x1f2   :  { %348 = vst.msk [vmem:[#allocation2 + $0x10] sm:$0xff] %vm347_vm4, %v342_v53 }
 0x1f3   :  { %422 = vrot.lane.b32.xlu0 %v387_v50, %s693_s17  ;;  %445 = vperm.xlu1 %678, %v441_v54  }
 0x1f4   :  { %v344_v56 = vpop.permute.xlu0 %343  ;;  %v353_v57 = vpop.permute.xlu1 %352 }
 0x1f5   :  { %349 = vst.msk [vmem:[#allocation2 + $0x18] sm:$0xff] %vm347_vm4, %v344_v56 }
 0x1f6   :  { %359 = vst.msk [vmem:[#allocation2 + $0x30] sm:$0xff] %vm358_vm5, %v353_v57 }
 0x1f7   :  { %450 = vperm.xlu0 %677, %v442_v58  }
 0x1f8   :  { %v355_v59 = vpop.permute.xlu0 %354 }
 0x1f9   :  { %360 = vst.msk [vmem:[#allocation2 + $0x38] sm:$0xff] %vm358_vm5, %v355_v59 }
 0x251   :  { %v391_v60 = vpop.permute.xlu1 %390 }
 0x252   :  { %397 = vst.msk [vmem:[#allocation2] sm:$0xff] %vm396_vm7, %v391_v60 }
 0x255   :  { %v393_v61 = vpop.permute.xlu0 %392  ;;  %v400_v62 = vpop.permute.xlu1 %399 }
 0x256   :  { %398 = vst.msk [vmem:[#allocation2 + $0x8] sm:$0xff] %vm396_vm7, %v393_v61 }
 0x257   :  { %406 = vst.msk [vmem:[#allocation2 + $0x10] sm:$0xff] %vm405_vm8, %v400_v62 }
 0x259   :  { %v402_v63 = vpop.permute.xlu0 %401  ;;  %v362_v0 = vpop.permute.xlu1 %361  ;;  %v431_v3 = vld [vmem:[#allocation2] sm:$0xff] }
 0x25a   :  { %407 = vst.msk [vmem:[#allocation2 + $0x18] sm:$0xff] %vm405_vm8, %v402_v63 }
 0x25b   :  { %368 = vst.msk [vmem:[#allocation2 + $0x40] sm:$0xff] %vm367_vm9, %v362_v0 }
 0x25d   :  { %v364_v1 = vpop.permute.xlu0 %363  ;;  %v412_v2 = vpop.permute.xlu1 %411  ;;  %v432_v8 = vld [vmem:[#allocation2 + $0x8] sm:$0xff] }
 0x25e   :  { %369 = vst.msk [vmem:[#allocation2 + $0x48] sm:$0xff] %vm367_vm9, %v364_v1  ;;  %v641_v9 = vpack.c.bf16 %v432_v8, %v431_v3  ;;  %v433_v12 = vld [vmem:[#allocation2 + $0x10] sm:$0xff] }
 0x25f   :  { %418 = vst.msk [vmem:[#allocation2 + $0x30] sm:$0xff] %vm417_vm10, %v412_v2 }
 0x260   :  { %642 = vmatprep.subr.bf16.mxu1 %v641_v9 }
 0x261   :  { %v414_v10 = vpop.permute.xlu0 %413  ;;  %644 = vmatpush3.bf16.msra.mxu1 %v641_v9  ;;  %v421_v11 = vpop.permute.xlu1 %420  ;;  %v434_v13 = vld [vmem:[#allocation2 + $0x18] sm:$0xff] }
 0x262   :  { %419 = vst.msk [vmem:[#allocation2 + $0x38] sm:$0xff] %vm417_vm10, %v414_v10  ;;  %v645_v15 = vpack.c.bf16 %v434_v13, %v433_v12 }
 0x263   :  { %427 = vst.msk [vmem:[#allocation2 + $0x40] sm:$0xff] %vm426_vm11, %v421_v11 }
 0x264   :  { %646 = vmatprep.subr.bf16.mxu1 %v645_v15 }
 0x265   :  { %v423_v18 = vpop.permute.xlu0 %422  ;;  %648 = vmatpush3.bf16.msra.mxu1 %v645_v15 }
 0x266   :  { %428 = vst.msk [vmem:[#allocation2 + $0x48] sm:$0xff] %vm426_vm11, %v423_v18  ;;  %650 = vmatprep.subr.bf16.mxu1 %v649_v17  ;;  %v437_v19 = vld [vmem:[#allocation2 + $0x30] sm:$0xff] }
 0x269   :  { %652 = vmatpush3.bf16.msra.mxu1 %v649_v17  ;;  %v438_v20 = vld [vmem:[#allocation2 + $0x38] sm:$0xff] }
 0x26a   :  { %v653_v21 = vpack.c.bf16 %v438_v20, %v437_v19  ;;  %v439_v22 = vld [vmem:[#allocation2 + $0x40] sm:$0xff] }
 0x26c   :  { %654 = vmatprep.subr.bf16.mxu1 %v653_v21 }
 0x26d   :  { %656 = vmatpush3.bf16.msra.mxu1 %v653_v21  ;;  %v440_v23 = vld [vmem:[#allocation2 + $0x48] sm:$0xff] }
 0x26e   :  { %v657_v24 = vpack.c.bf16 %v440_v23, %v439_v22 }
 0x270   :  { %658 = vmatprep.subr.bf16.mxu1 %v657_v24 }
 0x271   :  { %660 = vmatpush3.bf16.msra.mxu1 %v657_v24 }
 0x272   :  { %v446_v28 = vpop.permute.xlu1 %445 }
 0x274   :  { %627 = vmatmul.mubr.msk.f32.vlgmr.msra.gmra.mrb[0].mxu1 %vm453_vm6, %v430_v25 }
 0x276   :  { %v451_v26 = vpop.permute.xlu0 %450 }
 0x347   :  { %v628_v27 = vpop.f32.mrb[0].mxu1 }
 0x348   :  { %v532_v29 = vadd.f32 %v628_v27, %v451_v26  ;;  %v526_v30 = vpop.f32.mrb[1].mxu1 }
 0x349   :  { %v527_v31 = vadd.f32 %v526_v30, %v446_v28 }
 0x34a   :  { %536 = vst.msk [vmem:[%s916_s8 + $0x8] sm:$0xff] %vm42_vm3, %v532_v29  ;;  %541 = vrot.lane.b32.xlu0 %v532_v29, %s698_s10 }
 0x34b   :  { %535 = vst.msk [vmem:[%s916_s8] sm:$0xff] %vm42_vm3, %v527_v31  ;;  %539 = vrot.lane.b32.xlu1 %v527_v31, %s698_s10 }
 0x3bc   :  { %v542_v32 = vpop.permute.xlu0 %541 }
 0x3bd   :  { %562 = vst.msk [vmem:[%s916_s8 + $0x18] sm:$0xff] %vm42_vm3, %v542_v32  ;;  %v540_v7 = vpop.permute.xlu1 %539 }
 0x3be   :  { %561 = vst.msk [vmem:[%s916_s8 + $0x10] sm:$0xff] %vm42_vm3, %v540_v7 }

// kernel: _lambda_.11
= control target key start
LH: loop header
LB: loop body
LE: loop exit
PB: predicated region body
PF: predicated region fallthrough
CT: control target
= control target key end

     0   :  { %vm77_vm0 = vcmask 261120   ;;  %v619_v2 = vmov 0.0   ;;  %s621_s9 = smov 3   ;;  %s622_s10 = smov 18   ;;  %vm102_vm1 = vcmask 60416   ;;  %vm192_vm2 = vcmask 457728   ;;  %s824_s3 = inlined_call_operand.vmem [shape: f32[2,4,8], index: 3, kind: input, shape index: {}]   ;;  %s825_s4 = inlined_call_operand.vmem [shape: f32[32,56], index: 4, kind: input, shape index: {}]   ;;  %s826_s0 = inlined_call_operand.vmem [shape: f32[2,16,16], index: 0, kind: input, shape index: {}]   ;;  %s827_s1 = inlined_call_operand.vmem [shape: f32[16,1], index: 1, kind: input, shape index: {}]   ;;  %s828_s2 = inlined_call_operand.vmem [shape: f32[16,1], index: 2, kind: input, shape index: {}]   ;;  %s829_s5 = inlined_call_operand.vmem [shape: f32[32,1], index: 5, kind: input, shape index: {}]   ;;  %s830_s7 = inlined_call_operand.vmem [shape: f32[16,1], index: 7, kind: input, shape index: {}]   ;;  %s831_s6 = inlined_call_operand.vmem [shape: f32[16,48], index: 6, kind: input, shape index: {}]   ;;  %s832_s8 = inlined_call_operand.vmem [shape: f32[2,16,16], index: 8, kind: output, shape index: {}]  }
   0x1   :  { %v510_v0 = vld [vmem:[%s824_s3 + $0x4] sm:$0xf]  ;;  %v85_v1 = vld [vmem:[%s824_s3] sm:$0xf]  ;;  %78 = vst.msk [vmem:[#allocation3] sm:$0xff] %vm77_vm0, %v619_v2  ;;  %79 = vst.msk [vmem:[#allocation3 + $0x8] sm:$0xff] %vm77_vm0, %v619_v2 }
   0x2   :  { %80 = vst.msk [vmem:[#allocation3 + $0x10] sm:$0xff] %vm77_vm0, %v619_v2  ;;  %81 = vst.msk [vmem:[#allocation3 + $0x18] sm:$0xff] %vm77_vm0, %v619_v2  ;;  %s620_s3 = smov 19   ;;  %87 = vrot.lane.b32.xlu0 %v85_v1, %s621_s9  ;;  %s623_s11 = smov 2   ;;  %v157_v3 = vld [vmem:[%s825_s4] sm:$0xff]  ;;  %v709_v4 = vld [vmem:[%s826_s0 + $0x8] sm:$0xff] }
   0x3   :  { %82 = vst.msk [vmem:[#allocation3 + $0x20] sm:$0xff] %vm77_vm0, %v619_v2  ;;  %83 = vst.msk [vmem:[#allocation3 + $0x28] sm:$0xff] %vm77_vm0, %v619_v2  ;;  %122 = vrot.lane.b32.xlu1 %v510_v0, %s620_s3  ;;  %s624_s12 = smov 17   ;;  %s625_s13 = smov 1   ;;  %552 = vmatprep.mubr.msk.f32.mxu0 %vm192_vm2, %v157_v3  ;;  %v714_v5 = vld [vmem:[%s826_s0 + $0x18] sm:$0xff]  ;;  %v719_v6 = vld [vmem:[%s826_s0] sm:$0xff]  ;;  %v35_v12 = vmul.f32 %v709_v4, %v709_v4 }
   0x4   :  { %84 = vst.msk [vmem:[#allocation3 + $0x30] sm:$0xff] %vm77_vm0, %v619_v2  ;;  %290 = vst.msk [vmem:[#allocation2] sm:$0xff] %vm77_vm0, %v619_v2  ;;  %s626_s14 = smov 127   ;;  %s627_s15 = smov 16   ;;  %v724_v7 = vld [vmem:[%s826_s0 + $0x10] sm:$0xff]  ;;  %v37_v8 = vadd.f32 %v714_v5, %v709_v4  ;;  %v34_v9 = vmul.f32 %v719_v6, %v719_v6  ;;  %vm42_vm3 = vcmask 130048   ;;  %v39_v13 = vmul.f32 %v714_v5, %v714_v5 }
   0x5   :  { %291 = vst.msk [vmem:[#allocation2 + $0x8] sm:$0xff] %vm77_vm0, %v619_v2  ;;  %292 = vst.msk [vmem:[#allocation2 + $0x10] sm:$0xff] %vm77_vm0, %v619_v2  ;;  %s628_s16 = smov 15   ;;  %s629_s17 = smov 126   ;;  %v38_v10 = vmul.f32 %v724_v7, %v724_v7  ;;  %v36_v11 = vadd.f32 %v724_v7, %v719_v6  ;;  %v633_v20 = vmov 0   ;;  %vm90_vm4 = vcmask 85016  }
   0x6   :  { %293 = vst.msk [vmem:[#allocation2 + $0x18] sm:$0xff] %vm77_vm0, %v619_v2  ;;  %294 = vst.msk [vmem:[#allocation2 + $0x20] sm:$0xff] %vm77_vm0, %v619_v2  ;;  %92 = vrot.lane.b32.xlu0 %v85_v1, %s623_s11  ;;  %s630_s18 = smov 125   ;;  %s631_s19 = smov 14   ;;  %v46_v14 = vsel %vm42_vm3, %v37_v8, 0.0  ;;  %v41_v17 = vadd.f32 %v39_v13, %v35_v12  ;;  %614 = vset.pattern.permute.xlu1 %v633_v20  ;;  %vm125_vm5 = vcmask 216216  }
   0x7   :  { %295 = vst.msk [vmem:[#allocation2 + $0x28] sm:$0xff] %vm77_vm0, %v619_v2  ;;  %127 = vrot.lane.b32.xlu1 %v510_v0, %s622_s10  ;;  %s632_s22 = smov 13   ;;  %v40_v15 = vadd.f32 %v38_v10, %v34_v9  ;;  %v43_v16 = vsel %vm42_vm3, %v36_v11, 0.0  ;;  %613 = vset.pattern.permute.xlu0 %v633_v20  ;;  %vm95_vm6 = vcmask 76816   ;;  %vm130_vm7 = vcmask 208016   ;;  %v158_v44 = vld [vmem:[%s825_s4 + $0x8] sm:$0xff] }
   0x8   :  { %103 = vst.msk [vmem:[#allocation3 + $0x18] sm:$0xf] %vm102_vm1, %v85_v1  ;;  %v54_v19 = vsel %vm42_vm3, %v41_v17, 0.0  ;;  %vm100_vm8 = vcmask 68616   ;;  %vm135_vm9 = vcmask 199816   ;;  %vm107_vm10 = vcmask 52224  }
   0x9   :  { %v51_v18 = vsel %vm42_vm3, %v40_v15, 0.0  ;;  %vm140_vm11 = vcmask 191616   ;;  %vm145_vm12 = vcmask 183424   ;;  %vm112_vm13 = vcmask 44032   ;;  %v159_v45 = vld [vmem:[%s825_s4 + $0x10] sm:$0xff]  ;;  %v160_v46 = vld [vmem:[%s825_s4 + $0x18] sm:$0xff] }
   0xa   :  { %97 = vrot.lane.b32.xlu0 %v85_v1, %s625_s13  ;;  %vm117_vm14 = vcmask 35840   ;;  %vm150_vm15 = vcmask 175232   ;;  %vm155_vm0 = vcmask 167040   ;;  %v67_v61 = vld [vmem:[%s827_s1] sm:$0xff]  ;;  %v68_v62 = vld [vmem:[%s827_s1 + $0x8] sm:$0xff]  ;;  %v170_v15 = vld [vmem:[%s829_s5 + $0x10] sm:$0xff] }
   0xb   :  { %132 = vrot.lane.b32.xlu1 %v510_v0, %s624_s12  ;;  %v71_v3 = vld [vmem:[%s828_s2] sm:$0xff]  ;;  %v72_v11 = vld [vmem:[%s828_s2 + $0x8] sm:$0xff]  ;;  %vm377_vm1 = vcmask 261248   ;;  %s634_s10 = smov 112  }
   0xc   :  { %v168_v13 = vld [vmem:[%s829_s5] sm:$0xff] }
   0xe   :  { %137 = vrot.lane.b32.xlu0 %v510_v0, %s627_s15 }
   0xf   :  { %104 = vrot.lane.b32.xlu1 %v85_v1, %s626_s14 }
  0x12   :  { %109 = vrot.lane.b32.xlu0 %v85_v1, %s629_s17 }
  0x13   :  { %142 = vrot.lane.b32.xlu1 %v510_v0, %s628_s16 }
  0x16   :  { %147 = vrot.lane.b32.xlu0 %v510_v0, %s631_s19 }
  0x17   :  { %114 = vrot.lane.b32.xlu1 %v85_v1, %s630_s18 }
  0x1a   :  { %152 = vrot.lane.b32.xlu0 %v510_v0, %s632_s22 }
  0x39   :  { %47 = vadd.xlane.f32.xlu0 %v46_v14  ;;  %v169_v14 = vld [vmem:[%s829_s5 + $0x8] sm:$0xff] }
  0x3b   :  { %44 = vadd.xlane.f32.xlu1 %v43_v16  ;;  %v171_v16 = vld [vmem:[%s829_s5 + $0x18] sm:$0xff] }
  0x3d   :  { %52 = vadd.xlane.f32.xlu0 %v51_v18 }
  0x3f   :  { %55 = vadd.xlane.f32.xlu1 %v54_v19 }
  0x74   :  { %v88_v22 = vpop.permute.xlu0 %87 }
  0x75   :  { %v123_v21 = vpop.permute.xlu1 %122  ;;  %91 = vst.msk [vmem:[#allocation3] sm:$0xf] %vm90_vm4, %v88_v22  ;;  %vm409_vm4 = vcmask 392192  }
  0x76   :  { %126 = vst.msk [vmem:[#allocation3] sm:$0xf] %vm125_vm5, %v123_v21  ;;  %vm374_vm5 = vcmask 261256  }
  0x78   :  { %v93_v24 = vpop.permute.xlu0 %92 }
  0x79   :  { %v128_v23 = vpop.permute.xlu1 %127  ;;  %96 = vst.msk [vmem:[#allocation3 + $0x8] sm:$0xf] %vm95_vm6, %v93_v24  ;;  %vm345_vm6 = vcmask 121856  }
  0x7a   :  { %131 = vst.msk [vmem:[#allocation3 + $0x8] sm:$0xf] %vm130_vm7, %v128_v23  ;;  %vm386_vm7 = vcmask 253056  }
  0x7c   :  { %v98_v26 = vpop.permute.xlu0 %97 }
  0x7d   :  { %v133_v25 = vpop.permute.xlu1 %132  ;;  %101 = vst.msk [vmem:[#allocation3 + $0x10] sm:$0xf] %vm100_vm8, %v98_v26  ;;  %v161_v29 = vld [vmem:[#allocation3] sm:$0xff] }
  0x7e   :  { %136 = vst.msk [vmem:[#allocation3 + $0x10] sm:$0xf] %vm135_vm9, %v133_v25 }
  0x80   :  { %v138_v28 = vpop.permute.xlu0 %137 }
  0x81   :  { %v105_v27 = vpop.permute.xlu1 %104  ;;  %141 = vst.msk [vmem:[#allocation3 + $0x18] sm:$0xf] %vm140_vm11, %v138_v28  ;;  %v162_v30 = vld [vmem:[#allocation3 + $0x8] sm:$0xff] }
  0x82   :  { %108 = vst.msk [vmem:[#allocation3 + $0x20] sm:$0xf] %vm107_vm10, %v105_v27  ;;  %v573_v31 = vpack.c.bf16 %v162_v30, %v161_v29 }
  0x84   :  { %574 = vmatprep.subr.bf16.mxu0 %v573_v31  ;;  %v110_v33 = vpop.permute.xlu0 %109 }
  0x85   :  { %v143_v32 = vpop.permute.xlu1 %142  ;;  %113 = vst.msk [vmem:[#allocation3 + $0x28] sm:$0xf] %vm112_vm13, %v110_v33  ;;  %576 = vmatpush3.bf16.msra.mxu0 %v573_v31  ;;  %v163_v36 = vld [vmem:[#allocation3 + $0x10] sm:$0xff] }
  0x86   :  { %146 = vst.msk [vmem:[#allocation3 + $0x20] sm:$0xf] %vm145_vm12, %v143_v32 }
  0x88   :  { %v148_v35 = vpop.permute.xlu0 %147  ;;  %v164_v37 = vld [vmem:[#allocation3 + $0x18] sm:$0xff] }
  0x89   :  { %v115_v34 = vpop.permute.xlu1 %114  ;;  %151 = vst.msk [vmem:[#allocation3 + $0x28] sm:$0xf] %vm150_vm15, %v148_v35  ;;  %v577_v38 = vpack.c.bf16 %v164_v37, %v163_v36 }
  0x8a   :  { %118 = vst.msk [vmem:[#allocation3 + $0x30] sm:$0xf] %vm117_vm14, %v115_v34 }
  0x8b   :  { %578 = vmatprep.subr.bf16.mxu0 %v577_v38 }
  0x8c   :  { %580 = vmatpush3.bf16.msra.mxu0 %v577_v38  ;;  %v153_v39 = vpop.permute.xlu0 %152 }
  0x8d   :  { %156 = vst.msk [vmem:[#allocation3 + $0x30] sm:$0xf] %vm155_vm0, %v153_v39  ;;  %v165_v40 = vld [vmem:[#allocation3 + $0x20] sm:$0xff] }
  0x90   :  { %v166_v41 = vld [vmem:[#allocation3 + $0x28] sm:$0xff] }
  0x91   :  { %v581_v42 = vpack.c.bf16 %v166_v41, %v165_v40 }
  0x93   :  { %582 = vmatprep.subr.bf16.mxu0 %v581_v42 }
  0x94   :  { %584 = vmatpush3.bf16.msra.mxu0 %v581_v42  ;;  %v167_v43 = vld [vmem:[#allocation3 + $0x30] sm:$0xff] }
  0x95   :  { %550 = vmatprep.subr.mxu0 %v167_v43 }
  0x98   :  { %551 = vmatpush3.msra.mxu0 %v167_v43 }
  0x99   :  { %553 = vmatmul.mubr.msk.f32.vlgmr.msra.gmra.mrb[0].mxu0 %vm192_vm2, %v158_v44 }
  0x9a   :  { %555 = vmatprep.mubr.msk.f32.mxu0 %vm192_vm2, %v159_v45 }
  0x9d   :  { %556 = vmatmul.mubr.msk.f32.gmra.mrb[2].mxu0 %vm192_vm2, %v160_v46  ;;  %vm334_vm2 = vcmask 130056  }
  0xc6   :  { %v48_v47 = vpop.xlane.xlu0 %47 }
  0xc7   :  { %v50_v49 = vmul.f32 0.03125, %v48_v47 }
  0xc8   :  { %v45_v48 = vpop.xlane.xlu1 %44 }
  0xc9   :  { %v49_v50 = vmul.f32 0.03125, %v45_v48  ;;  %v60_v55 = vmul.f32 %v50_v49, %v50_v49 }
  0xca   :  { %v53_v52 = vpop.xlane.xlu0 %52 }
  0xcb   :  { %v59_v51 = vmul.f32 %v49_v50, %v49_v50  ;;  %v57_v53 = vmul.f32 0.03125, %v53_v52  ;;  %v389_v52 = vld [vmem:[%s831_s6] sm:$0xff] }
  0xcc   :  { %v56_v54 = vpop.xlane.xlu1 %55  ;;  %570 = vmatprep.mubr.msk.f32.mxu1 %vm409_vm4, %v389_v52 }
  0xcd   :  { %v58_v56 = vmul.f32 0.03125, %v56_v54  ;;  %v61_v57 = vsub.f32 %v57_v53, %v59_v51  ;;  %v397_v51 = vld [vmem:[%s830_s7] sm:$0xff]  ;;  %v398_v54 = vld [vmem:[%s830_s7 + $0x8] sm:$0xff] }
  0xcf   :  { %v62_v58 = vsub.f32 %v58_v56, %v60_v55  ;;  %v63_v59 = vadd.f32 1e-05, %v61_v57 }
  0xd1   :  { %v64_v60 = vadd.f32 1e-05, %v62_v58  ;;  %615 = vrsqrt.f32 %v63_v59 }
  0xd3   :  { %617 = vrsqrt.f32 %v64_v60 }
  0xdb   :  { %v616_v63 = vpop.eup %615 }
  0xdc   :  { %v69_v1 = vmul.f32 %v616_v63, %v67_v61 }
  0xdd   :  { %v618_v0 = vpop.eup %617 }
  0xde   :  { %v70_v2 = vmul.f32 %v618_v0, %v68_v62  ;;  %298 = vperm.xlu0 %613, %v69_v1   ;;  %v73_v8 = vmul.f32 %v69_v1, %v49_v50 }
  0xe0   :  { %303 = vperm.xlu1 %614, %v70_v2   ;;  %v75_v9 = vsub.f32 %v71_v3, %v73_v8  ;;  %v74_v10 = vmul.f32 %v70_v2, %v50_v49 }
  0xe2   :  { %v76_v12 = vsub.f32 %v72_v11, %v74_v10  ;;  %v390_v11 = vld [vmem:[%s831_s6 + $0x8] sm:$0xff] }
  0xe4   :  { %310 = vperm.xlu1 %614, %v75_v9  }
  0xe8   :  { %315 = vperm.xlu1 %614, %v76_v12  }
  0xec   :  { %174 = vperm.xlu1 %614, %v168_v13  }
  0xf0   :  { %179 = vperm.xlu1 %614, %v169_v14  }
  0xf4   :  { %184 = vperm.xlu1 %614, %v170_v15  }
  0xf8   :  { %189 = vperm.xlu1 %614, %v171_v16  }
 0x15d   :  { %v299_v17 = vpop.permute.xlu0 %298 }
 0x15e   :  { %v348_v19 = vmul.f32 %v724_v7, %v299_v17  ;;  %v306_v29 = vmul.f32 %v299_v17, %v719_v6 }
 0x15f   :  { %v304_v18 = vpop.permute.xlu1 %303 }
 0x160   :  { %v349_v22 = vmul.f32 %v714_v5, %v304_v18  ;;  %v307_v34 = vmul.f32 %v304_v18, %v709_v4 }
 0x163   :  { %v311_v20 = vpop.permute.xlu1 %310 }
 0x164   :  { %v350_v21 = vadd.f32 %v348_v19, %v311_v20  ;;  %v318_v32 = vadd.f32 %v311_v20, %v306_v29 }
 0x166   :  { %354 = vrot.lane.b32.xlu1 %v350_v21, %s627_s15 }
 0x167   :  { %v316_v23 = vpop.permute.xlu1 %315 }
 0x168   :  { %v351_v24 = vadd.f32 %v349_v22, %v316_v23  ;;  %v319_v37 = vadd.f32 %v316_v23, %v307_v34 }
 0x16a   :  { %356 = vrot.lane.b32.xlu0 %v351_v24, %s627_s15 }
 0x16b   :  { %v175_v25 = vpop.permute.xlu1 %174 }
 0x16c   :  { %v554_v26 = vpop.f32.mrb[0].mxu0 }
 0x16d   :  { %v271_v27 = vpop.f32.mrb[1].mxu0 }
 0x16e   :  { %v272_v30 = vadd.f32 %v271_v27, %v175_v25 }
 0x16f   :  { %v180_v28 = vpop.permute.xlu1 %179 }
 0x170   :  { %v557_v31 = vpop.f32.mrb[2].mxu0  ;;  %v320_v5 = vmul.f32 %v318_v32, %v272_v30  ;;  %v277_v35 = vadd.f32 %v554_v26, %v180_v28 }
 0x171   :  { %v281_v7 = vpop.f32.mrb[3].mxu0 }
 0x172   :  { %v321_v40 = vmul.f32 %v319_v37, %v277_v35 }
 0x173   :  { %v185_v33 = vpop.permute.xlu1 %184 }
 0x174   :  { %v282_v36 = vadd.f32 %v281_v7, %v185_v33 }
 0x176   :  { %v322_v38 = vadd.f32 %v320_v5, %v282_v36 }
 0x177   :  { %v190_v39 = vpop.permute.xlu1 %189 }
 0x178   :  { %v324_v41 = vmax.f32 %v322_v38, 0.0  ;;  %v287_v42 = vadd.f32 %v557_v31, %v190_v39 }
 0x17a   :  { %337 = vst.msk [vmem:[#allocation2 + $0x10] sm:$0xff] %vm42_vm3, %v324_v41  ;;  %v323_v43 = vadd.f32 %v321_v40, %v287_v42  ;;  %328 = vrot.lane.b32.xlu1 %v324_v41, %s625_s13 }
 0x17c   :  { %v325_v6 = vmax.f32 %v323_v43, 0.0 }
 0x17e   :  { %338 = vst.msk [vmem:[#allocation2 + $0x18] sm:$0xff] %vm42_vm3, %v325_v6  ;;  %330 = vrot.lane.b32.xlu0 %v325_v6, %s625_s13 }
 0x1d8   :  { %v355_v4 = vpop.permute.xlu1 %354 }
 0x1d9   :  { %v360_v44 = vmul.f32 %v355_v4, %v272_v30 }
 0x1db   :  { %v362_v45 = vadd.f32 %v360_v44, %v282_v36 }
 0x1dc   :  { %v357_v46 = vpop.permute.xlu0 %356 }
 0x1dd   :  { %v364_v47 = vmax.f32 %v362_v45, 0.0  ;;  %v361_v48 = vmul.f32 %v357_v46, %v277_v35 }
 0x1df   :  { %378 = vst.msk [vmem:[#allocation2 + $0x10] sm:$0xff] %vm377_vm1, %v364_v47  ;;  %v363_v49 = vadd.f32 %v361_v48, %v287_v42  ;;  %368 = vrot.lane.b32.xlu1 %v364_v47, %s625_s13 }
 0x1e1   :  { %v365_v50 = vmax.f32 %v363_v49, 0.0 }
 0x1e3   :  { %379 = vst.msk [vmem:[#allocation2 + $0x18] sm:$0xff] %vm377_vm1, %v365_v50  ;;  %370 = vrot.lane.b32.xlu0 %v365_v50, %s625_s13  ;;  %339 = vrot.lane.b32.xlu1 %v324_v41, %s626_s14 }
 0x1e6   :  { %v393_v2 = vld [vmem:[#allocation2 + $0x10] sm:$0xff] }
 0x1e7   :  { %341 = vrot.lane.b32.xlu0 %v325_v6, %s626_s14  ;;  %380 = vrot.lane.b32.xlu1 %v364_v47, %s626_s14 }
 0x1ea   :  { %v394_v0 = vld [vmem:[#allocation2 + $0x18] sm:$0xff] }
 0x1eb   :  { %382 = vrot.lane.b32.xlu0 %v365_v50, %s626_s14  ;;  %401 = vperm.xlu1 %614, %v397_v51   ;;  %v589_v3 = vpack.c.bf16 %v394_v0, %v393_v2 }
 0x1ec   :  { %v329_v53 = vpop.permute.xlu1 %328 }
 0x1ed   :  { %335 = vst.msk [vmem:[#allocation2] sm:$0xff] %vm334_vm2, %v329_v53 }
 0x1ef   :  { %406 = vperm.xlu0 %613, %v398_v54  }
 0x1f0   :  { %v331_v55 = vpop.permute.xlu0 %330 }
 0x1f1   :  { %336 = vst.msk [vmem:[#allocation2 + $0x8] sm:$0xff] %vm334_vm2, %v331_v55 }
 0x251   :  { %v369_v56 = vpop.permute.xlu1 %368 }
 0x252   :  { %375 = vst.msk [vmem:[#allocation2] sm:$0xff] %vm374_vm5, %v369_v56 }
 0x255   :  { %v371_v57 = vpop.permute.xlu0 %370  ;;  %v340_v58 = vpop.permute.xlu1 %339 }
 0x256   :  { %376 = vst.msk [vmem:[#allocation2 + $0x8] sm:$0xff] %vm374_vm5, %v371_v57 }
 0x257   :  { %346 = vst.msk [vmem:[#allocation2 + $0x20] sm:$0xff] %vm345_vm6, %v340_v58 }
 0x259   :  { %v342_v59 = vpop.permute.xlu0 %341  ;;  %v381_v60 = vpop.permute.xlu1 %380  ;;  %v391_v62 = vld [vmem:[#allocation2] sm:$0xff] }
 0x25a   :  { %347 = vst.msk [vmem:[#allocation2 + $0x28] sm:$0xff] %vm345_vm6, %v342_v59 }
 0x25b   :  { %387 = vst.msk [vmem:[#allocation2 + $0x20] sm:$0xff] %vm386_vm7, %v381_v60 }
 0x25d   :  { %v383_v61 = vpop.permute.xlu0 %382  ;;  %v392_v63 = vld [vmem:[#allocation2 + $0x8] sm:$0xff] }
 0x25e   :  { %388 = vst.msk [vmem:[#allocation2 + $0x28] sm:$0xff] %vm386_vm7, %v383_v61  ;;  %v585_v1 = vpack.c.bf16 %v392_v63, %v391_v62 }
 0x260   :  { %586 = vmatprep.subr.bf16.mxu1 %v585_v1 }
 0x261   :  { %588 = vmatpush3.bf16.msra.mxu1 %v585_v1 }
 0x262   :  { %590 = vmatprep.subr.bf16.mxu1 %v589_v3  ;;  %v395_v8 = vld [vmem:[#allocation2 + $0x20] sm:$0xff] }
 0x265   :  { %592 = vmatpush3.bf16.msra.mxu1 %v589_v3  ;;  %v396_v9 = vld [vmem:[#allocation2 + $0x28] sm:$0xff] }
 0x266   :  { %v593_v10 = vpack.c.bf16 %v396_v9, %v395_v8 }
 0x268   :  { %594 = vmatprep.subr.bf16.mxu1 %v593_v10 }
 0x269   :  { %596 = vmatpush3.bf16.msra.mxu1 %v593_v10 }
 0x26a   :  { %v402_v14 = vpop.permute.xlu1 %401 }
 0x26c   :  { %571 = vmatmul.mubr.msk.f32.vlgmr.msra.gmra.mrb[0].mxu1 %vm409_vm4, %v390_v11 }
 0x26e   :  { %v407_v12 = vpop.permute.xlu0 %406 }
 0x33f   :  { %v572_v13 = vpop.f32.mrb[0].mxu1 }
 0x340   :  { %v488_v15 = vadd.f32 %v572_v13, %v407_v12  ;;  %v482_v16 = vpop.f32.mrb[1].mxu1 }
 0x341   :  { %v483_v17 = vadd.f32 %v482_v16, %v402_v14 }
 0x342   :  { %492 = vst.msk [vmem:[%s832_s8 + $0x8] sm:$0xff] %vm42_vm3, %v488_v15  ;;  %497 = vrot.lane.b32.xlu0 %v488_v15, %s634_s10 }
 0x343   :  { %491 = vst.msk [vmem:[%s832_s8] sm:$0xff] %vm42_vm3, %v483_v17  ;;  %495 = vrot.lane.b32.xlu1 %v483_v17, %s634_s10 }
 0x3b4   :  { %v498_v18 = vpop.permute.xlu0 %497 }
 0x3b5   :  { %518 = vst.msk [vmem:[%s832_s8 + $0x18] sm:$0xff] %vm42_vm3, %v498_v18  ;;  %v496_v19 = vpop.permute.xlu1 %495 }
 0x3b6   :  { %517 = vst.msk [vmem:[%s832_s8 + $0x10] sm:$0xff] %vm42_vm3, %v496_v19 }

// kernel: _lambda_.12
= control target key start
LH: loop header
LB: loop body
LE: loop exit
PB: predicated region body
PF: predicated region fallthrough
CT: control target
= control target key end

     0   :  { %vm80_vm0 = vcmask 261120   ;;  %v645_v2 = vmov 0.0   ;;  %s647_s13 = smov 3   ;;  %s648_s14 = smov 18   ;;  %vm105_vm1 = vcmask 60416   ;;  %vm195_vm2 = vcmask 457728   ;;  %s869_s3 = inlined_call_operand.vmem [shape: f32[2,4,8], index: 3, kind: input, shape index: {}]   ;;  %s870_s4 = inlined_call_operand.vmem [shape: f32[32,56], index: 4, kind: input, shape index: {}]   ;;  %s871_s0 = inlined_call_operand.vmem [shape: f32[2,16,16], index: 0, kind: input, shape index: {}]   ;;  %s872_s1 = inlined_call_operand.vmem [shape: f32[16,1], index: 1, kind: input, shape index: {}]   ;;  %s873_s2 = inlined_call_operand.vmem [shape: f32[16,1], index: 2, kind: input, shape index: {}]   ;;  %s874_s5 = inlined_call_operand.vmem [shape: f32[32,1], index: 5, kind: input, shape index: {}]   ;;  %s875_s7 = inlined_call_operand.vmem [shape: f32[16,1], index: 7, kind: input, shape index: {}]   ;;  %s876_s6 = inlined_call_operand.vmem [shape: f32[16,48], index: 6, kind: input, shape index: {}]   ;;  %s877_s8 = inlined_call_operand.vmem [shape: f32[2,16,16], index: 8, kind: input, shape index: {}]   ;;  %s878_s9 = inlined_call_operand.vmem [shape: f32[2,16,16], index: 9, kind: output, shape index: {}]  }
   0x1   :  { %v534_v0 = vld [vmem:[%s869_s3 + $0x4] sm:$0xf]  ;;  %v88_v1 = vld [vmem:[%s869_s3] sm:$0xf]  ;;  %81 = vst.msk [vmem:[#allocation3] sm:$0xff] %vm80_vm0, %v645_v2  ;;  %82 = vst.msk [vmem:[#allocation3 + $0x8] sm:$0xff] %vm80_vm0, %v645_v2 }
   0x2   :  { %83 = vst.msk [vmem:[#allocation3 + $0x10] sm:$0xff] %vm80_vm0, %v645_v2  ;;  %84 = vst.msk [vmem:[#allocation3 + $0x18] sm:$0xff] %vm80_vm0, %v645_v2  ;;  %s646_s3 = smov 19   ;;  %90 = vrot.lane.b32.xlu0 %v88_v1, %s647_s13  ;;  %s649_s15 = smov 2   ;;  %v160_v3 = vld [vmem:[%s870_s4] sm:$0xff]  ;;  %v740_v4 = vld [vmem:[%s871_s0 + $0x8] sm:$0xff] }
   0x3   :  { %85 = vst.msk [vmem:[#allocation3 + $0x20] sm:$0xff] %vm80_vm0, %v645_v2  ;;  %86 = vst.msk [vmem:[#allocation3 + $0x28] sm:$0xff] %vm80_vm0, %v645_v2  ;;  %125 = vrot.lane.b32.xlu1 %v534_v0, %s646_s3  ;;  %s650_s16 = smov 17   ;;  %s651_s17 = smov 1   ;;  %578 = vmatprep.mubr.msk.f32.mxu0 %vm195_vm2, %v160_v3  ;;  %v745_v5 = vld [vmem:[%s871_s0 + $0x18] sm:$0xff]  ;;  %v750_v6 = vld [vmem:[%s871_s0] sm:$0xff]  ;;  %v38_v12 = vmul.f32 %v740_v4, %v740_v4 }
   0x4   :  { %87 = vst.msk [vmem:[#allocation3 + $0x30] sm:$0xff] %vm80_vm0, %v645_v2  ;;  %293 = vst.msk [vmem:[#allocation2] sm:$0xff] %vm80_vm0, %v645_v2  ;;  %s652_s18 = smov 127   ;;  %s653_s19 = smov 16   ;;  %v755_v7 = vld [vmem:[%s871_s0 + $0x10] sm:$0xff]  ;;  %v40_v8 = vadd.f32 %v745_v5, %v740_v4  ;;  %v37_v9 = vmul.f32 %v750_v6, %v750_v6  ;;  %vm45_vm3 = vcmask 130048   ;;  %v42_v13 = vmul.f32 %v745_v5, %v745_v5 }
   0x5   :  { %294 = vst.msk [vmem:[#allocation2 + $0x8] sm:$0xff] %vm80_vm0, %v645_v2  ;;  %295 = vst.msk [vmem:[#allocation2 + $0x10] sm:$0xff] %vm80_vm0, %v645_v2  ;;  %s654_s20 = smov 15   ;;  %s655_s21 = smov 126   ;;  %v41_v10 = vmul.f32 %v755_v7, %v755_v7  ;;  %v39_v11 = vadd.f32 %v755_v7, %v750_v6  ;;  %v659_v20 = vmov 0   ;;  %vm93_vm4 = vcmask 85016  }
   0x6   :  { %296 = vst.msk [vmem:[#allocation2 + $0x18] sm:$0xff] %vm80_vm0, %v645_v2  ;;  %297 = vst.msk [vmem:[#allocation2 + $0x20] sm:$0xff] %vm80_vm0, %v645_v2  ;;  %95 = vrot.lane.b32.xlu0 %v88_v1, %s649_s15  ;;  %s656_s22 = smov 125   ;;  %s657_s23 = smov 14   ;;  %v49_v14 = vsel %vm45_vm3, %v40_v8, 0.0  ;;  %v44_v17 = vadd.f32 %v42_v13, %v38_v12  ;;  %640 = vset.pattern.permute.xlu1 %v659_v20  ;;  %vm128_vm5 = vcmask 216216  }
   0x7   :  { %298 = vst.msk [vmem:[#allocation2 + $0x28] sm:$0xff] %vm80_vm0, %v645_v2  ;;  %130 = vrot.lane.b32.xlu1 %v534_v0, %s648_s14  ;;  %s658_s26 = smov 13   ;;  %v43_v15 = vadd.f32 %v41_v10, %v37_v9  ;;  %v46_v16 = vsel %vm45_vm3, %v39_v11, 0.0  ;;  %639 = vset.pattern.permute.xlu0 %v659_v20  ;;  %vm98_vm6 = vcmask 76816   ;;  %vm133_vm7 = vcmask 208016   ;;  %v161_v44 = vld [vmem:[%s870_s4 + $0x8] sm:$0xff] }
   0x8   :  { %106 = vst.msk [vmem:[#allocation3 + $0x18] sm:$0xf] %vm105_vm1, %v88_v1  ;;  %v57_v19 = vsel %vm45_vm3, %v44_v17, 0.0  ;;  %vm103_vm8 = vcmask 68616   ;;  %vm138_vm9 = vcmask 199816   ;;  %vm110_vm10 = vcmask 52224  }
   0x9   :  { %v54_v18 = vsel %vm45_vm3, %v43_v15, 0.0  ;;  %vm143_vm11 = vcmask 191616   ;;  %vm148_vm12 = vcmask 183424   ;;  %vm115_vm13 = vcmask 44032   ;;  %v162_v45 = vld [vmem:[%s870_s4 + $0x10] sm:$0xff]  ;;  %v163_v46 = vld [vmem:[%s870_s4 + $0x18] sm:$0xff] }
   0xa   :  { %100 = vrot.lane.b32.xlu0 %v88_v1, %s651_s17  ;;  %vm120_vm14 = vcmask 35840   ;;  %vm153_vm15 = vcmask 175232   ;;  %vm158_vm0 = vcmask 167040   ;;  %v70_v61 = vld [vmem:[%s872_s1] sm:$0xff]  ;;  %v71_v62 = vld [vmem:[%s872_s1 + $0x8] sm:$0xff]  ;;  %v173_v15 = vld [vmem:[%s874_s5 + $0x10] sm:$0xff] }
   0xb   :  { %135 = vrot.lane.b32.xlu1 %v534_v0, %s650_s16  ;;  %v74_v3 = vld [vmem:[%s873_s2] sm:$0xff]  ;;  %v75_v11 = vld [vmem:[%s873_s2 + $0x8] sm:$0xff]  ;;  %vm380_vm1 = vcmask 261248  }
   0xc   :  { %v171_v13 = vld [vmem:[%s874_s5] sm:$0xff] }
   0xe   :  { %140 = vrot.lane.b32.xlu0 %v534_v0, %s653_s19 }
   0xf   :  { %107 = vrot.lane.b32.xlu1 %v88_v1, %s652_s18 }
  0x12   :  { %112 = vrot.lane.b32.xlu0 %v88_v1, %s655_s21 }
  0x13   :  { %145 = vrot.lane.b32.xlu1 %v534_v0, %s654_s20 }
  0x16   :  { %150 = vrot.lane.b32.xlu0 %v534_v0, %s657_s23 }
  0x17   :  { %117 = vrot.lane.b32.xlu1 %v88_v1, %s656_s22 }
  0x1a   :  { %155 = vrot.lane.b32.xlu0 %v534_v0, %s658_s26 }
  0x39   :  { %50 = vadd.xlane.f32.xlu0 %v49_v14  ;;  %v172_v14 = vld [vmem:[%s874_s5 + $0x8] sm:$0xff] }
  0x3b   :  { %47 = vadd.xlane.f32.xlu1 %v46_v16  ;;  %v174_v16 = vld [vmem:[%s874_s5 + $0x18] sm:$0xff] }
  0x3d   :  { %55 = vadd.xlane.f32.xlu0 %v54_v18 }
  0x3f   :  { %58 = vadd.xlane.f32.xlu1 %v57_v19 }
  0x74   :  { %v91_v22 = vpop.permute.xlu0 %90 }
  0x75   :  { %v126_v21 = vpop.permute.xlu1 %125  ;;  %94 = vst.msk [vmem:[#allocation3] sm:$0xf] %vm93_vm4, %v91_v22  ;;  %vm412_vm4 = vcmask 392192  }
  0x76   :  { %129 = vst.msk [vmem:[#allocation3] sm:$0xf] %vm128_vm5, %v126_v21  ;;  %vm377_vm5 = vcmask 261272  }
  0x78   :  { %v96_v24 = vpop.permute.xlu0 %95 }
  0x79   :  { %v131_v23 = vpop.permute.xlu1 %130  ;;  %99 = vst.msk [vmem:[#allocation3 + $0x8] sm:$0xf] %vm98_vm6, %v96_v24  ;;  %vm348_vm6 = vcmask 105472  }
  0x7a   :  { %134 = vst.msk [vmem:[#allocation3 + $0x8] sm:$0xf] %vm133_vm7, %v131_v23  ;;  %vm389_vm7 = vcmask 236672  }
  0x7c   :  { %v101_v26 = vpop.permute.xlu0 %100 }
  0x7d   :  { %v136_v25 = vpop.permute.xlu1 %135  ;;  %104 = vst.msk [vmem:[#allocation3 + $0x10] sm:$0xf] %vm103_vm8, %v101_v26  ;;  %v164_v29 = vld [vmem:[#allocation3] sm:$0xff] }
  0x7e   :  { %139 = vst.msk [vmem:[#allocation3 + $0x10] sm:$0xf] %vm138_vm9, %v136_v25 }
  0x80   :  { %v141_v28 = vpop.permute.xlu0 %140 }
  0x81   :  { %v108_v27 = vpop.permute.xlu1 %107  ;;  %144 = vst.msk [vmem:[#allocation3 + $0x18] sm:$0xf] %vm143_vm11, %v141_v28  ;;  %v165_v30 = vld [vmem:[#allocation3 + $0x8] sm:$0xff] }
  0x82   :  { %111 = vst.msk [vmem:[#allocation3 + $0x20] sm:$0xf] %vm110_vm10, %v108_v27  ;;  %v599_v31 = vpack.c.bf16 %v165_v30, %v164_v29 }
  0x84   :  { %600 = vmatprep.subr.bf16.mxu0 %v599_v31  ;;  %v113_v33 = vpop.permute.xlu0 %112 }
  0x85   :  { %v146_v32 = vpop.permute.xlu1 %145  ;;  %116 = vst.msk [vmem:[#allocation3 + $0x28] sm:$0xf] %vm115_vm13, %v113_v33  ;;  %602 = vmatpush3.bf16.msra.mxu0 %v599_v31  ;;  %v166_v36 = vld [vmem:[#allocation3 + $0x10] sm:$0xff] }
  0x86   :  { %149 = vst.msk [vmem:[#allocation3 + $0x20] sm:$0xf] %vm148_vm12, %v146_v32 }
  0x88   :  { %v151_v35 = vpop.permute.xlu0 %150  ;;  %v167_v37 = vld [vmem:[#allocation3 + $0x18] sm:$0xff] }
  0x89   :  { %v118_v34 = vpop.permute.xlu1 %117  ;;  %154 = vst.msk [vmem:[#allocation3 + $0x28] sm:$0xf] %vm153_vm15, %v151_v35  ;;  %v603_v38 = vpack.c.bf16 %v167_v37, %v166_v36 }
  0x8a   :  { %121 = vst.msk [vmem:[#allocation3 + $0x30] sm:$0xf] %vm120_vm14, %v118_v34 }
  0x8b   :  { %604 = vmatprep.subr.bf16.mxu0 %v603_v38 }
  0x8c   :  { %606 = vmatpush3.bf16.msra.mxu0 %v603_v38  ;;  %v156_v39 = vpop.permute.xlu0 %155 }
  0x8d   :  { %159 = vst.msk [vmem:[#allocation3 + $0x30] sm:$0xf] %vm158_vm0, %v156_v39  ;;  %v168_v40 = vld [vmem:[#allocation3 + $0x20] sm:$0xff] }
  0x90   :  { %v169_v41 = vld [vmem:[#allocation3 + $0x28] sm:$0xff] }
  0x91   :  { %v607_v42 = vpack.c.bf16 %v169_v41, %v168_v40 }
  0x93   :  { %608 = vmatprep.subr.bf16.mxu0 %v607_v42 }
  0x94   :  { %610 = vmatpush3.bf16.msra.mxu0 %v607_v42  ;;  %v170_v43 = vld [vmem:[#allocation3 + $0x30] sm:$0xff] }
  0x95   :  { %576 = vmatprep.subr.mxu0 %v170_v43 }
  0x98   :  { %577 = vmatpush3.msra.mxu0 %v170_v43 }
  0x99   :  { %579 = vmatmul.mubr.msk.f32.vlgmr.msra.gmra.mrb[0].mxu0 %vm195_vm2, %v161_v44 }
  0x9a   :  { %581 = vmatprep.mubr.msk.f32.mxu0 %vm195_vm2, %v162_v45 }
  0x9d   :  { %582 = vmatmul.mubr.msk.f32.gmra.mrb[2].mxu0 %vm195_vm2, %v163_v46  ;;  %vm337_vm2 = vcmask 130072  }
  0xc6   :  { %v51_v47 = vpop.xlane.xlu0 %50 }
  0xc7   :  { %v53_v49 = vmul.f32 0.03125, %v51_v47 }
  0xc8   :  { %v48_v48 = vpop.xlane.xlu1 %47 }
  0xc9   :  { %v52_v50 = vmul.f32 0.03125, %v48_v48  ;;  %v63_v55 = vmul.f32 %v53_v49, %v53_v49 }
  0xca   :  { %v56_v52 = vpop.xlane.xlu0 %55 }
  0xcb   :  { %v62_v51 = vmul.f32 %v52_v50, %v52_v50  ;;  %v60_v53 = vmul.f32 0.03125, %v56_v52  ;;  %v392_v52 = vld [vmem:[%s876_s6] sm:$0xff] }
  0xcc   :  { %v59_v54 = vpop.xlane.xlu1 %58  ;;  %596 = vmatprep.mubr.msk.f32.mxu1 %vm412_vm4, %v392_v52 }
  0xcd   :  { %v61_v56 = vmul.f32 0.03125, %v59_v54  ;;  %v64_v57 = vsub.f32 %v60_v53, %v62_v51  ;;  %v400_v51 = vld [vmem:[%s875_s7] sm:$0xff]  ;;  %v401_v54 = vld [vmem:[%s875_s7 + $0x8] sm:$0xff] }
  0xcf   :  { %v65_v58 = vsub.f32 %v61_v56, %v63_v55  ;;  %v66_v59 = vadd.f32 1e-05, %v64_v57  ;;  %v541_v55 = vld [vmem:[%s877_s8 + $0x10] sm:$0xff]  ;;  %v542_v57 = vld [vmem:[%s877_s8 + $0x18] sm:$0xff] }
  0xd1   :  { %v67_v60 = vadd.f32 1e-05, %v65_v58  ;;  %641 = vrsqrt.f32 %v66_v59 }
  0xd3   :  { %643 = vrsqrt.f32 %v67_v60 }
  0xdb   :  { %v642_v63 = vpop.eup %641 }
  0xdc   :  { %v72_v1 = vmul.f32 %v642_v63, %v70_v61 }
  0xdd   :  { %v644_v0 = vpop.eup %643 }
  0xde   :  { %v73_v2 = vmul.f32 %v644_v0, %v71_v62  ;;  %301 = vperm.xlu0 %639, %v72_v1   ;;  %v76_v8 = vmul.f32 %v72_v1, %v52_v50 }
  0xe0   :  { %306 = vperm.xlu1 %640, %v73_v2   ;;  %v78_v9 = vsub.f32 %v74_v3, %v76_v8  ;;  %v77_v10 = vmul.f32 %v73_v2, %v53_v49 }
  0xe2   :  { %v79_v12 = vsub.f32 %v75_v11, %v77_v10 }
  0xe4   :  { %313 = vperm.xlu1 %640, %v78_v9  }
  0xe8   :  { %318 = vperm.xlu1 %640, %v79_v12  }
  0xec   :  { %177 = vperm.xlu1 %640, %v171_v13   ;;  %v393_v13 = vld [vmem:[%s876_s6 + $0x8] sm:$0xff]  ;;  %s660_s6 = smov 112  }
  0xf0   :  { %182 = vperm.xlu1 %640, %v172_v14  }
  0xf4   :  { %187 = vperm.xlu1 %640, %v173_v15  }
  0xf8   :  { %192 = vperm.xlu1 %640, %v174_v16  }
 0x15d   :  { %v302_v17 = vpop.permute.xlu0 %301 }
 0x15e   :  { %v351_v19 = vmul.f32 %v755_v7, %v302_v17  ;;  %v309_v29 = vmul.f32 %v302_v17, %v750_v6  ;;  %v495_v17 = vld [vmem:[%s877_s8 + $0x8] sm:$0xff] }
 0x15f   :  { %v307_v18 = vpop.permute.xlu1 %306 }
 0x160   :  { %v352_v22 = vmul.f32 %v745_v5, %v307_v18  ;;  %v310_v34 = vmul.f32 %v307_v18, %v740_v4 }
 0x163   :  { %v314_v20 = vpop.permute.xlu1 %313 }
 0x164   :  { %v353_v21 = vadd.f32 %v351_v19, %v314_v20  ;;  %v321_v32 = vadd.f32 %v314_v20, %v309_v29 }
 0x166   :  { %357 = vrot.lane.b32.xlu1 %v353_v21, %s653_s19  ;;  %v494_v21 = vld [vmem:[%s877_s8] sm:$0xff] }
 0x167   :  { %v319_v23 = vpop.permute.xlu1 %318 }
 0x168   :  { %v354_v24 = vadd.f32 %v352_v22, %v319_v23  ;;  %v322_v37 = vadd.f32 %v319_v23, %v310_v34 }
 0x16a   :  { %359 = vrot.lane.b32.xlu0 %v354_v24, %s653_s19 }
 0x16b   :  { %v178_v25 = vpop.permute.xlu1 %177 }
 0x16c   :  { %v580_v26 = vpop.f32.mrb[0].mxu0 }
 0x16d   :  { %v274_v27 = vpop.f32.mrb[1].mxu0 }
 0x16e   :  { %v275_v30 = vadd.f32 %v274_v27, %v178_v25 }
 0x16f   :  { %v183_v28 = vpop.permute.xlu1 %182 }
 0x170   :  { %v583_v31 = vpop.f32.mrb[2].mxu0  ;;  %v323_v5 = vmul.f32 %v321_v32, %v275_v30  ;;  %v280_v35 = vadd.f32 %v580_v26, %v183_v28 }
 0x171   :  { %v284_v7 = vpop.f32.mrb[3].mxu0 }
 0x172   :  { %v324_v40 = vmul.f32 %v322_v37, %v280_v35 }
 0x173   :  { %v188_v33 = vpop.permute.xlu1 %187 }
 0x174   :  { %v285_v36 = vadd.f32 %v284_v7, %v188_v33 }
 0x176   :  { %v325_v38 = vadd.f32 %v323_v5, %v285_v36 }
 0x177   :  { %v193_v39 = vpop.permute.xlu1 %192 }
 0x178   :  { %v327_v41 = vmax.f32 %v325_v38, 0.0  ;;  %v290_v42 = vadd.f32 %v583_v31, %v193_v39 }
 0x17a   :  { %340 = vst.msk [vmem:[#allocation2 + $0x10] sm:$0xff] %vm45_vm3, %v327_v41  ;;  %v326_v43 = vadd.f32 %v324_v40, %v290_v42  ;;  %331 = vrot.lane.b32.xlu1 %v327_v41, %s647_s13 }
 0x17c   :  { %v328_v6 = vmax.f32 %v326_v43, 0.0 }
 0x17e   :  { %341 = vst.msk [vmem:[#allocation2 + $0x18] sm:$0xff] %vm45_vm3, %v328_v6  ;;  %333 = vrot.lane.b32.xlu0 %v328_v6, %s647_s13 }
 0x1d8   :  { %v358_v4 = vpop.permute.xlu1 %357 }
 0x1d9   :  { %v363_v44 = vmul.f32 %v358_v4, %v275_v30 }
 0x1db   :  { %v365_v45 = vadd.f32 %v363_v44, %v285_v36 }
 0x1dc   :  { %v360_v46 = vpop.permute.xlu0 %359 }
 0x1dd   :  { %v367_v47 = vmax.f32 %v365_v45, 0.0  ;;  %v364_v48 = vmul.f32 %v360_v46, %v280_v35 }
 0x1df   :  { %381 = vst.msk [vmem:[#allocation2 + $0x10] sm:$0xff] %vm380_vm1, %v367_v47  ;;  %v366_v49 = vadd.f32 %v364_v48, %v290_v42  ;;  %371 = vrot.lane.b32.xlu1 %v367_v47, %s647_s13 }
 0x1e1   :  { %v368_v50 = vmax.f32 %v366_v49, 0.0 }
 0x1e3   :  { %382 = vst.msk [vmem:[#allocation2 + $0x18] sm:$0xff] %vm380_vm1, %v368_v50  ;;  %373 = vrot.lane.b32.xlu0 %v368_v50, %s647_s13  ;;  %342 = vrot.lane.b32.xlu1 %v327_v41, %s656_s22 }
 0x1e6   :  { %v396_v8 = vld [vmem:[#allocation2 + $0x10] sm:$0xff] }
 0x1e7   :  { %344 = vrot.lane.b32.xlu0 %v328_v6, %s656_s22  ;;  %383 = vrot.lane.b32.xlu1 %v367_v47, %s656_s22 }
 0x1ea   :  { %v397_v2 = vld [vmem:[#allocation2 + $0x18] sm:$0xff] }
 0x1eb   :  { %385 = vrot.lane.b32.xlu0 %v368_v50, %s656_s22  ;;  %404 = vperm.xlu1 %640, %v400_v51   ;;  %v615_v9 = vpack.c.bf16 %v397_v2, %v396_v8 }
 0x1ec   :  { %v332_v53 = vpop.permute.xlu1 %331 }
 0x1ed   :  { %338 = vst.msk [vmem:[#allocation2] sm:$0xff] %vm337_vm2, %v332_v53 }
 0x1ef   :  { %409 = vperm.xlu0 %639, %v401_v54   ;;  %507 = vrot.lane.b32.xlu1 %v541_v55, %s653_s19 }
 0x1f0   :  { %v334_v56 = vpop.permute.xlu0 %333 }
 0x1f1   :  { %339 = vst.msk [vmem:[#allocation2 + $0x8] sm:$0xff] %vm337_vm2, %v334_v56 }
 0x1f3   :  { %509 = vrot.lane.b32.xlu0 %v542_v57, %s653_s19 }
 0x251   :  { %v372_v58 = vpop.permute.xlu1 %371 }
 0x252   :  { %378 = vst.msk [vmem:[#allocation2] sm:$0xff] %vm377_vm5, %v372_v58 }
 0x255   :  { %v374_v59 = vpop.permute.xlu0 %373  ;;  %v343_v60 = vpop.permute.xlu1 %342 }
 0x256   :  { %379 = vst.msk [vmem:[#allocation2 + $0x8] sm:$0xff] %vm377_vm5, %v374_v59 }
 0x257   :  { %349 = vst.msk [vmem:[#allocation2 + $0x20] sm:$0xff] %vm348_vm6, %v343_v60 }
 0x259   :  { %v345_v61 = vpop.permute.xlu0 %344  ;;  %v384_v62 = vpop.permute.xlu1 %383  ;;  %v394_v0 = vld [vmem:[#allocation2] sm:$0xff] }
 0x25a   :  { %350 = vst.msk [vmem:[#allocation2 + $0x28] sm:$0xff] %vm348_vm6, %v345_v61 }
 0x25b   :  { %390 = vst.msk [vmem:[#allocation2 + $0x20] sm:$0xff] %vm389_vm7, %v384_v62 }
 0x25d   :  { %v386_v63 = vpop.permute.xlu0 %385  ;;  %v395_v1 = vld [vmem:[#allocation2 + $0x8] sm:$0xff] }
 0x25e   :  { %391 = vst.msk [vmem:[#allocation2 + $0x28] sm:$0xff] %vm389_vm7, %v386_v63  ;;  %v611_v3 = vpack.c.bf16 %v395_v1, %v394_v0 }
 0x260   :  { %612 = vmatprep.subr.bf16.mxu1 %v611_v3 }
 0x261   :  { %614 = vmatpush3.bf16.msra.mxu1 %v611_v3 }
 0x262   :  { %616 = vmatprep.subr.bf16.mxu1 %v615_v9  ;;  %v398_v10 = vld [vmem:[#allocation2 + $0x20] sm:$0xff] }
 0x265   :  { %618 = vmatpush3.bf16.msra.mxu1 %v615_v9  ;;  %v399_v11 = vld [vmem:[#allocation2 + $0x28] sm:$0xff] }
 0x266   :  { %v619_v12 = vpack.c.bf16 %v399_v11, %v398_v10 }
 0x268   :  { %620 = vmatprep.subr.bf16.mxu1 %v619_v12 }
 0x269   :  { %622 = vmatpush3.bf16.msra.mxu1 %v619_v12 }
 0x26a   :  { %v405_v15 = vpop.permute.xlu1 %404 }
 0x26c   :  { %597 = vmatmul.mubr.msk.f32.vlgmr.msra.gmra.mrb[0].mxu1 %vm412_vm4, %v393_v13 }
 0x26e   :  { %v410_v14 = vpop.permute.xlu0 %409  ;;  %v508_v22 = vpop.permute.xlu1 %507 }
 0x272   :  { %v510_v18 = vpop.permute.xlu0 %509 }
 0x33f   :  { %v598_v16 = vpop.f32.mrb[0].mxu1 }
 0x340   :  { %v491_v19 = vadd.f32 %v598_v16, %v410_v14  ;;  %v485_v20 = vpop.f32.mrb[1].mxu1 }
 0x341   :  { %v486_v23 = vadd.f32 %v485_v20, %v405_v15 }
 0x342   :  { %v497_v24 = vadd.f32 %v495_v17, %v491_v19  ;;  %v514_v25 = vadd.f32 %v510_v18, %v491_v19 }
 0x343   :  { %v496_v26 = vadd.f32 %v494_v21, %v486_v23  ;;  %v513_v27 = vadd.f32 %v508_v22, %v486_v23 }
 0x344   :  { %v499_v28 = vmul.f32 0.5, %v497_v24  ;;  %v516_v29 = vmul.f32 0.5, %v514_v25 }
 0x345   :  { %v498_v30 = vmul.f32 0.5, %v496_v26  ;;  %v515_v31 = vmul.f32 0.5, %v513_v27 }
 0x346   :  { %521 = vrot.lane.b32.xlu0 %v516_v29, %s660_s6  ;;  %501 = vst.msk [vmem:[%s878_s9 + $0x8] sm:$0xff] %vm45_vm3, %v499_v28 }
 0x347   :  { %519 = vrot.lane.b32.xlu1 %v515_v31, %s660_s6  ;;  %500 = vst.msk [vmem:[%s878_s9] sm:$0xff] %vm45_vm3, %v498_v30 }
 0x3b8   :  { %v522_v32 = vpop.permute.xlu0 %521 }
 0x3b9   :  { %544 = vst.msk [vmem:[%s878_s9 + $0x18] sm:$0xff] %vm45_vm3, %v522_v32  ;;  %v520_v7 = vpop.permute.xlu1 %519 }
 0x3ba   :  { %543 = vst.msk [vmem:[%s878_s9 + $0x10] sm:$0xff] %vm45_vm3, %v520_v7 }

// kernel: _lambda_.14
= control target key start
LH: loop header
LB: loop body
LE: loop exit
PB: predicated region body
PF: predicated region fallthrough
CT: control target
= control target key end

     0   :  { %vm83_vm0 = vcmask 261120   ;;  %v733_v2 = vmov 0.0   ;;  %s735_s17 = smov 3   ;;  %s736_s18 = smov 18   ;;  %vm108_vm1 = vcmask 60416   ;;  %vm198_vm2 = vcmask 457728   ;;  %s990_s3 = inlined_call_operand.vmem [shape: f32[2,4,8], index: 3, kind: input, shape index: {}]   ;;  %s991_s4 = inlined_call_operand.vmem [shape: f32[32,56], index: 4, kind: input, shape index: {}]   ;;  %s992_s0 = inlined_call_operand.vmem [shape: f32[2,16,16], index: 0, kind: input, shape index: {}]   ;;  %s993_s1 = inlined_call_operand.vmem [shape: f32[16,1], index: 1, kind: input, shape index: {}]   ;;  %s994_s2 = inlined_call_operand.vmem [shape: f32[16,1], index: 2, kind: input, shape index: {}]   ;;  %s995_s5 = inlined_call_operand.vmem [shape: f32[32,1], index: 5, kind: input, shape index: {}]   ;;  %s996_s7 = inlined_call_operand.vmem [shape: f32[16,1], index: 7, kind: input, shape index: {}]   ;;  %s997_s6 = inlined_call_operand.vmem [shape: f32[16,80], index: 6, kind: input, shape index: {}]   ;;  %s998_s8 = inlined_call_operand.vmem [shape: f32[2,16,16], index: 8, kind: input, shape index: {}]   ;;  %s999_s9 = inlined_call_operand.vmem [shape: f32[2,16,16], index: 9, kind: input, shape index: {}]   ;;  %s1000_s10 = inlined_call_operand.vmem [shape: f32[2,16,16], index: 10, kind: output, shape index: {}]  }
   0x1   :  { %v598_v0 = vld [vmem:[%s990_s3 + $0x4] sm:$0xf]  ;;  %v91_v1 = vld [vmem:[%s990_s3] sm:$0xf]  ;;  %84 = vst.msk [vmem:[#allocation3] sm:$0xff] %vm83_vm0, %v733_v2  ;;  %85 = vst.msk [vmem:[#allocation3 + $0x8] sm:$0xff] %vm83_vm0, %v733_v2 }
   0x2   :  { %86 = vst.msk [vmem:[#allocation3 + $0x10] sm:$0xff] %vm83_vm0, %v733_v2  ;;  %87 = vst.msk [vmem:[#allocation3 + $0x18] sm:$0xff] %vm83_vm0, %v733_v2  ;;  %s734_s3 = smov 19   ;;  %93 = vrot.lane.b32.xlu0 %v91_v1, %s735_s17  ;;  %s737_s19 = smov 2   ;;  %v163_v3 = vld [vmem:[%s991_s4] sm:$0xff]  ;;  %v839_v4 = vld [vmem:[%s992_s0 + $0x8] sm:$0xff] }
   0x3   :  { %88 = vst.msk [vmem:[#allocation3 + $0x20] sm:$0xff] %vm83_vm0, %v733_v2  ;;  %89 = vst.msk [vmem:[#allocation3 + $0x28] sm:$0xff] %vm83_vm0, %v733_v2  ;;  %128 = vrot.lane.b32.xlu1 %v598_v0, %s734_s3  ;;  %s738_s20 = smov 17   ;;  %s739_s21 = smov 1   ;;  %648 = vmatprep.mubr.msk.f32.mxu0 %vm198_vm2, %v163_v3  ;;  %v844_v5 = vld [vmem:[%s992_s0 + $0x18] sm:$0xff]  ;;  %v849_v6 = vld [vmem:[%s992_s0] sm:$0xff]  ;;  %v41_v12 = vmul.f32 %v839_v4, %v839_v4 }
   0x4   :  { %90 = vst.msk [vmem:[#allocation3 + $0x30] sm:$0xff] %vm83_vm0, %v733_v2  ;;  %296 = vst.msk [vmem:[#allocation2] sm:$0xff] %vm83_vm0, %v733_v2  ;;  %s740_s22 = smov 127   ;;  %s741_s23 = smov 16   ;;  %v854_v7 = vld [vmem:[%s992_s0 + $0x10] sm:$0xff]  ;;  %v43_v8 = vadd.f32 %v844_v5, %v839_v4  ;;  %v40_v9 = vmul.f32 %v849_v6, %v849_v6  ;;  %vm48_vm3 = vcmask 130048   ;;  %v45_v13 = vmul.f32 %v844_v5, %v844_v5 }
   0x5   :  { %297 = vst.msk [vmem:[#allocation2 + $0x8] sm:$0xff] %vm83_vm0, %v733_v2  ;;  %298 = vst.msk [vmem:[#allocation2 + $0x10] sm:$0xff] %vm83_vm0, %v733_v2  ;;  %s742_s24 = smov 15   ;;  %s743_s25 = smov 126   ;;  %v44_v10 = vmul.f32 %v854_v7, %v854_v7  ;;  %v42_v11 = vadd.f32 %v854_v7, %v849_v6  ;;  %v747_v20 = vmov 0   ;;  %vm96_vm4 = vcmask 85016  }
   0x6   :  { %299 = vst.msk [vmem:[#allocation2 + $0x18] sm:$0xff] %vm83_vm0, %v733_v2  ;;  %300 = vst.msk [vmem:[#allocation2 + $0x20] sm:$0xff] %vm83_vm0, %v733_v2  ;;  %98 = vrot.lane.b32.xlu0 %v91_v1, %s737_s19  ;;  %s744_s26 = smov 125   ;;  %s745_s27 = smov 14   ;;  %v52_v14 = vsel %vm48_vm3, %v43_v8, 0.0  ;;  %v47_v17 = vadd.f32 %v45_v13, %v41_v12  ;;  %728 = vset.pattern.permute.xlu1 %v747_v20  ;;  %vm131_vm5 = vcmask 216216  }
   0x7   :  { %301 = vst.msk [vmem:[#allocation2 + $0x28] sm:$0xff] %vm83_vm0, %v733_v2  ;;  %302 = vst.msk [vmem:[#allocation2 + $0x30] sm:$0xff] %vm83_vm0, %v733_v2  ;;  %133 = vrot.lane.b32.xlu1 %v598_v0, %s736_s18  ;;  %s746_s30 = smov 13   ;;  %v46_v15 = vadd.f32 %v44_v10, %v40_v9  ;;  %v49_v16 = vsel %vm48_vm3, %v42_v11, 0.0  ;;  %727 = vset.pattern.permute.xlu0 %v747_v20  ;;  %vm101_vm6 = vcmask 76816   ;;  %vm136_vm7 = vcmask 208016  }
   0x8   :  { %303 = vst.msk [vmem:[#allocation2 + $0x38] sm:$0xff] %vm83_vm0, %v733_v2  ;;  %304 = vst.msk [vmem:[#allocation2 + $0x40] sm:$0xff] %vm83_vm0, %v733_v2  ;;  %v60_v19 = vsel %vm48_vm3, %v47_v17, 0.0  ;;  %vm106_vm8 = vcmask 68616   ;;  %vm141_vm9 = vcmask 199816   ;;  %vm113_vm10 = vcmask 52224  }
   0x9   :  { %305 = vst.msk [vmem:[#allocation2 + $0x48] sm:$0xff] %vm83_vm0, %v733_v2  ;;  %v57_v18 = vsel %vm48_vm3, %v46_v15, 0.0  ;;  %vm146_vm11 = vcmask 191616   ;;  %vm151_vm12 = vcmask 183424   ;;  %vm118_vm13 = vcmask 44032   ;;  %v164_v44 = vld [vmem:[%s991_s4 + $0x8] sm:$0xff] }
   0xa   :  { %109 = vst.msk [vmem:[#allocation3 + $0x18] sm:$0xf] %vm108_vm1, %v91_v1  ;;  %103 = vrot.lane.b32.xlu0 %v91_v1, %s739_s21  ;;  %vm123_vm14 = vcmask 35840   ;;  %vm156_vm15 = vcmask 175232   ;;  %vm161_vm0 = vcmask 167040   ;;  %v165_v45 = vld [vmem:[%s991_s4 + $0x10] sm:$0xff] }
   0xb   :  { %138 = vrot.lane.b32.xlu1 %v598_v0, %s738_s20  ;;  %v166_v46 = vld [vmem:[%s991_s4 + $0x18] sm:$0xff]  ;;  %v73_v61 = vld [vmem:[%s993_s1] sm:$0xff]  ;;  %v74_v62 = vld [vmem:[%s993_s1 + $0x8] sm:$0xff]  ;;  %vm414_vm1 = vcmask 261248   ;;  %s749_s0 = smov 122  }
   0xc   :  { %v77_v3 = vld [vmem:[%s994_s2] sm:$0xff]  ;;  %v78_v11 = vld [vmem:[%s994_s2 + $0x8] sm:$0xff]  ;;  %v176_v15 = vld [vmem:[%s995_s5 + $0x10] sm:$0xff] }
   0xd   :  { %v174_v13 = vld [vmem:[%s995_s5] sm:$0xff] }
   0xe   :  { %143 = vrot.lane.b32.xlu0 %v598_v0, %s741_s23 }
   0xf   :  { %110 = vrot.lane.b32.xlu1 %v91_v1, %s740_s22 }
  0x12   :  { %115 = vrot.lane.b32.xlu0 %v91_v1, %s743_s25 }
  0x13   :  { %148 = vrot.lane.b32.xlu1 %v598_v0, %s742_s24 }
  0x16   :  { %153 = vrot.lane.b32.xlu0 %v598_v0, %s745_s27 }
  0x17   :  { %120 = vrot.lane.b32.xlu1 %v91_v1, %s744_s26 }
  0x1a   :  { %158 = vrot.lane.b32.xlu0 %v598_v0, %s746_s30 }
  0x39   :  { %53 = vadd.xlane.f32.xlu0 %v52_v14  ;;  %v175_v14 = vld [vmem:[%s995_s5 + $0x8] sm:$0xff] }
  0x3b   :  { %50 = vadd.xlane.f32.xlu1 %v49_v16  ;;  %v177_v16 = vld [vmem:[%s995_s5 + $0x18] sm:$0xff]  ;;  %s748_s5 = smov 6  }
  0x3d   :  { %58 = vadd.xlane.f32.xlu0 %v57_v18 }
  0x3f   :  { %61 = vadd.xlane.f32.xlu1 %v60_v19 }
  0x74   :  { %v94_v22 = vpop.permute.xlu0 %93 }
  0x75   :  { %v129_v21 = vpop.permute.xlu1 %128  ;;  %97 = vst.msk [vmem:[#allocation3] sm:$0xf] %vm96_vm4, %v94_v22  ;;  %vm353_vm4 = vcmask 130072  }
  0x76   :  { %132 = vst.msk [vmem:[#allocation3] sm:$0xf] %vm131_vm5, %v129_v21  ;;  %vm364_vm5 = vcmask 105472  }
  0x78   :  { %v99_v24 = vpop.permute.xlu0 %98 }
  0x79   :  { %v134_v23 = vpop.permute.xlu1 %133  ;;  %102 = vst.msk [vmem:[#allocation3 + $0x8] sm:$0xf] %vm101_vm6, %v99_v24  ;;  %vm459_vm6 = vcmask 654336  }
  0x7a   :  { %137 = vst.msk [vmem:[#allocation3 + $0x8] sm:$0xf] %vm136_vm7, %v134_v23  ;;  %vm402_vm7 = vcmask 261296  }
  0x7c   :  { %v104_v26 = vpop.permute.xlu0 %103 }
  0x7d   :  { %v139_v25 = vpop.permute.xlu1 %138  ;;  %107 = vst.msk [vmem:[#allocation3 + $0x10] sm:$0xf] %vm106_vm8, %v104_v26  ;;  %v167_v29 = vld [vmem:[#allocation3] sm:$0xff]  ;;  %vm411_vm8 = vcmask 261272  }
  0x7e   :  { %142 = vst.msk [vmem:[#allocation3 + $0x10] sm:$0xf] %vm141_vm9, %v139_v25  ;;  %vm373_vm9 = vcmask 80896  }
  0x80   :  { %v144_v28 = vpop.permute.xlu0 %143 }
  0x81   :  { %v111_v27 = vpop.permute.xlu1 %110  ;;  %147 = vst.msk [vmem:[#allocation3 + $0x18] sm:$0xf] %vm146_vm11, %v144_v28  ;;  %v168_v30 = vld [vmem:[#allocation3 + $0x8] sm:$0xff]  ;;  %vm432_vm11 = vcmask 212096  }
  0x82   :  { %114 = vst.msk [vmem:[#allocation3 + $0x20] sm:$0xf] %vm113_vm10, %v111_v27  ;;  %v677_v31 = vpack.c.bf16 %v168_v30, %v167_v29  ;;  %vm423_vm10 = vcmask 236672  }
  0x84   :  { %678 = vmatprep.subr.bf16.mxu0 %v677_v31  ;;  %v116_v33 = vpop.permute.xlu0 %115 }
  0x85   :  { %v149_v32 = vpop.permute.xlu1 %148  ;;  %119 = vst.msk [vmem:[#allocation3 + $0x28] sm:$0xf] %vm118_vm13, %v116_v33  ;;  %680 = vmatpush3.bf16.msra.mxu0 %v677_v31  ;;  %v169_v36 = vld [vmem:[#allocation3 + $0x10] sm:$0xff] }
  0x86   :  { %152 = vst.msk [vmem:[#allocation3 + $0x20] sm:$0xf] %vm151_vm12, %v149_v32 }
  0x88   :  { %v154_v35 = vpop.permute.xlu0 %153  ;;  %v170_v37 = vld [vmem:[#allocation3 + $0x18] sm:$0xff] }
  0x89   :  { %v121_v34 = vpop.permute.xlu1 %120  ;;  %157 = vst.msk [vmem:[#allocation3 + $0x28] sm:$0xf] %vm156_vm15, %v154_v35  ;;  %v681_v38 = vpack.c.bf16 %v170_v37, %v169_v36 }
  0x8a   :  { %124 = vst.msk [vmem:[#allocation3 + $0x30] sm:$0xf] %vm123_vm14, %v121_v34 }
  0x8b   :  { %682 = vmatprep.subr.bf16.mxu0 %v681_v38 }
  0x8c   :  { %684 = vmatpush3.bf16.msra.mxu0 %v681_v38  ;;  %v159_v39 = vpop.permute.xlu0 %158 }
  0x8d   :  { %162 = vst.msk [vmem:[#allocation3 + $0x30] sm:$0xf] %vm161_vm0, %v159_v39  ;;  %v171_v40 = vld [vmem:[#allocation3 + $0x20] sm:$0xff] }
  0x90   :  { %v172_v41 = vld [vmem:[#allocation3 + $0x28] sm:$0xff] }
  0x91   :  { %v685_v42 = vpack.c.bf16 %v172_v41, %v171_v40 }
  0x93   :  { %686 = vmatprep.subr.bf16.mxu0 %v685_v42 }
  0x94   :  { %688 = vmatpush3.bf16.msra.mxu0 %v685_v42  ;;  %v173_v43 = vld [vmem:[#allocation3 + $0x30] sm:$0xff] }
  0x95   :  { %646 = vmatprep.subr.mxu0 %v173_v43 }
  0x98   :  { %647 = vmatpush3.msra.mxu0 %v173_v43 }
  0x99   :  { %649 = vmatmul.mubr.msk.f32.vlgmr.msra.gmra.mrb[0].mxu0 %vm198_vm2, %v164_v44 }
  0x9a   :  { %651 = vmatprep.mubr.msk.f32.mxu0 %vm198_vm2, %v165_v45 }
  0x9d   :  { %652 = vmatmul.mubr.msk.f32.gmra.mrb[2].mxu0 %vm198_vm2, %v166_v46  ;;  %vm344_vm2 = vcmask 130096  }
  0xc6   :  { %v54_v47 = vpop.xlane.xlu0 %53 }
  0xc7   :  { %v56_v49 = vmul.f32 0.03125, %v54_v47 }
  0xc8   :  { %v51_v48 = vpop.xlane.xlu1 %50 }
  0xc9   :  { %v55_v50 = vmul.f32 0.03125, %v51_v48  ;;  %v66_v55 = vmul.f32 %v56_v49, %v56_v49 }
  0xca   :  { %v59_v52 = vpop.xlane.xlu0 %58 }
  0xcb   :  { %v65_v51 = vmul.f32 %v55_v50, %v55_v50  ;;  %v63_v53 = vmul.f32 0.03125, %v59_v52 }
  0xcc   :  { %v62_v54 = vpop.xlane.xlu1 %61 }
  0xcd   :  { %v64_v56 = vmul.f32 0.03125, %v62_v54  ;;  %v67_v57 = vsub.f32 %v63_v53, %v65_v51  ;;  %v447_v54 = vld [vmem:[%s996_s7] sm:$0xff] }
  0xcf   :  { %v68_v58 = vsub.f32 %v64_v56, %v66_v55  ;;  %v69_v59 = vadd.f32 1e-05, %v67_v57  ;;  %v435_v55 = vld [vmem:[%s997_s6] sm:$0xff] }
  0xd0   :  { %674 = vmatprep.mubr.msk.f32.mxu1 %vm459_vm6, %v435_v55 }
  0xd1   :  { %v70_v60 = vadd.f32 1e-05, %v68_v58  ;;  %729 = vrsqrt.f32 %v69_v59  ;;  %v448_v58 = vld [vmem:[%s996_s7 + $0x8] sm:$0xff]  ;;  %v605_v59 = vld [vmem:[%s998_s8 + $0x10] sm:$0xff] }
  0xd3   :  { %731 = vrsqrt.f32 %v70_v60 }
  0xdb   :  { %v730_v63 = vpop.eup %729 }
  0xdc   :  { %v75_v1 = vmul.f32 %v730_v63, %v73_v61  ;;  %v606_v61 = vld [vmem:[%s998_s8 + $0x18] sm:$0xff] }
  0xdd   :  { %v732_v0 = vpop.eup %731  ;;  %v608_v63 = vld [vmem:[%s999_s9 + $0x18] sm:$0xff] }
  0xde   :  { %v76_v2 = vmul.f32 %v732_v0, %v74_v62  ;;  %308 = vperm.xlu0 %727, %v75_v1   ;;  %v79_v8 = vmul.f32 %v75_v1, %v55_v50  ;;  %v607_v62 = vld [vmem:[%s999_s9 + $0x10] sm:$0xff] }
  0xe0   :  { %313 = vperm.xlu1 %728, %v76_v2   ;;  %v81_v9 = vsub.f32 %v77_v3, %v79_v8  ;;  %v80_v10 = vmul.f32 %v76_v2, %v56_v49 }
  0xe2   :  { %v82_v12 = vsub.f32 %v78_v11, %v80_v10 }
  0xe4   :  { %320 = vperm.xlu1 %728, %v81_v9  }
  0xe8   :  { %325 = vperm.xlu1 %728, %v82_v12  }
  0xec   :  { %180 = vperm.xlu1 %728, %v174_v13  }
  0xf0   :  { %185 = vperm.xlu1 %728, %v175_v14  }
  0xf4   :  { %190 = vperm.xlu1 %728, %v176_v15  }
  0xf8   :  { %195 = vperm.xlu1 %728, %v177_v16  }
 0x15d   :  { %v309_v17 = vpop.permute.xlu0 %308 }
 0x15e   :  { %v376_v19 = vmul.f32 %v854_v7, %v309_v17  ;;  %v316_v29 = vmul.f32 %v309_v17, %v849_v6 }
 0x15f   :  { %v314_v18 = vpop.permute.xlu1 %313 }
 0x160   :  { %v377_v22 = vmul.f32 %v844_v5, %v314_v18  ;;  %v317_v34 = vmul.f32 %v314_v18, %v839_v4 }
 0x163   :  { %v321_v20 = vpop.permute.xlu1 %320 }
 0x164   :  { %v378_v21 = vadd.f32 %v376_v19, %v321_v20  ;;  %v328_v32 = vadd.f32 %v321_v20, %v316_v29  ;;  %v436_v29 = vld [vmem:[%s997_s6 + $0x8] sm:$0xff] }
 0x166   :  { %382 = vrot.lane.b32.xlu1 %v378_v21, %s741_s23 }
 0x167   :  { %v326_v23 = vpop.permute.xlu1 %325 }
 0x168   :  { %v379_v24 = vadd.f32 %v377_v22, %v326_v23  ;;  %v329_v37 = vadd.f32 %v326_v23, %v317_v34  ;;  %v542_v34 = vld [vmem:[%s998_s8 + $0x8] sm:$0xff] }
 0x16a   :  { %384 = vrot.lane.b32.xlu0 %v379_v24, %s741_s23 }
 0x16b   :  { %v181_v25 = vpop.permute.xlu1 %180 }
 0x16c   :  { %v650_v26 = vpop.f32.mrb[0].mxu0 }
 0x16d   :  { %v277_v27 = vpop.f32.mrb[1].mxu0 }
 0x16e   :  { %v278_v30 = vadd.f32 %v277_v27, %v181_v25 }
 0x16f   :  { %v186_v28 = vpop.permute.xlu1 %185 }
 0x170   :  { %v653_v31 = vpop.f32.mrb[2].mxu0  ;;  %v330_v5 = vmul.f32 %v328_v32, %v278_v30  ;;  %v283_v35 = vadd.f32 %v650_v26, %v186_v28 }
 0x171   :  { %v287_v7 = vpop.f32.mrb[3].mxu0 }
 0x172   :  { %v331_v40 = vmul.f32 %v329_v37, %v283_v35 }
 0x173   :  { %v191_v33 = vpop.permute.xlu1 %190 }
 0x174   :  { %v288_v36 = vadd.f32 %v287_v7, %v191_v33 }
 0x176   :  { %v332_v38 = vadd.f32 %v330_v5, %v288_v36 }
 0x177   :  { %v196_v39 = vpop.permute.xlu1 %195 }
 0x178   :  { %v334_v41 = vmax.f32 %v332_v38, 0.0  ;;  %v293_v42 = vadd.f32 %v653_v31, %v196_v39 }
 0x17a   :  { %356 = vst.msk [vmem:[#allocation2 + $0x20] sm:$0xff] %vm48_vm3, %v334_v41  ;;  %v333_v43 = vadd.f32 %v331_v40, %v293_v42  ;;  %338 = vrot.lane.b32.xlu1 %v334_v41, %s748_s5  ;;  %v548_v40 = vld [vmem:[%s999_s9 + $0x8] sm:$0xff] }
 0x17c   :  { %v335_v6 = vmax.f32 %v333_v43, 0.0 }
 0x17e   :  { %357 = vst.msk [vmem:[#allocation2 + $0x28] sm:$0xff] %vm48_vm3, %v335_v6  ;;  %347 = vrot.lane.b32.xlu1 %v334_v41, %s735_s17  ;;  %340 = vrot.lane.b32.xlu0 %v335_v6, %s748_s5 }
 0x182   :  { %358 = vrot.lane.b32.xlu1 %v334_v41, %s744_s26  ;;  %349 = vrot.lane.b32.xlu0 %v335_v6, %s735_s17 }
 0x186   :  { %360 = vrot.lane.b32.xlu0 %v335_v6, %s744_s26 }
 0x1d8   :  { %v383_v4 = vpop.permute.xlu1 %382 }
 0x1d9   :  { %v388_v44 = vmul.f32 %v383_v4, %v278_v30  ;;  %v547_v4 = vld [vmem:[%s999_s9] sm:$0xff] }
 0x1db   :  { %v390_v45 = vadd.f32 %v388_v44, %v288_v36  ;;  %v541_v36 = vld [vmem:[%s998_s8] sm:$0xff]  ;;  %s750_s8 = smov 112  }
 0x1dc   :  { %v385_v46 = vpop.permute.xlu0 %384 }
 0x1dd   :  { %v392_v47 = vmax.f32 %v390_v45, 0.0  ;;  %v389_v48 = vmul.f32 %v385_v46, %v283_v35 }
 0x1df   :  { %415 = vst.msk [vmem:[#allocation2 + $0x20] sm:$0xff] %vm414_vm1, %v392_v47  ;;  %v391_v49 = vadd.f32 %v389_v48, %v293_v42  ;;  %396 = vrot.lane.b32.xlu1 %v392_v47, %s748_s5 }
 0x1e1   :  { %v393_v50 = vmax.f32 %v391_v49, 0.0 }
 0x1e3   :  { %416 = vst.msk [vmem:[#allocation2 + $0x28] sm:$0xff] %vm414_vm1, %v393_v50  ;;  %398 = vrot.lane.b32.xlu0 %v393_v50, %s748_s5  ;;  %405 = vrot.lane.b32.xlu1 %v392_v47, %s735_s17 }
 0x1e6   :  { %v441_v20 = vld [vmem:[#allocation2 + $0x20] sm:$0xff] }
 0x1e7   :  { %407 = vrot.lane.b32.xlu0 %v393_v50, %s735_s17  ;;  %367 = vrot.lane.b32.xlu1 %v334_v41, %s749_s0 }
 0x1ea   :  { %v442_v18 = vld [vmem:[#allocation2 + $0x28] sm:$0xff] }
 0x1eb   :  { %369 = vrot.lane.b32.xlu0 %v335_v6, %s749_s0  ;;  %417 = vrot.lane.b32.xlu1 %v392_v47, %s744_s26  ;;  %v697_v21 = vpack.c.bf16 %v442_v18, %v441_v20 }
 0x1ec   :  { %v339_v51 = vpop.permute.xlu1 %338 }
 0x1ed   :  { %345 = vst.msk [vmem:[#allocation2] sm:$0xff] %vm344_vm2, %v339_v51 }
 0x1ef   :  { %419 = vrot.lane.b32.xlu0 %v393_v50, %s744_s26  ;;  %426 = vrot.lane.b32.xlu1 %v392_v47, %s749_s0 }
 0x1f0   :  { %v341_v52 = vpop.permute.xlu0 %340  ;;  %v348_v53 = vpop.permute.xlu1 %347 }
 0x1f1   :  { %346 = vst.msk [vmem:[#allocation2 + $0x8] sm:$0xff] %vm344_vm2, %v341_v52 }
 0x1f2   :  { %354 = vst.msk [vmem:[#allocation2 + $0x10] sm:$0xff] %vm353_vm4, %v348_v53 }
 0x1f3   :  { %428 = vrot.lane.b32.xlu0 %v393_v50, %s749_s0  ;;  %451 = vperm.xlu1 %728, %v447_v54  }
 0x1f4   :  { %v350_v56 = vpop.permute.xlu0 %349  ;;  %v359_v57 = vpop.permute.xlu1 %358 }
 0x1f5   :  { %355 = vst.msk [vmem:[#allocation2 + $0x18] sm:$0xff] %vm353_vm4, %v350_v56 }
 0x1f6   :  { %365 = vst.msk [vmem:[#allocation2 + $0x30] sm:$0xff] %vm364_vm5, %v359_v57 }
 0x1f7   :  { %456 = vperm.xlu0 %727, %v448_v58   ;;  %558 = vrot.lane.b32.xlu1 %v605_v59, %s741_s23 }
 0x1f8   :  { %v361_v60 = vpop.permute.xlu0 %360 }
 0x1f9   :  { %366 = vst.msk [vmem:[#allocation2 + $0x38] sm:$0xff] %vm364_vm5, %v361_v60 }
 0x1fb   :  { %560 = vrot.lane.b32.xlu0 %v606_v61, %s741_s23  ;;  %573 = vrot.lane.b32.xlu1 %v607_v62, %s741_s23 }
 0x1ff   :  { %575 = vrot.lane.b32.xlu0 %v608_v63, %s741_s23 }
 0x251   :  { %v397_v0 = vpop.permute.xlu1 %396 }
 0x252   :  { %403 = vst.msk [vmem:[#allocation2] sm:$0xff] %vm402_vm7, %v397_v0 }
 0x255   :  { %v399_v1 = vpop.permute.xlu0 %398  ;;  %v406_v2 = vpop.permute.xlu1 %405 }
 0x256   :  { %404 = vst.msk [vmem:[#allocation2 + $0x8] sm:$0xff] %vm402_vm7, %v399_v1 }
 0x257   :  { %412 = vst.msk [vmem:[#allocation2 + $0x10] sm:$0xff] %vm411_vm8, %v406_v2 }
 0x259   :  { %v408_v3 = vpop.permute.xlu0 %407  ;;  %v368_v8 = vpop.permute.xlu1 %367  ;;  %v437_v11 = vld [vmem:[#allocation2] sm:$0xff] }
 0x25a   :  { %413 = vst.msk [vmem:[#allocation2 + $0x18] sm:$0xff] %vm411_vm8, %v408_v3 }
 0x25b   :  { %374 = vst.msk [vmem:[#allocation2 + $0x40] sm:$0xff] %vm373_vm9, %v368_v8 }
 0x25d   :  { %v370_v9 = vpop.permute.xlu0 %369  ;;  %v418_v10 = vpop.permute.xlu1 %417  ;;  %v438_v12 = vld [vmem:[#allocation2 + $0x8] sm:$0xff] }
 0x25e   :  { %375 = vst.msk [vmem:[#allocation2 + $0x48] sm:$0xff] %vm373_vm9, %v370_v9  ;;  %v689_v13 = vpack.c.bf16 %v438_v12, %v437_v11  ;;  %v439_v16 = vld [vmem:[#allocation2 + $0x10] sm:$0xff] }
 0x25f   :  { %424 = vst.msk [vmem:[#allocation2 + $0x30] sm:$0xff] %vm423_vm10, %v418_v10 }
 0x260   :  { %690 = vmatprep.subr.bf16.mxu1 %v689_v13 }
 0x261   :  { %v420_v14 = vpop.permute.xlu0 %419  ;;  %692 = vmatpush3.bf16.msra.mxu1 %v689_v13  ;;  %v427_v15 = vpop.permute.xlu1 %426  ;;  %v440_v17 = vld [vmem:[#allocation2 + $0x18] sm:$0xff] }
 0x262   :  { %425 = vst.msk [vmem:[#allocation2 + $0x38] sm:$0xff] %vm423_vm10, %v420_v14  ;;  %v693_v19 = vpack.c.bf16 %v440_v17, %v439_v16 }
 0x263   :  { %433 = vst.msk [vmem:[#allocation2 + $0x40] sm:$0xff] %vm432_vm11, %v427_v15 }
 0x264   :  { %694 = vmatprep.subr.bf16.mxu1 %v693_v19 }
 0x265   :  { %v429_v22 = vpop.permute.xlu0 %428  ;;  %696 = vmatpush3.bf16.msra.mxu1 %v693_v19 }
 0x266   :  { %434 = vst.msk [vmem:[#allocation2 + $0x48] sm:$0xff] %vm432_vm11, %v429_v22  ;;  %698 = vmatprep.subr.bf16.mxu1 %v697_v21  ;;  %v443_v23 = vld [vmem:[#allocation2 + $0x30] sm:$0xff] }
 0x269   :  { %700 = vmatpush3.bf16.msra.mxu1 %v697_v21  ;;  %v444_v24 = vld [vmem:[#allocation2 + $0x38] sm:$0xff] }
 0x26a   :  { %v701_v25 = vpack.c.bf16 %v444_v24, %v443_v23  ;;  %v445_v26 = vld [vmem:[#allocation2 + $0x40] sm:$0xff] }
 0x26c   :  { %702 = vmatprep.subr.bf16.mxu1 %v701_v25 }
 0x26d   :  { %704 = vmatpush3.bf16.msra.mxu1 %v701_v25  ;;  %v446_v27 = vld [vmem:[#allocation2 + $0x48] sm:$0xff] }
 0x26e   :  { %v705_v28 = vpack.c.bf16 %v446_v27, %v445_v26 }
 0x270   :  { %706 = vmatprep.subr.bf16.mxu1 %v705_v28 }
 0x271   :  { %708 = vmatpush3.bf16.msra.mxu1 %v705_v28 }
 0x272   :  { %v452_v31 = vpop.permute.xlu1 %451 }
 0x274   :  { %675 = vmatmul.mubr.msk.f32.vlgmr.msra.gmra.mrb[0].mxu1 %vm459_vm6, %v436_v29 }
 0x276   :  { %v457_v30 = vpop.permute.xlu0 %456  ;;  %v559_v7 = vpop.permute.xlu1 %558 }
 0x27a   :  { %v561_v32 = vpop.permute.xlu0 %560  ;;  %v574_v45 = vpop.permute.xlu1 %573 }
 0x27e   :  { %v576_v43 = vpop.permute.xlu0 %575 }
 0x347   :  { %v676_v33 = vpop.f32.mrb[0].mxu1 }
 0x348   :  { %v538_v5 = vadd.f32 %v676_v33, %v457_v30  ;;  %v532_v35 = vpop.f32.mrb[1].mxu1 }
 0x349   :  { %v533_v37 = vadd.f32 %v532_v35, %v452_v31 }
 0x34a   :  { %v544_v38 = vadd.f32 %v542_v34, %v538_v5  ;;  %v565_v39 = vadd.f32 %v561_v32, %v538_v5 }
 0x34b   :  { %v543_v41 = vadd.f32 %v541_v36, %v533_v37  ;;  %v564_v42 = vadd.f32 %v559_v7, %v533_v37 }
 0x34c   :  { %v546_v6 = vmul.f32 0.5, %v544_v38  ;;  %v567_v44 = vmul.f32 0.5, %v565_v39 }
 0x34d   :  { %v545_v46 = vmul.f32 0.5, %v543_v41  ;;  %v566_v47 = vmul.f32 0.5, %v564_v42 }
 0x34e   :  { %v550_v48 = vadd.f32 %v548_v40, %v546_v6  ;;  %v580_v49 = vadd.f32 %v576_v43, %v567_v44 }
 0x34f   :  { %v549_v50 = vadd.f32 %v547_v4, %v545_v46  ;;  %v579_v51 = vadd.f32 %v574_v45, %v566_v47 }
 0x350   :  { %585 = vrot.lane.b32.xlu0 %v580_v49, %s750_s8  ;;  %552 = vst.msk [vmem:[%s1000_s10 + $0x8] sm:$0xff] %vm48_vm3, %v550_v48 }
 0x351   :  { %583 = vrot.lane.b32.xlu1 %v579_v51, %s750_s8  ;;  %551 = vst.msk [vmem:[%s1000_s10] sm:$0xff] %vm48_vm3, %v549_v50 }
 0x3c2   :  { %v586_v52 = vpop.permute.xlu0 %585 }
 0x3c3   :  { %610 = vst.msk [vmem:[%s1000_s10 + $0x18] sm:$0xff] %vm48_vm3, %v586_v52  ;;  %v584_v53 = vpop.permute.xlu1 %583 }
 0x3c4   :  { %609 = vst.msk [vmem:[%s1000_s10 + $0x10] sm:$0xff] %vm48_vm3, %v584_v53 }

// kernel: _lambda_.16
= control target key start
LH: loop header
LB: loop body
LE: loop exit
PB: predicated region body
PF: predicated region fallthrough
CT: control target
= control target key end

     0   :  { %vm27_vm0 = vcmask 261120   ;;  %v221_v8 = vmov 0   ;;  %vm45_vm1 = vcmask 523264   ;;  %v222_v22 = vmov 0.0   ;;  %s226_s25 = smov 32   ;;  %s228_s26 = smov 127   ;;  %s290_s0 = inlined_call_operand.vmem [shape: f32[2,8,32], index: 0, kind: input, shape index: {}]   ;;  %s291_s1 = inlined_call_operand.vmem [shape: f32[8,1], index: 1, kind: input, shape index: {}]   ;;  %s292_s2 = inlined_call_operand.vmem [shape: f32[8,1], index: 2, kind: input, shape index: {}]   ;;  %s293_s4 = inlined_call_operand.vmem [shape: f32[8,1], index: 4, kind: input, shape index: {}]   ;;  %s294_s3 = inlined_call_operand.vmem [shape: f32[8,24], index: 3, kind: input, shape index: {}]   ;;  %s295_s5 = inlined_call_operand.vmem [shape: f32[2,8,32], index: 5, kind: output, shape index: {}]  }
   0x1   :  { %v20_v0 = vld [vmem:[%s290_s0] sm:$0xff]  ;;  %v188_v1 = vld [vmem:[%s290_s0 + $0x8] sm:$0xff]  ;;  %217 = vset.pattern.permute.xlu1 %v221_v8  ;;  %218 = vset.pattern.permute.xlu0 %v221_v8  ;;  %46 = vst.msk [vmem:[#allocation2] sm:$0xff] %vm45_vm1, %v222_v22  ;;  %47 = vst.msk [vmem:[#allocation2 + $0x8] sm:$0xff] %vm45_vm1, %v222_v22  ;;  %v225_v31 = vmov 0.0|0.0   ;;  %vm227_vm2 = vmmov 0  }
   0x2   :  { %v24_v2 = vadd.f32 %v188_v1, %v20_v0  ;;  %v23_v3 = vmul.f32 %v20_v0, %v20_v0  ;;  %v25_v4 = vmul.f32 %v188_v1, %v188_v1  ;;  %v40_v16 = vld [vmem:[%s291_s1] sm:$0xff]  ;;  %48 = vst.msk [vmem:[#allocation2 + $0x10] sm:$0xff] %vm45_vm1, %v222_v22  ;;  %s223_s1 = smov 1   ;;  %204 = vmatprep.subr.bf16.mxu0 %v225_v31  ;;  %s229_s27 = smov 31   ;;  %vm66_vm3 = vcmask 261128  }
   0x3   :  { %v42_v19 = vld [vmem:[%s292_s2] sm:$0xff]  ;;  %s224_s2 = smov 33   ;;  %201 = vmatprep.mubr.msk.f32.mxu0 %vm227_vm2, %v222_v22  ;;  %vm81_vm4 = vcmask 523528   ;;  %vm86_vm5 = vcmask 523520   ;;  %vm72_vm6 = vcmask 252928   ;;  %vm91_vm7 = vcmask 515328  }
   0x4   :  { %v28_v5 = vsel %vm27_vm0, %v24_v2, 0.0  ;;  %v26_v6 = vadd.f32 %v25_v4, %v23_v3  ;;  %v97_v32 = vld [vmem:[%s293_s4] sm:$0xff]  ;;  %vm103_vm8 = vcmask 195584   ;;  %s230_s6 = smov 96  }
   0x5   :  { %29 = vadd.xlane.f32.xlu0 %v28_v5  ;;  %v93_v41 = vld [vmem:[%s294_s3] sm:$0xff] }
   0x6   :  { %v32_v7 = vsel %vm27_vm0, %v26_v6, 0.0 }
   0x9   :  { %33 = vadd.xlane.f32.xlu0 %v32_v7 }
  0x92   :  { %v30_v9 = vpop.xlane.xlu0 %29 }
  0x93   :  { %v31_v10 = vmul.f32 0.015625, %v30_v9 }
  0x95   :  { %v36_v12 = vmul.f32 %v31_v10, %v31_v10 }
  0x96   :  { %v34_v11 = vpop.xlane.xlu0 %33 }
  0x97   :  { %v35_v13 = vmul.f32 0.015625, %v34_v11 }
  0x99   :  { %v37_v14 = vsub.f32 %v35_v13, %v36_v12 }
  0x9b   :  { %v38_v15 = vadd.f32 1e-05, %v37_v14 }
  0x9d   :  { %219 = vrsqrt.f32 %v38_v15 }
  0xa7   :  { %v220_v17 = vpop.eup %219 }
  0xa8   :  { %v41_v18 = vmul.f32 %v220_v17, %v40_v16 }
  0xaa   :  { %51 = vperm.xlu1 %217, %v41_v18   ;;  %v43_v20 = vmul.f32 %v41_v18, %v31_v10 }
  0xac   :  { %v44_v21 = vsub.f32 %v42_v19, %v43_v20 }
  0xae   :  { %57 = vperm.xlu1 %217, %v44_v21  }
 0x129   :  { %v52_v23 = vpop.permute.xlu1 %51 }
 0x12a   :  { %v54_v24 = vmul.f32 %v52_v23, %v20_v0  ;;  %v74_v25 = vmul.f32 %v188_v1, %v52_v23 }
 0x12d   :  { %v58_v26 = vpop.permute.xlu1 %57 }
 0x12e   :  { %v60_v27 = vadd.f32 %v58_v26, %v54_v24  ;;  %v75_v28 = vadd.f32 %v74_v25, %v58_v26 }
 0x130   :  { %v61_v29 = vmax.f32 %v60_v27, 0.0  ;;  %v76_v30 = vmax.f32 %v75_v28, 0.0 }
 0x132   :  { %63 = vrot.lane.b32.xlu0 %v61_v29, %s223_s1  ;;  %78 = vrot.lane.b32.xlu1 %v76_v30, %s224_s2  ;;  %68 = vst.msk [vmem:[#allocation2 + $0x8] sm:$0xff] %vm27_vm0, %v61_v29 }
 0x136   :  { %83 = vrot.lane.b32.xlu1 %v76_v30, %s226_s25 }
 0x13a   :  { %69 = vrot.lane.b32.xlu1 %v61_v29, %s228_s26 }
 0x13e   :  { %88 = vrot.lane.b32.xlu1 %v76_v30, %s229_s27 }
 0x142   :  { %100 = vperm.xlu1 %217, %v97_v32  }
 0x1a4   :  { %v64_v33 = vpop.permute.xlu0 %63  ;;  %v79_v34 = vpop.permute.xlu1 %78 }
 0x1a5   :  { %67 = vst.msk [vmem:[#allocation2] sm:$0xff] %vm66_vm3, %v64_v33 }
 0x1a6   :  { %82 = vst.msk [vmem:[#allocation2] sm:$0xff] %vm81_vm4, %v79_v34 }
 0x1a8   :  { %v84_v35 = vpop.permute.xlu1 %83 }
 0x1a9   :  { %87 = vst.msk [vmem:[#allocation2 + $0x8] sm:$0xff] %vm86_vm5, %v84_v35 }
 0x1ac   :  { %v70_v36 = vpop.permute.xlu1 %69 }
 0x1ad   :  { %73 = vst.msk [vmem:[#allocation2 + $0x10] sm:$0xff] %vm72_vm6, %v70_v36  ;;  %v94_v38 = vld [vmem:[#allocation2] sm:$0xff] }
 0x1b0   :  { %v89_v37 = vpop.permute.xlu1 %88  ;;  %v95_v39 = vld [vmem:[#allocation2 + $0x8] sm:$0xff] }
 0x1b1   :  { %92 = vst.msk [vmem:[#allocation2 + $0x10] sm:$0xff] %vm91_vm7, %v89_v37  ;;  %v205_v40 = vpack.c.bf16 %v95_v39, %v94_v38 }
 0x1b3   :  { %206 = vmatpush3.bf16.msra.mxu0 %v205_v40 }
 0x1b4   :  { %199 = vmatprep.subr.mxu0 %v222_v22 }
 0x1b8   :  { %v96_v42 = vld [vmem:[#allocation2 + $0x10] sm:$0xff] }
 0x1b9   :  { %200 = vmatpush3.msra.mxu0 %v96_v42 }
 0x1ba   :  { %202 = vmatmul.mubr.msk.f32.vlgmr.msra.gmra.mrb[0].mxu0 %vm103_vm8, %v93_v41 }
 0x1c1   :  { %v101_v43 = vpop.permute.xlu1 %100 }
 0x28d   :  { %v173_v44 = vpop.f32.mrb[0].mxu0 }
 0x28e   :  { %v174_v45 = vadd.f32 %v173_v44, %v101_v43  ;;  %v203_v46 = vpop.f32.mrb[1].mxu0 }
 0x290   :  { %179 = vrot.lane.b32.xlu1 %v174_v45, %s230_s6  ;;  %177 = vst.msk [vmem:[%s295_s5] sm:$0xff] %vm27_vm0, %v174_v45 }
 0x302   :  { %v180_v47 = vpop.permute.xlu1 %179 }
 0x303   :  { %190 = vst.msk [vmem:[%s295_s5 + $0x8] sm:$0xff] %vm27_vm0, %v180_v47 }

// kernel: _lambda_.15
= control target key start
LH: loop header
LB: loop body
LE: loop exit
PB: predicated region body
PF: predicated region fallthrough
CT: control target
= control target key end

     0   :  { %vm14_vm0 = vcmask 285696   ;;  %v576_v2 = vmov 0.0   ;;  %s577_s16 = smov 3   ;;  %s578_s17 = smov 2   ;;  %vm31_vm1 = vcmask 23568   ;;  %vm40_vm2 = vcmask 39968   ;;  %s832_s0 = inlined_call_operand.vmem [shape: f32[2,16,16], index: 0, kind: input, shape index: {}]   ;;  %s833_s2 = inlined_call_operand.vmem [shape: f32[8,1], index: 2, kind: input, shape index: {}]   ;;  %s834_s1 = inlined_call_operand.vmem [shape: f32[8,64], index: 1, kind: input, shape index: {}]   ;;  %s835_s3 = inlined_call_operand.vmem [shape: f32[2,8,32], index: 3, kind: output, shape index: {}]  }
   0x1   :  { %v503_v0 = vld [vmem:[%s832_s0 + $0x10] sm:$0xff]  ;;  %v504_v1 = vld [vmem:[%s832_s0 + $0x18] sm:$0xff]  ;;  %17 = vst.msk [vmem:[#allocation2 + $0x10] sm:$0xff] %vm14_vm0, %v576_v2  ;;  %15 = vst.msk [vmem:[#allocation2] sm:$0xff] %vm14_vm0, %v576_v2  ;;  %s579_s22 = smov 4   ;;  %s580_s23 = smov 5  }
   0x2   :  { %16 = vst.msk [vmem:[#allocation2 + $0x8] sm:$0xff] %vm14_vm0, %v576_v2  ;;  %18 = vst.msk [vmem:[#allocation2 + $0x18] sm:$0xff] %vm14_vm0, %v576_v2  ;;  %v634_v3 = vmax.f32 %v503_v0, 0.0  ;;  %v638_v4 = vmax.f32 %v504_v1, 0.0  ;;  %v20_v5 = vld [vmem:[%s832_s0 + $0x8] sm:$0xff]  ;;  %v19_v6 = vld [vmem:[%s832_s0] sm:$0xff] }
   0x3   :  { %v650_v7 = vmax.f32 %v20_v5, 0.0  ;;  %v652_v8 = vmax.f32 %v19_v6, 0.0  ;;  %s581_s0 = smov 6   ;;  %s582_s24 = smov 7   ;;  %vm305_vm3 = vcmask 523264   ;;  %vm49_vm4 = vcmask 56368  }
   0x4   :  { %185 = vrot.lane.b32.xlu1 %v634_v3, %s577_s16  ;;  %176 = vrot.lane.b32.xlu0 %v634_v3, %s578_s17  ;;  %s583_s25 = smov 8   ;;  %s584_s26 = smov 9   ;;  %307 = vst.msk [vmem:[#allocation3 + $0x8] sm:$0xff] %vm305_vm3, %v576_v2  ;;  %306 = vst.msk [vmem:[#allocation3] sm:$0xff] %vm305_vm3, %v576_v2  ;;  %vm58_vm5 = vcmask 72768   ;;  %vm67_vm6 = vcmask 89168  }
   0x5   :  { %s585_s27 = smov 10   ;;  %s586_s28 = smov 11   ;;  %308 = vst.msk [vmem:[#allocation3 + $0x10] sm:$0xff] %vm305_vm3, %v576_v2  ;;  %309 = vst.msk [vmem:[#allocation3 + $0x18] sm:$0xff] %vm305_vm3, %v576_v2  ;;  %vm76_vm7 = vcmask 105568   ;;  %vm85_vm8 = vcmask 121968  }
   0x6   :  { %s587_s29 = smov 12   ;;  %s588_s30 = smov 13   ;;  %310 = vst.msk [vmem:[#allocation3 + $0x20] sm:$0xff] %vm305_vm3, %v576_v2  ;;  %311 = vst.msk [vmem:[#allocation3 + $0x28] sm:$0xff] %vm305_vm3, %v576_v2  ;;  %vm94_vm9 = vcmask 138368   ;;  %vm103_vm10 = vcmask 154768  }
   0x7   :  { %s589_s4 = smov 14   ;;  %s590_s5 = smov 15   ;;  %312 = vst.msk [vmem:[#allocation3 + $0x30] sm:$0xff] %vm305_vm3, %v576_v2  ;;  %313 = vst.msk [vmem:[#allocation3 + $0x38] sm:$0xff] %vm305_vm3, %v576_v2  ;;  %vm112_vm11 = vcmask 171168   ;;  %vm121_vm12 = vcmask 187568  }
   0x8   :  { %187 = vrot.lane.b32.xlu1 %v638_v4, %s577_s16  ;;  %178 = vrot.lane.b32.xlu0 %v638_v4, %s578_s17  ;;  %s591_s6 = smov 16   ;;  %s592_s7 = smov 17   ;;  %vm130_vm13 = vcmask 203968   ;;  %vm139_vm14 = vcmask 220368   ;;  %vm148_vm15 = vcmask 236768   ;;  %vm157_vm0 = vcmask 253168  }
   0x9   :  { %v593_v1 = vmov 0.0|0.0   ;;  %s594_s8 = smov 32   ;;  %s595_s9 = smov 127  }
   0xa   :  { %535 = vmatprep.subr.bf16.mxu0 %v593_v1  ;;  %s596_s10 = smov 31   ;;  %s597_s11 = smov 126  }
   0xb   :  { %s598_s12 = smov 30   ;;  %s599_s13 = smov 125  }
   0xc   :  { %195 = vrot.lane.b32.xlu1 %v638_v4, %s579_s22  ;;  %193 = vrot.lane.b32.xlu0 %v634_v3, %s579_s22  ;;  %s601_s14 = smov 29   ;;  %s603_s18 = smov 96  }
  0x10   :  { %27 = vrot.lane.b32.xlu1 %v650_v7, %s578_s17  ;;  %25 = vrot.lane.b32.xlu0 %v652_v8, %s578_s17 }
  0x14   :  { %203 = vrot.lane.b32.xlu1 %v638_v4, %s580_s23  ;;  %201 = vrot.lane.b32.xlu0 %v634_v3, %s580_s23 }
  0x18   :  { %36 = vrot.lane.b32.xlu1 %v650_v7, %s577_s16  ;;  %34 = vrot.lane.b32.xlu0 %v652_v8, %s577_s16 }
  0x1c   :  { %211 = vrot.lane.b32.xlu1 %v638_v4, %s581_s0  ;;  %209 = vrot.lane.b32.xlu0 %v634_v3, %s581_s0 }
  0x20   :  { %45 = vrot.lane.b32.xlu1 %v650_v7, %s579_s22  ;;  %43 = vrot.lane.b32.xlu0 %v652_v8, %s579_s22 }
  0x24   :  { %219 = vrot.lane.b32.xlu1 %v638_v4, %s582_s24  ;;  %217 = vrot.lane.b32.xlu0 %v634_v3, %s582_s24 }
  0x28   :  { %54 = vrot.lane.b32.xlu1 %v650_v7, %s580_s23  ;;  %52 = vrot.lane.b32.xlu0 %v652_v8, %s580_s23 }
  0x2c   :  { %227 = vrot.lane.b32.xlu1 %v638_v4, %s583_s25  ;;  %225 = vrot.lane.b32.xlu0 %v634_v3, %s583_s25 }
  0x30   :  { %63 = vrot.lane.b32.xlu1 %v650_v7, %s581_s0  ;;  %61 = vrot.lane.b32.xlu0 %v652_v8, %s581_s0 }
  0x34   :  { %235 = vrot.lane.b32.xlu1 %v638_v4, %s584_s26  ;;  %233 = vrot.lane.b32.xlu0 %v634_v3, %s584_s26 }
  0x38   :  { %72 = vrot.lane.b32.xlu1 %v650_v7, %s582_s24  ;;  %70 = vrot.lane.b32.xlu0 %v652_v8, %s582_s24 }
  0x3c   :  { %243 = vrot.lane.b32.xlu1 %v638_v4, %s585_s27  ;;  %241 = vrot.lane.b32.xlu0 %v634_v3, %s585_s27 }
  0x40   :  { %81 = vrot.lane.b32.xlu1 %v650_v7, %s583_s25  ;;  %79 = vrot.lane.b32.xlu0 %v652_v8, %s583_s25 }
  0x44   :  { %251 = vrot.lane.b32.xlu1 %v638_v4, %s586_s28  ;;  %249 = vrot.lane.b32.xlu0 %v634_v3, %s586_s28 }
  0x48   :  { %90 = vrot.lane.b32.xlu1 %v650_v7, %s584_s26  ;;  %88 = vrot.lane.b32.xlu0 %v652_v8, %s584_s26 }
  0x4c   :  { %259 = vrot.lane.b32.xlu1 %v638_v4, %s587_s29  ;;  %257 = vrot.lane.b32.xlu0 %v634_v3, %s587_s29 }
  0x50   :  { %99 = vrot.lane.b32.xlu1 %v650_v7, %s585_s27  ;;  %97 = vrot.lane.b32.xlu0 %v652_v8, %s585_s27 }
  0x54   :  { %267 = vrot.lane.b32.xlu1 %v638_v4, %s588_s30  ;;  %265 = vrot.lane.b32.xlu0 %v634_v3, %s588_s30 }
  0x58   :  { %108 = vrot.lane.b32.xlu1 %v650_v7, %s586_s28  ;;  %106 = vrot.lane.b32.xlu0 %v652_v8, %s586_s28 }
  0x5c   :  { %275 = vrot.lane.b32.xlu1 %v638_v4, %s589_s4  ;;  %273 = vrot.lane.b32.xlu0 %v634_v3, %s589_s4 }
  0x60   :  { %117 = vrot.lane.b32.xlu1 %v650_v7, %s587_s29  ;;  %115 = vrot.lane.b32.xlu0 %v652_v8, %s587_s29 }
  0x64   :  { %283 = vrot.lane.b32.xlu1 %v638_v4, %s590_s5  ;;  %281 = vrot.lane.b32.xlu0 %v634_v3, %s590_s5 }
  0x68   :  { %126 = vrot.lane.b32.xlu1 %v650_v7, %s588_s30  ;;  %124 = vrot.lane.b32.xlu0 %v652_v8, %s588_s30 }
  0x6c   :  { %291 = vrot.lane.b32.xlu1 %v638_v4, %s591_s6  ;;  %289 = vrot.lane.b32.xlu0 %v634_v3, %s591_s6 }
  0x70   :  { %135 = vrot.lane.b32.xlu1 %v650_v7, %s589_s4  ;;  %133 = vrot.lane.b32.xlu0 %v652_v8, %s589_s4 }
  0x74   :  { %299 = vrot.lane.b32.xlu1 %v638_v4, %s592_s7  ;;  %297 = vrot.lane.b32.xlu0 %v634_v3, %s592_s7 }
  0x76   :  { %v186_v9 = vpop.permute.xlu1 %185  ;;  %v177_v10 = vpop.permute.xlu0 %176 }
  0x77   :  { %183 = vst.msk [vmem:[#allocation2 + $0x10] sm:$0xff] %vm31_vm1, %v177_v10 }
  0x78   :  { %144 = vrot.lane.b32.xlu1 %v650_v7, %s590_s5  ;;  %142 = vrot.lane.b32.xlu0 %v652_v8, %s590_s5  ;;  %191 = vst.msk [vmem:[#allocation2 + $0x10] sm:$0xff] %vm40_vm2, %v186_v9 }
  0x7a   :  { %v188_v11 = vpop.permute.xlu1 %187  ;;  %v179_v12 = vpop.permute.xlu0 %178 }
  0x7b   :  { %184 = vst.msk [vmem:[#allocation2 + $0x18] sm:$0xff] %vm31_vm1, %v179_v12 }
  0x7c   :  { %153 = vrot.lane.b32.xlu1 %v650_v7, %s591_s6  ;;  %151 = vrot.lane.b32.xlu0 %v652_v8, %s591_s6  ;;  %192 = vst.msk [vmem:[#allocation2 + $0x18] sm:$0xff] %vm40_vm2, %v188_v11 }
  0x7e   :  { %v196_v13 = vpop.permute.xlu1 %195  ;;  %v194_v14 = vpop.permute.xlu0 %193 }
  0x7f   :  { %200 = vst.msk [vmem:[#allocation2 + $0x18] sm:$0xff] %vm49_vm4, %v196_v13  ;;  %199 = vst.msk [vmem:[#allocation2 + $0x10] sm:$0xff] %vm49_vm4, %v194_v14 }
  0x80   :  { %162 = vrot.lane.b32.xlu1 %v650_v7, %s592_s7  ;;  %160 = vrot.lane.b32.xlu0 %v652_v8, %s592_s7 }
  0x82   :  { %v28_v15 = vpop.permute.xlu1 %27  ;;  %v26_v16 = vpop.permute.xlu0 %25 }
  0x83   :  { %33 = vst.msk [vmem:[#allocation2 + $0x8] sm:$0xff] %vm31_vm1, %v28_v15  ;;  %32 = vst.msk [vmem:[#allocation2] sm:$0xff] %vm31_vm1, %v26_v16  ;;  %vm166_vm1 = vcmask 269568   ;;  %v602_v15 = vmov 0   ;;  %v413_v16 = vld [vmem:[%s833_s2] sm:$0xff] }
  0x84   :  { %575 = vset.pattern.permute.xlu0 %v602_v15 }
  0x86   :  { %v204_v17 = vpop.permute.xlu1 %203  ;;  %v202_v18 = vpop.permute.xlu0 %201 }
  0x87   :  { %208 = vst.msk [vmem:[#allocation2 + $0x18] sm:$0xff] %vm58_vm5, %v204_v17  ;;  %207 = vst.msk [vmem:[#allocation2 + $0x10] sm:$0xff] %vm58_vm5, %v202_v18 }
  0x8a   :  { %v37_v19 = vpop.permute.xlu1 %36  ;;  %v35_v20 = vpop.permute.xlu0 %34 }
  0x8b   :  { %42 = vst.msk [vmem:[#allocation2 + $0x8] sm:$0xff] %vm40_vm2, %v37_v19  ;;  %41 = vst.msk [vmem:[#allocation2] sm:$0xff] %vm40_vm2, %v35_v20  ;;  %vm316_vm2 = vcmask 261120  }
  0x8e   :  { %v212_v21 = vpop.permute.xlu1 %211  ;;  %v210_v22 = vpop.permute.xlu0 %209 }
  0x8f   :  { %216 = vst.msk [vmem:[#allocation2 + $0x18] sm:$0xff] %vm67_vm6, %v212_v21  ;;  %215 = vst.msk [vmem:[#allocation2 + $0x10] sm:$0xff] %vm67_vm6, %v210_v22 }
  0x92   :  { %v46_v23 = vpop.permute.xlu1 %45  ;;  %v44_v24 = vpop.permute.xlu0 %43 }
  0x93   :  { %51 = vst.msk [vmem:[#allocation2 + $0x8] sm:$0xff] %vm49_vm4, %v46_v23  ;;  %50 = vst.msk [vmem:[#allocation2] sm:$0xff] %vm49_vm4, %v44_v24  ;;  %vm600_vm4 = vmmov 0  }
  0x94   :  { %532 = vmatprep.mubr.msk.f32.mxu0 %vm600_vm4, %v576_v2 }
  0x96   :  { %v220_v25 = vpop.permute.xlu1 %219  ;;  %v218_v26 = vpop.permute.xlu0 %217 }
  0x97   :  { %224 = vst.msk [vmem:[#allocation2 + $0x18] sm:$0xff] %vm76_vm7, %v220_v25  ;;  %223 = vst.msk [vmem:[#allocation2 + $0x10] sm:$0xff] %vm76_vm7, %v218_v26 }
  0x9a   :  { %v55_v27 = vpop.permute.xlu1 %54  ;;  %v53_v28 = vpop.permute.xlu0 %52 }
  0x9b   :  { %60 = vst.msk [vmem:[#allocation2 + $0x8] sm:$0xff] %vm58_vm5, %v55_v27  ;;  %59 = vst.msk [vmem:[#allocation2] sm:$0xff] %vm58_vm5, %v53_v28  ;;  %vm365_vm5 = vcmask 523520  }
  0x9e   :  { %v228_v29 = vpop.permute.xlu1 %227  ;;  %v226_v30 = vpop.permute.xlu0 %225 }
  0x9f   :  { %232 = vst.msk [vmem:[#allocation2 + $0x18] sm:$0xff] %vm85_vm8, %v228_v29  ;;  %231 = vst.msk [vmem:[#allocation2 + $0x10] sm:$0xff] %vm85_vm8, %v226_v30 }
  0xa2   :  { %v64_v31 = vpop.permute.xlu1 %63  ;;  %v62_v32 = vpop.permute.xlu0 %61 }
  0xa3   :  { %69 = vst.msk [vmem:[#allocation2 + $0x8] sm:$0xff] %vm67_vm6, %v64_v31  ;;  %68 = vst.msk [vmem:[#allocation2] sm:$0xff] %vm67_vm6, %v62_v32 }
  0xa6   :  { %v236_v33 = vpop.permute.xlu1 %235  ;;  %v234_v34 = vpop.permute.xlu0 %233 }
  0xa7   :  { %240 = vst.msk [vmem:[#allocation2 + $0x18] sm:$0xff] %vm94_vm9, %v236_v33  ;;  %239 = vst.msk [vmem:[#allocation2 + $0x10] sm:$0xff] %vm94_vm9, %v234_v34 }
  0xaa   :  { %v73_v35 = vpop.permute.xlu1 %72  ;;  %v71_v36 = vpop.permute.xlu0 %70 }
  0xab   :  { %78 = vst.msk [vmem:[#allocation2 + $0x8] sm:$0xff] %vm76_vm7, %v73_v35  ;;  %77 = vst.msk [vmem:[#allocation2] sm:$0xff] %vm76_vm7, %v71_v36 }
  0xae   :  { %v244_v37 = vpop.permute.xlu1 %243  ;;  %v242_v38 = vpop.permute.xlu0 %241 }
  0xaf   :  { %248 = vst.msk [vmem:[#allocation2 + $0x18] sm:$0xff] %vm103_vm10, %v244_v37  ;;  %247 = vst.msk [vmem:[#allocation2 + $0x10] sm:$0xff] %vm103_vm10, %v242_v38 }
  0xb2   :  { %v82_v39 = vpop.permute.xlu1 %81  ;;  %v80_v40 = vpop.permute.xlu0 %79 }
  0xb3   :  { %87 = vst.msk [vmem:[#allocation2 + $0x8] sm:$0xff] %vm85_vm8, %v82_v39  ;;  %86 = vst.msk [vmem:[#allocation2] sm:$0xff] %vm85_vm8, %v80_v40 }
  0xb6   :  { %v252_v41 = vpop.permute.xlu1 %251  ;;  %v250_v42 = vpop.permute.xlu0 %249 }
  0xb7   :  { %256 = vst.msk [vmem:[#allocation2 + $0x18] sm:$0xff] %vm112_vm11, %v252_v41  ;;  %255 = vst.msk [vmem:[#allocation2 + $0x10] sm:$0xff] %vm112_vm11, %v250_v42  ;;  %v404_v42 = vld [vmem:[%s834_s1] sm:$0xff] }
  0xba   :  { %v91_v43 = vpop.permute.xlu1 %90  ;;  %v89_v44 = vpop.permute.xlu0 %88 }
  0xbb   :  { %96 = vst.msk [vmem:[#allocation2 + $0x8] sm:$0xff] %vm94_vm9, %v91_v43  ;;  %95 = vst.msk [vmem:[#allocation2] sm:$0xff] %vm94_vm9, %v89_v44 }
  0xbe   :  { %v260_v45 = vpop.permute.xlu1 %259  ;;  %v258_v46 = vpop.permute.xlu0 %257 }
  0xbf   :  { %264 = vst.msk [vmem:[#allocation2 + $0x18] sm:$0xff] %vm121_vm12, %v260_v45  ;;  %263 = vst.msk [vmem:[#allocation2 + $0x10] sm:$0xff] %vm121_vm12, %v258_v46 }
  0xc2   :  { %v100_v47 = vpop.permute.xlu1 %99  ;;  %v98_v48 = vpop.permute.xlu0 %97 }
  0xc3   :  { %105 = vst.msk [vmem:[#allocation2 + $0x8] sm:$0xff] %vm103_vm10, %v100_v47  ;;  %104 = vst.msk [vmem:[#allocation2] sm:$0xff] %vm103_vm10, %v98_v48 }
  0xc6   :  { %v268_v49 = vpop.permute.xlu1 %267  ;;  %v266_v50 = vpop.permute.xlu0 %265 }
  0xc7   :  { %272 = vst.msk [vmem:[#allocation2 + $0x18] sm:$0xff] %vm130_vm13, %v268_v49  ;;  %271 = vst.msk [vmem:[#allocation2 + $0x10] sm:$0xff] %vm130_vm13, %v266_v50 }
  0xca   :  { %v109_v51 = vpop.permute.xlu1 %108  ;;  %v107_v52 = vpop.permute.xlu0 %106 }
  0xcb   :  { %114 = vst.msk [vmem:[#allocation2 + $0x8] sm:$0xff] %vm112_vm11, %v109_v51  ;;  %113 = vst.msk [vmem:[#allocation2] sm:$0xff] %vm112_vm11, %v107_v52 }
  0xce   :  { %v276_v53 = vpop.permute.xlu1 %275  ;;  %v274_v54 = vpop.permute.xlu0 %273 }
  0xcf   :  { %280 = vst.msk [vmem:[#allocation2 + $0x18] sm:$0xff] %vm139_vm14, %v276_v53  ;;  %279 = vst.msk [vmem:[#allocation2 + $0x10] sm:$0xff] %vm139_vm14, %v274_v54 }
  0xd2   :  { %v118_v55 = vpop.permute.xlu1 %117  ;;  %v116_v56 = vpop.permute.xlu0 %115 }
  0xd3   :  { %123 = vst.msk [vmem:[#allocation2 + $0x8] sm:$0xff] %vm121_vm12, %v118_v55  ;;  %122 = vst.msk [vmem:[#allocation2] sm:$0xff] %vm121_vm12, %v116_v56 }
  0xd6   :  { %v284_v57 = vpop.permute.xlu1 %283  ;;  %v282_v58 = vpop.permute.xlu0 %281 }
  0xd7   :  { %288 = vst.msk [vmem:[#allocation2 + $0x18] sm:$0xff] %vm148_vm15, %v284_v57  ;;  %287 = vst.msk [vmem:[#allocation2 + $0x10] sm:$0xff] %vm148_vm15, %v282_v58 }
  0xda   :  { %v127_v59 = vpop.permute.xlu1 %126  ;;  %v125_v60 = vpop.permute.xlu0 %124 }
  0xdb   :  { %132 = vst.msk [vmem:[#allocation2 + $0x8] sm:$0xff] %vm130_vm13, %v127_v59  ;;  %131 = vst.msk [vmem:[#allocation2] sm:$0xff] %vm130_vm13, %v125_v60 }
  0xde   :  { %v292_v61 = vpop.permute.xlu1 %291  ;;  %v290_v62 = vpop.permute.xlu0 %289 }
  0xdf   :  { %296 = vst.msk [vmem:[#allocation2 + $0x18] sm:$0xff] %vm157_vm0, %v292_v61  ;;  %295 = vst.msk [vmem:[#allocation2 + $0x10] sm:$0xff] %vm157_vm0, %v290_v62 }
  0xe2   :  { %v136_v63 = vpop.permute.xlu1 %135  ;;  %v134_v0 = vpop.permute.xlu0 %133 }
  0xe3   :  { %141 = vst.msk [vmem:[#allocation2 + $0x8] sm:$0xff] %vm139_vm14, %v136_v63  ;;  %140 = vst.msk [vmem:[#allocation2] sm:$0xff] %vm139_vm14, %v134_v0 }
  0xe6   :  { %v300_v3 = vpop.permute.xlu1 %299  ;;  %v298_v4 = vpop.permute.xlu0 %297 }
  0xe7   :  { %304 = vst.msk [vmem:[#allocation2 + $0x18] sm:$0xff] %vm166_vm1, %v300_v3  ;;  %303 = vst.msk [vmem:[#allocation2 + $0x10] sm:$0xff] %vm166_vm1, %v298_v4 }
  0xea   :  { %v145_v5 = vpop.permute.xlu1 %144  ;;  %v143_v6 = vpop.permute.xlu0 %142 }
  0xeb   :  { %150 = vst.msk [vmem:[#allocation2 + $0x8] sm:$0xff] %vm148_vm15, %v145_v5  ;;  %149 = vst.msk [vmem:[#allocation2] sm:$0xff] %vm148_vm15, %v143_v6 }
  0xee   :  { %v154_v7 = vpop.permute.xlu1 %153  ;;  %v152_v8 = vpop.permute.xlu0 %151  ;;  %v356_v9 = vld [vmem:[#allocation2 + $0x18] sm:$0xff]  ;;  %v355_v10 = vld [vmem:[#allocation2 + $0x10] sm:$0xff] }
  0xef   :  { %159 = vst.msk [vmem:[#allocation2 + $0x8] sm:$0xff] %vm157_vm0, %v154_v7  ;;  %158 = vst.msk [vmem:[#allocation2] sm:$0xff] %vm157_vm0, %v152_v8  ;;  %361 = vrot.lane.b32.xlu1 %v356_v9, %s594_s8  ;;  %359 = vrot.lane.b32.xlu0 %v355_v10, %s594_s8 }
  0xf2   :  { %v163_v11 = vpop.permute.xlu1 %162  ;;  %v161_v12 = vpop.permute.xlu0 %160 }
  0xf3   :  { %168 = vst.msk [vmem:[#allocation2 + $0x8] sm:$0xff] %vm166_vm1, %v163_v11  ;;  %167 = vst.msk [vmem:[#allocation2] sm:$0xff] %vm166_vm1, %v161_v12 }
  0xfa   :  { %v320_v13 = vld [vmem:[#allocation2 + $0x8] sm:$0xff]  ;;  %v319_v14 = vld [vmem:[#allocation2] sm:$0xff] }
  0xfb   :  { %325 = vrot.lane.b32.xlu1 %v320_v13, %s595_s9  ;;  %323 = vrot.lane.b32.xlu0 %v319_v14, %s595_s9  ;;  %318 = vst.msk [vmem:[#allocation3 + $0x8] sm:$0xff] %vm316_vm2, %v320_v13  ;;  %317 = vst.msk [vmem:[#allocation3] sm:$0xff] %vm316_vm2, %v319_v14 }
  0xff   :  { %374 = vrot.lane.b32.xlu1 %v356_v9, %s596_s10  ;;  %372 = vrot.lane.b32.xlu0 %v355_v10, %s596_s10 }
 0x103   :  { %337 = vrot.lane.b32.xlu1 %v320_v13, %s597_s11  ;;  %335 = vrot.lane.b32.xlu0 %v319_v14, %s597_s11 }
 0x107   :  { %386 = vrot.lane.b32.xlu1 %v356_v9, %s598_s12  ;;  %384 = vrot.lane.b32.xlu0 %v355_v10, %s598_s12 }
 0x10b   :  { %349 = vrot.lane.b32.xlu1 %v320_v13, %s599_s13  ;;  %347 = vrot.lane.b32.xlu0 %v319_v14, %s599_s13 }
 0x10f   :  { %398 = vrot.lane.b32.xlu1 %v356_v9, %s601_s14  ;;  %396 = vrot.lane.b32.xlu0 %v355_v10, %s601_s14 }
 0x113   :  { %416 = vperm.xlu0 %575, %v413_v16  }
 0x161   :  { %v362_v17 = vpop.permute.xlu1 %361  ;;  %v360_v18 = vpop.permute.xlu0 %359 }
 0x162   :  { %367 = vst.msk [vmem:[#allocation3 + $0x8] sm:$0xff] %vm365_vm5, %v362_v17  ;;  %366 = vst.msk [vmem:[#allocation3] sm:$0xff] %vm365_vm5, %v360_v18 }
 0x169   :  { %v405_v19 = vld [vmem:[#allocation3] sm:$0xff]  ;;  %v406_v20 = vld [vmem:[#allocation3 + $0x8] sm:$0xff] }
 0x16a   :  { %v536_v2 = vpack.c.bf16 %v406_v20, %v405_v19 }
 0x16c   :  { %537 = vmatpush3.bf16.msra.mxu0 %v536_v2 }
 0x16d   :  { %v326_v21 = vpop.permute.xlu1 %325  ;;  %v324_v22 = vpop.permute.xlu0 %323  ;;  %538 = vmatprep.subr.bf16.mxu0 %v593_v1 }
 0x16e   :  { %330 = vst.msk [vmem:[#allocation3 + $0x18] sm:$0xff] %vm316_vm2, %v326_v21  ;;  %329 = vst.msk [vmem:[#allocation3 + $0x10] sm:$0xff] %vm316_vm2, %v324_v22 }
 0x171   :  { %v375_v23 = vpop.permute.xlu1 %374  ;;  %v373_v24 = vpop.permute.xlu0 %372 }
 0x172   :  { %379 = vst.msk [vmem:[#allocation3 + $0x18] sm:$0xff] %vm365_vm5, %v375_v23  ;;  %378 = vst.msk [vmem:[#allocation3 + $0x10] sm:$0xff] %vm365_vm5, %v373_v24 }
 0x175   :  { %v338_v25 = vpop.permute.xlu1 %337  ;;  %v336_v26 = vpop.permute.xlu0 %335 }
 0x176   :  { %342 = vst.msk [vmem:[#allocation3 + $0x28] sm:$0xff] %vm316_vm2, %v338_v25  ;;  %341 = vst.msk [vmem:[#allocation3 + $0x20] sm:$0xff] %vm316_vm2, %v336_v26 }
 0x179   :  { %v387_v27 = vpop.permute.xlu1 %386  ;;  %v385_v28 = vpop.permute.xlu0 %384  ;;  %v407_v29 = vld [vmem:[#allocation3 + $0x10] sm:$0xff]  ;;  %v408_v30 = vld [vmem:[#allocation3 + $0x18] sm:$0xff] }
 0x17a   :  { %391 = vst.msk [vmem:[#allocation3 + $0x28] sm:$0xff] %vm365_vm5, %v387_v27  ;;  %390 = vst.msk [vmem:[#allocation3 + $0x20] sm:$0xff] %vm365_vm5, %v385_v28  ;;  %v539_v31 = vpack.c.bf16 %v408_v30, %v407_v29 }
 0x17c   :  { %540 = vmatpush3.bf16.msra.mxu0 %v539_v31 }
 0x17d   :  { %v350_v32 = vpop.permute.xlu1 %349  ;;  %v348_v33 = vpop.permute.xlu0 %347  ;;  %541 = vmatprep.subr.bf16.mxu0 %v593_v1 }
 0x17e   :  { %354 = vst.msk [vmem:[#allocation3 + $0x38] sm:$0xff] %vm316_vm2, %v350_v32  ;;  %353 = vst.msk [vmem:[#allocation3 + $0x30] sm:$0xff] %vm316_vm2, %v348_v33 }
 0x181   :  { %v399_v34 = vpop.permute.xlu1 %398  ;;  %v397_v35 = vpop.permute.xlu0 %396  ;;  %v409_v36 = vld [vmem:[#allocation3 + $0x20] sm:$0xff]  ;;  %v410_v37 = vld [vmem:[#allocation3 + $0x28] sm:$0xff] }
 0x182   :  { %403 = vst.msk [vmem:[#allocation3 + $0x38] sm:$0xff] %vm365_vm5, %v399_v34  ;;  %402 = vst.msk [vmem:[#allocation3 + $0x30] sm:$0xff] %vm365_vm5, %v397_v35  ;;  %v542_v38 = vpack.c.bf16 %v410_v37, %v409_v36 }
 0x184   :  { %543 = vmatpush3.bf16.msra.mxu0 %v542_v38 }
 0x185   :  { %544 = vmatprep.subr.bf16.mxu0 %v593_v1 }
 0x189   :  { %v411_v39 = vld [vmem:[#allocation3 + $0x30] sm:$0xff]  ;;  %v412_v40 = vld [vmem:[#allocation3 + $0x38] sm:$0xff] }
 0x18a   :  { %v545_v41 = vpack.c.bf16 %v412_v40, %v411_v39 }
 0x18c   :  { %546 = vmatpush3.bf16.msra.mxu0 %v545_v41 }
 0x18f   :  { %533 = vmatmul.mubr.msk.f32.vlgmr.msra.gmra.mrb[0].mxu0 %vm305_vm3, %v404_v42 }
 0x192   :  { %v417_v43 = vpop.permute.xlu0 %416 }
 0x262   :  { %v488_v44 = vpop.f32.mrb[0].mxu0 }
 0x263   :  { %v489_v45 = vadd.f32 %v488_v44, %v417_v43  ;;  %v534_v46 = vpop.f32.mrb[1].mxu0 }
 0x265   :  { %494 = vrot.lane.b32.xlu1 %v489_v45, %s603_s18  ;;  %492 = vst.msk [vmem:[%s835_s3] sm:$0xff] %vm316_vm2, %v489_v45 }
 0x2d7   :  { %v495_v47 = vpop.permute.xlu1 %494 }
 0x2d8   :  { %506 = vst.msk [vmem:[%s835_s3 + $0x8] sm:$0xff] %vm316_vm2, %v495_v47 }

// kernel: _lambda_.17
= control target key start
LH: loop header
LB: loop body
LE: loop exit
PB: predicated region body
PF: predicated region fallthrough
CT: control target
= control target key end

     0   :  { %vm30_vm0 = vcmask 261120   ;;  %v236_v8 = vmov 0   ;;  %vm48_vm1 = vcmask 523264   ;;  %v237_v22 = vmov 0.0   ;;  %s241_s28 = smov 32   ;;  %s243_s29 = smov 125   ;;  %s316_s0 = inlined_call_operand.vmem [shape: f32[2,8,32], index: 0, kind: input, shape index: {}]   ;;  %s317_s1 = inlined_call_operand.vmem [shape: f32[8,1], index: 1, kind: input, shape index: {}]   ;;  %s318_s2 = inlined_call_operand.vmem [shape: f32[8,1], index: 2, kind: input, shape index: {}]   ;;  %s319_s4 = inlined_call_operand.vmem [shape: f32[8,1], index: 4, kind: input, shape index: {}]   ;;  %s320_s5 = inlined_call_operand.vmem [shape: f32[2,8,32], index: 5, kind: input, shape index: {}]   ;;  %s321_s3 = inlined_call_operand.vmem [shape: f32[8,24], index: 3, kind: input, shape index: {}]   ;;  %s322_s6 = inlined_call_operand.vmem [shape: f32[2,8,32], index: 6, kind: output, shape index: {}]  }
   0x1   :  { %v23_v0 = vld [vmem:[%s316_s0] sm:$0xff]  ;;  %v202_v1 = vld [vmem:[%s316_s0 + $0x8] sm:$0xff]  ;;  %232 = vset.pattern.permute.xlu1 %v236_v8  ;;  %233 = vset.pattern.permute.xlu0 %v236_v8  ;;  %49 = vst.msk [vmem:[#allocation2] sm:$0xff] %vm48_vm1, %v237_v22  ;;  %50 = vst.msk [vmem:[#allocation2 + $0x8] sm:$0xff] %vm48_vm1, %v237_v22  ;;  %v240_v31 = vmov 0.0|0.0   ;;  %vm242_vm2 = vmmov 0  }
   0x2   :  { %v27_v2 = vadd.f32 %v202_v1, %v23_v0  ;;  %v26_v3 = vmul.f32 %v23_v0, %v23_v0  ;;  %v28_v4 = vmul.f32 %v202_v1, %v202_v1  ;;  %v43_v16 = vld [vmem:[%s317_s1] sm:$0xff]  ;;  %51 = vst.msk [vmem:[#allocation2 + $0x10] sm:$0xff] %vm48_vm1, %v237_v22  ;;  %s238_s1 = smov 3   ;;  %219 = vmatprep.subr.bf16.mxu0 %v240_v31  ;;  %s244_s30 = smov 29   ;;  %v204_v33 = vld [vmem:[%s320_s5 + $0x8] sm:$0xff]  ;;  %vm69_vm3 = vcmask 261144  }
   0x3   :  { %v45_v19 = vld [vmem:[%s318_s2] sm:$0xff]  ;;  %s239_s2 = smov 35   ;;  %216 = vmatprep.mubr.msk.f32.mxu0 %vm242_vm2, %v237_v22  ;;  %vm84_vm4 = vcmask 523544   ;;  %vm89_vm5 = vcmask 523520   ;;  %vm75_vm6 = vcmask 236544   ;;  %vm94_vm7 = vcmask 498944  }
   0x4   :  { %v31_v5 = vsel %vm30_vm0, %v27_v2, 0.0  ;;  %v29_v6 = vadd.f32 %v28_v4, %v26_v3  ;;  %v100_v32 = vld [vmem:[%s319_s4] sm:$0xff]  ;;  %vm106_vm8 = vcmask 195584   ;;  %s245_s14 = smov 96  }
   0x5   :  { %32 = vadd.xlane.f32.xlu0 %v31_v5  ;;  %v96_v42 = vld [vmem:[%s321_s3] sm:$0xff] }
   0x6   :  { %v35_v7 = vsel %vm30_vm0, %v29_v6, 0.0  ;;  %v180_v46 = vld [vmem:[%s320_s5] sm:$0xff] }
   0x9   :  { %36 = vadd.xlane.f32.xlu0 %v35_v7 }
  0x92   :  { %v33_v9 = vpop.xlane.xlu0 %32 }
  0x93   :  { %v34_v10 = vmul.f32 0.015625, %v33_v9 }
  0x95   :  { %v39_v12 = vmul.f32 %v34_v10, %v34_v10 }
  0x96   :  { %v37_v11 = vpop.xlane.xlu0 %36 }
  0x97   :  { %v38_v13 = vmul.f32 0.015625, %v37_v11 }
  0x99   :  { %v40_v14 = vsub.f32 %v38_v13, %v39_v12 }
  0x9b   :  { %v41_v15 = vadd.f32 1e-05, %v40_v14 }
  0x9d   :  { %234 = vrsqrt.f32 %v41_v15 }
  0xa7   :  { %v235_v17 = vpop.eup %234 }
  0xa8   :  { %v44_v18 = vmul.f32 %v235_v17, %v43_v16 }
  0xaa   :  { %54 = vperm.xlu1 %232, %v44_v18   ;;  %v46_v20 = vmul.f32 %v44_v18, %v34_v10 }
  0xac   :  { %v47_v21 = vsub.f32 %v45_v19, %v46_v20 }
  0xae   :  { %60 = vperm.xlu1 %232, %v47_v21  }
 0x129   :  { %v55_v23 = vpop.permute.xlu1 %54 }
 0x12a   :  { %v57_v24 = vmul.f32 %v55_v23, %v23_v0  ;;  %v77_v25 = vmul.f32 %v202_v1, %v55_v23 }
 0x12d   :  { %v61_v26 = vpop.permute.xlu1 %60 }
 0x12e   :  { %v63_v27 = vadd.f32 %v61_v26, %v57_v24  ;;  %v78_v28 = vadd.f32 %v77_v25, %v61_v26 }
 0x130   :  { %v64_v29 = vmax.f32 %v63_v27, 0.0  ;;  %v79_v30 = vmax.f32 %v78_v28, 0.0 }
 0x132   :  { %66 = vrot.lane.b32.xlu0 %v64_v29, %s238_s1  ;;  %81 = vrot.lane.b32.xlu1 %v79_v30, %s239_s2  ;;  %71 = vst.msk [vmem:[#allocation2 + $0x8] sm:$0xff] %vm30_vm0, %v64_v29 }
 0x136   :  { %86 = vrot.lane.b32.xlu1 %v79_v30, %s241_s28 }
 0x13a   :  { %72 = vrot.lane.b32.xlu1 %v64_v29, %s243_s29 }
 0x13e   :  { %91 = vrot.lane.b32.xlu1 %v79_v30, %s244_s30 }
 0x142   :  { %103 = vperm.xlu1 %232, %v100_v32  }
 0x146   :  { %187 = vrot.lane.b32.xlu1 %v204_v33, %s241_s28 }
 0x1a4   :  { %v67_v34 = vpop.permute.xlu0 %66  ;;  %v82_v35 = vpop.permute.xlu1 %81 }
 0x1a5   :  { %70 = vst.msk [vmem:[#allocation2] sm:$0xff] %vm69_vm3, %v67_v34 }
 0x1a6   :  { %85 = vst.msk [vmem:[#allocation2] sm:$0xff] %vm84_vm4, %v82_v35 }
 0x1a8   :  { %v87_v36 = vpop.permute.xlu1 %86 }
 0x1a9   :  { %90 = vst.msk [vmem:[#allocation2 + $0x8] sm:$0xff] %vm89_vm5, %v87_v36 }
 0x1ac   :  { %v73_v37 = vpop.permute.xlu1 %72 }
 0x1ad   :  { %76 = vst.msk [vmem:[#allocation2 + $0x10] sm:$0xff] %vm75_vm6, %v73_v37  ;;  %v97_v39 = vld [vmem:[#allocation2] sm:$0xff] }
 0x1b0   :  { %v92_v38 = vpop.permute.xlu1 %91  ;;  %v98_v40 = vld [vmem:[#allocation2 + $0x8] sm:$0xff] }
 0x1b1   :  { %95 = vst.msk [vmem:[#allocation2 + $0x10] sm:$0xff] %vm94_vm7, %v92_v38  ;;  %v220_v41 = vpack.c.bf16 %v98_v40, %v97_v39 }
 0x1b3   :  { %221 = vmatpush3.bf16.msra.mxu0 %v220_v41 }
 0x1b4   :  { %214 = vmatprep.subr.mxu0 %v237_v22 }
 0x1b8   :  { %v99_v43 = vld [vmem:[#allocation2 + $0x10] sm:$0xff] }
 0x1b9   :  { %215 = vmatpush3.msra.mxu0 %v99_v43 }
 0x1ba   :  { %217 = vmatmul.mubr.msk.f32.vlgmr.msra.gmra.mrb[0].mxu0 %vm106_vm8, %v96_v42 }
 0x1c1   :  { %v104_v44 = vpop.permute.xlu1 %103 }
 0x1c5   :  { %v188_v47 = vpop.permute.xlu1 %187 }
 0x28d   :  { %v176_v45 = vpop.f32.mrb[0].mxu0 }
 0x28e   :  { %v177_v48 = vadd.f32 %v176_v45, %v104_v44  ;;  %v218_v49 = vpop.f32.mrb[1].mxu0 }
 0x290   :  { %v181_v50 = vadd.f32 %v180_v46, %v177_v48  ;;  %v190_v51 = vadd.f32 %v188_v47, %v177_v48 }
 0x292   :  { %v182_v52 = vmul.f32 0.5, %v181_v50  ;;  %v191_v53 = vmul.f32 0.5, %v190_v51 }
 0x294   :  { %193 = vrot.lane.b32.xlu0 %v191_v53, %s245_s14  ;;  %183 = vst.msk [vmem:[%s322_s6] sm:$0xff] %vm30_vm0, %v182_v52 }
 0x306   :  { %v194_v54 = vpop.permute.xlu0 %193 }
 0x307   :  { %205 = vst.msk [vmem:[%s322_s6 + $0x8] sm:$0xff] %vm30_vm0, %v194_v54 }

// kernel: _lambda_.19
= control target key start
LH: loop header
LB: loop body
LE: loop exit
PB: predicated region body
PF: predicated region fallthrough
CT: control target
= control target key end

     0   :  { %vm34_vm0 = vcmask 261120   ;;  %s436_s0 = inlined_call_operand.vmem [shape: f32[2,8,32], index: 0, kind: input, shape index: {}]   ;;  %s437_s1 = inlined_call_operand.vmem [shape: f32[8,1], index: 1, kind: input, shape index: {}]   ;;  %s438_s2 = inlined_call_operand.vmem [shape: f32[8,1], index: 2, kind: input, shape index: {}]   ;;  %s439_s3 = inlined_call_operand.vmem [shape: f32[8,40], index: 3, kind: input, shape index: {}]   ;;  %s440_s4 = inlined_call_operand.vmem [shape: f32[8,1], index: 4, kind: input, shape index: {}]   ;;  %s441_s5 = inlined_call_operand.vmem [shape: f32[2,8,32], index: 5, kind: input, shape index: {}]   ;;  %s442_s6 = inlined_call_operand.vmem [shape: f32[2,8,32], index: 6, kind: input, shape index: {}]   ;;  %s443_s7 = inlined_call_operand.hbm [shape: f32[2,8,32], index: 7, kind: output, shape index: {}]  }
   0x1   :  { %v27_v0 = vld [vmem:[%s436_s0] sm:$0xff]  ;;  %v251_v1 = vld [vmem:[%s436_s0 + $0x8] sm:$0xff] }
   0x2   :  { %12 = vsyncpa [#allocation4], 0  ;;  %v31_v2 = vadd.f32 %v251_v1, %v27_v0  ;;  %v30_v3 = vmul.f32 %v27_v0, %v27_v0  ;;  %v32_v4 = vmul.f32 %v251_v1, %v251_v1  ;;  %v325_v8 = vmov 0   ;;  %v47_v16 = vld [vmem:[%s437_s1] sm:$0xff]  ;;  %s327_s1 = smov 3   ;;  %s329_s8 = smov 122  }
   0x3   :  { %297 = vset.pattern.permute.xlu1 %v325_v8  ;;  %298 = vset.pattern.permute.xlu0 %v325_v8  ;;  %v49_v19 = vld [vmem:[%s438_s2] sm:$0xff]  ;;  %vm52_vm1 = vcmask 523264   ;;  %v326_v22 = vmov 0.0   ;;  %s328_s2 = smov 6   ;;  %s330_s9 = smov 38   ;;  %v331_v31 = vmov 0.0|0.0  }
   0x4   :  { %v35_v5 = vsel %vm34_vm0, %v31_v2, 0.0  ;;  %v33_v6 = vadd.f32 %v32_v4, %v30_v3  ;;  %54 = vst.msk [vmem:[#allocation2 + $0x8] sm:$0xff] %vm52_vm1, %v326_v22  ;;  %53 = vst.msk [vmem:[#allocation2] sm:$0xff] %vm52_vm1, %v326_v22  ;;  %274 = vmatprep.subr.bf16.mxu0 %v331_v31  ;;  %s332_s10 = smov 35   ;;  %s333_s11 = smov 125   ;;  %vm336_vm2 = vmmov 0  }
   0x5   :  { %36 = vadd.xlane.f32.xlu0 %v35_v5  ;;  %55 = vst.msk [vmem:[#allocation2 + $0x10] sm:$0xff] %vm52_vm1, %v326_v22  ;;  %56 = vst.msk [vmem:[#allocation2 + $0x18] sm:$0xff] %vm52_vm1, %v326_v22  ;;  %s334_s12 = smov 32   ;;  %s335_s13 = smov 29   ;;  %271 = vmatprep.mubr.msk.f32.mxu0 %vm336_vm2, %v326_v22  ;;  %v128_v32 = vld [vmem:[%s440_s4] sm:$0xff]  ;;  %v253_v33 = vld [vmem:[%s441_s5 + $0x8] sm:$0xff] }
   0x6   :  { %v39_v7 = vsel %vm34_vm0, %v33_v6, 0.0  ;;  %57 = vst.msk [vmem:[#allocation2 + $0x20] sm:$0xff] %vm52_vm1, %v326_v22  ;;  %s337_s16 = smov 26   ;;  %v254_v34 = vld [vmem:[%s442_s6 + $0x8] sm:$0xff]  ;;  %vm80_vm3 = vcmask 261144   ;;  %vm75_vm4 = vcmask 261168  }
   0x7   :  { %vm91_vm5 = vcmask 211968   ;;  %vm100_vm6 = vcmask 523568   ;;  %vm105_vm7 = vcmask 523544   ;;  %vm86_vm8 = vcmask 236544   ;;  %v122_v50 = vld [vmem:[%s439_s3] sm:$0xff]  ;;  %s338_s3 = smov 96  }
   0x8   :  { %vm110_vm9 = vcmask 523520   ;;  %vm115_vm10 = vcmask 498944   ;;  %vm120_vm11 = vcmask 474368   ;;  %vm134_vm12 = vcmask 326656   ;;  %v208_v55 = vld [vmem:[%s441_s5] sm:$0xff]  ;;  %s339_s26 = smov [#allocation3]  }
   0x9   :  { %40 = vadd.xlane.f32.xlu0 %v39_v7  ;;  %v211_v60 = vld [vmem:[%s442_s6] sm:$0xff]  ;;  %s240_s27 = sshll.u32 %s339_s26, 4  ;;  %s241_s27 = int_to_ptr.vmem [resolvable:$true] %s240_s27 }
   0xa   :  { %s301_s5 = scalar_lea.vmem %s241_s27, 256  ;;  %p306_p1 = scmp.lt.s32.totalorder %s241_s27, %s241_s27 }
   0xb   :  { %p302_p0 = scmp.ne.s32.totalorder %s241_s27, %s301_s5  ;;  %p307_p2 = scmp.lt.s32.totalorder %s301_s5, %s301_s5 }
   0xd   :  { %p308_p3 = por %p307_p2, %p306_p1 }
   0xf   :  { %p309_p4 = pnand %p308_p3, %p302_p0 }
  0x92   :  { %v37_v9 = vpop.xlane.xlu0 %36 }
  0x93   :  { %v38_v10 = vmul.f32 0.015625, %v37_v9 }
  0x95   :  { %v43_v12 = vmul.f32 %v38_v10, %v38_v10 }
  0x96   :  { %v41_v11 = vpop.xlane.xlu0 %40 }
  0x97   :  { %v42_v13 = vmul.f32 0.015625, %v41_v11 }
  0x99   :  { %v44_v14 = vsub.f32 %v42_v13, %v43_v12 }
  0x9b   :  { %v45_v15 = vadd.f32 1e-05, %v44_v14 }
  0x9d   :  { %299 = vrsqrt.f32 %v45_v15 }
  0xa7   :  { %v300_v17 = vpop.eup %299 }
  0xa8   :  { %v48_v18 = vmul.f32 %v300_v17, %v47_v16 }
  0xaa   :  { %60 = vperm.xlu1 %297, %v48_v18   ;;  %v50_v20 = vmul.f32 %v48_v18, %v38_v10 }
  0xac   :  { %v51_v21 = vsub.f32 %v49_v19, %v50_v20 }
  0xae   :  { %66 = vperm.xlu1 %297, %v51_v21  }
 0x129   :  { %v61_v23 = vpop.permute.xlu1 %60 }
 0x12a   :  { %v63_v24 = vmul.f32 %v61_v23, %v27_v0  ;;  %v93_v26 = vmul.f32 %v251_v1, %v61_v23 }
 0x12d   :  { %v67_v25 = vpop.permute.xlu1 %66 }
 0x12e   :  { %v69_v27 = vadd.f32 %v67_v25, %v63_v24  ;;  %v94_v29 = vadd.f32 %v93_v26, %v67_v25 }
 0x130   :  { %v70_v28 = vmax.f32 %v69_v27, 0.0  ;;  %v95_v30 = vmax.f32 %v94_v29, 0.0 }
 0x132   :  { %77 = vrot.lane.b32.xlu1 %v70_v28, %s327_s1  ;;  %72 = vrot.lane.b32.xlu0 %v70_v28, %s328_s2  ;;  %82 = vst.msk [vmem:[#allocation2 + $0x10] sm:$0xff] %vm34_vm0, %v70_v28 }
 0x136   :  { %88 = vrot.lane.b32.xlu0 %v70_v28, %s329_s8  ;;  %97 = vrot.lane.b32.xlu1 %v95_v30, %s330_s9 }
 0x13a   :  { %102 = vrot.lane.b32.xlu1 %v95_v30, %s332_s10  ;;  %131 = vperm.xlu0 %298, %v128_v32  }
 0x13e   :  { %83 = vrot.lane.b32.xlu1 %v70_v28, %s333_s11 }
 0x142   :  { %107 = vrot.lane.b32.xlu1 %v95_v30, %s334_s12 }
 0x146   :  { %112 = vrot.lane.b32.xlu1 %v95_v30, %s335_s13 }
 0x14a   :  { %117 = vrot.lane.b32.xlu1 %v95_v30, %s337_s16 }
 0x14e   :  { %217 = vrot.lane.b32.xlu1 %v253_v33, %s334_s12 }
 0x152   :  { %225 = vrot.lane.b32.xlu1 %v254_v34, %s334_s12 }
 0x1a4   :  { %v78_v35 = vpop.permute.xlu1 %77  ;;  %v73_v36 = vpop.permute.xlu0 %72 }
 0x1a5   :  { %81 = vst.msk [vmem:[#allocation2 + $0x8] sm:$0xff] %vm80_vm3, %v78_v35 }
 0x1a6   :  { %76 = vst.msk [vmem:[#allocation2] sm:$0xff] %vm75_vm4, %v73_v36 }
 0x1a8   :  { %v89_v37 = vpop.permute.xlu0 %88  ;;  %v98_v38 = vpop.permute.xlu1 %97 }
 0x1a9   :  { %92 = vst.msk [vmem:[#allocation2 + $0x20] sm:$0xff] %vm91_vm5, %v89_v37 }
 0x1aa   :  { %101 = vst.msk [vmem:[#allocation2] sm:$0xff] %vm100_vm6, %v98_v38 }
 0x1ac   :  { %v103_v39 = vpop.permute.xlu1 %102 }
 0x1ad   :  { %106 = vst.msk [vmem:[#allocation2 + $0x8] sm:$0xff] %vm105_vm7, %v103_v39 }
 0x1b0   :  { %v84_v40 = vpop.permute.xlu1 %83 }
 0x1b1   :  { %87 = vst.msk [vmem:[#allocation2 + $0x18] sm:$0xff] %vm86_vm8, %v84_v40  ;;  %v123_v42 = vld [vmem:[#allocation2] sm:$0xff] }
 0x1b4   :  { %v108_v41 = vpop.permute.xlu1 %107  ;;  %v124_v43 = vld [vmem:[#allocation2 + $0x8] sm:$0xff] }
 0x1b5   :  { %111 = vst.msk [vmem:[#allocation2 + $0x10] sm:$0xff] %vm110_vm9, %v108_v41  ;;  %v275_v44 = vpack.c.bf16 %v124_v43, %v123_v42 }
 0x1b7   :  { %276 = vmatpush3.bf16.msra.mxu0 %v275_v44 }
 0x1b8   :  { %v113_v45 = vpop.permute.xlu1 %112  ;;  %277 = vmatprep.subr.bf16.mxu0 %v331_v31 }
 0x1b9   :  { %116 = vst.msk [vmem:[#allocation2 + $0x18] sm:$0xff] %vm115_vm10, %v113_v45  ;;  %v132_v52 = vpop.permute.xlu0 %131 }
 0x1bc   :  { %v118_v46 = vpop.permute.xlu1 %117  ;;  %v125_v47 = vld [vmem:[#allocation2 + $0x10] sm:$0xff] }
 0x1bd   :  { %121 = vst.msk [vmem:[#allocation2 + $0x20] sm:$0xff] %vm120_vm11, %v118_v46 }
 0x1c0   :  { %v126_v48 = vld [vmem:[#allocation2 + $0x18] sm:$0xff]  ;;  %v218_v53 = vpop.permute.xlu1 %217 }
 0x1c1   :  { %v278_v49 = vpack.c.bf16 %v126_v48, %v125_v47 }
 0x1c3   :  { %279 = vmatpush3.bf16.msra.mxu0 %v278_v49 }
 0x1c4   :  { %269 = vmatprep.subr.mxu0 %v326_v22  ;;  %v127_v51 = vld [vmem:[#allocation2 + $0x20] sm:$0xff]  ;;  %v226_v61 = vpop.permute.xlu1 %225 }
 0x1c7   :  { %270 = vmatpush3.msra.mxu0 %v127_v51 }
 0x1c8   :  { %272 = vmatmul.mubr.msk.f32.vlgmr.msra.gmra.mrb[0].mxu0 %vm134_vm12, %v122_v50 }
 0x29b   :  { %v204_v54 = vpop.f32.mrb[0].mxu0 }
 0x29c   :  { %v205_v56 = vadd.f32 %v204_v54, %v132_v52  ;;  %v273_v57 = vpop.f32.mrb[1].mxu0 }
 0x29e   :  { %v209_v58 = vadd.f32 %v208_v55, %v205_v56  ;;  %v220_v59 = vadd.f32 %v218_v53, %v205_v56 }
 0x2a0   :  { %v210_v62 = vmul.f32 0.5, %v209_v58  ;;  %v221_v63 = vmul.f32 0.5, %v220_v59 }
 0x2a2   :  { %v212_v0 = vadd.f32 %v211_v60, %v210_v62  ;;  %v228_v1 = vadd.f32 %v226_v61, %v221_v63 }
 0x2a4   :  { %213 = vst.msk [vmem:[#allocation3] sm:$0xff] %vm34_vm0, %v212_v0  ;;  %230 = vrot.lane.b32.xlu0 %v228_v1, %s338_s3 }
 0x316   :  { %v231_v2 = vpop.permute.xlu0 %230 }
 0x317   :  { %234 = vst.msk [vmem:[#allocation3 + $0x8] sm:$0xff] %vm34_vm0, %v231_v2 }
 0x318   :  { %312 = shalt.err (!%p309_p4)
}
 0x319   :  { %s313_s28 = scalar_lea.hbm %s443_s7, 256 }
 0x31a   :  { %p314_p5 = scmp.ne.s32.totalorder %s443_s7, %s313_s28  ;;  %p317_p6 = scmp.lt.u32.totalorder %s313_s28, %s443_s7 }
 0x31c   :  { %p319_p7 = pnand %p317_p6, %p314_p5 }
 0x31e   :  { %322 = shalt.err (!%p319_p7)
}
 0x31f   :  { %s340_s8 = smov 128   ;;  %s341_s9 = smov 8  }
 0x320   :  { %246 = dma.vmem_to_hbm [thread:$0]  %s241_s27, 256, %s443_s7, [#allocation4], %s340_s8, %s340_s8, %s341_s9  }
 0x321   :  { %323 = dma.done.wait [#allocation4], 256  }
 0x322   :  { %324 = vsyncadd [#allocation4], 4294967040 }
 0x323   :  { %250 = vsyncpa [#allocation4], 1 }

// kernel: _lambda_.18
= control target key start
LH: loop header
LB: loop body
LE: loop exit
PB: predicated region body
PF: predicated region fallthrough
CT: control target
= control target key end

     0   :  { %vm27_vm0 = vcmask 261120   ;;  %v258_v8 = vmov 0   ;;  %vm45_vm1 = vcmask 523264   ;;  %v259_v22 = vmov 0.0   ;;  %s262_s25 = smov 126   ;;  %s263_s26 = smov 34   ;;  %s338_s0 = inlined_call_operand.vmem [shape: f32[2,8,32], index: 0, kind: input, shape index: {}]   ;;  %s339_s1 = inlined_call_operand.vmem [shape: f32[8,1], index: 1, kind: input, shape index: {}]   ;;  %s340_s2 = inlined_call_operand.vmem [shape: f32[8,1], index: 2, kind: input, shape index: {}]   ;;  %s341_s4 = inlined_call_operand.vmem [shape: f32[8,1], index: 4, kind: input, shape index: {}]   ;;  %s342_s3 = inlined_call_operand.vmem [shape: f32[8,40], index: 3, kind: input, shape index: {}]   ;;  %s343_s5 = inlined_call_operand.vmem [shape: f32[2,8,32], index: 5, kind: output, shape index: {}]  }
   0x1   :  { %v20_v0 = vld [vmem:[%s338_s0] sm:$0xff]  ;;  %v212_v1 = vld [vmem:[%s338_s0 + $0x8] sm:$0xff]  ;;  %254 = vset.pattern.permute.xlu1 %v258_v8  ;;  %255 = vset.pattern.permute.xlu0 %v258_v8  ;;  %47 = vst.msk [vmem:[#allocation2 + $0x8] sm:$0xff] %vm45_vm1, %v259_v22  ;;  %46 = vst.msk [vmem:[#allocation2] sm:$0xff] %vm45_vm1, %v259_v22  ;;  %v264_v31 = vmov 0.0|0.0   ;;  %s265_s27 = smov 33  }
   0x2   :  { %v24_v2 = vadd.f32 %v212_v1, %v20_v0  ;;  %v23_v3 = vmul.f32 %v20_v0, %v20_v0  ;;  %v25_v4 = vmul.f32 %v212_v1, %v212_v1  ;;  %v40_v16 = vld [vmem:[%s339_s1] sm:$0xff]  ;;  %48 = vst.msk [vmem:[#allocation2 + $0x10] sm:$0xff] %vm45_vm1, %v259_v22  ;;  %49 = vst.msk [vmem:[#allocation2 + $0x18] sm:$0xff] %vm45_vm1, %v259_v22  ;;  %s260_s1 = smov 1   ;;  %234 = vmatprep.subr.bf16.mxu0 %v264_v31  ;;  %s266_s28 = smov 127   ;;  %vm269_vm2 = vmmov 0  }
   0x3   :  { %v42_v19 = vld [vmem:[%s340_s2] sm:$0xff]  ;;  %50 = vst.msk [vmem:[#allocation2 + $0x20] sm:$0xff] %vm45_vm1, %v259_v22  ;;  %s261_s2 = smov 2   ;;  %s267_s29 = smov 32   ;;  %231 = vmatprep.mubr.msk.f32.mxu0 %vm269_vm2, %v259_v22  ;;  %vm73_vm3 = vcmask 261128   ;;  %vm68_vm4 = vcmask 261136  }
   0x4   :  { %v28_v5 = vsel %vm27_vm0, %v24_v2, 0.0  ;;  %v26_v6 = vadd.f32 %v25_v4, %v23_v3  ;;  %s268_s30 = smov 31   ;;  %v121_v32 = vld [vmem:[%s341_s4] sm:$0xff]  ;;  %s270_s8 = smov 30   ;;  %vm84_vm5 = vcmask 244736   ;;  %vm93_vm6 = vcmask 523536  }
   0x5   :  { %29 = vadd.xlane.f32.xlu0 %v28_v5  ;;  %vm98_vm7 = vcmask 523528   ;;  %vm79_vm8 = vcmask 252928   ;;  %vm103_vm9 = vcmask 523520   ;;  %vm108_vm10 = vcmask 515328   ;;  %v115_v48 = vld [vmem:[%s342_s3] sm:$0xff]  ;;  %s271_s10 = smov 96  }
   0x6   :  { %v32_v7 = vsel %vm27_vm0, %v26_v6, 0.0  ;;  %vm113_vm11 = vcmask 507136   ;;  %vm127_vm12 = vcmask 326656  }
   0x9   :  { %33 = vadd.xlane.f32.xlu0 %v32_v7 }
  0x92   :  { %v30_v9 = vpop.xlane.xlu0 %29 }
  0x93   :  { %v31_v10 = vmul.f32 0.015625, %v30_v9 }
  0x95   :  { %v36_v12 = vmul.f32 %v31_v10, %v31_v10 }
  0x96   :  { %v34_v11 = vpop.xlane.xlu0 %33 }
  0x97   :  { %v35_v13 = vmul.f32 0.015625, %v34_v11 }
  0x99   :  { %v37_v14 = vsub.f32 %v35_v13, %v36_v12 }
  0x9b   :  { %v38_v15 = vadd.f32 1e-05, %v37_v14 }
  0x9d   :  { %256 = vrsqrt.f32 %v38_v15 }
  0xa7   :  { %v257_v17 = vpop.eup %256 }
  0xa8   :  { %v41_v18 = vmul.f32 %v257_v17, %v40_v16 }
  0xaa   :  { %53 = vperm.xlu1 %254, %v41_v18   ;;  %v43_v20 = vmul.f32 %v41_v18, %v31_v10 }
  0xac   :  { %v44_v21 = vsub.f32 %v42_v19, %v43_v20 }
  0xae   :  { %59 = vperm.xlu1 %254, %v44_v21  }
 0x129   :  { %v54_v23 = vpop.permute.xlu1 %53 }
 0x12a   :  { %v56_v24 = vmul.f32 %v54_v23, %v20_v0  ;;  %v86_v26 = vmul.f32 %v212_v1, %v54_v23 }
 0x12d   :  { %v60_v25 = vpop.permute.xlu1 %59 }
 0x12e   :  { %v62_v27 = vadd.f32 %v60_v25, %v56_v24  ;;  %v87_v29 = vadd.f32 %v86_v26, %v60_v25 }
 0x130   :  { %v63_v28 = vmax.f32 %v62_v27, 0.0  ;;  %v88_v30 = vmax.f32 %v87_v29, 0.0 }
 0x132   :  { %70 = vrot.lane.b32.xlu1 %v63_v28, %s260_s1  ;;  %65 = vrot.lane.b32.xlu0 %v63_v28, %s261_s2  ;;  %75 = vst.msk [vmem:[#allocation2 + $0x10] sm:$0xff] %vm27_vm0, %v63_v28 }
 0x136   :  { %81 = vrot.lane.b32.xlu0 %v63_v28, %s262_s25  ;;  %90 = vrot.lane.b32.xlu1 %v88_v30, %s263_s26 }
 0x13a   :  { %95 = vrot.lane.b32.xlu1 %v88_v30, %s265_s27  ;;  %124 = vperm.xlu0 %255, %v121_v32  }
 0x13e   :  { %76 = vrot.lane.b32.xlu1 %v63_v28, %s266_s28 }
 0x142   :  { %100 = vrot.lane.b32.xlu1 %v88_v30, %s267_s29 }
 0x146   :  { %105 = vrot.lane.b32.xlu1 %v88_v30, %s268_s30 }
 0x14a   :  { %110 = vrot.lane.b32.xlu1 %v88_v30, %s270_s8 }
 0x1a4   :  { %v71_v33 = vpop.permute.xlu1 %70  ;;  %v66_v34 = vpop.permute.xlu0 %65 }
 0x1a5   :  { %74 = vst.msk [vmem:[#allocation2 + $0x8] sm:$0xff] %vm73_vm3, %v71_v33 }
 0x1a6   :  { %69 = vst.msk [vmem:[#allocation2] sm:$0xff] %vm68_vm4, %v66_v34 }
 0x1a8   :  { %v82_v35 = vpop.permute.xlu0 %81  ;;  %v91_v36 = vpop.permute.xlu1 %90 }
 0x1a9   :  { %85 = vst.msk [vmem:[#allocation2 + $0x20] sm:$0xff] %vm84_vm5, %v82_v35 }
 0x1aa   :  { %94 = vst.msk [vmem:[#allocation2] sm:$0xff] %vm93_vm6, %v91_v36 }
 0x1ac   :  { %v96_v37 = vpop.permute.xlu1 %95 }
 0x1ad   :  { %99 = vst.msk [vmem:[#allocation2 + $0x8] sm:$0xff] %vm98_vm7, %v96_v37 }
 0x1b0   :  { %v77_v38 = vpop.permute.xlu1 %76 }
 0x1b1   :  { %80 = vst.msk [vmem:[#allocation2 + $0x18] sm:$0xff] %vm79_vm8, %v77_v38  ;;  %v116_v40 = vld [vmem:[#allocation2] sm:$0xff] }
 0x1b4   :  { %v101_v39 = vpop.permute.xlu1 %100  ;;  %v117_v41 = vld [vmem:[#allocation2 + $0x8] sm:$0xff] }
 0x1b5   :  { %104 = vst.msk [vmem:[#allocation2 + $0x10] sm:$0xff] %vm103_vm9, %v101_v39  ;;  %v235_v42 = vpack.c.bf16 %v117_v41, %v116_v40 }
 0x1b7   :  { %236 = vmatpush3.bf16.msra.mxu0 %v235_v42 }
 0x1b8   :  { %v106_v43 = vpop.permute.xlu1 %105  ;;  %237 = vmatprep.subr.bf16.mxu0 %v264_v31 }
 0x1b9   :  { %109 = vst.msk [vmem:[#allocation2 + $0x18] sm:$0xff] %vm108_vm10, %v106_v43  ;;  %v125_v50 = vpop.permute.xlu0 %124 }
 0x1bc   :  { %v111_v44 = vpop.permute.xlu1 %110  ;;  %v118_v45 = vld [vmem:[#allocation2 + $0x10] sm:$0xff] }
 0x1bd   :  { %114 = vst.msk [vmem:[#allocation2 + $0x20] sm:$0xff] %vm113_vm11, %v111_v44 }
 0x1c0   :  { %v119_v46 = vld [vmem:[#allocation2 + $0x18] sm:$0xff] }
 0x1c1   :  { %v238_v47 = vpack.c.bf16 %v119_v46, %v118_v45 }
 0x1c3   :  { %239 = vmatpush3.bf16.msra.mxu0 %v238_v47 }
 0x1c4   :  { %229 = vmatprep.subr.mxu0 %v259_v22  ;;  %v120_v49 = vld [vmem:[#allocation2 + $0x20] sm:$0xff] }
 0x1c7   :  { %230 = vmatpush3.msra.mxu0 %v120_v49 }
 0x1c8   :  { %232 = vmatmul.mubr.msk.f32.vlgmr.msra.gmra.mrb[0].mxu0 %vm127_vm12, %v115_v48 }
 0x29b   :  { %v197_v51 = vpop.f32.mrb[0].mxu0 }
 0x29c   :  { %v198_v52 = vadd.f32 %v197_v51, %v125_v50  ;;  %v233_v53 = vpop.f32.mrb[1].mxu0 }
 0x29e   :  { %203 = vrot.lane.b32.xlu1 %v198_v52, %s271_s10  ;;  %201 = vst.msk [vmem:[%s343_s5] sm:$0xff] %vm27_vm0, %v198_v52 }
 0x310   :  { %v204_v54 = vpop.permute.xlu1 %203 }
 0x311   :  { %214 = vst.msk [vmem:[%s343_s5 + $0x8] sm:$0xff] %vm27_vm0, %v204_v54 }

</bundles_post_ra>
